<compile_context>
chip_gen: v6e
topology: v6e:2x2x1
jax: 0.10.0
libtpu: 0.0.40
codegen_flags: <defaults>
</compile_context>

<pallas_src>
import functools

import jax
import jax.numpy as jnp
from jax import lax
from jax.experimental import pallas as pl
from jax.experimental.pallas import tpu as pltpu

# ---------------------------------------------------------------------------
# Problem sizes (gradient_loss hard-codes a 32x32 ray patch per batch element)
# ---------------------------------------------------------------------------
B = 2          # batch (views)
H = W = 32     # spatial patch of rays
R = H * W      # rays per batch element = 1024 (lane axis)
S = 8          # samples along each ray (sdf / hessian)
LANES = 128
N_OUT = 8      # [eik, rgb, smooth, normal_l1, normal_cos, depth, curvature, total]

U_THRESHOLD = 0.3
U_GRAD_THRESHOLD = 0.03

# Channel offsets inside the fused slab [B, C_TOTAL, R]
C_SDF = 0                   # S channels
C_OUT = C_SDF + S           # 1
C_GEIK = C_OUT + 1          # 3
C_GEIKN = C_GEIK + 3        # 3
C_RGBP = C_GEIKN + 3        # 3
C_RGBG = C_RGBP + 3         # 3
C_NRMP = C_RGBG + 3         # 3
C_NRMG = C_NRMP + 3         # 3
C_DPRED = C_NRMG + 3        # 1
C_DGT = C_DPRED + 1         # 1
C_MASK = C_DGT + 1          # 1
C_UNC = C_MASK + 1          # 1
C_UNCG = C_UNC + 1          # 1
C_HESS = C_UNCG + 1         # 3*S channels, component-major (x0..x7, y0..y7, z0..z7)
C_TOTAL = C_HESS + 3 * S    # 56

# Rows of the phase-1 reduction stack (summed with one MXU ones-matmul / batch)
(I_EIK, I_RGB, I_NOTOUT, I_SMOOTH, I_NL1, I_NCOS, I_NMASK, I_CURV,
 I_A00, I_A01, I_A11, I_B00, I_B10) = range(13)
K_STACK = 13


def _finite(x):
    # nan_to_num(nan=0, posinf=0, neginf=0)
    return jnp.where(jnp.isfinite(x), x, 0.0)


# ---------------------------------------------------------------------------
# Kernel (single grid step; everything reduced in one pass)
# ---------------------------------------------------------------------------
def _recon_loss_kernel(slab_ref, out_ref, *, lambdas):
    lam_rgb, lam_eik, lam_smooth, lam_normal, lam_depth, lam_curv = lambdas
    f32 = jnp.float32

    # ----- masks -------------------------------------------------------------
    sdf = slab_ref[:, C_SDF:C_SDF + S, :]               # (B, S, R)
    outside = slab_ref[:, C_OUT:C_OUT + 1, :]           # (B, 1, R), {0,1}
    not_out = 1.0 - outside
    fg = jnp.logical_and(jnp.max(sdf, axis=1, keepdims=True) > 0.0,
                         jnp.min(sdf, axis=1, keepdims=True) < 0.0).astype(f32)

    msk = slab_ref[:, C_MASK:C_MASK + 1, :]
    unc = slab_ref[:, C_UNC:C_UNC + 1, :]
    uncg = slab_ref[:, C_UNCG:C_UNCG + 1, :]
    nmask = jnp.logical_or(
        msk == 1.0,
        jnp.logical_and(jnp.logical_and(msk == 0.0, unc < U_THRESHOLD),
                        uncg < U_GRAD_THRESHOLD)).astype(f32)
    mask_n = not_out * fg * nmask                        # normal-loss mask
    md = not_out * fg                                    # depth-loss mask

    # ----- eikonal error (mask=None -> mean over all rays) --------------------
    g1 = slab_ref[:, C_GEIK:C_GEIK + 3, :]               # (B, 3, R)
    g1_sq = jnp.sum(g1 * g1, axis=1, keepdims=True)
    eik_err = _finite((jnp.sqrt(g1_sq) - 1.0) ** 2)

    # ----- rgb L1 error, mask = ~outside --------------------------------------
    rgb_err = jnp.sum(
        jnp.abs(slab_ref[:, C_RGBP:C_RGBP + 3, :] - slab_ref[:, C_RGBG:C_RGBG + 3, :]),
        axis=1, keepdims=True) * not_out

    # ----- smooth error (mask=None -> mean) ------------------------------------
    g2 = slab_ref[:, C_GEIKN:C_GEIKN + 3, :]
    inv1 = pl.reciprocal(jnp.sqrt(g1_sq) + 1e-6)                             # EUP
    inv2 = pl.reciprocal(jnp.sqrt(jnp.sum(g2 * g2, axis=1, keepdims=True)) + 1e-6)
    dn = g1 * inv1 - g2 * inv2
    smooth_err = jnp.sqrt(jnp.sum(dn * dn, axis=1, keepdims=True))

    # ----- normal L1 / cos error, mask = ~outside & fg & normal_mask ----------
    npred = slab_ref[:, C_NRMP:C_NRMP + 3, :]
    ngt = slab_ref[:, C_NRMG:C_NRMG + 3, :]
    # F.normalize(p=2, eps=1e-12): x / max(||x||, 1e-12) == x * rsqrt(max(||x||^2, 1e-24))
    npred_n = npred * lax.rsqrt(
        jnp.maximum(jnp.sum(npred * npred, axis=1, keepdims=True), 1e-24))
    ngt_n = ngt * lax.rsqrt(
        jnp.maximum(jnp.sum(ngt * ngt, axis=1, keepdims=True), 1e-24))
    l1n = jnp.sum(jnp.abs(npred_n - ngt_n), axis=1, keepdims=True) * mask_n
    cosn = (1.0 - jnp.sum(npred_n * ngt_n, axis=1, keepdims=True)) * mask_n

    # ----- curvature (|laplacian|), mask = ~outside ----------------------------
    hx = slab_ref[:, C_HESS:C_HESS + S, :]
    hy = slab_ref[:, C_HESS + S:C_HESS + 2 * S, :]
    hz = slab_ref[:, C_HESS + 2 * S:C_HESS + 3 * S, :]
    lap = _finite(jnp.abs(hx + hy + hz))                 # (B, S, R)
    curv = jnp.sum(lap, axis=1, keepdims=True) * not_out

    # ----- depth: normal-equation terms for the per-batch scale/shift solve ----
    dp = slab_ref[:, C_DPRED:C_DPRED + 1, :]
    dg = slab_ref[:, C_DGT:C_DGT + 1, :] * 5.0 + 0.05    # sample['depth'] * 5 + 0.05
    dpm = dp * md
    dgm = dg * md

    # ----- phase 1: all full-image sums via one MXU ones-matmul per batch ------
    maps = [None] * K_STACK
    maps[I_EIK] = eik_err
    maps[I_RGB] = rgb_err
    maps[I_NOTOUT] = not_out
    maps[I_SMOOTH] = smooth_err
    maps[I_NL1] = l1n
    maps[I_NCOS] = cosn
    maps[I_NMASK] = mask_n
    maps[I_CURV] = curv
    maps[I_A00] = dpm * dpm
    maps[I_A01] = dpm
    maps[I_A11] = md
    maps[I_B00] = dpm * dgm
    maps[I_B10] = dgm
    stack = jnp.concatenate(maps, axis=1)                # (B, K_STACK, R)
    ones_col = jnp.ones((R, 1), f32)
    sums = [jnp.dot(stack[b], ones_col,
                    preferred_element_type=f32,
                    precision=lax.Precision.HIGHEST)     # (K_STACK, 1) per batch
            for b in range(B)]

    def tot(k):                                          # sum over batch elements
        s = sums[0][k, 0]
        for b in range(1, B):
            s = s + sums[b][k, 0]
        return s

    # ----- phase 2: per-batch monocular alignment + mse + gradient -------------
    ids = lax.broadcasted_iota(jnp.int32, (1, R - 1), 1)
    colmask = (ids % W != W - 1).astype(f32)             # drop pairs wrapping 32-col rows
    num_mse = 0.0
    num_grad = 0.0
    for b in range(B):                                    # B = 2, statically unrolled
        a00 = sums[b][I_A00, 0]
        a01 = sums[b][I_A01, 0]
        a11 = sums[b][I_A11, 0]
        b00 = sums[b][I_B00, 0]
        b10 = sums[b][I_B10, 0]
        det = a00 * a11 - a01 * a01
        safe_det = jnp.where(det == 0.0, 1.0, det)
        scale = jnp.where(det == 0.0, 0.0, (a11 * b00 - a01 * b10) / safe_det)
        shift = jnp.where(det == 0.0, 0.0, (-a01 * b00 + a00 * b10) / safe_det)
        dp_b = dp[b]                                     # (1, R)
        dg_b = dg[b]
        md_b = md[b]
        dps = scale * dp_b + shift
        num_mse = num_mse + jnp.sum(((dps - dg_b) ** 2) * md_b)
        # gradient_loss: diff carries the mask, pairs re-masked, normalized by
        # sum(mask) -- matches the reference exactly (incl. the double masking).
        diff = md_b * (dps - dg_b)
        gx = jnp.abs(diff[:, 1:] - diff[:, :-1]) * (md_b[:, 1:] * md_b[:, :-1]) * colmask
        gy = jnp.abs(diff[:, W:] - diff[:, :-W]) * (md_b[:, W:] * md_b[:, :-W])
        num_grad = num_grad + jnp.sum(gx) + jnp.sum(gy)

    # ----- finalize -------------------------------------------------------------
    n_pts = float(B * R)
    loss_eik = tot(I_EIK) / n_pts
    sum_no = tot(I_NOTOUT)
    loss_rgb = tot(I_RGB) / sum_no / 3.0                 # no 0-guard (reference l1_loss)
    loss_smooth = tot(I_SMOOTH) / n_pts

    sum_nm = tot(I_NMASK)
    safe_nm = jnp.where(sum_nm == 0.0, 1.0, sum_nm)
    loss_nl1 = jnp.where(sum_nm == 0.0, 0.0, tot(I_NL1) / safe_nm)
    loss_ncos = jnp.where(sum_nm == 0.0, 0.0, tot(I_NCOS) / safe_nm)

    sum_md = tot(I_A11)
    loss_depth = num_mse / sum_md + 0.5 * (num_grad / sum_md)  # no 0-guard (reference)

    m_c = sum_no * float(S)
    safe_mc = jnp.where(m_c == 0.0, 1.0, m_c)
    loss_curv = jnp.where(m_c == 0.0, 0.0, tot(I_CURV) / safe_mc)

    total = (lam_rgb * loss_rgb + lam_eik * loss_eik + lam_smooth * loss_smooth
             + lam_normal * (loss_nl1 + loss_ncos) + lam_depth * loss_depth
             + lam_curv * loss_curv)

    def row(s):
        return jnp.full((1, LANES), s, dtype=f32)

    out_ref[...] = jnp.concatenate(
        [row(loss_eik), row(loss_rgb), row(loss_smooth), row(loss_nl1),
         row(loss_ncos), row(loss_depth), row(loss_curv), row(total)], axis=0)


# ---------------------------------------------------------------------------
# Wrapper: one concat + one transpose to build the fused lane-dense slab
# ---------------------------------------------------------------------------
def implicit_recon_loss_pallas(output, sample, lambdas):
    f32 = jnp.float32

    def flat(x, c):
        return jnp.reshape(jnp.asarray(x, f32), (B, R, c))

    # hessian [B,R,S,3] -> component-major channels [B,R,3*S]
    hess = jnp.reshape(
        jnp.transpose(jnp.asarray(output['hessian'], f32), (0, 1, 3, 2)), (B, R, 3 * S))

    parts = [
        flat(output['sdf'], S),
        flat(output['outside'], 1),
        flat(output['gradient_eik'], 3),
        flat(output['gradient_eik_neighbor'], 3),
        flat(output['rgb'], 3),
        flat(sample['rgb'], 3),
        flat(output['normal'], 3),
        flat(sample['normal'], 3),
        flat(output['depth'], 1),
        flat(sample['depth'], 1),
        flat(sample['mask'], 1),
        flat(sample['uncertainty'], 1),
        flat(sample['uncertainty_grad'], 1),
        hess,
    ]
    # [B, R, C_TOTAL] -> [B, C_TOTAL, R]  (pixels on the lane axis, 56 sublane rows)
    slab = jnp.transpose(jnp.concatenate(parts, axis=-1), (0, 2, 1))

    kernel = functools.partial(_recon_loss_kernel,
                               lambdas=tuple(float(l) for l in lambdas))

    out = pl.pallas_call(
        kernel,
        out_shape=jax.ShapeDtypeStruct((N_OUT, LANES), jnp.float32),
        grid=(1,),
        in_specs=[pl.BlockSpec((B, C_TOTAL, R), lambda i: (0, 0, 0))],
        out_specs=pl.BlockSpec((N_OUT, LANES), lambda i: (0, 0)),
        compiler_params=pltpu.CompilerParams(dimension_semantics=("arbitrary",)),
    )(slab)

    scalars = out[:, 0]
    return {
        'loss_eik': scalars[0],
        'loss_rgb': scalars[1],
        'loss_smooth': scalars[2],
        'loss_normal_l1': scalars[3],
        'loss_normal_cos': scalars[4],
        'loss_depth': scalars[5],
        'loss_curvature': scalars[6],
        'loss': scalars[7],
    }


class ImplicitReconLossPallas:
    """Mirrors ImplicitReconLoss (no learned parameters, only scalar weights)."""

    def __init__(self, lambda_rgb=1.0, lambda_eik=0.05, lambda_smooth=0.005,
                 lambda_normal=0.05, lambda_depth=0.1, lambda_curvature=0.1,
                 warm_up_end=0):
        self.lambda_rgb = lambda_rgb
        self.lambda_eik = lambda_eik
        self.lambda_smooth = lambda_smooth
        self.lambda_normal = lambda_normal
        self.lambda_depth = lambda_depth
        self.init_lambda_curvature = lambda_curvature
        self.lambda_curvature = lambda_curvature
        self.warm_up_end = warm_up_end

    def set_curvature_weight(self, cur_step, anneal_levels):
        sched_weight = self.init_lambda_curvature
        if cur_step <= self.warm_up_end:
            sched_weight *= cur_step / self.warm_up_end
        else:
            decay_factor = 1.38098 ** (anneal_levels - 1)
            sched_weight /= decay_factor
        self.lambda_curvature = sched_weight

    def __call__(self, output, sample):
        lambdas = (self.lambda_rgb, self.lambda_eik, self.lambda_smooth,
                   self.lambda_normal, self.lambda_depth, self.lambda_curvature)
        return implicit_recon_loss_pallas(output, sample, lambdas)


# ---------------------------------------------------------------------------
# Main
# ---------------------------------------------------------------------------
if __name__ == "__main__":
    key = jax.random.PRNGKey(0)
    ks = jax.random.split(key, 16)

    geik = jax.random.normal(ks[2], (B, R, 3), jnp.float32)
    output = {
        'outside': jax.random.uniform(ks[0], (B, R, 1)) < 0.2,          # bool
        'sdf': jax.random.normal(ks[1], (B, R, S, 1), jnp.float32),
        'gradient_eik': geik,
        'gradient_eik_neighbor': geik + 0.05 * jax.random.normal(ks[3], (B, R, 3)),
        'rgb': jax.random.uniform(ks[4], (B, R, 3)),
        'normal': jax.random.normal(ks[5], (B, R, 3)),
        'depth': jax.random.uniform(ks[6], (B, R, 1)) * 2.0 + 0.1,
        'hessian': jax.random.normal(ks[7], (B, R, S, 3), jnp.float32),
    }
    sample = {
        'rgb': jax.random.uniform(ks[8], (B, R, 3)),
        'normal': jax.random.normal(ks[9], (B, R, 3)),
        'depth': jax.random.uniform(ks[10], (B, R, 1)),
        'mask': (jax.random.uniform(ks[11], (B, R, 1)) < 0.5).astype(jnp.float32),
        'uncertainty': jax.random.uniform(ks[12], (B, R, 1)) * 0.6,
        'uncertainty_grad': jax.random.uniform(ks[13], (B, R, 1)) * 0.06,
    }

    loss_mod = ImplicitReconLossPallas()
    loss_mod.set_curvature_weight(cur_step=100, anneal_levels=1)

    losses = loss_mod(output, sample)
    for v in losses.values():
        jax.block_until_ready(v)
    print("KERNEL_OK")
</pallas_src>

<mosaic_0001>
module attributes {stable_mosaic.version = 11 : i64} {
  func.func @_recon_loss_kernel(%arg0: i32, %arg1: memref<2x56x1024xf32, #tpu.memory_space<vmem>>, %arg2: memref<8x128xf32, #tpu.memory_space<vmem>>) attributes {dimension_semantics = [#tpu.dimension_semantics<arbitrary>], iteration_bounds = array<i64: 1>, scalar_prefetch = 0 : i64, scratch_operands = 0 : i64, tpu.core_type = #tpu.core_type<tc>, window_params = [{pipeline_mode = #tpu.pipeline_mode<synchronous>, transform_indices = @transform_0, window_bounds = array<i64: 2, 56, 1024>}, {pipeline_mode = #tpu.pipeline_mode<synchronous>, transform_indices = @transform_1, window_bounds = array<i64: 8, 128>}]} {
    %c0 = arith.constant 0 : index
    %c0_0 = arith.constant 0 : index
    %c0_1 = arith.constant 0 : index
    %0 = vector.load %arg1[%c0, %c0_0, %c0_1] : memref<2x56x1024xf32, #tpu.memory_space<vmem>>, vector<2x8x1024xf32>
    %c0_2 = arith.constant 0 : index
    %c8 = arith.constant 8 : index
    %c0_3 = arith.constant 0 : index
    %1 = vector.load %arg1[%c0_2, %c8, %c0_3] : memref<2x56x1024xf32, #tpu.memory_space<vmem>>, vector<2x1x1024xf32>
    %cst = arith.constant 1.000000e+00 : f32
    %2 = vector.broadcast %cst : f32 to vector<2x1x1024xf32>
    %3 = arith.subf %2, %1 : vector<2x1x1024xf32>
    %cst_4 = arith.constant dense<0xFF800000> : vector<2x1024xf32>
    %4 = vector.multi_reduction <maximumf>, %0, %cst_4 [1] : vector<2x8x1024xf32> to vector<2x1024xf32>
    %5 = vector.shape_cast %4 : vector<2x1024xf32> to vector<2x1x1024xf32>
    %cst_5 = arith.constant 0.000000e+00 : f32
    %6 = vector.broadcast %cst_5 : f32 to vector<2x1x1024xf32>
    %7 = arith.cmpf ogt, %5, %6 : vector<2x1x1024xf32>
    %cst_6 = arith.constant dense<0x7F800000> : vector<2x1024xf32>
    %8 = vector.multi_reduction <minimumf>, %0, %cst_6 [1] : vector<2x8x1024xf32> to vector<2x1024xf32>
    %9 = vector.shape_cast %8 : vector<2x1024xf32> to vector<2x1x1024xf32>
    %cst_7 = arith.constant 0.000000e+00 : f32
    %10 = vector.broadcast %cst_7 : f32 to vector<2x1x1024xf32>
    %11 = arith.cmpf olt, %9, %10 : vector<2x1x1024xf32>
    %12 = arith.andi %7, %11 : vector<2x1x1024xi1>
    %13 = arith.extui %12 : vector<2x1x1024xi1> to vector<2x1x1024xi32>
    %14 = arith.sitofp %13 : vector<2x1x1024xi32> to vector<2x1x1024xf32>
    %c0_8 = arith.constant 0 : index
    %c29 = arith.constant 29 : index
    %c0_9 = arith.constant 0 : index
    %15 = vector.load %arg1[%c0_8, %c29, %c0_9] : memref<2x56x1024xf32, #tpu.memory_space<vmem>>, vector<2x1x1024xf32>
    %c0_10 = arith.constant 0 : index
    %c30 = arith.constant 30 : index
    %c0_11 = arith.constant 0 : index
    %16 = vector.load %arg1[%c0_10, %c30, %c0_11] : memref<2x56x1024xf32, #tpu.memory_space<vmem>>, vector<2x1x1024xf32>
    %c0_12 = arith.constant 0 : index
    %c31 = arith.constant 31 : index
    %c0_13 = arith.constant 0 : index
    %17 = vector.load %arg1[%c0_12, %c31, %c0_13] : memref<2x56x1024xf32, #tpu.memory_space<vmem>>, vector<2x1x1024xf32>
    %cst_14 = arith.constant 1.000000e+00 : f32
    %18 = vector.broadcast %cst_14 : f32 to vector<2x1x1024xf32>
    %19 = arith.cmpf oeq, %15, %18 : vector<2x1x1024xf32>
    %cst_15 = arith.constant 0.000000e+00 : f32
    %20 = vector.broadcast %cst_15 : f32 to vector<2x1x1024xf32>
    %21 = arith.cmpf oeq, %15, %20 : vector<2x1x1024xf32>
    %cst_16 = arith.constant 3.000000e-01 : f32
    %22 = vector.broadcast %cst_16 : f32 to vector<2x1x1024xf32>
    %23 = arith.cmpf olt, %16, %22 : vector<2x1x1024xf32>
    %24 = arith.andi %21, %23 : vector<2x1x1024xi1>
    %cst_17 = arith.constant 3.000000e-02 : f32
    %25 = vector.broadcast %cst_17 : f32 to vector<2x1x1024xf32>
    %26 = arith.cmpf olt, %17, %25 : vector<2x1x1024xf32>
    %27 = arith.andi %24, %26 : vector<2x1x1024xi1>
    %28 = arith.ori %19, %27 : vector<2x1x1024xi1>
    %29 = arith.extui %28 : vector<2x1x1024xi1> to vector<2x1x1024xi32>
    %30 = arith.sitofp %29 : vector<2x1x1024xi32> to vector<2x1x1024xf32>
    %31 = arith.mulf %3, %14 : vector<2x1x1024xf32>
    %32 = arith.mulf %31, %30 : vector<2x1x1024xf32>
    %33 = arith.mulf %3, %14 : vector<2x1x1024xf32>
    %c0_18 = arith.constant 0 : index
    %c9 = arith.constant 9 : index
    %c0_19 = arith.constant 0 : index
    %34 = vector.load %arg1[%c0_18, %c9, %c0_19] : memref<2x56x1024xf32, #tpu.memory_space<vmem>>, vector<2x3x1024xf32>
    %35 = arith.mulf %34, %34 : vector<2x3x1024xf32>
    %cst_20 = arith.constant dense<0.000000e+00> : vector<2x1024xf32>
    %36 = vector.multi_reduction <add>, %35, %cst_20 [1] : vector<2x3x1024xf32> to vector<2x1024xf32>
    %37 = vector.shape_cast %36 : vector<2x1024xf32> to vector<2x1x1024xf32>
    %38 = math.sqrt %37 : vector<2x1x1024xf32>
    %cst_21 = arith.constant 1.000000e+00 : f32
    %39 = vector.broadcast %cst_21 : f32 to vector<2x1x1024xf32>
    %40 = arith.subf %38, %39 : vector<2x1x1024xf32>
    %41 = arith.mulf %40, %40 : vector<2x1x1024xf32>
    %42 = tpu.weird %41 : vector<2x1x1024xf32> -> vector<2x1x1024xi1>
    %cst_22 = arith.constant dense<true> : vector<2x1x1024xi1>
    %43 = arith.xori %42, %cst_22 : vector<2x1x1024xi1>
    %cst_23 = arith.constant 0.000000e+00 : f32
    %44 = vector.broadcast %cst_23 : f32 to vector<2x1x1024xf32>
    %45 = arith.select %43, %41, %44 : vector<2x1x1024xi1>, vector<2x1x1024xf32>
    %c0_24 = arith.constant 0 : index
    %c15 = arith.constant 15 : index
    %c0_25 = arith.constant 0 : index
    %46 = vector.load %arg1[%c0_24, %c15, %c0_25] : memref<2x56x1024xf32, #tpu.memory_space<vmem>>, vector<2x3x1024xf32>
    %c0_26 = arith.constant 0 : index
    %c18 = arith.constant 18 : index
    %c0_27 = arith.constant 0 : index
    %47 = vector.load %arg1[%c0_26, %c18, %c0_27] : memref<2x56x1024xf32, #tpu.memory_space<vmem>>, vector<2x3x1024xf32>
    %48 = arith.subf %46, %47 : vector<2x3x1024xf32>
    %49 = math.absf %48 : vector<2x3x1024xf32>
    %cst_28 = arith.constant dense<0.000000e+00> : vector<2x1024xf32>
    %50 = vector.multi_reduction <add>, %49, %cst_28 [1] : vector<2x3x1024xf32> to vector<2x1024xf32>
    %51 = vector.shape_cast %50 : vector<2x1024xf32> to vector<2x1x1024xf32>
    %52 = arith.mulf %51, %3 : vector<2x1x1024xf32>
    %c0_29 = arith.constant 0 : index
    %c12 = arith.constant 12 : index
    %c0_30 = arith.constant 0 : index
    %53 = vector.load %arg1[%c0_29, %c12, %c0_30] : memref<2x56x1024xf32, #tpu.memory_space<vmem>>, vector<2x3x1024xf32>
    %54 = math.sqrt %37 : vector<2x1x1024xf32>
    %cst_31 = arith.constant 9.99999997E-7 : f32
    %55 = vector.broadcast %cst_31 : f32 to vector<2x1x1024xf32>
    %56 = arith.addf %54, %55 : vector<2x1x1024xf32>
    %57 = tpu.reciprocal %56 : vector<2x1x1024xf32> -> vector<2x1x1024xf32>
    %58 = arith.mulf %53, %53 : vector<2x3x1024xf32>
    %cst_32 = arith.constant dense<0.000000e+00> : vector<2x1024xf32>
    %59 = vector.multi_reduction <add>, %58, %cst_32 [1] : vector<2x3x1024xf32> to vector<2x1024xf32>
    %60 = vector.shape_cast %59 : vector<2x1024xf32> to vector<2x1x1024xf32>
    %61 = math.sqrt %60 : vector<2x1x1024xf32>
    %cst_33 = arith.constant 9.99999997E-7 : f32
    %62 = vector.broadcast %cst_33 : f32 to vector<2x1x1024xf32>
    %63 = arith.addf %61, %62 : vector<2x1x1024xf32>
    %64 = tpu.reciprocal %63 : vector<2x1x1024xf32> -> vector<2x1x1024xf32>
    %65 = vector.broadcast %57 : vector<2x1x1024xf32> to vector<2x3x1024xf32>
    %66 = arith.mulf %34, %65 : vector<2x3x1024xf32>
    %67 = vector.broadcast %64 : vector<2x1x1024xf32> to vector<2x3x1024xf32>
    %68 = arith.mulf %53, %67 : vector<2x3x1024xf32>
    %69 = arith.subf %66, %68 : vector<2x3x1024xf32>
    %70 = arith.mulf %69, %69 : vector<2x3x1024xf32>
    %cst_34 = arith.constant dense<0.000000e+00> : vector<2x1024xf32>
    %71 = vector.multi_reduction <add>, %70, %cst_34 [1] : vector<2x3x1024xf32> to vector<2x1024xf32>
    %72 = vector.shape_cast %71 : vector<2x1024xf32> to vector<2x1x1024xf32>
    %73 = math.sqrt %72 : vector<2x1x1024xf32>
    %c0_35 = arith.constant 0 : index
    %c21 = arith.constant 21 : index
    %c0_36 = arith.constant 0 : index
    %74 = vector.load %arg1[%c0_35, %c21, %c0_36] : memref<2x56x1024xf32, #tpu.memory_space<vmem>>, vector<2x3x1024xf32>
    %c0_37 = arith.constant 0 : index
    %c24 = arith.constant 24 : index
    %c0_38 = arith.constant 0 : index
    %75 = vector.load %arg1[%c0_37, %c24, %c0_38] : memref<2x56x1024xf32, #tpu.memory_space<vmem>>, vector<2x3x1024xf32>
    %76 = arith.mulf %74, %74 : vector<2x3x1024xf32>
    %cst_39 = arith.constant dense<0.000000e+00> : vector<2x1024xf32>
    %77 = vector.multi_reduction <add>, %76, %cst_39 [1] : vector<2x3x1024xf32> to vector<2x1024xf32>
    %78 = vector.shape_cast %77 : vector<2x1024xf32> to vector<2x1x1024xf32>
    %cst_40 = arith.constant 1.000000e-24 : f32
    %79 = vector.broadcast %cst_40 : f32 to vector<2x1x1024xf32>
    %80 = arith.maximumf %78, %79 : vector<2x1x1024xf32>
    %81 = math.rsqrt %80 : vector<2x1x1024xf32>
    %82 = vector.broadcast %81 : vector<2x1x1024xf32> to vector<2x3x1024xf32>
    %83 = arith.mulf %74, %82 : vector<2x3x1024xf32>
    %84 = arith.mulf %75, %75 : vector<2x3x1024xf32>
    %cst_41 = arith.constant dense<0.000000e+00> : vector<2x1024xf32>
    %85 = vector.multi_reduction <add>, %84, %cst_41 [1] : vector<2x3x1024xf32> to vector<2x1024xf32>
    %86 = vector.shape_cast %85 : vector<2x1024xf32> to vector<2x1x1024xf32>
    %cst_42 = arith.constant 1.000000e-24 : f32
    %87 = vector.broadcast %cst_42 : f32 to vector<2x1x1024xf32>
    %88 = arith.maximumf %86, %87 : vector<2x1x1024xf32>
    %89 = math.rsqrt %88 : vector<2x1x1024xf32>
    %90 = vector.broadcast %89 : vector<2x1x1024xf32> to vector<2x3x1024xf32>
    %91 = arith.mulf %75, %90 : vector<2x3x1024xf32>
    %92 = arith.subf %83, %91 : vector<2x3x1024xf32>
    %93 = math.absf %92 : vector<2x3x1024xf32>
    %cst_43 = arith.constant dense<0.000000e+00> : vector<2x1024xf32>
    %94 = vector.multi_reduction <add>, %93, %cst_43 [1] : vector<2x3x1024xf32> to vector<2x1024xf32>
    %95 = vector.shape_cast %94 : vector<2x1024xf32> to vector<2x1x1024xf32>
    %96 = arith.mulf %95, %32 : vector<2x1x1024xf32>
    %97 = arith.mulf %83, %91 : vector<2x3x1024xf32>
    %cst_44 = arith.constant dense<0.000000e+00> : vector<2x1024xf32>
    %98 = vector.multi_reduction <add>, %97, %cst_44 [1] : vector<2x3x1024xf32> to vector<2x1024xf32>
    %99 = vector.shape_cast %98 : vector<2x1024xf32> to vector<2x1x1024xf32>
    %cst_45 = arith.constant 1.000000e+00 : f32
    %100 = vector.broadcast %cst_45 : f32 to vector<2x1x1024xf32>
    %101 = arith.subf %100, %99 : vector<2x1x1024xf32>
    %102 = arith.mulf %101, %32 : vector<2x1x1024xf32>
    %c0_46 = arith.constant 0 : index
    %c32 = arith.constant 32 : index
    %c0_47 = arith.constant 0 : index
    %103 = vector.load %arg1[%c0_46, %c32, %c0_47] : memref<2x56x1024xf32, #tpu.memory_space<vmem>>, vector<2x8x1024xf32>
    %c0_48 = arith.constant 0 : index
    %c40 = arith.constant 40 : index
    %c0_49 = arith.constant 0 : index
    %104 = vector.load %arg1[%c0_48, %c40, %c0_49] : memref<2x56x1024xf32, #tpu.memory_space<vmem>>, vector<2x8x1024xf32>
    %c0_50 = arith.constant 0 : index
    %c48 = arith.constant 48 : index
    %c0_51 = arith.constant 0 : index
    %105 = vector.load %arg1[%c0_50, %c48, %c0_51] : memref<2x56x1024xf32, #tpu.memory_space<vmem>>, vector<2x8x1024xf32>
    %106 = arith.addf %103, %104 : vector<2x8x1024xf32>
    %107 = arith.addf %106, %105 : vector<2x8x1024xf32>
    %108 = math.absf %107 : vector<2x8x1024xf32>
    %109 = tpu.weird %108 : vector<2x8x1024xf32> -> vector<2x8x1024xi1>
    %cst_52 = arith.constant dense<true> : vector<2x8x1024xi1>
    %110 = arith.xori %109, %cst_52 : vector<2x8x1024xi1>
    %cst_53 = arith.constant 0.000000e+00 : f32
    %111 = vector.broadcast %cst_53 : f32 to vector<2x8x1024xf32>
    %112 = arith.select %110, %108, %111 : vector<2x8x1024xi1>, vector<2x8x1024xf32>
    %cst_54 = arith.constant dense<0.000000e+00> : vector<2x1024xf32>
    %113 = vector.multi_reduction <add>, %112, %cst_54 [1] : vector<2x8x1024xf32> to vector<2x1024xf32>
    %114 = vector.shape_cast %113 : vector<2x1024xf32> to vector<2x1x1024xf32>
    %115 = arith.mulf %114, %3 : vector<2x1x1024xf32>
    %c0_55 = arith.constant 0 : index
    %c27 = arith.constant 27 : index
    %c0_56 = arith.constant 0 : index
    %116 = vector.load %arg1[%c0_55, %c27, %c0_56] : memref<2x56x1024xf32, #tpu.memory_space<vmem>>, vector<2x1x1024xf32>
    %c0_57 = arith.constant 0 : index
    %c28 = arith.constant 28 : index
    %c0_58 = arith.constant 0 : index
    %117 = vector.load %arg1[%c0_57, %c28, %c0_58] : memref<2x56x1024xf32, #tpu.memory_space<vmem>>, vector<2x1x1024xf32>
    %cst_59 = arith.constant 5.000000e+00 : f32
    %118 = vector.broadcast %cst_59 : f32 to vector<2x1x1024xf32>
    %119 = arith.mulf %117, %118 : vector<2x1x1024xf32>
    %cst_60 = arith.constant 5.000000e-02 : f32
    %120 = vector.broadcast %cst_60 : f32 to vector<2x1x1024xf32>
    %121 = arith.addf %119, %120 : vector<2x1x1024xf32>
    %122 = arith.mulf %116, %33 : vector<2x1x1024xf32>
    %123 = arith.mulf %121, %33 : vector<2x1x1024xf32>
    %124 = arith.mulf %122, %122 : vector<2x1x1024xf32>
    %125 = arith.mulf %122, %123 : vector<2x1x1024xf32>
    %126 = tpu.concatenate %45, %52, %3, %73, %96, %102, %32, %115, %124, %122, %33, %125, %123 in 1 : vector<2x1x1024xf32>, vector<2x1x1024xf32>, vector<2x1x1024xf32>, vector<2x1x1024xf32>, vector<2x1x1024xf32>, vector<2x1x1024xf32>, vector<2x1x1024xf32>, vector<2x1x1024xf32>, vector<2x1x1024xf32>, vector<2x1x1024xf32>, vector<2x1x1024xf32>, vector<2x1x1024xf32>, vector<2x1x1024xf32> -> vector<2x13x1024xf32>
    %cst_61 = arith.constant 1.000000e+00 : f32
    %127 = vector.broadcast %cst_61 : f32 to vector<1024x1xf32>
    %128 = vector.extract_strided_slice %126 {offsets = [0, 0, 0], sizes = [1, 13, 1024], strides = [1, 1, 1]} : vector<2x13x1024xf32> to vector<1x13x1024xf32>
    %129 = vector.shape_cast %128 : vector<1x13x1024xf32> to vector<13x1024xf32>
    %cst_62 = arith.constant dense<0.000000e+00> : vector<13x1xf32>
    %130 = tpu.matmul %129, %127, %cst_62 {dimension_numbers = #tpu.dot_dimension_numbers<[1], [0], [0], [1], [0, 0, 1, 1], [], []>, precision = #tpu.contract_precision<fp32>} : vector<13x1024xf32>, vector<1024x1xf32>, vector<13x1xf32> -> vector<13x1xf32>
    %131 = vector.extract_strided_slice %126 {offsets = [1, 0, 0], sizes = [1, 13, 1024], strides = [1, 1, 1]} : vector<2x13x1024xf32> to vector<1x13x1024xf32>
    %132 = vector.shape_cast %131 : vector<1x13x1024xf32> to vector<13x1024xf32>
    %cst_63 = arith.constant dense<0.000000e+00> : vector<13x1xf32>
    %133 = tpu.matmul %132, %127, %cst_63 {dimension_numbers = #tpu.dot_dimension_numbers<[1], [0], [0], [1], [0, 0, 1, 1], [], []>, precision = #tpu.contract_precision<fp32>} : vector<13x1024xf32>, vector<1024x1xf32>, vector<13x1xf32> -> vector<13x1xf32>
    %134 = tpu.iota {dimensions = array<i32: 1>} : vector<1x1023xi32>
    %c32_i32 = arith.constant 32 : i32
    %c0_i32 = arith.constant 0 : i32
    %135 = arith.cmpi eq, %c32_i32, %c0_i32 : i32
    %c1_i32 = arith.constant 1 : i32
    %136 = arith.select %135, %c1_i32, %c32_i32 : i32
    %137 = vector.broadcast %136 : i32 to vector<1x1023xi32>
    %138 = arith.remsi %134, %137 : vector<1x1023xi32>
    %c0_i32_64 = arith.constant 0 : i32
    %139 = vector.broadcast %c0_i32_64 : i32 to vector<1x1023xi32>
    %140 = arith.cmpi ne, %138, %139 : vector<1x1023xi32>
    %c0_i32_65 = arith.constant 0 : i32
    %141 = vector.broadcast %c0_i32_65 : i32 to vector<1x1023xi32>
    %142 = arith.cmpi slt, %138, %141 : vector<1x1023xi32>
    %c0_i32_66 = arith.constant 0 : i32
    %143 = arith.cmpi slt, %136, %c0_i32_66 : i32
    %144 = vector.broadcast %143 : i1 to vector<1x1023xi1>
    %145 = vector.broadcast %144 : vector<1x1023xi1> to vector<1x1023xi1>
    %146 = arith.xori %142, %145 : vector<1x1023xi1>
    %147 = arith.andi %146, %140 : vector<1x1023xi1>
    %148 = vector.broadcast %136 : i32 to vector<1x1023xi32>
    %149 = arith.addi %138, %148 : vector<1x1023xi32>
    %150 = arith.select %147, %149, %138 : vector<1x1023xi1>, vector<1x1023xi32>
    %c31_i32 = arith.constant 31 : i32
    %151 = vector.broadcast %c31_i32 : i32 to vector<1x1023xi32>
    %152 = arith.cmpi ne, %150, %151 : vector<1x1023xi32>
    %153 = arith.extui %152 : vector<1x1023xi1> to vector<1x1023xi32>
    %154 = arith.sitofp %153 : vector<1x1023xi32> to vector<1x1023xf32>
    %155 = vector.extract_strided_slice %130 {offsets = [8, 0], sizes = [1, 1], strides = [1, 1]} : vector<13x1xf32> to vector<1x1xf32>
    %156 = vector.extract %155[0, 0] : f32 from vector<1x1xf32>
    %157 = vector.extract_strided_slice %130 {offsets = [9, 0], sizes = [1, 1], strides = [1, 1]} : vector<13x1xf32> to vector<1x1xf32>
    %158 = vector.extract %157[0, 0] : f32 from vector<1x1xf32>
    %159 = vector.extract_strided_slice %130 {offsets = [10, 0], sizes = [1, 1], strides = [1, 1]} : vector<13x1xf32> to vector<1x1xf32>
    %160 = vector.extract %159[0, 0] : f32 from vector<1x1xf32>
    %161 = vector.extract_strided_slice %130 {offsets = [11, 0], sizes = [1, 1], strides = [1, 1]} : vector<13x1xf32> to vector<1x1xf32>
    %162 = vector.extract %161[0, 0] : f32 from vector<1x1xf32>
    %163 = vector.extract_strided_slice %130 {offsets = [12, 0], sizes = [1, 1], strides = [1, 1]} : vector<13x1xf32> to vector<1x1xf32>
    %164 = vector.extract %163[0, 0] : f32 from vector<1x1xf32>
    %165 = arith.mulf %156, %160 : f32
    %166 = arith.mulf %158, %158 : f32
    %167 = arith.subf %165, %166 : f32
    %cst_67 = arith.constant 0.000000e+00 : f32
    %168 = arith.cmpf oeq, %167, %cst_67 : f32
    %cst_68 = arith.constant 1.000000e+00 : f32
    %169 = arith.select %168, %cst_68, %167 : f32
    %cst_69 = arith.constant 0.000000e+00 : f32
    %170 = arith.cmpf oeq, %167, %cst_69 : f32
    %171 = arith.mulf %160, %162 : f32
    %172 = arith.mulf %158, %164 : f32
    %173 = arith.subf %171, %172 : f32
    %174 = arith.divf %173, %169 : f32
    %cst_70 = arith.constant 0.000000e+00 : f32
    %175 = arith.select %170, %cst_70, %174 : f32
    %cst_71 = arith.constant 0.000000e+00 : f32
    %176 = arith.cmpf oeq, %167, %cst_71 : f32
    %cst_72 = arith.constant 0.000000e+00 : f32
    %177 = arith.subf %cst_72, %158 : f32
    %178 = arith.mulf %177, %162 : f32
    %179 = arith.mulf %156, %164 : f32
    %180 = arith.addf %178, %179 : f32
    %181 = arith.divf %180, %169 : f32
    %cst_73 = arith.constant 0.000000e+00 : f32
    %182 = arith.select %176, %cst_73, %181 : f32
    %183 = vector.extract_strided_slice %116 {offsets = [0, 0, 0], sizes = [1, 1, 1024], strides = [1, 1, 1]} : vector<2x1x1024xf32> to vector<1x1x1024xf32>
    %184 = vector.shape_cast %183 : vector<1x1x1024xf32> to vector<1x1024xf32>
    %185 = vector.extract_strided_slice %121 {offsets = [0, 0, 0], sizes = [1, 1, 1024], strides = [1, 1, 1]} : vector<2x1x1024xf32> to vector<1x1x1024xf32>
    %186 = vector.shape_cast %185 : vector<1x1x1024xf32> to vector<1x1024xf32>
    %187 = vector.extract_strided_slice %33 {offsets = [0, 0, 0], sizes = [1, 1, 1024], strides = [1, 1, 1]} : vector<2x1x1024xf32> to vector<1x1x1024xf32>
    %188 = vector.shape_cast %187 : vector<1x1x1024xf32> to vector<1x1024xf32>
    %189 = vector.broadcast %175 : f32 to vector<1x1024xf32>
    %190 = arith.mulf %189, %184 : vector<1x1024xf32>
    %191 = vector.broadcast %182 : f32 to vector<1x1024xf32>
    %192 = arith.addf %190, %191 : vector<1x1024xf32>
    %193 = arith.subf %192, %186 : vector<1x1024xf32>
    %194 = arith.mulf %193, %193 : vector<1x1024xf32>
    %195 = arith.mulf %194, %188 : vector<1x1024xf32>
    %196 = vector.shape_cast %195 : vector<1x1024xf32> to vector<1x1x1024xf32>
    %cst_74 = arith.constant dense<0.000000e+00> : vector<1xf32>
    %197 = vector.multi_reduction <add>, %196, %cst_74 [1, 2] : vector<1x1x1024xf32> to vector<1xf32>
    %198 = vector.shape_cast %197 : vector<1xf32> to vector<1x1x1xf32>
    %199 = vector.extract %198[0, 0, 0] : f32 from vector<1x1x1xf32>
    %cst_75 = arith.constant 0.000000e+00 : f32
    %200 = arith.addf %cst_75, %199 : f32
    %201 = arith.subf %192, %186 : vector<1x1024xf32>
    %202 = arith.mulf %188, %201 : vector<1x1024xf32>
    %203 = vector.extract_strided_slice %202 {offsets = [0, 1], sizes = [1, 1023], strides = [1, 1]} : vector<1x1024xf32> to vector<1x1023xf32>
    %204 = vector.extract_strided_slice %202 {offsets = [0, 0], sizes = [1, 1023], strides = [1, 1]} : vector<1x1024xf32> to vector<1x1023xf32>
    %205 = arith.subf %203, %204 : vector<1x1023xf32>
    %206 = math.absf %205 : vector<1x1023xf32>
    %207 = vector.extract_strided_slice %188 {offsets = [0, 1], sizes = [1, 1023], strides = [1, 1]} : vector<1x1024xf32> to vector<1x1023xf32>
    %208 = vector.extract_strided_slice %188 {offsets = [0, 0], sizes = [1, 1023], strides = [1, 1]} : vector<1x1024xf32> to vector<1x1023xf32>
    %209 = arith.mulf %207, %208 : vector<1x1023xf32>
    %210 = arith.mulf %206, %209 : vector<1x1023xf32>
    %211 = arith.mulf %210, %154 : vector<1x1023xf32>
    %212 = vector.extract_strided_slice %202 {offsets = [0, 32], sizes = [1, 992], strides = [1, 1]} : vector<1x1024xf32> to vector<1x992xf32>
    %213 = vector.extract_strided_slice %202 {offsets = [0, 0], sizes = [1, 992], strides = [1, 1]} : vector<1x1024xf32> to vector<1x992xf32>
    %214 = arith.subf %212, %213 : vector<1x992xf32>
    %215 = math.absf %214 : vector<1x992xf32>
    %216 = vector.extract_strided_slice %188 {offsets = [0, 32], sizes = [1, 992], strides = [1, 1]} : vector<1x1024xf32> to vector<1x992xf32>
    %217 = vector.extract_strided_slice %188 {offsets = [0, 0], sizes = [1, 992], strides = [1, 1]} : vector<1x1024xf32> to vector<1x992xf32>
    %218 = arith.mulf %216, %217 : vector<1x992xf32>
    %219 = arith.mulf %215, %218 : vector<1x992xf32>
    %220 = vector.shape_cast %211 : vector<1x1023xf32> to vector<1x1x1023xf32>
    %cst_76 = arith.constant dense<0.000000e+00> : vector<1xf32>
    %221 = vector.multi_reduction <add>, %220, %cst_76 [1, 2] : vector<1x1x1023xf32> to vector<1xf32>
    %222 = vector.shape_cast %221 : vector<1xf32> to vector<1x1x1xf32>
    %223 = vector.extract %222[0, 0, 0] : f32 from vector<1x1x1xf32>
    %cst_77 = arith.constant 0.000000e+00 : f32
    %224 = arith.addf %cst_77, %223 : f32
    %225 = vector.shape_cast %219 : vector<1x992xf32> to vector<1x1x992xf32>
    %cst_78 = arith.constant dense<0.000000e+00> : vector<1xf32>
    %226 = vector.multi_reduction <add>, %225, %cst_78 [1, 2] : vector<1x1x992xf32> to vector<1xf32>
    %227 = vector.shape_cast %226 : vector<1xf32> to vector<1x1x1xf32>
    %228 = vector.extract %227[0, 0, 0] : f32 from vector<1x1x1xf32>
    %229 = arith.addf %224, %228 : f32
    %230 = vector.extract_strided_slice %133 {offsets = [8, 0], sizes = [1, 1], strides = [1, 1]} : vector<13x1xf32> to vector<1x1xf32>
    %231 = vector.extract %230[0, 0] : f32 from vector<1x1xf32>
    %232 = vector.extract_strided_slice %133 {offsets = [9, 0], sizes = [1, 1], strides = [1, 1]} : vector<13x1xf32> to vector<1x1xf32>
    %233 = vector.extract %232[0, 0] : f32 from vector<1x1xf32>
    %234 = vector.extract_strided_slice %133 {offsets = [10, 0], sizes = [1, 1], strides = [1, 1]} : vector<13x1xf32> to vector<1x1xf32>
    %235 = vector.extract %234[0, 0] : f32 from vector<1x1xf32>
    %236 = vector.extract_strided_slice %133 {offsets = [11, 0], sizes = [1, 1], strides = [1, 1]} : vector<13x1xf32> to vector<1x1xf32>
    %237 = vector.extract %236[0, 0] : f32 from vector<1x1xf32>
    %238 = vector.extract_strided_slice %133 {offsets = [12, 0], sizes = [1, 1], strides = [1, 1]} : vector<13x1xf32> to vector<1x1xf32>
    %239 = vector.extract %238[0, 0] : f32 from vector<1x1xf32>
    %240 = arith.mulf %231, %235 : f32
    %241 = arith.mulf %233, %233 : f32
    %242 = arith.subf %240, %241 : f32
    %cst_79 = arith.constant 0.000000e+00 : f32
    %243 = arith.cmpf oeq, %242, %cst_79 : f32
    %cst_80 = arith.constant 1.000000e+00 : f32
    %244 = arith.select %243, %cst_80, %242 : f32
    %cst_81 = arith.constant 0.000000e+00 : f32
    %245 = arith.cmpf oeq, %242, %cst_81 : f32
    %246 = arith.mulf %235, %237 : f32
    %247 = arith.mulf %233, %239 : f32
    %248 = arith.subf %246, %247 : f32
    %249 = arith.divf %248, %244 : f32
    %cst_82 = arith.constant 0.000000e+00 : f32
    %250 = arith.select %245, %cst_82, %249 : f32
    %cst_83 = arith.constant 0.000000e+00 : f32
    %251 = arith.cmpf oeq, %242, %cst_83 : f32
    %cst_84 = arith.constant 0.000000e+00 : f32
    %252 = arith.subf %cst_84, %233 : f32
    %253 = arith.mulf %252, %237 : f32
    %254 = arith.mulf %231, %239 : f32
    %255 = arith.addf %253, %254 : f32
    %256 = arith.divf %255, %244 : f32
    %cst_85 = arith.constant 0.000000e+00 : f32
    %257 = arith.select %251, %cst_85, %256 : f32
    %258 = vector.extract_strided_slice %116 {offsets = [1, 0, 0], sizes = [1, 1, 1024], strides = [1, 1, 1]} : vector<2x1x1024xf32> to vector<1x1x1024xf32>
    %259 = vector.shape_cast %258 : vector<1x1x1024xf32> to vector<1x1024xf32>
    %260 = vector.extract_strided_slice %121 {offsets = [1, 0, 0], sizes = [1, 1, 1024], strides = [1, 1, 1]} : vector<2x1x1024xf32> to vector<1x1x1024xf32>
    %261 = vector.shape_cast %260 : vector<1x1x1024xf32> to vector<1x1024xf32>
    %262 = vector.extract_strided_slice %33 {offsets = [1, 0, 0], sizes = [1, 1, 1024], strides = [1, 1, 1]} : vector<2x1x1024xf32> to vector<1x1x1024xf32>
    %263 = vector.shape_cast %262 : vector<1x1x1024xf32> to vector<1x1024xf32>
    %264 = vector.broadcast %250 : f32 to vector<1x1024xf32>
    %265 = arith.mulf %264, %259 : vector<1x1024xf32>
    %266 = vector.broadcast %257 : f32 to vector<1x1024xf32>
    %267 = arith.addf %265, %266 : vector<1x1024xf32>
    %268 = arith.subf %267, %261 : vector<1x1024xf32>
    %269 = arith.mulf %268, %268 : vector<1x1024xf32>
    %270 = arith.mulf %269, %263 : vector<1x1024xf32>
    %271 = vector.shape_cast %270 : vector<1x1024xf32> to vector<1x1x1024xf32>
    %cst_86 = arith.constant dense<0.000000e+00> : vector<1xf32>
    %272 = vector.multi_reduction <add>, %271, %cst_86 [1, 2] : vector<1x1x1024xf32> to vector<1xf32>
    %273 = vector.shape_cast %272 : vector<1xf32> to vector<1x1x1xf32>
    %274 = vector.extract %273[0, 0, 0] : f32 from vector<1x1x1xf32>
    %275 = arith.addf %200, %274 : f32
    %276 = arith.subf %267, %261 : vector<1x1024xf32>
    %277 = arith.mulf %263, %276 : vector<1x1024xf32>
    %278 = vector.extract_strided_slice %277 {offsets = [0, 1], sizes = [1, 1023], strides = [1, 1]} : vector<1x1024xf32> to vector<1x1023xf32>
    %279 = vector.extract_strided_slice %277 {offsets = [0, 0], sizes = [1, 1023], strides = [1, 1]} : vector<1x1024xf32> to vector<1x1023xf32>
    %280 = arith.subf %278, %279 : vector<1x1023xf32>
    %281 = math.absf %280 : vector<1x1023xf32>
    %282 = vector.extract_strided_slice %263 {offsets = [0, 1], sizes = [1, 1023], strides = [1, 1]} : vector<1x1024xf32> to vector<1x1023xf32>
    %283 = vector.extract_strided_slice %263 {offsets = [0, 0], sizes = [1, 1023], strides = [1, 1]} : vector<1x1024xf32> to vector<1x1023xf32>
    %284 = arith.mulf %282, %283 : vector<1x1023xf32>
    %285 = arith.mulf %281, %284 : vector<1x1023xf32>
    %286 = arith.mulf %285, %154 : vector<1x1023xf32>
    %287 = vector.extract_strided_slice %277 {offsets = [0, 32], sizes = [1, 992], strides = [1, 1]} : vector<1x1024xf32> to vector<1x992xf32>
    %288 = vector.extract_strided_slice %277 {offsets = [0, 0], sizes = [1, 992], strides = [1, 1]} : vector<1x1024xf32> to vector<1x992xf32>
    %289 = arith.subf %287, %288 : vector<1x992xf32>
    %290 = math.absf %289 : vector<1x992xf32>
    %291 = vector.extract_strided_slice %263 {offsets = [0, 32], sizes = [1, 992], strides = [1, 1]} : vector<1x1024xf32> to vector<1x992xf32>
    %292 = vector.extract_strided_slice %263 {offsets = [0, 0], sizes = [1, 992], strides = [1, 1]} : vector<1x1024xf32> to vector<1x992xf32>
    %293 = arith.mulf %291, %292 : vector<1x992xf32>
    %294 = arith.mulf %290, %293 : vector<1x992xf32>
    %295 = vector.shape_cast %286 : vector<1x1023xf32> to vector<1x1x1023xf32>
    %cst_87 = arith.constant dense<0.000000e+00> : vector<1xf32>
    %296 = vector.multi_reduction <add>, %295, %cst_87 [1, 2] : vector<1x1x1023xf32> to vector<1xf32>
    %297 = vector.shape_cast %296 : vector<1xf32> to vector<1x1x1xf32>
    %298 = vector.extract %297[0, 0, 0] : f32 from vector<1x1x1xf32>
    %299 = arith.addf %229, %298 : f32
    %300 = vector.shape_cast %294 : vector<1x992xf32> to vector<1x1x992xf32>
    %cst_88 = arith.constant dense<0.000000e+00> : vector<1xf32>
    %301 = vector.multi_reduction <add>, %300, %cst_88 [1, 2] : vector<1x1x992xf32> to vector<1xf32>
    %302 = vector.shape_cast %301 : vector<1xf32> to vector<1x1x1xf32>
    %303 = vector.extract %302[0, 0, 0] : f32 from vector<1x1x1xf32>
    %304 = arith.addf %299, %303 : f32
    %305 = vector.extract_strided_slice %130 {offsets = [0, 0], sizes = [1, 1], strides = [1, 1]} : vector<13x1xf32> to vector<1x1xf32>
    %306 = vector.extract %305[0, 0] : f32 from vector<1x1xf32>
    %307 = vector.extract_strided_slice %133 {offsets = [0, 0], sizes = [1, 1], strides = [1, 1]} : vector<13x1xf32> to vector<1x1xf32>
    %308 = vector.extract %307[0, 0] : f32 from vector<1x1xf32>
    %309 = arith.addf %306, %308 : f32
    %cst_89 = arith.constant 2.048000e+03 : f32
    %310 = arith.divf %309, %cst_89 : f32
    %311 = vector.extract_strided_slice %130 {offsets = [2, 0], sizes = [1, 1], strides = [1, 1]} : vector<13x1xf32> to vector<1x1xf32>
    %312 = vector.extract %311[0, 0] : f32 from vector<1x1xf32>
    %313 = vector.extract_strided_slice %133 {offsets = [2, 0], sizes = [1, 1], strides = [1, 1]} : vector<13x1xf32> to vector<1x1xf32>
    %314 = vector.extract %313[0, 0] : f32 from vector<1x1xf32>
    %315 = arith.addf %312, %314 : f32
    %316 = vector.extract_strided_slice %130 {offsets = [1, 0], sizes = [1, 1], strides = [1, 1]} : vector<13x1xf32> to vector<1x1xf32>
    %317 = vector.extract %316[0, 0] : f32 from vector<1x1xf32>
    %318 = vector.extract_strided_slice %133 {offsets = [1, 0], sizes = [1, 1], strides = [1, 1]} : vector<13x1xf32> to vector<1x1xf32>
    %319 = vector.extract %318[0, 0] : f32 from vector<1x1xf32>
    %320 = arith.addf %317, %319 : f32
    %321 = arith.divf %320, %315 : f32
    %cst_90 = arith.constant 3.000000e+00 : f32
    %322 = arith.divf %321, %cst_90 : f32
    %323 = vector.extract_strided_slice %130 {offsets = [3, 0], sizes = [1, 1], strides = [1, 1]} : vector<13x1xf32> to vector<1x1xf32>
    %324 = vector.extract %323[0, 0] : f32 from vector<1x1xf32>
    %325 = vector.extract_strided_slice %133 {offsets = [3, 0], sizes = [1, 1], strides = [1, 1]} : vector<13x1xf32> to vector<1x1xf32>
    %326 = vector.extract %325[0, 0] : f32 from vector<1x1xf32>
    %327 = arith.addf %324, %326 : f32
    %cst_91 = arith.constant 2.048000e+03 : f32
    %328 = arith.divf %327, %cst_91 : f32
    %329 = vector.extract_strided_slice %130 {offsets = [6, 0], sizes = [1, 1], strides = [1, 1]} : vector<13x1xf32> to vector<1x1xf32>
    %330 = vector.extract %329[0, 0] : f32 from vector<1x1xf32>
    %331 = vector.extract_strided_slice %133 {offsets = [6, 0], sizes = [1, 1], strides = [1, 1]} : vector<13x1xf32> to vector<1x1xf32>
    %332 = vector.extract %331[0, 0] : f32 from vector<1x1xf32>
    %333 = arith.addf %330, %332 : f32
    %cst_92 = arith.constant 0.000000e+00 : f32
    %334 = arith.cmpf oeq, %333, %cst_92 : f32
    %cst_93 = arith.constant 1.000000e+00 : f32
    %335 = arith.select %334, %cst_93, %333 : f32
    %cst_94 = arith.constant 0.000000e+00 : f32
    %336 = arith.cmpf oeq, %333, %cst_94 : f32
    %337 = vector.extract_strided_slice %130 {offsets = [4, 0], sizes = [1, 1], strides = [1, 1]} : vector<13x1xf32> to vector<1x1xf32>
    %338 = vector.extract %337[0, 0] : f32 from vector<1x1xf32>
    %339 = vector.extract_strided_slice %133 {offsets = [4, 0], sizes = [1, 1], strides = [1, 1]} : vector<13x1xf32> to vector<1x1xf32>
    %340 = vector.extract %339[0, 0] : f32 from vector<1x1xf32>
    %341 = arith.addf %338, %340 : f32
    %342 = arith.divf %341, %335 : f32
    %cst_95 = arith.constant 0.000000e+00 : f32
    %343 = arith.select %336, %cst_95, %342 : f32
    %cst_96 = arith.constant 0.000000e+00 : f32
    %344 = arith.cmpf oeq, %333, %cst_96 : f32
    %345 = vector.extract_strided_slice %130 {offsets = [5, 0], sizes = [1, 1], strides = [1, 1]} : vector<13x1xf32> to vector<1x1xf32>
    %346 = vector.extract %345[0, 0] : f32 from vector<1x1xf32>
    %347 = vector.extract_strided_slice %133 {offsets = [5, 0], sizes = [1, 1], strides = [1, 1]} : vector<13x1xf32> to vector<1x1xf32>
    %348 = vector.extract %347[0, 0] : f32 from vector<1x1xf32>
    %349 = arith.addf %346, %348 : f32
    %350 = arith.divf %349, %335 : f32
    %cst_97 = arith.constant 0.000000e+00 : f32
    %351 = arith.select %344, %cst_97, %350 : f32
    %352 = vector.extract_strided_slice %130 {offsets = [10, 0], sizes = [1, 1], strides = [1, 1]} : vector<13x1xf32> to vector<1x1xf32>
    %353 = vector.extract %352[0, 0] : f32 from vector<1x1xf32>
    %354 = vector.extract_strided_slice %133 {offsets = [10, 0], sizes = [1, 1], strides = [1, 1]} : vector<13x1xf32> to vector<1x1xf32>
    %355 = vector.extract %354[0, 0] : f32 from vector<1x1xf32>
    %356 = arith.addf %353, %355 : f32
    %357 = arith.divf %275, %356 : f32
    %358 = arith.divf %304, %356 : f32
    %cst_98 = arith.constant 5.000000e-01 : f32
    %359 = arith.mulf %cst_98, %358 : f32
    %360 = arith.addf %357, %359 : f32
    %cst_99 = arith.constant 8.000000e+00 : f32
    %361 = arith.mulf %315, %cst_99 : f32
    %cst_100 = arith.constant 0.000000e+00 : f32
    %362 = arith.cmpf oeq, %361, %cst_100 : f32
    %cst_101 = arith.constant 1.000000e+00 : f32
    %363 = arith.select %362, %cst_101, %361 : f32
    %cst_102 = arith.constant 0.000000e+00 : f32
    %364 = arith.cmpf oeq, %361, %cst_102 : f32
    %365 = vector.extract_strided_slice %130 {offsets = [7, 0], sizes = [1, 1], strides = [1, 1]} : vector<13x1xf32> to vector<1x1xf32>
    %366 = vector.extract %365[0, 0] : f32 from vector<1x1xf32>
    %367 = vector.extract_strided_slice %133 {offsets = [7, 0], sizes = [1, 1], strides = [1, 1]} : vector<13x1xf32> to vector<1x1xf32>
    %368 = vector.extract %367[0, 0] : f32 from vector<1x1xf32>
    %369 = arith.addf %366, %368 : f32
    %370 = arith.divf %369, %363 : f32
    %cst_103 = arith.constant 0.000000e+00 : f32
    %371 = arith.select %364, %cst_103, %370 : f32
    %cst_104 = arith.constant 1.000000e+00 : f32
    %372 = arith.mulf %cst_104, %322 : f32
    %cst_105 = arith.constant 5.000000e-02 : f32
    %373 = arith.mulf %cst_105, %310 : f32
    %374 = arith.addf %372, %373 : f32
    %cst_106 = arith.constant 5.000000e-03 : f32
    %375 = arith.mulf %cst_106, %328 : f32
    %376 = arith.addf %374, %375 : f32
    %377 = arith.addf %343, %351 : f32
    %cst_107 = arith.constant 5.000000e-02 : f32
    %378 = arith.mulf %cst_107, %377 : f32
    %379 = arith.addf %376, %378 : f32
    %cst_108 = arith.constant 1.000000e-01 : f32
    %380 = arith.mulf %cst_108, %360 : f32
    %381 = arith.addf %379, %380 : f32
    %cst_109 = arith.constant 1.000000e-01 : f32
    %382 = arith.mulf %cst_109, %371 : f32
    %383 = arith.addf %381, %382 : f32
    %384 = vector.broadcast %310 : f32 to vector<1x128xf32>
    %385 = vector.broadcast %322 : f32 to vector<1x128xf32>
    %386 = vector.broadcast %328 : f32 to vector<1x128xf32>
    %387 = vector.broadcast %343 : f32 to vector<1x128xf32>
    %388 = vector.broadcast %351 : f32 to vector<1x128xf32>
    %389 = vector.broadcast %360 : f32 to vector<1x128xf32>
    %390 = vector.broadcast %371 : f32 to vector<1x128xf32>
    %391 = vector.broadcast %383 : f32 to vector<1x128xf32>
    %392 = tpu.concatenate %384, %385, %386, %387, %388, %389, %390, %391 in 0 : vector<1x128xf32>, vector<1x128xf32>, vector<1x128xf32>, vector<1x128xf32>, vector<1x128xf32>, vector<1x128xf32>, vector<1x128xf32>, vector<1x128xf32> -> vector<8x128xf32>
    %c0_110 = arith.constant 0 : index
    %c0_111 = arith.constant 0 : index
    %393 = vector.load %arg2[%c0_110, %c0_111] : memref<8x128xf32, #tpu.memory_space<vmem>>, vector<8x128xf32>
    tpu.vector_store %arg2[%c0_110, %c0_111], %392 {strides = array<i32>} : memref<8x128xf32, #tpu.memory_space<vmem>>, vector<8x128xf32>,
    return
  }
  func.func @transform_0(%arg0: i32) -> (i32, i32, i32) {
    %c0_i32 = arith.constant 0 : i32
    %c0_i32_0 = arith.constant 0 : i32
    %c0_i32_1 = arith.constant 0 : i32
    %c0_i32_2 = arith.constant 0 : i32
    return %c0_i32, %c0_i32_0, %c0_i32_1 : i32, i32, i32
  }
  func.func @transform_1(%arg0: i32) -> (i32, i32) {
    %c0_i32 = arith.constant 0 : i32
    %c0_i32_0 = arith.constant 0 : i32
    %c0_i32_1 = arith.constant 0 : i32
    return %c0_i32, %c0_i32_0 : i32, i32
  }
}

</mosaic_0001>

<bundles_post_ra>
// kernel: tpu_custom_call.1
= control target key start
LH: loop header
LB: loop body
LE: loop exit
PB: predicated region body
PF: predicated region fallthrough
CT: control target
= control target key end

     0   :  { %6 = vsyncpa [#allocation3], 0  ;;  %s15034_s0 = inlined_call_operand.hbm [shape: f32[2,56,1024], index: 0, kind: input, shape index: {}]   ;;  %s15035_s1 = inlined_call_operand.hbm [shape: f32[8,128], index: 1, kind: output, shape index: {}]  }
   0x1   :  { %7 = vsyncpa [#allocation4], 0  ;;  %s10423_s6 = smov [#allocation2]  }
   0x2   :  { %s13_s7 = sshll.u32 %s10423_s6, 4  ;;  %s14_s7 = int_to_ptr.vmem [resolvable:$true] %s13_s7 }
   0x3   :  { %s10387_s8 = scalar_lea.vmem %s14_s7, 14336  ;;  %p10392_p1 = scmp.lt.s32.totalorder %s14_s7, %s14_s7 }
   0x4   :  { %p10388_p0 = scmp.ne.s32.totalorder %s14_s7, %s10387_s8  ;;  %p10393_p2 = scmp.lt.s32.totalorder %s10387_s8, %s10387_s8 }
   0x6   :  { %p10394_p3 = por %p10393_p2, %p10392_p1 }
   0x8   :  { %p10395_p4 = pnand %p10394_p3, %p10388_p0 }
   0xa   :  { %10398 = shalt.err (!%p10395_p4)
}
   0xb   :  { %s10424_s9 = smov 1024   ;;  %s10425_s10 = smov 64  }
   0xc   :  { %19 = dma.hbm_to_vmem [thread:$0]  %s15034_s0, 14336, %s14_s7, [#allocation3], %s10424_s9, %s10424_s9, %s10425_s10  }
   0xd   :  { %10419 = dma.done.wait [#allocation3], 14336  }
   0xe   :  { %10420 = vsyncadd [#allocation3], 4294952960  ;;  %v15041_v0 = vmov 1.0   ;;  %v15038_v1 = vmov 0.0   ;;  %v10458_v2 = vld [vmem:[#allocation2] sm:$0xff]  ;;  %v10460_v3 = vld [vmem:[#allocation2 + $0x8] sm:$0xff]  ;;  %v15036_v20 = vlaneseq }
   0xf   :  { %9137 = vmatprep.subr.mxu0 %v15041_v0  ;;  %10049 = vmatprep.subr.mxu1 %v15038_v1  ;;  %v10462_v4 = vld [vmem:[#allocation2 + $0x10] sm:$0xff]  ;;  %v10465_v5 = vld [vmem:[#allocation2 + $0x18] sm:$0xff]  ;;  %v10467_v6 = vld [vmem:[#allocation2 + $0x20] sm:$0xff]  ;;  %v49_v8 = vrot.slane %v10458_v2, 4  ;;  %v55_v9 = vrot.slane %v10460_v3, 4  ;;  %s10430_s2 = smov 32  }
  0x10   :  { %9138 = vmatpush3.msra.mxu0 %v15041_v0  ;;  %10050 = vmatpush1.msra.mxu1 %v15038_v1  ;;  %v10469_v7 = vld [vmem:[#allocation2 + $0x28] sm:$0xff]  ;;  %v61_v10 = vrot.slane %v10462_v4, 4  ;;  %v10475_v11 = vld [vmem:[#allocation2 + $0x30] sm:$0xff]  ;;  %v67_v12 = vrot.slane %v10465_v5, 4  ;;  %v73_v16 = vrot.slane %v10467_v6, 4  ;;  %v10496_v21 = vld [vmem:[#allocation2 + $0x38] sm:$0xff] }
  0x11   :  { %9139 = vmatprep.subr.mxu0 %v15041_v0  ;;  %4336 = vmatprep.subr.mxu1 %v15038_v1  ;;  %v50_v13 = vmax.f32 %v10458_v2, %v49_v8  ;;  %v56_v14 = vmax.f32 %v10460_v3, %v55_v9  ;;  %v79_v18 = vrot.slane %v10469_v7, 4  ;;  %v85_v19 = vrot.slane %v10475_v11, 4  ;;  %s10431_s3 = smov 1   ;;  %s10432_s4 = smov 96  }
  0x12   :  { %9140 = vmatpush3.msra.mxu0 %v15041_v0  ;;  %v62_v15 = vmax.f32 %v10462_v4, %v61_v10  ;;  %v68_v17 = vmax.f32 %v10465_v5, %v67_v12  ;;  %v74_v25 = vmax.f32 %v10467_v6, %v73_v16  ;;  %v10428_v29 = vmov 1966171168   ;;  %s10433_s5 = smov 127  }
  0x13   :  { %9141 = vmatprep.subr.mxu0 %v15041_v0  ;;  %v51_v22 = vrot.slane %v50_v13, 2  ;;  %v57_v23 = vrot.slane %v56_v14, 2  ;;  %v80_v27 = vmax.f32 %v10469_v7, %v79_v18  ;;  %v86_v28 = vmax.f32 %v10475_v11, %v85_v19 }
  0x14   :  { %9142 = vmatpush3.msra.mxu0 %v15041_v0  ;;  %v63_v24 = vrot.slane %v62_v15, 2  ;;  %v69_v26 = vrot.slane %v68_v17, 2  ;;  %v10508_v30 = vunpack.c.l.s4 %v10428_v29  ;;  %v75_v34 = vrot.slane %v74_v25, 2 }
  0x15   :  { %9143 = vmatprep.subr.mxu0 %v15041_v0  ;;  %v52_v31 = vmax.f32 %v50_v13, %v51_v22  ;;  %v58_v32 = vmax.f32 %v56_v14, %v57_v23  ;;  %v81_v36 = vrot.slane %v80_v27, 2  ;;  %v87_v37 = vrot.slane %v86_v28, 2 }
  0x16   :  { %9144 = vmatpush3.msra.mxu0 %v15041_v0  ;;  %v64_v33 = vmax.f32 %v62_v15, %v63_v24  ;;  %v70_v35 = vmax.f32 %v68_v17, %v69_v26  ;;  %v91_v38 = vrot.slane %v10496_v21, 4  ;;  %v76_v42 = vmax.f32 %v74_v25, %v75_v34 }
  0x17   :  { %9145 = vmatprep.subr.mxu0 %v15041_v0  ;;  %v53_v39 = vrot.slane %v52_v31, 1  ;;  %v59_v40 = vrot.slane %v58_v32, 1  ;;  %v82_v44 = vmax.f32 %v80_v27, %v81_v36  ;;  %v88_v45 = vmax.f32 %v86_v28, %v87_v37 }
  0x18   :  { %9146 = vmatpush3.msra.mxu0 %v15041_v0  ;;  %v65_v41 = vrot.slane %v64_v33, 1  ;;  %v71_v43 = vrot.slane %v70_v35, 1  ;;  %v92_v46 = vmax.f32 %v10496_v21, %v91_v38  ;;  %v77_v48 = vrot.slane %v76_v42, 1 }
  0x19   :  { %9147 = vmatprep.subr.mxu0 %v15041_v0  ;;  %v10519_v47 = vmax.f32 %v52_v31, %v53_v39  ;;  %v10522_v49 = vmax.f32 %v58_v32, %v59_v40  ;;  %v83_v50 = vrot.slane %v82_v44, 1  ;;  %v89_v51 = vrot.slane %v88_v45, 1 }
  0x1a   :  { %9148 = vmatpush3.msra.mxu0 %v15041_v0  ;;  %v93_v52 = vrot.slane %v92_v46, 2  ;;  %v10525_v53 = vmax.f32 %v64_v33, %v65_v41  ;;  %v10528_v54 = vshrl.u32 %v15036_v20, 7  ;;  %v10530_v55 = vmax.f32 %v70_v35, %v71_v43 }
  0x1b   :  { %9149 = vmatprep.subr.mxu0 %v15041_v0  ;;  %v10532_v56 = vmax.f32 %v76_v42, %v77_v48  ;;  %v385_v58 = vunpack.c.0.s8 %v10508_v30  ;;  %vm145_vm0 = vcmp.gt.f32.partialorder %v10519_v47, 0.0  ;;  %v162_v59 = vmin.f32 %v10458_v2, %v49_v8  ;;  %v40_v47 = vld [vmem:[#allocation2 + $0x40] ss:$8 sm:$0xf] }
  0x1c   :  { %9150 = vmatpush3.msra.mxu0 %v15041_v0  ;;  %v94_v57 = vmax.f32 %v92_v46, %v93_v52  ;;  %v168_v60 = vmin.f32 %v10460_v3, %v55_v9  ;;  %v174_v61 = vmin.f32 %v10462_v4, %v61_v10  ;;  %v10547_v62 = vmax.f32 %v82_v44, %v83_v50  ;;  %v3330_v46 = vld [vmem:[#allocation2 + $0xc4] ss:$8 sm:$0xf]  ;;  %v41_v48 = vld [vmem:[#allocation2 + $0x40] ss:$8 sm:$0xf0] }
  0x1d   :  { %9151 = vmatprep.subr.mxu0 %v15041_v0  ;;  %v10549_v63 = vmax.f32 %v88_v45, %v89_v51  ;;  %vm146_vm1 = vcmp.gt.f32.partialorder %v10522_v49, 0.0  ;;  %v180_v2 = vmin.f32 %v10465_v5, %v67_v12  ;;  %vm147_vm2 = vcmp.gt.f32.partialorder %v10525_v53, 0.0  ;;  %v3331_v51 = vld [vmem:[#allocation2 + $0xc4] ss:$8 sm:$0xf0] }
  0x1e   :  { %9152 = vmatpush3.msra.mxu0 %v15041_v0  ;;  %v95_v13 = vrot.slane %v94_v57, 1  ;;  %v163_v3 = vrot.slane %v162_v59, 2  ;;  %v169_v8 = vrot.slane %v168_v60, 2  ;;  %v175_v4 = vrot.slane %v174_v61, 2 }
  0x1f   :  { %9153 = vmatprep.subr.mxu0 %v15041_v0  ;;  %v186_v9 = vmin.f32 %v10467_v6, %v73_v16  ;;  %vm148_vm3 = vcmp.gt.f32.partialorder %v10530_v55, 0.0  ;;  %v181_v10 = vrot.slane %v180_v2, 2  ;;  %v192_v5 = vmin.f32 %v10469_v7, %v79_v18 }
  0x20   :  { %9154 = vmatpush3.msra.mxu0 %v15041_v0  ;;  %v198_v12 = vmin.f32 %v10475_v11, %v85_v19  ;;  %v164_v14 = vmin.f32 %v162_v59, %v163_v3  ;;  %v170_v15 = vmin.f32 %v168_v60, %v169_v8  ;;  %v176_v17 = vmin.f32 %v174_v61, %v175_v4  ;;  %v869_v59 = vld [vmem:[#allocation2 + $0x48] sm:$0x80]  ;;  %v10623_v3 = vld [vmem:[#allocation2 + $0x48] sm:$0x70] }
  0x21   :  { %9155 = vmatprep.subr.mxu0 %v15041_v0  ;;  %v187_v22 = vrot.slane %v186_v9, 2  ;;  %v10570_v6 = vmax.f32 %v94_v57, %v95_v13  ;;  %v182_v16 = vmin.f32 %v180_v2, %v181_v10  ;;  %v193_v23 = vrot.slane %v192_v5, 2  ;;  %v10613_v57 = vld [vmem:[#allocation2 + $0x48] sm:$0xe] }
  0x22   :  { %9156 = vmatpush3.msra.mxu0 %v15041_v0  ;;  %v199_v24 = vrot.slane %v198_v12, 2  ;;  %v165_v7 = vrot.slane %v164_v14, 1  ;;  %v171_v18 = vrot.slane %v170_v15, 1  ;;  %v177_v25 = vrot.slane %v176_v17, 1  ;;  %v877_v2 = vld [vmem:[#allocation2 + $0x88] sm:$0x3] }
  0x23   :  { %9157 = vmatprep.subr.mxu0 %v15041_v0  ;;  %v188_v26 = vmin.f32 %v186_v9, %v187_v22  ;;  %v183_v11 = vrot.slane %v182_v16, 1  ;;  %v194_v19 = vmin.f32 %v192_v5, %v193_v23  ;;  %v204_v28 = vmin.f32 %v10496_v21, %v91_v38  ;;  %v10628_v9 = vld [vmem:[#allocation2 + $0x88] sm:$0xe0] }
  0x24   :  { %9158 = vmatpush3.msra.mxu0 %v15041_v0  ;;  %v200_v27 = vmin.f32 %v198_v12, %v199_v24  ;;  %v166_v29 = vmin.f32 %v164_v14, %v165_v7  ;;  %v172_v31 = vmin.f32 %v170_v15, %v171_v18  ;;  %v178_v32 = vmin.f32 %v176_v17, %v177_v25  ;;  %v3322_v7 = vld [vmem:[#allocation2 + $0xc3] ss:$8 sm:$0xf] }
  0x25   :  { %9159 = vmatprep.subr.mxu0 %v15041_v0  ;;  %v189_v33 = vrot.slane %v188_v26, 1  ;;  %v184_v34 = vmin.f32 %v182_v16, %v183_v11  ;;  %v195_v35 = vrot.slane %v194_v19, 1  ;;  %v205_v37 = vrot.slane %v204_v28, 2  ;;  %v10633_v16 = vld [vmem:[#allocation2 + $0xc8] sm:$0x7] }
  0x26   :  { %9160 = vmatpush3.msra.mxu0 %v15041_v0  ;;  %v201_v36 = vrot.slane %v200_v27, 1  ;;  %vm257_vm4 = vcmp.lt.f32.partialorder %v166_v29, 0.0  ;;  %vm258_vm5 = vcmp.lt.f32.partialorder %v172_v31, 0.0  ;;  %vm259_vm6 = vcmp.lt.f32.partialorder %v178_v32, 0.0 }
  0x27   :  { %9161 = vmatprep.subr.mxu0 %v15041_v0  ;;  %v190_v39 = vmin.f32 %v188_v26, %v189_v33  ;;  %v196_v21 = vmin.f32 %v194_v19, %v195_v35  ;;  %v206_v40 = vmin.f32 %v204_v28, %v205_v37  ;;  %vm260_vm7 = vcmp.lt.f32.partialorder %v184_v34, 0.0  ;;  %vm273_vm8 = vmand %vm145_vm0, %vm257_vm4  ;;  %v3323_v29 = vld [vmem:[#allocation2 + $0xc3] ss:$8 sm:$0xf0] }
  0x28   :  { %9162 = vmatpush3.msra.mxu0 %v15041_v0  ;;  %v202_v38 = vmin.f32 %v200_v27, %v201_v36  ;;  %vm149_vm9 = vcmp.gt.f32.partialorder %v10532_v56, 0.0  ;;  %vm274_vm11 = vmand %vm146_vm1, %vm258_vm5  ;;  %v9095_v41 = vsel %vm273_vm8, 1.0, %v15038_v1  ;;  %v10591_v42 = vsub.s32 %v385_v58, %v10528_v54  ;;  %v901_v58 = vld [vmem:[#allocation2 + $0x88] sm:$0x1c] }
  0x29   :  { %9163 = vmatprep.subr.mxu0 %v15041_v0  ;;  %vm261_vm10 = vcmp.lt.f32.partialorder %v190_v39, 0.0  ;;  %vm150_vm12 = vcmp.gt.f32.partialorder %v10547_v62, 0.0  ;;  %v207_v43 = vrot.slane %v206_v40, 1  ;;  %vm262_vm13 = vcmp.lt.f32.partialorder %v196_v21, 0.0  ;;  %vm275_vm14 = vmand %vm147_vm2, %vm259_vm6  ;;  %v3066_v39 = vld [vmem:[#allocation2 + $0x108] sm:$0xff] }
  0x2a   :  { %9164 = vmatpush3.msra.mxu0 %v15041_v0  ;;  %15088 = vst [vmem:[#allocation8_spill] sm:$0xff] %v10591_v42  ;;  %v9096_v44 = vsel %vm274_vm11, 1.0, %v15038_v1  ;;  %vm151_vm15 = vcmp.gt.f32.partialorder %v10549_v63, 0.0  ;;  %vm263_vm0 = vcmp.lt.f32.partialorder %v202_v38, 0.0  ;;  %vm276_vm1 = vmand %vm148_vm3, %vm260_vm7  ;;  %v9097_v30 = vsel %vm275_vm14, 1.0, %v15038_v1  ;;  %v3082_v21 = vld [vmem:[#allocation2 + $0x148] sm:$0xff] }
  0x2b   :  { %9165 = vmatprep.subr.mxu0 %v15041_v0  ;;  %v379_v45 = vcombine.low %v9095_v41, %v9096_v44  ;;  %vm152_vm4 = vcmp.gt.f32.partialorder %v10570_v6, 0.0  ;;  %v208_v49 = vmin.f32 %v206_v40, %v207_v43  ;;  %vm277_vm2 = vmand %vm149_vm9, %vm261_vm10  ;;  %v9098_v50 = vsel %vm276_vm1, 1.0, %v15038_v1 }
  0x2c   :  { %9166 = vmatpush3.msra.mxu0 %v15041_v0  ;;  %vm278_vm3 = vmand %vm150_vm12, %vm262_vm13  ;;  %v9099_v52 = vsel %vm277_vm2, 1.0, %v15038_v1  ;;  %v380_v53 = vcombine.low %v9097_v30, %v9098_v50  ;;  %vm563_vm7 = vcmask 1042432   ;;  %v3332_v13 = vor.u32 %v3331_v51, %v3330_v46 }
  0x2d   :  { %9167 = vmatprep.subr.mxu0 %v15041_v0  ;;  %v389_v55 = vrot.slane %v379_v45, %v10591_v42  ;;  %vm264_vm5 = vcmp.lt.f32.partialorder %v208_v49, 0.0  ;;  %vm279_vm6 = vmand %vm151_vm15, %vm263_vm0  ;;  %v9100_v56 = vsel %vm278_vm3, 1.0, %v15038_v1  ;;  %vm15064_vm9 = vcmask 1040384  }
  0x2e   :  { %9168 = vmatpush3.msra.mxu0 %v15041_v0  ;;  %vm280_vm8 = vmand %vm152_vm4, %vm264_vm5  ;;  %v9101_v60 = vsel %vm279_vm6, 1.0, %v15038_v1  ;;  %v381_v61 = vcombine.low %v9099_v52, %v9100_v56  ;;  %v396_v62 = vrot.slane %v380_v53, %v10591_v42  ;;  %v500_v63 = vmul.f32 %v10613_v57, %v10613_v57  ;;  %v3098_v53 = vld [vmem:[#allocation2 + $0x188] sm:$0xff] }
  0x2f   :  { %4257 = vmatprep.subr.mxu0 %v15038_v1  ;;  %v9102_v8 = vsel %vm280_vm8, 1.0, %v15038_v1  ;;  %v933_v4 = vrot.slane %v901_v58, 3  ;;  %v42_v10 = vor.u32 %v41_v48, %v40_v47  ;;  %v1384_v6 = vmul.f32 %v10623_v3, %v10623_v3 }
  0x30   :  { %v382_v5 = vcombine.low %v9101_v60, %v9102_v8  ;;  %v403_v12 = vrot.slane %v381_v61, %v10591_v42  ;;  %v411_v14 = vcombine.low %v389_v55, %v396_v62  ;;  %v532_v15 = vrot.slane %v500_v63, 1 }
  0x31   :  { %v965_v17 = vsub.f32 %v869_v59, %v933_v4  ;;  %v973_v22 = vsub.f32 %v877_v2, %v933_v4  ;;  %v3337_v18 = vmul.f32 5.0, %v3332_v13  ;;  %v2120_v25 = vmul.f32 %v10628_v9, %v10628_v9 }
  0x32   :  { %v410_v23 = vrot.slane %v382_v5, %v10591_v42  ;;  %v419_v24 = vrot.slane %v411_v14, %v10591_v42  ;;  %v571_v26 = vsel %vm563_vm7, %v532_v15, 0.0  ;;  %v1416_v27 = vrot.slane %v1384_v6, 4 }
  0x33   :  { %v997_v11 = vand.u32 2147483647, %v965_v17  ;;  %v1005_v19 = vand.u32 2147483647, %v973_v22  ;;  %v572_v31 = vrot.slane %v571_v26, 4  ;;  %v2152_v32 = vrot.slane %v2120_v25, 5 }
  0x34   :  { %v412_v28 = vcombine.low %v403_v12, %v410_v23  ;;  %v2344_v33 = vmul.f32 %v10633_v16, %v10633_v16  ;;  %v10642_v34 = vsub.f32 1.0, %v42_v10  ;;  %v1454_v37 = vsel %vm563_vm7, %v1416_v27, 0.0 }
  0x35   :  { %v1064_v35 = vrot.slane %v997_v11, 7  ;;  %v1065_v36 = vrot.slane %v1005_v19, 7  ;;  %v573_v40 = vadd.f32 %v572_v31, %v571_v26  ;;  %v1455_v41 = vrot.slane %v1454_v37, 4 }
  0x36   :  { %v426_v38 = vrot.slane %v412_v28, %v10591_v42  ;;  %v2190_v43 = vsel %vm563_vm7, %v2152_v32, 0.0  ;;  %v10647_v44 = vor.u32 %v3323_v29, %v3322_v7  ;;  %v10649_v30 = vadd.f32 0.05, %v3337_v18  ;;  %v322_v29 = vld [vmem:[#allocation2 + $0xc5] ss:$8 sm:$0xf] }
  0x37   :  { %v2191_v45 = vrot.slane %v2190_v43, 4  ;;  %v2366_v46 = vsel %vm563_vm7, %v2344_v33, 0.0  ;;  %v574_v48 = vrot.slane %v573_v40, 2  ;;  %v1456_v49 = vadd.f32 %v1455_v41, %v1454_v37  ;;  %v331_v41 = vld [vmem:[#allocation2 + $0xc6] ss:$8 sm:$0xf0] }
  0x38   :  { %15089 = vst [vmem:[#allocation9_spill] sm:$0xff] %v10647_v44  ;;  %15090 = vst [vmem:[#allocation10_spill] sm:$0xff] %v10649_v30  ;;  %v427_v47 = vcombine.low %v419_v24, %v426_v38  ;;  %v3114_v50 = vadd.f32 %v3082_v21, %v3066_v39  ;;  %v2367_v52 = vrot.slane %v2366_v46, 4  ;;  %v1066_v56 = vsel %vm15064_vm9, %v1064_v35, %v1065_v36  ;;  %v323_v36 = vld [vmem:[#allocation2 + $0xc5] ss:$8 sm:$0xf0] }
  0x39   :  { %v2192_v51 = vadd.f32 %v2191_v45, %v2190_v43  ;;  %v575_v58 = vadd.f32 %v574_v48, %v573_v40  ;;  %v1457_v59 = vrot.slane %v1456_v49, 2  ;;  %v10657_v60 = vsub.s32 1, %v10528_v54  ;;  %v330_v40 = vld [vmem:[#allocation2 + $0xc6] ss:$8 sm:$0xf] }
  0x3a   :  { %v10653_v55 = vmul.f32 %v427_v47, %v10642_v34  ;;  %vm15061_vm10 = vcmask 1041408   ;;  %vm15060_vm11 = vcmask 1043456   ;;  %v10668_v13 = vsub.s32 0, %v10528_v54  ;;  %v10719_v47 = vld [vmem:[#allocation2 + $0xc7] ss:$8 sm:$0xf] }
  0x3b   :  { %15092 = vst [vmem:[#allocation12_spill] sm:$0xff] %v10657_v60  ;;  %v10670_v2 = vadd.f32 %v3114_v50, %v3098_v53  ;;  %v576_v8 = vrot.slane %v575_v58, 1  ;;  %v1132_v63 = vsel %vm563_vm7, %v1066_v56, 0.0  ;;  %v2193_v4 = vrot.slane %v2192_v51, 2 }
  0x3c   :  { %15091 = vst [vmem:[#allocation11_spill] sm:$0xff] %v10653_v55  ;;  %v10661_v61 = vmul.f32 %v10647_v44, %v10653_v55  ;;  %v10665_v62 = vmul.f32 %v10649_v30, %v10653_v55  ;;  %15093 = vst [vmem:[#allocation13_spill] sm:$0xff] %v10668_v13  ;;  %v2368_v10 = vadd.f32 %v2367_v52, %v2366_v46  ;;  %v1133_v19 = vrot.slane %v1132_v63, 4  ;;  %v10727_v52 = vld [vmem:[#allocation2 + $0xc7] ss:$8 sm:$0xf0] }
  0x3d   :  { %v1458_v15 = vadd.f32 %v1457_v59, %v1456_v49  ;;  %v3714_v17 = vrot.slane %v10653_v55, %v10657_v60  ;;  %v3710_v6 = vrot.slane %v10653_v55, %v10668_v13  ;;  %v10689_v23 = vadd.f32 %v576_v8, %v575_v58  ;;  %v10736_v8 = vld [vmem:[#allocation2 + $0x40] sm:$0xe] }
  0x3e   :  { %v10675_v5 = vmul.f32 %v10661_v61, %v10661_v61  ;;  %v10679_v12 = vmul.f32 %v10665_v62, %v10661_v61  ;;  %v3632_v14 = vrot.slane %v10661_v61, %v10657_v60  ;;  %v3628_v22 = vrot.slane %v10661_v61, %v10668_v13 }
  0x3f   :  { %v3878_v26 = vrot.slane %v10665_v62, %v10657_v60  ;;  %v3874_v11 = vrot.slane %v10665_v62, %v10668_v13  ;;  %10139 = vrsqrt.f32 %v10689_v23  ;;  %v1459_v31 = vrot.slane %v1458_v15, 1 }
  0x40   :  { %v3550_v24 = vrot.slane %v10675_v5, %v10657_v60  ;;  %v3796_v7 = vrot.slane %v10679_v12, %v10657_v60  ;;  %v3546_v18 = vrot.slane %v10675_v5, %v10668_v13  ;;  %v3792_v25 = vrot.slane %v10679_v12, %v10668_v13 }
  0x41   :  { %v3146_v32 = vand.u32 2147483647, %v10670_v2  ;;  %v2194_v37 = vadd.f32 %v2193_v4, %v2192_v51  ;;  %v2369_v39 = vrot.slane %v2368_v10, 2  ;;  %v10711_v43 = vadd.f32 %v1459_v31, %v1458_v15  ;;  %v900_v4 = vld [vmem:[#allocation2 + $0x80] sm:$0x1c] }
  0x42   :  { %v4069_v27 = vsel %vm15064_vm9, %v3550_v24, %v3632_v14  ;;  %v4068_v28 = vsel %vm15064_vm9, %v3546_v18, %v3628_v22  ;;  %v1134_v53 = vadd.f32 %v1133_v19, %v1132_v63  ;;  %v10730_v58 = vor.u32 %v323_v36, %v322_v29  ;;  %v10739_v14 = vld [vmem:[#allocation2 + $0x40] sm:$0x70]  ;;  %v868_v22 = vld [vmem:[#allocation2 + $0x40] sm:$0x80] }
  0x43   :  { %v4085_v33 = vsel %vm15061_vm10, %v4069_v27, %v3714_v17  ;;  %v4084_v35 = vsel %vm15061_vm10, %v4068_v28, %v3710_v6  ;;  %v2195_v48 = vrot.slane %v2194_v37, 1  ;;  %v2370_v49 = vadd.f32 %v2369_v39, %v2368_v10  ;;  %v10741_v15 = vld [vmem:[#allocation2 + $0x80] sm:$0xe0]  ;;  %v876_v6 = vld [vmem:[#allocation2 + $0x80] sm:$0x3] }
  0x44   :  { %v4101_v21 = vsel %vm563_vm7, %v4085_v33, %v3796_v7  ;;  %v4100_v38 = vsel %vm563_vm7, %v4084_v35, %v3792_v25  ;;  %10141 = vrsqrt.f32 %v10711_v43  ;;  %v332_v56 = vor.u32 %v331_v41, %v330_v40 }
  0x45   :  { %v10714_v45 = vsel %vm15060_vm11, %v4101_v21, %v3878_v26  ;;  %v10717_v46 = vsel %vm15060_vm11, %v4100_v38, %v3874_v11  ;;  %v2196_v59 = vadd.f32 %v2195_v48, %v2194_v37  ;;  %vm10732_vm12 = vweird.f32 %v3146_v32 }
  0x46   :  { %v10722_v50 = vand.u32 4294901760, %v10714_v45  ;;  %v10725_v51 = vand.u32 4294901760, %v10717_v46  ;;  %v2371_v10 = vrot.slane %v2370_v49, 1  ;;  %v340_v63 = vor.u32 %v10727_v52, %v10719_v47 }
  0x47   :  { %v2296_v17 = vmax.f32 %v2196_v59, 1e-24  ;;  %v1135_v24 = vrot.slane %v1134_v53, 2  ;;  %vm15062_vm13 = vmmov 1   ;;  %v499_v18 = vmul.f32 %v10736_v8, %v10736_v8  ;;  %v10768_v59 = vld [vmem:[#allocation2 + $0xc0] sm:$0x7] }
  0x48   :  { %4299 = vmatprep.mubr.f32.mxu1 %v10722_v50  ;;  %v2372_v7 = vadd.f32 %v2371_v10, %v2370_v49  ;;  %vm3178_vm14 = vmxor %vm10732_vm12, %vm15062_vm13  ;;  %v932_v25 = vrot.slane %v900_v4, 3  ;;  %vm347_vm15 = vcmp.eq.f32.partialorder %v10730_v58, 0.0  ;;  %vm10753_vm0 = vcmp.lt.f32.partialorder %v332_v56, 0.3 }
  0x49   :  { %4301 = vmatmul.mubr.f32.vlgmr.msra.gmra.mxu1 %v10725_v51  ;;  %vm685_vm1 = vcmp.eq.f32.partialorder %v10689_v23, inf  ;;  %10143 = vrsqrt.f32 %v2296_v17  ;;  %v1383_v11 = vmul.f32 %v10739_v14, %v10739_v14  ;;  %v2119_v19 = vmul.f32 %v10741_v15, %v10741_v15  ;;  %vm10785_vm5 = vmand %vm347_vm15, %vm10753_vm0 }
  0x4a   :  { %4337 = vmatpush1.msra.mxu1 %v15038_v1  ;;  %v2472_v27 = vmax.f32 %v2372_v7, 1e-24  ;;  %v531_v28 = vrot.slane %v499_v18, 1  ;;  %v964_v29 = vsub.f32 %v868_v22, %v932_v25  ;;  %v972_v31 = vsub.f32 %v876_v6, %v932_v25 }
  0x4b   :  { %9175 = vmatprep.subr.mxu1 %v15041_v0  ;;  %v688_v33 = vand.u32 2147483648, %v10689_v23  ;;  %v3194_v35 = vsel %vm3178_vm14, %v3146_v32, 0.0  ;;  %v1415_v36 = vrot.slane %v1383_v11, 4  ;;  %v2151_v37 = vrot.slane %v2119_v19, 5 }
  0x4c   :  { %v10140_v39 = vpop.eup %10139  ;;  %10145 = vrsqrt.f32 %v2472_v27  ;;  %v564_v21 = vsel %vm563_vm7, %v531_v28, 0.0  ;;  %v996_v38 = vand.u32 2147483647, %v964_v29  ;;  %v1004_v40 = vand.u32 2147483647, %v972_v31 }
  0x4d   :  { %v684_v41 = vmul.f32 %v10140_v39, %v10689_v23  ;;  %vm687_vm4 = vcmp.eq.f32.partialorder %v10689_v23, 0.0  ;;  %v565_v47 = vrot.slane %v564_v21, 4  ;;  %v1447_v48 = vsel %vm563_vm7, %v1415_v36, 0.0 }
  0x4e   :  { %v3215_v49 = vrot.slane %v3194_v35, 4  ;;  %v1061_v52 = vrot.slane %v996_v38, 7  ;;  %v1448_v56 = vrot.slane %v1447_v48, 4  ;;  %v2183_v32 = vsel %vm563_vm7, %v2151_v37, 0.0 }
  0x4f   :  { %v686_v2 = vsel %vm685_vm1, %v10689_v23, %v684_v41  ;;  %v566_v4 = vadd.f32 %v565_v47, %v564_v21  ;;  %v1062_v10 = vrot.slane %v1004_v40, 7  ;;  %v2184_v17 = vrot.slane %v2183_v32, 4 }
  0x50   :  { %v689_v22 = vsel %vm687_vm4, %v688_v33, %v686_v2  ;;  %v1136_v6 = vadd.f32 %v1135_v24, %v1134_v53  ;;  %vm1568_vm2 = vcmp.eq.f32.partialorder %v10711_v43, inf  ;;  %v1449_v7 = vadd.f32 %v1448_v56, %v1447_v48 }
  0x51   :  { %v10142_v18 = vpop.eup %10141  ;;  %v1352_v25 = vadd.f32 1e-06, %v689_v22  ;;  %v1571_v11 = vand.u32 2147483648, %v10711_v43  ;;  %v567_v19 = vrot.slane %v566_v4, 2  ;;  %v2343_v27 = vmul.f32 %v10768_v59, %v10768_v59 }
  0x52   :  { %v1567_v28 = vmul.f32 %v10142_v18, %v10711_v43  ;;  %vm1570_vm3 = vcmp.eq.f32.partialorder %v10711_v43, 0.0  ;;  %v1450_v23 = vrot.slane %v1449_v7, 2  ;;  %v2185_v29 = vadd.f32 %v2184_v17, %v2183_v32  ;;  %v3065_v18 = vld [vmem:[#allocation2 + $0x100] sm:$0xff] }
  0x53   :  { %v3216_v31 = vadd.f32 %v3215_v49, %v3194_v35  ;;  %v568_v33 = vadd.f32 %v567_v19, %v566_v4  ;;  %v1063_v53 = vsel %vm15064_vm9, %v1061_v52, %v1062_v10  ;;  %vm10789_vm6 = vcmp.lt.f32.partialorder %v340_v63, 0.03 }
  0x54   :  { %v1569_v37 = vsel %vm1568_vm2, %v10711_v43, %v1567_v28  ;;  %v1451_v35 = vadd.f32 %v1450_v23, %v1449_v7  ;;  %v2186_v39 = vrot.slane %v2185_v29, 2  ;;  %10147 = vrcp.f32 %v1352_v25  ;;  %vm355_vm12 = vmand %vm10785_vm5, %vm10789_vm6  ;;  %v3081_v25 = vld [vmem:[#allocation2 + $0x140] sm:$0xff] }
  0x55   :  { %v1572_v21 = vsel %vm1570_vm3, %v1571_v11, %v1569_v37  ;;  %v569_v38 = vrot.slane %v568_v33, 1  ;;  %v2359_v26 = vsel %vm563_vm7, %v2343_v27, 0.0  ;;  %v1137_v41 = vrot.slane %v1136_v6, 1 }
  0x56   :  { %v10144_v40 = vpop.eup %10143  ;;  %v1672_v47 = vadd.f32 1e-06, %v1572_v21  ;;  %v1125_v48 = vsel %vm563_vm7, %v1063_v53, 0.0  ;;  %v1452_v63 = vrot.slane %v1451_v35, 1  ;;  %vm345_vm8 = vcmp.eq.f32.partialorder %v10730_v58, 1.0 }
  0x57   :  { %v3217_v43 = vrot.slane %v3216_v31, 2  ;;  %v10803_v49 = vadd.f32 %v569_v38, %v568_v33  ;;  %v2187_v52 = vadd.f32 %v2186_v39, %v2185_v29  ;;  %v2360_v32 = vrot.slane %v2359_v26, 4  ;;  %vm357_vm14 = vmor %vm345_vm8, %vm355_vm12  ;;  %v3097_v29 = vld [vmem:[#allocation2 + $0x180] sm:$0xff] }
  0x58   :  { %10149 = vrcp.f32 %v1672_v47  ;;  %v10805_v56 = vadd.f32 %v1452_v63, %v1451_v35  ;;  %v10809_v4 = vrot.slane %v10642_v34, %v10657_v60  ;;  %v1126_v58 = vrot.slane %v1125_v48, 4 }
  0x59   :  { %v10146_v2 = vpop.eup %10145  ;;  %10151 = vrsqrt.f32 %v10803_v49  ;;  %v1138_v10 = vadd.f32 %v1137_v41, %v1136_v6  ;;  %v2328_v17 = vmul.f32 %v10144_v40, %v10628_v9  ;;  %v9114_v11 = vadd.f32 -1.0, %v689_v22 }
  0x5a   :  { %v2504_v7 = vmul.f32 %v10146_v2, %v10633_v16  ;;  %10153 = vrsqrt.f32 %v10805_v56  ;;  %v3218_v19 = vadd.f32 %v3217_v43, %v3216_v31  ;;  %v2188_v27 = vrot.slane %v2187_v52, 1 }
  0x5b   :  { %v2361_v23 = vadd.f32 %v2360_v32, %v2359_v26  ;;  %v9111_v33 = vsel %vm357_vm14, 1.0, %v15038_v1  ;;  %v1127_v53 = vadd.f32 %v1126_v58, %v1125_v48  ;;  %v3113_v36 = vadd.f32 %v3081_v25, %v3065_v18  ;;  %v10821_v26 = vld [vmem:[#allocation2 + $0x58] sm:$0xe] }
  0x5c   :  { %v2536_v28 = vrot.slane %v2504_v7, 3  ;;  %v2189_v24 = vadd.f32 %v2188_v27, %v2187_v52  ;;  %v10817_v6 = vmul.f32 %v10809_v4, %v1138_v10  ;;  %v10819_v35 = vmul.f32 %v9114_v11, %v9114_v11 }
  0x5d   :  { %v2362_v37 = vrot.slane %v2361_v23, 2  ;;  %v3219_v39 = vrot.slane %v3218_v19, 1  ;;  %v3129_v22 = vadd.f32 %v3113_v36, %v3097_v29  ;;  %v10824_v40 = vmul.f32 %v9111_v33, %v10653_v55 }
  0x5e   :  { %v2568_v9 = vsub.f32 %v2328_v17, %v2536_v28  ;;  %v2858_v16 = vmul.f32 %v2536_v28, %v2328_v17  ;;  %v1128_v41 = vrot.slane %v1127_v53, 2  ;;  %v2295_v47 = vmax.f32 %v2189_v24, 1e-24 }
  0x5f   :  { %v2363_v38 = vadd.f32 %v2362_v37, %v2361_v23  ;;  %v3145_v48 = vand.u32 2147483647, %v3129_v22  ;;  %v3366_v52 = vrot.slane %v10817_v6, 7  ;;  %v10829_v32 = vrot.slane %v10642_v34, %v10668_v13 }
  0x60   :  { %v2584_v31 = vand.u32 2147483647, %v2568_v9  ;;  %v2890_v21 = vrot.slane %v2858_v16, 5  ;;  %vm821_vm15 = vweird.f32 %v10819_v35  ;;  %v3220_v58 = vadd.f32 %v3219_v39, %v3218_v19 }
  0x61   :  { %v10148_v63 = vpop.eup %10147  ;;  %v2364_v2 = vrot.slane %v2363_v38, 1  ;;  %vm678_vm0 = vcmp.eq.f32.partialorder %v10803_v49, inf  ;;  %vm3161_vm1 = vweird.f32 %v3145_v48  ;;  %vm680_vm4 = vcmp.eq.f32.partialorder %v10803_v49, 0.0  ;;  %vm10845_vm3 = vmxor %vm821_vm15, %vm15062_vm13 }
  0x62   :  { %v2616_v43 = vrot.slane %v2584_v31, 5  ;;  %v2928_v10 = vsel %vm563_vm7, %v2890_v21, 0.0  ;;  %v502_v7 = vmul.f32 %v10821_v26, %v10821_v26  ;;  %v1704_v25 = vmul.f32 %v10148_v63, %v10613_v57  ;;  %vm3177_vm2 = vmxor %vm3161_vm1, %vm15062_vm13 }
  0x63   :  { %v2365_v17 = vadd.f32 %v2364_v2, %v2363_v38  ;;  %v681_v11 = vand.u32 2147483648, %v10803_v49  ;;  %v1129_v27 = vadd.f32 %v1128_v41, %v1127_v53  ;;  %10155 = vrsqrt.f32 %v2295_v47 }
  0x64   :  { %v2654_v23 = vsel %vm563_vm7, %v2616_v43, 0.0  ;;  %v534_v33 = vrot.slane %v502_v7, 1  ;;  %v2929_v57 = vrot.slane %v2928_v10, 4  ;;  %vm1561_vm5 = vcmp.eq.f32.partialorder %v10805_v56, inf }
  0x65   :  { %v10150_v18 = vpop.eup %10149  ;;  %v2471_v29 = vmax.f32 %v2365_v17, 1e-24  ;;  %vm1563_vm6 = vcmp.eq.f32.partialorder %v10805_v56, 0.0  ;;  %v1564_v9 = vand.u32 2147483648, %v10805_v56  ;;  %v2655_v16 = vrot.slane %v2654_v23, 4 }
  0x66   :  { %v10152_v28 = vpop.eup %10151  ;;  %v1720_v19 = vmul.f32 %v10150_v18, %v10623_v3  ;;  %v3193_v39 = vsel %vm3177_vm2, %v3145_v48, 0.0  ;;  %v585_v22 = vsel %vm563_vm7, %v534_v33, 0.0  ;;  %v853_v31 = vsel %vm10845_vm3, %v10819_v35, 0.0  ;;  %v903_v35 = vld [vmem:[#allocation2 + $0x98] sm:$0x1c] }
  0x67   :  { %v10154_v24 = vpop.eup %10153  ;;  %v677_v53 = vmul.f32 %v10152_v28, %v10803_v49  ;;  %10157 = vrsqrt.f32 %v2471_v29  ;;  %v2930_v47 = vadd.f32 %v2929_v57, %v2928_v10  ;;  %v1130_v63 = vrot.slane %v1129_v27, 1 }
  0x68   :  { %v1752_v3 = vrot.slane %v1720_v19, 3  ;;  %v1560_v6 = vmul.f32 %v10154_v24, %v10805_v56  ;;  %v10866_v2 = vsub.f32 %v10714_v45, %v10722_v50  ;;  %v3209_v7 = vrot.slane %v3193_v39, 4 }
  0x69   :  { %v679_v37 = vsel %vm678_vm0, %v10803_v49, %v677_v53  ;;  %v586_v18 = vrot.slane %v585_v22, 4  ;;  %v10871_v49 = vmul.f32 %v3220_v58, %v10809_v4  ;;  %v10876_v10 = vsub.f32 %v10717_v46, %v10725_v51  ;;  %v871_v53 = vld [vmem:[#allocation2 + $0x58] sm:$0x80] }
  0x6a   :  { %v1784_v21 = vsub.f32 %v1704_v25, %v1752_v3  ;;  %v682_v38 = vsel %vm680_vm4, %v681_v11, %v679_v37  ;;  %v1562_v41 = vsel %vm1561_vm5, %v10805_v56, %v1560_v6  ;;  %v2656_v25 = vadd.f32 %v2655_v16, %v2654_v23  ;;  %v10885_v3 = vld [vmem:[#allocation2 + $0x58] sm:$0x70] }
  0x6b   :  { %v1351_v43 = vadd.f32 1e-06, %v682_v38  ;;  %v1565_v17 = vsel %vm1563_vm6, %v1564_v9, %v1562_v41  ;;  %v3952_v11 = vsel %vm15064_vm9, %v853_v31, %v3366_v52  ;;  %v587_v19 = vadd.f32 %v586_v18, %v585_v22  ;;  %v10895_v22 = vld [vmem:[#allocation2 + $0x98] sm:$0xe0] }
  0x6c   :  { %v1800_v48 = vmul.f32 %v1784_v21, %v1784_v21  ;;  %v1671_v45 = vadd.f32 1e-06, %v1565_v17  ;;  %v2931_v29 = vrot.slane %v2930_v47, 2  ;;  %v1131_v56 = vadd.f32 %v1130_v63, %v1129_v27 }
  0x6d   :  { %10159 = vrcp.f32 %v1351_v43  ;;  %v15037_v33 = vand.u32 4294901760, %v10866_v2  ;;  %v935_v24 = vrot.slane %v903_v35, 3  ;;  %v3210_v58 = vadd.f32 %v3209_v7, %v3193_v39  ;;  %v879_v39 = vld [vmem:[#allocation2 + $0x98] sm:$0x3] }
  0x6e   :  { %v1832_v28 = vrot.slane %v1800_v48, 1  ;;  %10161 = vrcp.f32 %v1671_v45  ;;  %v588_v36 = vrot.slane %v587_v19, 2  ;;  %v10882_v52 = vrot.slane %v10824_v40, %v10657_v60 }
  0x6f   :  { %v2657_v27 = vrot.slane %v2656_v25, 2  ;;  %v10889_v9 = vsel %vm15061_vm10, %v3952_v11, %v10809_v4  ;;  %v10893_v16 = vrot.slane %v10824_v40, %v10668_v13  ;;  %v2932_v21 = vadd.f32 %v2931_v29, %v2930_v47 }
  0x70   :  { %v1870_v23 = vsel %vm563_vm7, %v1832_v28, 0.0  ;;  %v10156_v6 = vpop.eup %10155  ;;  %v589_v37 = vadd.f32 %v588_v36, %v587_v19  ;;  %v10898_v41 = vmul.f32 %v10829_v32, %v1131_v56  ;;  %v15040_v63 = vand.u32 4294901760, %v10876_v10 }
  0x71   :  { %v1871_v57 = vrot.slane %v1870_v23, 4  ;;  %v3211_v43 = vrot.slane %v3210_v58, 2  ;;  %v10904_v4 = vsub.f32 %v10866_v2, %v15037_v33  ;;  %v967_v17 = vsub.f32 %v871_v53, %v935_v24 }
  0x72   :  { %v590_v48 = vrot.slane %v589_v37, 1  ;;  %v975_v35 = vsub.f32 %v879_v39, %v935_v24  ;;  %v1386_v11 = vmul.f32 %v10885_v3, %v10885_v3  ;;  %v2122_v47 = vmul.f32 %v10895_v22, %v10895_v22 }
  0x73   :  { %v1872_v31 = vadd.f32 %v1871_v57, %v1870_v23  ;;  %v2658_v28 = vadd.f32 %v2657_v27, %v2656_v25  ;;  %v2327_v45 = vmul.f32 %v10156_v6, %v10741_v15  ;;  %v2933_v23 = vrot.slane %v2932_v21, 1 }
  0x74   :  { %v10158_v7 = vpop.eup %10157  ;;  %v10912_v29 = vadd.f32 %v590_v48, %v589_v37  ;;  %v1418_v36 = vrot.slane %v1386_v11, 4  ;;  %v2154_v57 = vrot.slane %v2122_v47, 5  ;;  %v9113_v53 = vadd.f32 -1.0, %v682_v38 }
  0x75   :  { %v1873_v18 = vrot.slane %v1872_v31, 2  ;;  %v2503_v19 = vmul.f32 %v10158_v7, %v10768_v59  ;;  %v3365_v24 = vrot.slane %v10898_v41, 7  ;;  %v999_v33 = vand.u32 2147483647, %v967_v17 }
  0x76   :  { %10163 = vrsqrt.f32 %v10912_v29  ;;  %v1007_v1 = vand.u32 2147483647, %v975_v35  ;;  %v1468_v25 = vsel %vm563_vm7, %v1418_v36, 0.0  ;;  %v3212_v59 = vadd.f32 %v3211_v43, %v3210_v58 }
  0x77   :  { %v1874_v56 = vadd.f32 %v1873_v18, %v1872_v31  ;;  %v2535_v20 = vrot.slane %v2503_v19, 3  ;;  %v1469_v27 = vrot.slane %v1468_v25, 4  ;;  %v2659_v48 = vrot.slane %v2658_v28, 1  ;;  %v10920_v19 = vld [vmem:[#allocation2 + $0xd8] sm:$0x7] }
  0x78   :  { %v2934_v7 = vadd.f32 %v2933_v23, %v2932_v21  ;;  %v2204_v38 = vsel %vm563_vm7, %v2154_v57, 0.0  ;;  %v10923_v36 = vmul.f32 %v9113_v53, %v9113_v53  ;;  %v1071_v58 = vrot.slane %v1007_v1, 7 }
  0x79   :  { %v1875_v39 = vrot.slane %v1874_v56, 1  ;;  %v2567_v15 = vsub.f32 %v2327_v45, %v2535_v20  ;;  %v2857_v6 = vmul.f32 %v2535_v20, %v2327_v45  ;;  %v1470_v47 = vadd.f32 %v1469_v27, %v1468_v25 }
  0x7a   :  { %v10160_v37 = vpop.eup %10159  ;;  %v2205_v17 = vrot.slane %v2204_v38, 4  ;;  %v1070_v20 = vrot.slane %v999_v33, 7  ;;  %v2346_v25 = vmul.f32 %v10920_v19, %v10920_v19  ;;  %v3213_v53 = vrot.slane %v3212_v59, 1 }
  0x7b   :  { %v10917_v31 = vadd.f32 %v1875_v39, %v1874_v56  ;;  %v2583_v18 = vand.u32 2147483647, %v2567_v15  ;;  %v2889_v11 = vrot.slane %v2857_v6, 5  ;;  %v10162_v35 = vpop.eup %10161  ;;  %v1703_v43 = vmul.f32 %v10160_v37, %v10736_v8 }
  0x7c   :  { %v1719_v45 = vmul.f32 %v10162_v35, %v10739_v14  ;;  %v1471_v57 = vrot.slane %v1470_v47, 2  ;;  %v2206_v39 = vadd.f32 %v2205_v17, %v2204_v38  ;;  %v2660_v1 = vadd.f32 %v2659_v48, %v2658_v28 }
  0x7d   :  { %10165 = vrsqrt.f32 %v10917_v31  ;;  %v2615_v21 = vrot.slane %v2583_v18, 5  ;;  %v2921_v56 = vsel %vm563_vm7, %v2889_v11, 0.0  ;;  %v1072_v8 = vsel %vm15064_vm9, %v1070_v20, %v1071_v58 }
  0x7e   :  { %v2922_v23 = vrot.slane %v2921_v56, 4  ;;  %v1751_v15 = vrot.slane %v1719_v45, 3  ;;  %v1472_v27 = vadd.f32 %v1471_v57, %v1470_v47  ;;  %v2207_v14 = vrot.slane %v2206_v39, 2 }
  0x7f   :  { %v2647_v6 = vsel %vm563_vm7, %v2615_v21, 0.0  ;;  %v10936_v38 = vsub.f32 %v10876_v10, %v15040_v63  ;;  %v2380_v11 = vsel %vm563_vm7, %v2346_v25, 0.0  ;;  %v3034_v17 = vsub.f32 1.0, %v2934_v7 }
  0x80   :  { %v1783_v37 = vsub.f32 %v1703_v43, %v1751_v15  ;;  %v2648_v18 = vrot.slane %v2647_v6, 4  ;;  %vm820_vm8 = vweird.f32 %v10923_v36  ;;  %v2923_v35 = vadd.f32 %v2922_v23, %v2921_v56 }
  0x81   :  { %v1473_v45 = vrot.slane %v1472_v27, 1  ;;  %v1146_v28 = vsel %vm563_vm7, %v1072_v8, 0.0  ;;  %v2208_v48 = vadd.f32 %v2207_v14, %v2206_v39  ;;  %v2381_v47 = vrot.slane %v2380_v11, 4  ;;  %vm10946_vm15 = vmxor %vm820_vm8, %vm15062_vm13 }
  0x82   :  { %v1799_v21 = vmul.f32 %v1783_v37, %v1783_v37  ;;  %v2842_v58 = vmul.f32 %v10882_v52, %v2660_v1  ;;  %v3214_v43 = vadd.f32 %v3213_v53, %v3212_v59  ;;  %vm699_vm12 = vcmp.eq.f32.partialorder %v10912_v29, inf }
  0x83   :  { %v10164_v20 = vpop.eup %10163  ;;  %v10943_v57 = vadd.f32 %v1473_v45, %v1472_v27  ;;  %vm15059_vm14 = vcmask 1044480   ;;  %v2649_v23 = vadd.f32 %v2648_v18, %v2647_v6  ;;  %vm701_vm0 = vcmp.eq.f32.partialorder %v10912_v29, 0.0 }
  0x84   :  { %v1831_v56 = vrot.slane %v1799_v21, 1  ;;  %v698_v25 = vmul.f32 %v10164_v20, %v10912_v29  ;;  %vm15058_vm1 = vcmask 1045504   ;;  %v2924_v39 = vrot.slane %v2923_v35, 2 }
  0x85   :  { %v702_v59 = vand.u32 2147483648, %v10912_v29  ;;  %v1147_v15 = vrot.slane %v1146_v28, 4  ;;  %10167 = vrsqrt.f32 %v10943_v57  ;;  %vm15057_vm4 = vcmask 1046528  }
  0x86   :  { %v1863_v53 = vsel %vm563_vm7, %v1831_v56, 0.0  ;;  %v700_v1 = vsel %vm699_vm12, %v10912_v29, %v698_v25  ;;  %v2209_v8 = vrot.slane %v2208_v48, 1  ;;  %v2382_v27 = vadd.f32 %v2381_v47, %v2380_v11 }
  0x87   :  { %v3050_v6 = vmul.f32 %v3034_v17, %v10882_v52  ;;  %v852_v14 = vsel %vm10946_vm15, %v10923_v36, 0.0  ;;  %v1864_v37 = vrot.slane %v1863_v53, 4  ;;  %v10961_v18 = vmul.f32 %v3214_v43, %v10829_v32 }
  0x88   :  { %vm1984_vm2 = vcmp.eq.f32.partialorder %v10917_v31, inf  ;;  %vm1986_vm3 = vcmp.eq.f32.partialorder %v10917_v31, 0.0  ;;  %v1987_v21 = vand.u32 2147483648, %v10917_v31  ;;  %v2650_v20 = vrot.slane %v2649_v23, 2 }
  0x89   :  { %v1865_v47 = vadd.f32 %v1864_v37, %v1863_v53  ;;  %v10969_v17 = vsel %vm701_vm0, %v702_v59, %v700_v1  ;;  %v10971_v36 = vadd.f32 %v1147_v15, %v1146_v28  ;;  %v3414_v7 = vrot.slane %v2842_v58, 4  ;;  %v3068_v1 = vld [vmem:[#allocation2 + $0x118] sm:$0xff]  ;;  %v10978_v15 = vld [vmem:[#allocation2 + $0x50] sm:$0xe] }
  0x8a   :  { %v10166_v45 = vpop.eup %10165  ;;  %v2925_v43 = vadd.f32 %v2924_v39, %v2923_v35  ;;  %v2210_v56 = vadd.f32 %v2209_v8, %v2208_v48  ;;  %v2383_v25 = vrot.slane %v2382_v27, 2  ;;  %v3462_v33 = vrot.slane %v3050_v6, 3  ;;  %v3084_v28 = vld [vmem:[#allocation2 + $0x158] sm:$0xff]  ;;  %v902_v39 = vld [vmem:[#allocation2 + $0x90] sm:$0x1c] }
  0x8b   :  { %v1983_v11 = vmul.f32 %v10166_v45, %v10917_v31  ;;  %v1866_v0 = vrot.slane %v1865_v47, 2  ;;  %v3951_v46 = vsel %vm15064_vm9, %v852_v14, %v3365_v24  ;;  %v2651_v53 = vadd.f32 %v2650_v20, %v2649_v23 }
  0x8c   :  { %v1354_v29 = vadd.f32 1e-06, %v10969_v17  ;;  %v2384_v59 = vadd.f32 %v2383_v25, %v2382_v27  ;;  %v10984_v58 = vsub.s32 3, %v10528_v54  ;;  %v2298_v24 = vmax.f32 %v2210_v56, 1e-24 }
  0x8d   :  { %v1985_v63 = vsel %vm1984_vm2, %v10917_v31, %v1983_v11  ;;  %v1867_v48 = vadd.f32 %v1866_v0, %v1865_v47  ;;  %v1149_v31 = vrot.slane %v10971_v36, 2  ;;  %v3116_v6 = vadd.f32 %v3084_v28, %v3068_v1 }
  0x8e   :  { %v1988_v45 = vsel %vm1986_vm3, %v1987_v21, %v1985_v63  ;;  %15106 = vst [vmem:[#allocation14_spill] sm:$0xff] %v10984_v58  ;;  %v2926_v63 = vrot.slane %v2925_v43, 1  ;;  %v2385_v23 = vrot.slane %v2384_v59, 1  ;;  %v501_v14 = vmul.f32 %v10978_v15, %v10978_v15  ;;  %v3100_v21 = vld [vmem:[#allocation2 + $0x198] sm:$0xff] }
  0x8f   :  { %v3985_v35 = vsel %vm563_vm7, %v10889_v9, %v1988_v45  ;;  %v1868_v27 = vrot.slane %v1867_v48, 1  ;;  %v2652_v9 = vrot.slane %v2651_v53, 1  ;;  %10169 = vrcp.f32 %v1354_v29 }
  0x90   :  { %v4002_v41 = vsel %vm15060_vm11, %v3985_v35, %v3414_v7  ;;  %v2386_v37 = vadd.f32 %v2385_v23, %v2384_v59  ;;  %v15107_v20 = vrot.slane %v10871_v49, 1  ;;  %v533_v7 = vrot.slane %v501_v14, 1 }
  0x91   :  { %v4019_v8 = vsel %vm15059_vm14, %v4002_v41, %v3462_v33  ;;  %v10995_v47 = vadd.f32 %v1868_v27, %v1867_v48  ;;  %v870_v33 = vld [vmem:[#allocation2 + $0x50] sm:$0x80]  ;;  %v934_v56 = vrot.slane %v902_v39, 3  ;;  %v2927_v1 = vadd.f32 %v2926_v63, %v2925_v43  ;;  %v11013_v27 = vld [vmem:[#allocation2 + $0x50] sm:$0x70] }
  0x92   :  { %v4036_v0 = vsel %vm15058_vm1, %v4019_v8, %v10882_v52  ;;  %v10168_v25 = vpop.eup %10167  ;;  %10171 = vrsqrt.f32 %v2298_v24  ;;  %v2474_v28 = vmax.f32 %v2386_v37, 1e-24  ;;  %v878_v52 = vld [vmem:[#allocation2 + $0x90] sm:$0x3]  ;;  %vm1582_vm5 = vcmp.eq.f32.partialorder %v10943_v57, inf }
  0x93   :  { %v4053_v11 = vsel %vm15057_vm4, %v4036_v0, %v15107_v20  ;;  %10173 = vrsqrt.f32 %v10995_v47  ;;  %v1585_v49 = vand.u32 2147483648, %v10943_v57  ;;  %v11002_v29 = vadd.f32 %v3116_v6, %v3100_v21 }
  0x94   :  { %v10997_v45 = vand.u32 4294901760, %v4053_v11  ;;  %v1581_v35 = vmul.f32 %v10168_v25, %v10943_v57  ;;  %vm1584_vm6 = vcmp.eq.f32.partialorder %v10943_v57, 0.0  ;;  %10175 = vrsqrt.f32 %v2474_v28 }
  0x95   :  { %v2653_v43 = vadd.f32 %v2652_v9, %v2651_v53  ;;  %v578_v48 = vsel %vm563_vm7, %v533_v7, 0.0  ;;  %v966_v41 = vsub.f32 %v870_v33, %v934_v56  ;;  %v974_v63 = vsub.f32 %v878_v52, %v934_v56  ;;  %v11023_v9 = vld [vmem:[#allocation2 + $0x90] sm:$0xe0] }
  0x96   :  { %v11005_v59 = vsub.f32 %v4053_v11, %v10997_v45  ;;  %v3033_v24 = vsub.f32 1.0, %v2927_v1  ;;  %v1583_v39 = vsel %vm1582_vm5, %v10943_v57, %v1581_v35  ;;  %v579_v8 = vrot.slane %v578_v48, 4 }
  0x97   :  { %v11018_v14 = vsel %vm15061_vm10, %v3951_v46, %v10829_v32  ;;  %v11021_v53 = vadd.f32 %v1149_v31, %v10971_v36  ;;  %v1586_v0 = vsel %vm1584_vm6, %v1585_v49, %v1583_v39  ;;  %v998_v21 = vand.u32 2147483647, %v966_v41  ;;  %v11037_v31 = vld [vmem:[#allocation2 + $0xd0] sm:$0x7] }
  0x98   :  { %4372 = vmatprep.mubr.f32.mxu1 %v11005_v59  ;;  %v15043_v23 = vand.u32 4294901760, %v11005_v59  ;;  %v1674_v57 = vadd.f32 1e-06, %v1586_v0  ;;  %v1006_v20 = vand.u32 2147483647, %v974_v63  ;;  %v11029_v11 = vmul.f32 %v10893_v16, %v2653_v43 }
  0x99   :  { %v11033_v32 = vrot.slane %v10642_v34, %v10984_v58  ;;  %v580_v46 = vadd.f32 %v579_v8, %v578_v48  ;;  %v1385_v36 = vmul.f32 %v11013_v27, %v11013_v27  ;;  %v11040_v7 = vmul.f32 %v3033_v24, %v10893_v16 }
  0x9a   :  { %v4199_v37 = vsub.f32 %v11005_v59, %v15043_v23  ;;  %10177 = vrcp.f32 %v1674_v57  ;;  %v3148_v56 = vand.u32 2147483647, %v11002_v29  ;;  %v2121_v52 = vmul.f32 %v11023_v9, %v11023_v9 }
  0x9b   :  { %v581_v1 = vrot.slane %v580_v46, 2  ;;  %v1417_v28 = vrot.slane %v1385_v36, 4  ;;  %v11047_v49 = vadd.f32 -1.0, %v10969_v17  ;;  %v1067_v35 = vrot.slane %v998_v21, 7 }
  0x9c   :  { %v4200_v33 = vand.u32 4294901760, %v4199_v37  ;;  %v1068_v43 = vrot.slane %v1006_v20, 7  ;;  %v2345_v48 = vmul.f32 %v11037_v31, %v11037_v31  ;;  %v10170_v41 = vpop.eup %10169  ;;  %v3413_v63 = vrot.slane %v11029_v11, 4 }
  0x9d   :  { %v582_v29 = vadd.f32 %v581_v1, %v580_v46  ;;  %v1461_v24 = vsel %vm563_vm7, %v1417_v28, 0.0  ;;  %v2153_v39 = vrot.slane %v2121_v52, 5  ;;  %v3461_v8 = vrot.slane %v11040_v7, 3  ;;  %v3067_v28 = vld [vmem:[#allocation2 + $0x110] sm:$0xff] }
  0x9e   :  { %4201 = vmatprep.mubr.f32.mxu0 %v4200_v33  ;;  %vm11054_vm8 = vweird.f32 %v3148_v56  ;;  %v1462_v17 = vrot.slane %v1461_v24, 4  ;;  %v2373_v37 = vsel %vm563_vm7, %v2345_v48, 0.0  ;;  %vm1977_vm12 = vcmp.eq.f32.partialorder %v10995_v47, inf  ;;  %v3083_v52 = vld [vmem:[#allocation2 + $0x150] sm:$0xff] }
  0x9f   :  { %v10172_v57 = vpop.eup %10171  ;;  %v583_v21 = vrot.slane %v582_v29, 1  ;;  %v2197_v20 = vsel %vm563_vm7, %v2153_v39, 0.0  ;;  %v2374_v11 = vrot.slane %v2373_v37, 4  ;;  %v1980_v36 = vand.u32 2147483648, %v10995_v47  ;;  %vm3180_vm0 = vmxor %vm11054_vm8, %vm15062_vm13 }
  0xa0   :  { %v10174_v46 = vpop.eup %10173  ;;  %v1069_v33 = vsel %vm15064_vm9, %v1067_v35, %v1068_v43  ;;  %v1463_v7 = vadd.f32 %v1462_v17, %v1461_v24  ;;  %v2198_v1 = vrot.slane %v2197_v20, 4  ;;  %vm1979_vm15 = vcmp.eq.f32.partialorder %v10995_v47, 0.0 }
  0xa1   :  { %v10176_v23 = vpop.eup %10175  ;;  %v1976_v25 = vmul.f32 %v10174_v46, %v10995_v47  ;;  %v11068_v48 = vadd.f32 %v583_v21, %v582_v29  ;;  %v2375_v39 = vadd.f32 %v2374_v11, %v2373_v37  ;;  %v2330_v6 = vmul.f32 %v10172_v57, %v10895_v22  ;;  %v3099_v11 = vld [vmem:[#allocation2 + $0x190] sm:$0xff] }
  0xa2   :  { %v2506_v35 = vmul.f32 %v10176_v23, %v10920_v19  ;;  %v1464_v43 = vrot.slane %v1463_v7, 2  ;;  %v2199_v24 = vadd.f32 %v2198_v1, %v2197_v20  ;;  %v1139_v46 = vsel %vm563_vm7, %v1069_v33, 0.0 }
  0xa3   :  { %v1978_v17 = vsel %vm1977_vm12, %v10995_v47, %v1976_v25  ;;  %10179 = vrsqrt.f32 %v11068_v48  ;;  %v3115_v30 = vadd.f32 %v3083_v52, %v3067_v28  ;;  %v1706_v29 = vmul.f32 %v10170_v41, %v10821_v26 }
  0xa4   :  { %v1981_v0 = vsel %vm1979_vm15, %v1980_v36, %v1978_v17  ;;  %v2538_v21 = vrot.slane %v2506_v35, 3  ;;  %v3196_v37 = vsel %vm3180_vm0, %v3148_v56, 0.0  ;;  %v1465_v19 = vadd.f32 %v1464_v43, %v1463_v7 }
  0xa5   :  { %v3984_v22 = vsel %vm563_vm7, %v11018_v14, %v1981_v0  ;;  %v2200_v23 = vrot.slane %v2199_v24, 2  ;;  %v2376_v57 = vrot.slane %v2375_v39, 2  ;;  %v1140_v1 = vrot.slane %v1139_v46, 4 }
  0xa6   :  { %v4001_v20 = vsel %vm15060_vm11, %v3984_v22, %v3413_v63  ;;  %v2570_v47 = vsub.f32 %v2330_v6, %v2538_v21  ;;  %v2860_v25 = vmul.f32 %v2538_v21, %v2330_v6  ;;  %v1466_v36 = vrot.slane %v1465_v19, 1 }
  0xa7   :  { %v10178_v44 = vpop.eup %10177  ;;  %v4018_v33 = vsel %vm15059_vm14, %v4001_v20, %v3461_v8  ;;  %v2201_v28 = vadd.f32 %v2200_v23, %v2199_v24  ;;  %v11082_v26 = vadd.f32 %v3115_v30, %v3099_v11  ;;  %v15110_v52 = vrot.slane %v10961_v18, 1 }
  0xa8   :  { %v4035_v56 = vsel %vm15058_vm1, %v4018_v33, %v10893_v16  ;;  %v1722_v14 = vmul.f32 %v10178_v44, %v10885_v3  ;;  %v2586_v41 = vand.u32 2147483647, %v2570_v47  ;;  %v2892_v7 = vrot.slane %v2860_v25, 5 }
  0xa9   :  { %v4052_v63 = vsel %vm15057_vm4, %v4035_v56, %v15110_v52  ;;  %v11090_v6 = vadd.f32 %v1466_v36, %v1465_v19  ;;  %v2202_v35 = vrot.slane %v2201_v28, 1  ;;  %v2377_v43 = vadd.f32 %v2376_v57, %v2375_v39 }
  0xaa   :  { %v11092_v8 = vand.u32 4294901760, %v4052_v63  ;;  %v1754_v24 = vrot.slane %v1722_v14, 3  ;;  %v2618_v30 = vrot.slane %v2586_v41, 5  ;;  %v2942_v17 = vsel %vm563_vm7, %v2892_v7, 0.0 }
  0xab   :  { %v2943_v0 = vrot.slane %v2942_v17, 4  ;;  %v3227_v16 = vrot.slane %v3196_v37, 4  ;;  %v1141_v21 = vadd.f32 %v1140_v1, %v1139_v46  ;;  %10181 = vrsqrt.f32 %v11090_v6 }
  0xac   :  { %v11097_v44 = vsub.f32 %v4052_v63, %v11092_v8  ;;  %v15111_v3 = vrot.slane %v11021_v53, 1  ;;  %v1786_v11 = vsub.f32 %v1706_v29, %v1754_v24  ;;  %v2668_v39 = vsel %vm563_vm7, %v2618_v30, 0.0 }
  0xad   :  { %v11105_v22 = vmul.f32 %v11047_v49, %v11047_v49  ;;  %v2669_v19 = vrot.slane %v2668_v39, 4  ;;  %v2944_v23 = vadd.f32 %v2943_v0, %v2942_v17  ;;  %v2203_v57 = vadd.f32 %v2202_v35, %v2201_v28 }
  0xae   :  { %v1152_v18 = vadd.f32 %v15111_v3, %v11021_v53  ;;  %4375 = vmatmul.mubr.f32.vlgmr.msra.gmra.mxu1 %v11097_v44  ;;  %v4204_v46 = vand.u32 4294901760, %v11097_v44  ;;  %v1802_v20 = vmul.f32 %v1786_v11, %v1786_v11  ;;  %v2378_v47 = vrot.slane %v2377_v43, 1 }
  0xaf   :  { %v3147_v25 = vand.u32 2147483647, %v11082_v26  ;;  %v15112_v1 = vmov 1.0   ;;  %4381 = vmatprep.mubr.f32.mxu1 %v10866_v2  ;;  %v3228_v53 = vadd.f32 %v3227_v16, %v3196_v37  ;;  %vm692_vm2 = vcmp.eq.f32.partialorder %v11068_v48, inf }
  0xb0   :  { %9176 = vmatpush3.msra.mxu1 %v15112_v1  ;;  %v1142_v49 = vrot.slane %v1141_v21, 2  ;;  %v2297_v29 = vmax.f32 %v2203_v57, 1e-24  ;;  %v10180_v33 = vpop.eup %10179  ;;  %v4205_v36 = vsub.f32 %v11097_v44, %v4204_v46  ;;  %v1834_v28 = vrot.slane %v1802_v20, 1 }
  0xb1   :  { %9177 = vmatprep.subr.mxu1 %v15112_v1  ;;  %v2379_v56 = vadd.f32 %v2378_v47, %v2377_v43  ;;  %vm3163_vm3 = vweird.f32 %v3147_v25  ;;  %v2670_v26 = vadd.f32 %v2669_v19, %v2668_v39  ;;  %v2945_v14 = vrot.slane %v2944_v23, 2 }
  0xb2   :  { %9178 = vmatpush3.msra.mxu1 %v15112_v1  ;;  %v691_v37 = vmul.f32 %v10180_v33, %v11068_v48  ;;  %v695_v41 = vand.u32 2147483648, %v11068_v48  ;;  %vm11121_vm5 = vmxor %vm3163_vm3, %vm15062_vm13  ;;  %v4206_v52 = vand.u32 4294901760, %v4205_v36  ;;  %v1884_v63 = vsel %vm563_vm7, %v1834_v28, 0.0 }
  0xb3   :  { %9179 = vmatprep.subr.mxu1 %v15112_v1  ;;  %4384 = vmatmul.mubr.f32.gmra.mxu1 %v10876_v10  ;;  %10183 = vrsqrt.f32 %v2297_v29  ;;  %v2473_v35 = vmax.f32 %v2379_v56, 1e-24  ;;  %v4221_v43 = vand.u32 4294901760, %v10936_v38  ;;  %v15115_v24 = vand.u32 4294901760, %v11005_v59 }
  0xb4   :  { %9180 = vmatpush3.msra.mxu1 %v15112_v1  ;;  %v1885_v30 = vrot.slane %v1884_v63, 4  ;;  %v693_v17 = vsel %vm692_vm2, %v11068_v48, %v691_v37  ;;  %vm694_vm6 = vcmp.eq.f32.partialorder %v11068_v48, 0.0  ;;  %4207 = vmatmul.mubr.f32.vlgmr.msra.gmra.mxu0 %v4206_v52  ;;  %v3229_v0 = vrot.slane %v3228_v53, 2 }
  0xb5   :  { %4456 = vmatprep.mubr.f32.mxu1 %v15115_v24  ;;  %9181 = vmatprep.subr.mxu1 %v15112_v1  ;;  %v1143_v16 = vadd.f32 %v1142_v49, %v1141_v21  ;;  %10185 = vrsqrt.f32 %v2473_v35  ;;  %v3195_v3 = vsel %vm11121_vm5, %v3147_v25, 0.0  ;;  %v15116_v38 = vand.u32 4294901760, %v10904_v4 }
  0xb6   :  { %9182 = vmatpush3.msra.mxu1 %v15112_v1  ;;  %vm823_vm8 = vweird.f32 %v11105_v22  ;;  %v1886_v59 = vadd.f32 %v1885_v30, %v1884_v63  ;;  %v2671_v11 = vrot.slane %v2670_v26, 2  ;;  %v2946_v39 = vadd.f32 %v2945_v14, %v2944_v23 }
  0xb7   :  { %4216 = vmatprep.mubr.f32.mxu0 %v15116_v38  ;;  %9183 = vmatprep.subr.mxu1 %v15112_v1  ;;  %v15117_v19 = vmov 0.0   ;;  %v1322_v21 = vmul.f32 %v11033_v32, %v1152_v18  ;;  %v696_v57 = vsel %vm694_vm6, %v695_v41, %v693_v17  ;;  %v3221_v47 = vrot.slane %v3195_v3, 4  ;;  %vm11154_vm12 = vmxor %vm823_vm8, %vm15062_vm13 }
  0xb8   :  { %4258 = vmatpush1.msra.mxu0 %v15117_v19  ;;  %9184 = vmatpush3.msra.mxu1 %v15112_v1  ;;  %v1887_v4 = vrot.slane %v1886_v59, 2  ;;  %v9115_v20 = vadd.f32 -1.0, %v696_v57  ;;  %v10182_v25 = vpop.eup %10181  ;;  %v3230_v48 = vadd.f32 %v3229_v0, %v3228_v53  ;;  %v1144_v18 = vrot.slane %v1143_v16, 1 }
  0xb9   :  { %4506 = vmatprep.subr.mxu0 %v15117_v19  ;;  %9185 = vmatprep.subr.mxu1 %v15112_v1  ;;  %v11159_v49 = vsub.s32 2, %v10528_v54  ;;  %vm1575_vm15 = vcmp.eq.f32.partialorder %v11090_v6, inf  ;;  %v2672_v33 = vadd.f32 %v2671_v11, %v2670_v26  ;;  %v2947_v36 = vrot.slane %v2946_v39, 1 }
  0xba   :  { %4222 = vmatmul.mubr.f32.gmra.mxu0 %v4221_v43  ;;  %9186 = vmatpush3.msra.mxu1 %v15112_v1  ;;  %v1888_v29 = vadd.f32 %v1887_v4, %v1886_v59  ;;  %v1578_v28 = vand.u32 2147483648, %v11090_v6  ;;  %v3368_v56 = vrot.slane %v1322_v21, 7  ;;  %v1353_v14 = vadd.f32 1e-06, %v696_v57 }
  0xbb   :  { %4292 = vmatprep.mubr.f32.mxu0 %v10997_v45  ;;  %9187 = vmatprep.subr.mxu1 %v15112_v1  ;;  %v1574_v53 = vmul.f32 %v10182_v25, %v11090_v6  ;;  %vm1577_vm0 = vcmp.eq.f32.partialorder %v11090_v6, 0.0  ;;  %v855_v37 = vsel %vm11154_vm12, %v11105_v22, 0.0  ;;  %v11172_v7 = vmul.f32 %v9115_v20, %v9115_v20 }
  0xbc   :  { %9188 = vmatpush3.msra.mxu1 %v15112_v1  ;;  %v1889_v41 = vrot.slane %v1888_v29, 1  ;;  %v3222_v26 = vadd.f32 %v3221_v47, %v3195_v3  ;;  %v3231_v52 = vrot.slane %v3230_v48, 1  ;;  %v1145_v63 = vadd.f32 %v1144_v18, %v1143_v16 }
  0xbd   :  { %9189 = vmatprep.subr.mxu1 %v15112_v1  ;;  %v11178_v35 = vrot.slane %v10642_v34, %v11159_v49  ;;  %v1576_v43 = vsel %vm1575_vm15, %v11090_v6, %v1574_v53  ;;  %v2673_v24 = vrot.slane %v2672_v33, 1  ;;  %v2948_v30 = vadd.f32 %v2947_v36, %v2946_v39  ;;  %v11196_v6 = vld [vmem:[#allocation2 + $0x68] sm:$0xe] }
  0xbe   :  { %4294 = vmatmul.mubr.f32.vlgmr.msra.gmra.mxu0 %v11092_v8  ;;  %9190 = vmatpush3.msra.mxu1 %v15112_v1  ;;  %v11185_v22 = vadd.f32 %v1889_v41, %v1888_v29  ;;  %v1579_v17 = vsel %vm1577_vm0, %v1578_v28, %v1576_v43  ;;  %v3954_v0 = vsel %vm15064_vm9, %v855_v37, %v3368_v56  ;;  %10187 = vrcp.f32 %v1353_v14 }
  0xbf   :  { %4507 = vmatpush1.msra.mxu0 %v15117_v19  ;;  %9191 = vmatprep.subr.mxu1 %v15112_v1  ;;  %v1673_v16 = vadd.f32 1e-06, %v1579_v17  ;;  %vm822_vm2 = vweird.f32 %v11172_v7  ;;  %v3223_v38 = vrot.slane %v3222_v26, 2  ;;  %v11202_v59 = vrot.slane %v10824_v40, %v10984_v58 }
  0xc0   :  { %4541 = vmatprep.mubr.f32.mxu0 %v10997_v45  ;;  %v10184_v3 = vpop.eup %10183  ;;  %9192 = vmatpush3.msra.mxu1 %v15112_v1  ;;  %10189 = vrsqrt.f32 %v11185_v22  ;;  %v3232_v11 = vadd.f32 %v3231_v52, %v3230_v48  ;;  %v1321_v39 = vmul.f32 %v11178_v35, %v1145_v63  ;;  %v2674_v57 = vadd.f32 %v2673_v24, %v2672_v33  ;;  %vm11220_vm3 = vmxor %vm822_vm2, %vm15062_vm13  ;;  %v11256_v63 = vld [vmem:[#allocation2 + $0x68] sm:$0x70] }
  0xc1   :  { %9213 = vmatprep.subr.mxu0 %v15112_v1  ;;  %9193 = vmatprep.subr.mxu1 %v15112_v1  ;;  %10191 = vrcp.f32 %v1673_v16  ;;  %v3036_v4 = vsub.f32 1.0, %v2948_v30  ;;  %v11209_v20 = vsel %vm15061_vm10, %v3954_v0, %v11033_v32  ;;  %v11213_v47 = vrot.slane %v10824_v40, %v11159_v49 }
  0xc2   :  { %4543 = vmatmul.mubr.f32.vlgmr.msra.gmra.mxu0 %v11092_v8  ;;  %v10186_v21 = vpop.eup %10185  ;;  %9194 = vmatpush3.msra.mxu1 %v15112_v1  ;;  %v2329_v23 = vmul.f32 %v10184_v3, %v11023_v9  ;;  %v504_v18 = vmul.f32 %v11196_v6, %v11196_v6  ;;  %v3224_v29 = vadd.f32 %v3223_v38, %v3222_v26  ;;  %v3367_v28 = vrot.slane %v1321_v39, 7  ;;  %v11267_v38 = vld [vmem:[#allocation2 + $0xa8] sm:$0xe0] }
  0xc3   :  { %9214 = vmatpush3.msra.mxu0 %v15112_v1  ;;  %9195 = vmatprep.subr.mxu1 %v15112_v1  ;;  %v2505_v48 = vmul.f32 %v10186_v21, %v11037_v31  ;;  %v3558_v33 = vrot.slane %v10675_v5, %v10984_v58  ;;  %v3640_v36 = vrot.slane %v10661_v61, %v10984_v58  ;;  %v854_v37 = vsel %vm11220_vm3, %v11172_v7, 0.0 }
  0xc4   :  { %9215 = vmatprep.subr.mxu0 %v15112_v1  ;;  %9196 = vmatpush3.msra.mxu1 %v15112_v1  ;;  %v11237_v9 = vmul.f32 %v3232_v11, %v11033_v32  ;;  %v536_v56 = vrot.slane %v504_v18, 1  ;;  %v11242_v14 = vmul.f32 %v11202_v59, %v2674_v57  ;;  %v11245_v53 = vmul.f32 %v3036_v4, %v11202_v59 }
  0xc5   :  { %9216 = vmatpush3.msra.mxu0 %v15112_v1  ;;  %9197 = vmatprep.subr.mxu1 %v15112_v1  ;;  %v2537_v31 = vrot.slane %v2505_v48, 3  ;;  %v3722_v32 = vrot.slane %v10653_v55, %v10984_v58  ;;  %v3804_v52 = vrot.slane %v10679_v12, %v10984_v58  ;;  %v3225_v43 = vrot.slane %v3224_v29, 1 }
  0xc6   :  { %9217 = vmatprep.subr.mxu0 %v15112_v1  ;;  %9198 = vmatpush3.msra.mxu1 %v15112_v1  ;;  %v3886_v7 = vrot.slane %v10665_v62, %v10984_v58  ;;  %v4071_v24 = vsel %vm15064_vm9, %v3558_v33, %v3640_v36  ;;  %v599_v30 = vsel %vm563_vm7, %v536_v56, 0.0  ;;  %v3953_v16 = vsel %vm15064_vm9, %v854_v37, %v3367_v28 }
  0xc7   :  { %9218 = vmatpush3.msra.mxu0 %v15112_v1  ;;  %9199 = vmatprep.subr.mxu1 %v15112_v1  ;;  %v2569_v41 = vsub.f32 %v2329_v23, %v2537_v31  ;;  %v2859_v26 = vmul.f32 %v2537_v31, %v2329_v23  ;;  %v600_v3 = vrot.slane %v599_v30, 4  ;;  %v3416_v11 = vrot.slane %v11242_v14, 4  ;;  %v905_v31 = vld [vmem:[#allocation2 + $0xa8] sm:$0x1c] }
  0xc8   :  { %9219 = vmatprep.subr.mxu0 %v15112_v1  ;;  %9200 = vmatpush3.msra.mxu1 %v15112_v1  ;;  %v3464_v39 = vrot.slane %v11245_v53, 3  ;;  %v3554_v21 = vrot.slane %v10675_v5, %v11159_v49  ;;  %v1388_v57 = vmul.f32 %v11256_v63, %v11256_v63  ;;  %v4087_v23 = vsel %vm15061_vm10, %v4071_v24, %v3722_v32 }
  0xc9   :  { %9220 = vmatpush3.msra.mxu0 %v15112_v1  ;;  %9201 = vmatprep.subr.mxu1 %v15112_v1  ;;  %v2585_v17 = vand.u32 2147483647, %v2569_v41  ;;  %v2891_v0 = vrot.slane %v2859_v26, 5  ;;  %v601_v48 = vadd.f32 %v600_v3, %v599_v30  ;;  %vm1998_vm5 = vcmp.eq.f32.partialorder %v11185_v22, inf }
  0xca   :  { %9221 = vmatprep.subr.mxu0 %v15112_v1  ;;  %9202 = vmatpush3.msra.mxu1 %v15112_v1  ;;  %v3226_v33 = vadd.f32 %v3225_v43, %v3224_v29  ;;  %v11286_v36 = vsel %vm15061_vm10, %v3953_v16, %v11178_v35  ;;  %v2124_v28 = vmul.f32 %v11267_v38, %v11267_v38  ;;  %v2001_v14 = vand.u32 2147483648, %v11185_v22 }
  0xcb   :  { %9222 = vmatpush3.msra.mxu0 %v15112_v1  ;;  %9203 = vmatprep.subr.mxu1 %v15112_v1  ;;  %v2617_v4 = vrot.slane %v2585_v17, 5  ;;  %v2935_v25 = vsel %vm563_vm7, %v2891_v0, 0.0  ;;  %v10188_v18 = vpop.eup %10187  ;;  %v602_v32 = vrot.slane %v601_v48, 2  ;;  %v1420_v41 = vrot.slane %v1388_v57, 4 }
  0xcc   :  { %9223 = vmatprep.subr.mxu0 %v15112_v1  ;;  %9204 = vmatpush3.msra.mxu1 %v15112_v1  ;;  %vm2000_vm6 = vcmp.eq.f32.partialorder %v11185_v22, 0.0  ;;  %v2936_v43 = vrot.slane %v2935_v25, 4  ;;  %v4103_v24 = vsel %vm563_vm7, %v4087_v23, %v3804_v52  ;;  %v1705_v30 = vmul.f32 %v10188_v18, %v10978_v15 }
  0xcd   :  { %9224 = vmatpush3.msra.mxu0 %v15112_v1  ;;  %v10190_v56 = vpop.eup %10189  ;;  %9205 = vmatprep.subr.mxu1 %v15112_v1  ;;  %v2661_v37 = vsel %vm563_vm7, %v2617_v4, 0.0  ;;  %v603_v0 = vadd.f32 %v602_v32, %v601_v48  ;;  %v937_v16 = vrot.slane %v905_v31, 3  ;;  %v3636_v44 = vrot.slane %v10661_v61, %v11159_v49  ;;  %v873_v4 = vld [vmem:[#allocation2 + $0x68] sm:$0x80] }
  0xce   :  { %9225 = vmatprep.subr.mxu0 %v15112_v1  ;;  %v10192_v29 = vpop.eup %10191  ;;  %9206 = vmatpush3.msra.mxu1 %v15112_v1  ;;  %v1997_v26 = vmul.f32 %v10190_v56, %v11185_v22  ;;  %v2662_v52 = vrot.slane %v2661_v37, 4  ;;  %v1482_v23 = vsel %vm563_vm7, %v1420_v41, 0.0  ;;  %v15122_v48 = vand.u32 4294901760, %v10866_v2 }
  0xcf   :  { %9226 = vmatpush3.msra.mxu0 %v15112_v1  ;;  %4460 = vmatmul.mubr.f32.vlgmr.msra.gmra.mxu1 %v4204_v46  ;;  %v1721_v17 = vmul.f32 %v10192_v29, %v11013_v27  ;;  %v2156_v46 = vrot.slane %v2124_v28, 5  ;;  %v604_v57 = vrot.slane %v603_v0, 1  ;;  %v3512_v18 = vrot.slane %v11237_v9, 1 }
  0xd0   :  { %9227 = vmatprep.subr.mxu0 %v15112_v1  ;;  %9251 = vmatprep.subr.mxu1 %v15112_v1  ;;  %v1999_v3 = vsel %vm1998_vm5, %v11185_v22, %v1997_v26  ;;  %v2937_v28 = vadd.f32 %v2936_v43, %v2935_v25  ;;  %v11323_v56 = vmul.f32 %v3226_v33, %v11178_v35  ;;  %v881_v22 = vld [vmem:[#allocation2 + $0xa8] sm:$0x3]  ;;  %v15123_v2 = vand.u32 4294901760, %v10876_v10 }
  0xd1   :  { %9228 = vmatpush3.msra.mxu0 %v15112_v1  ;;  %9252 = vmatpush3.msra.mxu1 %v15112_v1  ;;  %v2002_v15 = vsel %vm2000_vm6, %v2001_v14, %v1999_v3  ;;  %v1753_v27 = vrot.slane %v1721_v17, 3  ;;  %v11328_v41 = vadd.f32 %v604_v57, %v603_v0  ;;  %v969_v9 = vsub.f32 %v873_v4, %v937_v16  ;;  %v11349_v26 = vld [vmem:[#allocation2 + $0xe8] sm:$0x7] }
  0xd2   :  { %9229 = vmatprep.subr.mxu0 %v15112_v1  ;;  %9253 = vmatprep.subr.mxu1 %v15112_v1  ;;  %v3987_v31 = vsel %vm563_vm7, %v11209_v20, %v2002_v15  ;;  %v2663_v20 = vadd.f32 %v2662_v52, %v2661_v37  ;;  %v1483_v25 = vrot.slane %v1482_v23, 4  ;;  %v977_v29 = vsub.f32 %v881_v22, %v937_v16 }
  0xd3   :  { %4467 = vmatprep.mubr.f32.mxu1 %v15122_v48  ;;  %9230 = vmatpush3.msra.mxu0 %v15112_v1  ;;  %v4004_v14 = vsel %vm15060_vm11, %v3987_v31, %v3416_v11  ;;  %v1785_v32 = vsub.f32 %v1705_v30, %v1753_v27  ;;  %v2218_v10 = vsel %vm563_vm7, %v2156_v46, 0.0  ;;  %v4119_v37 = vsel %vm15060_vm11, %v4103_v24, %v3886_v7 }
  0xd4   :  { %9254 = vmatpush3.msra.mxu1 %v15112_v1  ;;  %9231 = vmatprep.subr.mxu0 %v15112_v1  ;;  %v4021_v35 = vsel %vm15059_vm14, %v4004_v14, %v3464_v39  ;;  %v2938_v39 = vrot.slane %v2937_v28, 2  ;;  %10193 = vrsqrt.f32 %v11328_v41  ;;  %v3718_v30 = vrot.slane %v10653_v55, %v11159_v49 }
  0xd5   :  { %4471 = vmatmul.mubr.f32.gmra.mxu1 %v15123_v2  ;;  %9255 = vmatprep.subr.mxu1 %v15112_v1  ;;  %v4038_v11 = vsel %vm15058_vm1, %v4021_v35, %v11202_v59  ;;  %v1801_v33 = vmul.f32 %v1785_v32, %v1785_v32  ;;  %v3800_v17 = vrot.slane %v10679_v12, %v11159_v49  ;;  %v2664_v7 = vrot.slane %v2663_v20, 2  ;;  %v11385_v32 = vld [vmem:[#allocation2 + $0x60] sm:$0xe] }
  0xd6   :  { %9232 = vmatpush3.msra.mxu0 %v15112_v1  ;;  %9256 = vmatpush3.msra.mxu1 %v15112_v1  ;;  %v4055_v53 = vsel %vm15057_vm4, %v4038_v11, %v3512_v18  ;;  %v4070_v24 = vsel %vm15064_vm9, %v3554_v21, %v3636_v44  ;;  %v1484_v0 = vadd.f32 %v1483_v25, %v1482_v23  ;;  %v2219_v16 = vrot.slane %v2218_v10, 4 }
  0xd7   :  { %9233 = vmatprep.subr.mxu0 %v15112_v1  ;;  %9257 = vmatprep.subr.mxu1 %v15112_v1  ;;  %v11353_v59 = vand.u32 4294901760, %v4055_v53  ;;  %v1833_v43 = vrot.slane %v1801_v33, 1  ;;  %v1001_v52 = vand.u32 2147483647, %v969_v9  ;;  %v1009_v46 = vand.u32 2147483647, %v977_v29 }
  0xd8   :  { %9234 = vmatpush3.msra.mxu0 %v15112_v1  ;;  %9258 = vmatpush3.msra.mxu1 %v15112_v1  ;;  %v2348_v15 = vmul.f32 %v11349_v26, %v11349_v26  ;;  %v2939_v57 = vadd.f32 %v2938_v39, %v2937_v28  ;;  %v3882_v21 = vrot.slane %v10665_v62, %v11159_v49  ;;  %v1485_v44 = vrot.slane %v1484_v0, 2 }
  0xd9   :  { %9235 = vmatprep.subr.mxu0 %v15112_v1  ;;  %9259 = vmatprep.subr.mxu1 %v15112_v1  ;;  %v1877_v3 = vsel %vm563_vm7, %v1833_v43, 0.0  ;;  %v11377_v4 = vsub.f32 %v4055_v53, %v11353_v59  ;;  %v4086_v23 = vsel %vm15061_vm10, %v4070_v24, %v3718_v30  ;;  %v2220_v48 = vadd.f32 %v2219_v16, %v2218_v10 }
  0xda   :  { %4548 = vmatprep.mubr.f32.mxu0 %v10722_v50  ;;  %9236 = vmatpush3.msra.mxu0 %v15112_v1  ;;  %v1878_v27 = vrot.slane %v1877_v3, 4  ;;  %v2394_v18 = vsel %vm563_vm7, %v2348_v15, 0.0  ;;  %v2665_v28 = vadd.f32 %v2664_v7, %v2663_v20  ;;  %v11383_v22 = vand.u32 4294901760, %v4119_v37 }
  0xdb   :  { %9260 = vmatpush3.msra.mxu1 %v15112_v1  ;;  %4550 = vmatmul.mubr.f32.gmra.mxu0 %v10725_v51  ;;  %v1486_v14 = vadd.f32 %v1485_v44, %v1484_v0  ;;  %v1076_v2 = vrot.slane %v1001_v52, 7  ;;  %v1077_v35 = vrot.slane %v1009_v46, 7  ;;  %v2221_v9 = vrot.slane %v2220_v48, 2 }
  0xdc   :  { %9237 = vmatprep.subr.mxu0 %v15112_v1  ;;  %9261 = vmatprep.subr.mxu1 %v15112_v1  ;;  %v1879_v31 = vadd.f32 %v1878_v27, %v1877_v3  ;;  %v2395_v25 = vrot.slane %v2394_v18, 4  ;;  %v2940_v33 = vrot.slane %v2939_v57, 1  ;;  %v4102_v20 = vsel %vm563_vm7, %v4086_v23, %v3800_v17 }
  0xdd   :  { %9238 = vmatpush3.msra.mxu0 %v15112_v1  ;;  %9262 = vmatpush3.msra.mxu1 %v15112_v1  ;;  %v1487_v29 = vrot.slane %v1486_v14, 1  ;;  %v15046_v10 = vand.u32 4294901760, %v11377_v4  ;;  %v2222_v53 = vadd.f32 %v2221_v9, %v2220_v48  ;;  %v503_v43 = vmul.f32 %v11385_v32, %v11385_v32  ;;  %v3086_v9 = vld [vmem:[#allocation2 + $0x168] sm:$0xff] }
  0xde   :  { %9239 = vmatprep.subr.mxu0 %v15112_v1  ;;  %9263 = vmatprep.subr.mxu1 %v15112_v1  ;;  %v1880_v11 = vrot.slane %v1879_v31, 2  ;;  %v2396_v39 = vadd.f32 %v2395_v25, %v2394_v18  ;;  %v2666_v7 = vrot.slane %v2665_v28, 1  ;;  %v11400_v17 = vsub.f32 %v4119_v37, %v11383_v22 }
  0xdf   :  { %9240 = vmatpush3.msra.mxu0 %v15112_v1  ;;  %9264 = vmatpush3.msra.mxu1 %v15112_v1  ;;  %v11402_v24 = vadd.f32 %v1487_v29, %v1486_v14  ;;  %v1078_v0 = vsel %vm15064_vm9, %v1076_v2, %v1077_v35  ;;  %v2223_v16 = vrot.slane %v2222_v53, 1  ;;  %v535_v52 = vrot.slane %v503_v43, 1 }
  0xe0   :  { %9241 = vmatprep.subr.mxu0 %v15112_v1  ;;  %9265 = vmatprep.subr.mxu1 %v15112_v1  ;;  %v1881_v30 = vadd.f32 %v1880_v11, %v1879_v31  ;;  %v2397_v3 = vrot.slane %v2396_v39, 2  ;;  %v2941_v15 = vadd.f32 %v2940_v33, %v2939_v57  ;;  %v4118_v37 = vsel %vm15060_vm11, %v4102_v20, %v3882_v21  ;;  %v3070_v31 = vld [vmem:[#allocation2 + $0x128] sm:$0xff]  ;;  %v904_v33 = vld [vmem:[#allocation2 + $0xa0] sm:$0x1c] }
  0xe1   :  { %9242 = vmatpush3.msra.mxu0 %v15112_v1  ;;  %9266 = vmatpush3.msra.mxu1 %v15112_v1  ;;  %10195 = vrsqrt.f32 %v11402_v24  ;;  %v10194_v27 = vpop.eup %10193  ;;  %v4701_v44 = vsub.f32 %v11377_v4, %v15046_v10  ;;  %v2224_v23 = vadd.f32 %v2223_v16, %v2222_v53  ;;  %v2667_v21 = vadd.f32 %v2666_v7, %v2665_v28  ;;  %v11440_v7 = vld [vmem:[#allocation2 + $0x60] sm:$0x70] }
  0xe2   :  { %9243 = vmatprep.subr.mxu0 %v15112_v1  ;;  %9267 = vmatprep.subr.mxu1 %v15112_v1  ;;  %v1882_v46 = vrot.slane %v1881_v30, 1  ;;  %v2398_v48 = vadd.f32 %v2397_v3, %v2396_v39  ;;  %v1160_v18 = vsel %vm563_vm7, %v1078_v0, 0.0  ;;  %v3035_v28 = vsub.f32 1.0, %v2941_v15  ;;  %v11442_v0 = vld [vmem:[#allocation2 + $0xa0] sm:$0xe0]  ;;  %v3102_v3 = vld [vmem:[#allocation2 + $0x1a8] sm:$0xff] }
  0xe3   :  { %9244 = vmatpush3.msra.mxu0 %v15112_v1  ;;  %4620 = vmatprep.mubr.f32.mxu0 %v10997_v45  ;;  %v592_v45 = vsel %vm563_vm7, %v535_v52, 0.0  ;;  %v2300_v2 = vmax.f32 %v2224_v23, 1e-24  ;;  %v11428_v25 = vand.u32 4294901760, %v4118_v37  ;;  %v712_v11 = vmul.f32 %v10194_v27, %v11328_v41  ;;  %v11456_v23 = vld [vmem:[#allocation2 + $0xe0] sm:$0x7] }
  0xe4   :  { %9268 = vmatpush3.msra.mxu1 %v15112_v1  ;;  %4622 = vmatmul.mubr.f32.vlgmr.msra.gmra.mxu0 %v11092_v8  ;;  %v11418_v57 = vadd.f32 %v1882_v46, %v1881_v30  ;;  %v2399_v35 = vrot.slane %v2398_v48, 1  ;;  %v593_v8 = vrot.slane %v592_v45, 4  ;;  %vm713_vm8 = vcmp.eq.f32.partialorder %v11328_v41, inf }
  0xe5   :  { %9269 = vmatprep.subr.mxu1 %v15112_v1  ;;  %4627 = vmatprep.mubr.f32.mxu0 %v10722_v50  ;;  %v4702_v50 = vand.u32 4294901760, %v4701_v44  ;;  %v1161_v20 = vrot.slane %v1160_v18, 4  ;;  %v11437_v53 = vmul.f32 %v11213_v47, %v2667_v21  ;;  %v3118_v43 = vadd.f32 %v3086_v9, %v3070_v31  ;;  %v872_v44 = vld [vmem:[#allocation2 + $0x60] sm:$0x80]  ;;  %v880_v31 = vld [vmem:[#allocation2 + $0xa0] sm:$0x3] }
  0xe6   :  { %9270 = vmatpush3.msra.mxu1 %v15112_v1  ;;  %4759 = vmatprep.subr.mxu0 %v15117_v19  ;;  %10197 = vrsqrt.f32 %v11418_v57  ;;  %v2400_v29 = vadd.f32 %v2399_v35, %v2398_v48  ;;  %v594_v30 = vadd.f32 %v593_v8, %v592_v45  ;;  %v716_v16 = vand.u32 2147483648, %v11328_v41 }
  0xe7   :  { %9271 = vmatprep.subr.mxu1 %v15112_v1  ;;  %4760 = vmatpush1.msra.mxu0 %v15117_v19  ;;  %10199 = vrsqrt.f32 %v2300_v2  ;;  %v936_v52 = vrot.slane %v904_v33, 3  ;;  %v11450_v46 = vmul.f32 %v3035_v28, %v11213_v47  ;;  %v714_v15 = vsel %vm713_vm8, %v11328_v41, %v712_v11 }
  0xe8   :  { %9272 = vmatpush3.msra.mxu1 %v15112_v1  ;;  %4629 = vmatmul.mubr.f32.gmra.mxu0 %v10725_v51  ;;  %v2476_v51 = vmax.f32 %v2400_v29, 1e-24  ;;  %vm715_vm12 = vcmp.eq.f32.partialorder %v11328_v41, 0.0  ;;  %v595_v27 = vrot.slane %v594_v30, 2  ;;  %v11460_v48 = vsub.f32 %v4118_v37, %v11428_v25 }
  0xe9   :  { %9273 = vmatprep.subr.mxu1 %v15112_v1  ;;  %4794 = vmatprep.mubr.f32.mxu0 %v11353_v59  ;;  %v11462_v21 = vadd.f32 %v1161_v20, %v1160_v18  ;;  %v1387_v45 = vmul.f32 %v11440_v7, %v11440_v7  ;;  %v11468_v35 = vadd.f32 %v3118_v43, %v3102_v3  ;;  %v3463_v33 = vrot.slane %v11450_v46, 3 }
  0xea   :  { %9274 = vmatpush3.msra.mxu1 %v15112_v1  ;;  %9289 = vmatprep.subr.mxu0 %v15112_v1  ;;  %10201 = vrsqrt.f32 %v2476_v51  ;;  %v596_v9 = vadd.f32 %v595_v27, %v594_v30  ;;  %v2123_v8 = vmul.f32 %v11442_v0, %v11442_v0  ;;  %v11475_v37 = vsel %vm715_vm12, %v716_v16, %v714_v15 }
  0xeb   :  { %9275 = vmatprep.subr.mxu1 %v15112_v1  ;;  %4703 = vmatprep.mubr.f32.mxu1 %v4702_v50  ;;  %v968_v18 = vsub.f32 %v872_v44, %v936_v52  ;;  %v1419_v28 = vrot.slane %v1387_v45, 4  ;;  %v2347_v11 = vmul.f32 %v11456_v23, %v11456_v23  ;;  %v976_v20 = vsub.f32 %v880_v31, %v936_v52 }
  0xec   :  { %9276 = vmatpush3.msra.mxu1 %v15112_v1  ;;  %v597_v50 = vrot.slane %v596_v9, 1  ;;  %v2155_v29 = vrot.slane %v2123_v8, 5  ;;  %vm1596_vm15 = vcmp.eq.f32.partialorder %v11402_v24, inf  ;;  %v1599_v41 = vand.u32 2147483648, %v11402_v24 }
  0xed   :  { %9277 = vmatprep.subr.mxu1 %v15112_v1  ;;  %v1475_v30 = vsel %vm563_vm7, %v1419_v28, 0.0  ;;  %v2387_v16 = vsel %vm563_vm7, %v2347_v11, 0.0  ;;  %v1356_v51 = vadd.f32 1e-06, %v11475_v37  ;;  %vm1598_vm0 = vcmp.eq.f32.partialorder %v11402_v24, 0.0 }
  0xee   :  { %9278 = vmatpush3.msra.mxu1 %v15112_v1  ;;  %v10196_v43 = vpop.eup %10195  ;;  %v11490_v52 = vadd.f32 %v597_v50, %v596_v9  ;;  %v3150_v46 = vand.u32 2147483647, %v11468_v35  ;;  %v1000_v15 = vand.u32 2147483647, %v968_v18  ;;  %v1476_v27 = vrot.slane %v1475_v30, 4 }
  0xef   :  { %9279 = vmatprep.subr.mxu1 %v15112_v1  ;;  %v1595_v3 = vmul.f32 %v10196_v43, %v11402_v24  ;;  %v2388_v44 = vrot.slane %v2387_v16, 4  ;;  %v1008_v45 = vand.u32 2147483647, %v976_v20  ;;  %v2211_v8 = vsel %vm563_vm7, %v2155_v29, 0.0 }
  0xf0   :  { %9280 = vmatpush3.msra.mxu1 %v15112_v1  ;;  %10203 = vrsqrt.f32 %v11490_v52  ;;  %vm1991_vm2 = vcmp.eq.f32.partialorder %v11418_v57, inf  ;;  %vm1993_vm3 = vcmp.eq.f32.partialorder %v11418_v57, 0.0  ;;  %v1994_v9 = vand.u32 2147483648, %v11418_v57 }
  0xf1   :  { %9281 = vmatprep.subr.mxu1 %v15112_v1  ;;  %v1597_v31 = vsel %vm1596_vm15, %v11402_v24, %v1595_v3  ;;  %10205 = vrcp.f32 %v1356_v51  ;;  %v1477_v50 = vadd.f32 %v1476_v27, %v1475_v30  ;;  %vm11504_vm5 = vweird.f32 %v3150_v46 }
  0xf2   :  { %9282 = vmatpush3.msra.mxu1 %v15112_v1  ;;  %v1600_v35 = vsel %vm1598_vm0, %v1599_v41, %v1597_v31  ;;  %v1073_v20 = vrot.slane %v1000_v15, 7  ;;  %v2212_v29 = vrot.slane %v2211_v8, 4  ;;  %v2389_v3 = vadd.f32 %v2388_v44, %v2387_v16  ;;  %vm3182_vm6 = vmxor %vm11504_vm5, %vm15062_vm13 }
  0xf3   :  { %4838 = vmatprep.subr.mxu1 %v15117_v19  ;;  %v10198_v28 = vpop.eup %10197  ;;  %v1676_v11 = vadd.f32 1e-06, %v1600_v35  ;;  %v1074_v2 = vrot.slane %v1008_v45, 7  ;;  %v1478_v39 = vrot.slane %v1477_v50, 2  ;;  %v1163_v41 = vrot.slane %v11462_v21, 2 }
  0xf4   :  { %v1990_v18 = vmul.f32 %v10198_v28, %v11418_v57  ;;  %v10200_v10 = vpop.eup %10199  ;;  %v2213_v51 = vadd.f32 %v2212_v29, %v2211_v8  ;;  %v2390_v30 = vrot.slane %v2389_v3, 2  ;;  %v15126_v15 = vand.u32 4294901760, %v11400_v17 }
  0xf5   :  { %10207 = vrcp.f32 %v1676_v11  ;;  %v4721_v44 = vand.u32 4294901760, %v11460_v48  ;;  %v2332_v8 = vmul.f32 %v10200_v10, %v11267_v38  ;;  %v1075_v35 = vsel %vm15064_vm9, %v1073_v20, %v1074_v2 }
  0xf6   :  { %v1992_v14 = vsel %vm1991_vm2, %v11418_v57, %v1990_v18  ;;  %v11517_v16 = vsub.f32 %v11400_v17, %v15126_v15  ;;  %v1479_v57 = vadd.f32 %v1478_v39, %v1477_v50  ;;  %v2214_v28 = vrot.slane %v2213_v51, 2 }
  0xf7   :  { %v1995_v24 = vsel %vm1993_vm3, %v1994_v9, %v1992_v14  ;;  %v10202_v27 = vpop.eup %10201  ;;  %v15127_v14 = vrot.slane %v11437_v53, 4  ;;  %v2391_v11 = vadd.f32 %v2390_v30, %v2389_v3  ;;  %v11533_v39 = vadd.f32 %v1163_v41, %v11462_v21  ;;  %v3085_v3 = vld [vmem:[#allocation2 + $0x160] sm:$0xff] }
  0xf8   :  { %v3986_v31 = vsel %vm563_vm7, %v11286_v36, %v1995_v24  ;;  %v2508_v36 = vmul.f32 %v10202_v27, %v11349_v26  ;;  %v1480_v18 = vrot.slane %v1479_v57, 1  ;;  %v3198_v50 = vsel %vm3182_vm6, %v3150_v46, 0.0  ;;  %v3069_v46 = vld [vmem:[#allocation2 + $0x120] sm:$0xff] }
  0xf9   :  { %v4003_v45 = vsel %vm15060_vm11, %v3986_v31, %v15127_v14  ;;  %v15128_v29 = vrot.slane %v11323_v56, 1  ;;  %v2215_v10 = vadd.f32 %v2214_v28, %v2213_v51  ;;  %v1153_v20 = vsel %vm563_vm7, %v1075_v35, 0.0 }
  0xfa   :  { %v4020_v9 = vsel %vm15059_vm14, %v4003_v45, %v3463_v33  ;;  %v2540_v53 = vrot.slane %v2508_v36, 3  ;;  %v11538_v26 = vadd.f32 %v1480_v18, %v1479_v57  ;;  %v2392_v33 = vrot.slane %v2391_v11, 1 }
  0xfb   :  { %v4037_v43 = vsel %vm15058_vm1, %v4020_v9, %v11213_v47  ;;  %v11544_v47 = vsub.s32 5, %v10528_v54  ;;  %v4717_v51 = vand.u32 4294901760, %v11517_v16  ;;  %v11555_v30 = vsub.f32 %v11460_v48, %v4721_v44 }
  0xfc   :  { %v4054_v38 = vsel %vm15057_vm4, %v4037_v43, %v15128_v29  ;;  %v2572_v2 = vsub.f32 %v2332_v8, %v2540_v53  ;;  %v2862_v21 = vmul.f32 %v2540_v53, %v2332_v8  ;;  %10209 = vrsqrt.f32 %v11538_v26 }
  0xfd   :  { %v11540_v24 = vand.u32 4294901760, %v4054_v38  ;;  %v10204_v56 = vpop.eup %10203  ;;  %v3239_v27 = vrot.slane %v3198_v50, 4  ;;  %v1165_v31 = vrot.slane %v11533_v39, 1  ;;  %v1154_v15 = vrot.slane %v1153_v20, 4 }
  0xfe   :  { %v2216_v57 = vrot.slane %v2215_v10, 1  ;;  %v2393_v14 = vadd.f32 %v2392_v33, %v2391_v11  ;;  %v10206_v45 = vpop.eup %10205  ;;  %v9118_v8 = vadd.f32 -1.0, %v11475_v37  ;;  %v2588_v36 = vand.u32 2147483647, %v2572_v2  ;;  %v3101_v37 = vld [vmem:[#allocation2 + $0x1a0] sm:$0xff] }
  0xff   :  { %v11548_v41 = vsub.f32 %v4054_v38, %v11540_v24  ;;  %4796 = vmatmul.mubr.f32.vlgmr.msra.gmra.mxu0 %v11540_v24  ;;  %v3117_v28 = vadd.f32 %v3085_v3, %v3069_v46  ;;  %v2894_v9 = vrot.slane %v2862_v21, 5  ;;  %v705_v35 = vmul.f32 %v10204_v56, %v11490_v52 }
 0x100   :  { %9290 = vmatpush3.msra.mxu0 %v15112_v1  ;;  %4801 = vmatprep.mubr.f32.mxu0 %v11383_v22  ;;  %v2217_v18 = vadd.f32 %v2216_v57, %v2215_v10  ;;  %v2475_v43 = vmax.f32 %v2393_v14, 1e-24  ;;  %v3240_v29 = vadd.f32 %v3239_v27, %v3198_v50  ;;  %vm706_vm8 = vcmp.eq.f32.partialorder %v11490_v52, inf }
 0x101   :  { %9291 = vmatprep.subr.mxu0 %v15112_v1  ;;  %v4706_v16 = vand.u32 4294901760, %v11548_v41  ;;  %vm708_vm12 = vcmp.eq.f32.partialorder %v11490_v52, 0.0  ;;  %v15129_v38 = vand.u32 4294901760, %v11377_v4  ;;  %v1708_v10 = vmul.f32 %v10206_v45, %v11196_v6 }
 0x102   :  { %9292 = vmatpush3.msra.mxu0 %v15112_v1  ;;  %v10208_v53 = vpop.eup %10207  ;;  %v709_v2 = vand.u32 2147483648, %v11490_v52  ;;  %v1155_v21 = vadd.f32 %v1154_v15, %v1153_v20  ;;  %v2620_v46 = vrot.slane %v2588_v36, 5  ;;  %v2299_v3 = vmax.f32 %v2217_v18, 1e-24 }
 0x103   :  { %9293 = vmatprep.subr.mxu0 %v15112_v1  ;;  %v4707_v11 = vsub.f32 %v11548_v41, %v4706_v16  ;;  %4803 = vmatmul.mubr.f32.gmra.mxu0 %v11428_v25  ;;  %v1724_v33 = vmul.f32 %v10208_v53, %v11256_v63  ;;  %10211 = vrsqrt.f32 %v2475_v43  ;;  %v2956_v27 = vsel %vm563_vm7, %v2894_v9, 0.0 }
 0x104   :  { %9294 = vmatpush3.msra.mxu0 %v15112_v1  ;;  %4958 = vmatprep.mubr.f32.mxu0 %v15129_v38  ;;  %v707_v6 = vsel %vm706_vm8, %v11490_v52, %v705_v35  ;;  %v11584_v57 = vadd.f32 %v3117_v28, %v3101_v37  ;;  %v4723_v63 = vand.u32 4294901760, %v11555_v30  ;;  %v3241_v20 = vrot.slane %v3240_v29, 2 }
 0x105   :  { %9295 = vmatprep.subr.mxu0 %v15112_v1  ;;  %v4708_v50 = vand.u32 4294901760, %v4707_v11  ;;  %v1756_v56 = vrot.slane %v1724_v33, 3  ;;  %v1166_v15 = vadd.f32 %v1165_v31, %v11533_v39  ;;  %v11593_v14 = vrot.slane %v10642_v34, %v11544_v47 }
 0x106   :  { %9296 = vmatpush3.msra.mxu0 %v15112_v1  ;;  %v2682_v36 = vsel %vm563_vm7, %v2620_v46, 0.0  ;;  %v2957_v28 = vrot.slane %v2956_v27, 4  ;;  %v11599_v30 = vsel %vm708_vm12, %v709_v2, %v707_v6  ;;  %10213 = vrsqrt.f32 %v2299_v3 }
 0x107   :  { %4709 = vmatmul.mubr.f32.vlgmr.msra.gmra.mxu1 %v4708_v50  ;;  %9297 = vmatprep.subr.mxu0 %v15112_v1  ;;  %v1788_v45 = vsub.f32 %v1708_v10, %v1756_v56  ;;  %v11603_v39 = vmul.f32 %v9118_v8, %v9118_v8  ;;  %v1156_v9 = vrot.slane %v1155_v21, 2  ;;  %v3242_v18 = vadd.f32 %v3241_v20, %v3240_v29 }
 0x108   :  { %4839 = vmatpush1.msra.mxu1 %v15117_v19  ;;  %9298 = vmatpush3.msra.mxu0 %v15112_v1  ;;  %vm1589_vm15 = vcmp.eq.f32.partialorder %v11538_v26, inf  ;;  %vm1591_vm0 = vcmp.eq.f32.partialorder %v11538_v26, 0.0  ;;  %v1592_v52 = vand.u32 2147483648, %v11538_v26  ;;  %v2683_v43 = vrot.slane %v2682_v36, 4 }
 0x109   :  { %4718 = vmatprep.mubr.f32.mxu1 %v4717_v51  ;;  %9299 = vmatprep.subr.mxu0 %v15112_v1  ;;  %v1804_v31 = vmul.f32 %v1788_v45, %v1788_v45  ;;  %v3149_v51 = vand.u32 2147483647, %v11584_v57  ;;  %v10210_v35 = vpop.eup %10209  ;;  %v1355_v53 = vadd.f32 1e-06, %v11599_v30  ;;  %v2958_v37 = vadd.f32 %v2957_v28, %v2956_v27  ;;  %v11698_v57 = vld [vmem:[#allocation2 + $0x78] sm:$0x70] }
 0x10a   :  { %9300 = vmatpush3.msra.mxu0 %v15112_v1  ;;  %5008 = vmatprep.subr.mxu1 %v15117_v19  ;;  %v1588_v11 = vmul.f32 %v10210_v35, %v11538_v26  ;;  %v1157_v38 = vadd.f32 %v1156_v9, %v1155_v21  ;;  %vm825_vm3 = vweird.f32 %v11603_v39  ;;  %v2684_v21 = vadd.f32 %v2683_v43, %v2682_v36  ;;  %v11654_v36 = vld [vmem:[#allocation2 + $0x78] sm:$0xe] }
 0x10b   :  { %4724 = vmatmul.mubr.f32.gmra.mxu1 %v4723_v63  ;;  %9301 = vmatprep.subr.mxu0 %v15112_v1  ;;  %v1836_v8 = vrot.slane %v1804_v31, 1  ;;  %vm11618_vm2 = vweird.f32 %v3149_v51  ;;  %v3243_v46 = vrot.slane %v3242_v18, 1  ;;  %10215 = vrcp.f32 %v1355_v53  ;;  %vm11644_vm6 = vmxor %vm825_vm3, %vm15062_vm13 }
 0x10c   :  { %9302 = vmatpush3.msra.mxu0 %v15112_v1  ;;  %4874 = vmatprep.mubr.f32.mxu1 %v11377_v4  ;;  %v1590_v10 = vsel %vm1589_vm15, %v11538_v26, %v1588_v11  ;;  %v1324_v4 = vmul.f32 %v11593_v14, %v1166_v15  ;;  %v2959_v27 = vrot.slane %v2958_v37, 2  ;;  %vm11635_vm5 = vmxor %vm11618_vm2, %vm15062_vm13  ;;  %v1158_v63 = vrot.slane %v1157_v38, 1 }
 0x10d   :  { %9303 = vmatprep.subr.mxu0 %v15112_v1  ;;  %v1898_v29 = vsel %vm563_vm7, %v1836_v8, 0.0  ;;  %v1593_v50 = vsel %vm1591_vm0, %v1592_v52, %v1590_v10  ;;  %v11649_v20 = vsub.s32 4, %v10528_v54  ;;  %v2685_v28 = vrot.slane %v2684_v21, 2 }
 0x10e   :  { %9304 = vmatpush3.msra.mxu0 %v15112_v1  ;;  %v1899_v2 = vrot.slane %v1898_v29, 4  ;;  %v1675_v3 = vadd.f32 1e-06, %v1593_v50  ;;  %v3244_v31 = vadd.f32 %v3243_v46, %v3242_v18  ;;  %v3370_v9 = vrot.slane %v1324_v4, 7 }
 0x10f   :  { %4877 = vmatmul.mubr.f32.vlgmr.msra.gmra.mxu1 %v11548_v41  ;;  %9305 = vmatprep.subr.mxu0 %v15112_v1  ;;  %v3197_v35 = vsel %vm11635_vm5, %v3149_v51, 0.0  ;;  %v857_v52 = vsel %vm11644_vm6, %v11603_v39, 0.0  ;;  %v1159_v11 = vadd.f32 %v1158_v63, %v1157_v38  ;;  %v11667_v18 = vrot.slane %v10642_v34, %v11649_v20 }
 0x110   :  { %5009 = vmatpush1.msra.mxu1 %v15117_v19  ;;  %9306 = vmatpush3.msra.mxu0 %v15112_v1  ;;  %v1900_v56 = vadd.f32 %v1899_v2, %v1898_v29  ;;  %v10212_v6 = vpop.eup %10211  ;;  %10217 = vrcp.f32 %v1675_v3  ;;  %v506_v51 = vmul.f32 %v11654_v36, %v11654_v36  ;;  %v2686_v38 = vadd.f32 %v2685_v28, %v2684_v21  ;;  %v11710_v28 = vld [vmem:[#allocation2 + $0xb8] sm:$0xe0] }
 0x111   :  { %4883 = vmatprep.mubr.f32.mxu1 %v11400_v17  ;;  %9307 = vmatprep.subr.mxu0 %v15112_v1  ;;  %v2507_v45 = vmul.f32 %v10212_v6, %v11456_v23  ;;  %v2960_v23 = vadd.f32 %v2959_v27, %v2958_v37  ;;  %v3233_v37 = vrot.slane %v3197_v35, 4  ;;  %v11677_v10 = vmul.f32 %v3244_v31, %v11593_v14 }
 0x112   :  { %9308 = vmatpush3.msra.mxu0 %v15112_v1  ;;  %9327 = vmatprep.subr.mxu1 %v15112_v1  ;;  %v1901_v15 = vrot.slane %v1900_v56, 2  ;;  %v3956_v33 = vsel %vm15064_vm9, %v857_v52, %v3370_v9  ;;  %v538_v4 = vrot.slane %v506_v51, 1  ;;  %v9117_v21 = vadd.f32 -1.0, %v11599_v30 }
 0x113   :  { %4886 = vmatmul.mubr.f32.gmra.mxu1 %v11460_v48  ;;  %9309 = vmatprep.subr.mxu0 %v15112_v1  ;;  %v2539_v43 = vrot.slane %v2507_v45, 3  ;;  %v10214_v53 = vpop.eup %10213  ;;  %v2961_v50 = vrot.slane %v2960_v23, 1  ;;  %v11688_v3 = vmul.f32 %v11667_v18, %v1159_v11  ;;  %v3234_v27 = vadd.f32 %v3233_v37, %v3197_v35 }
 0x114   :  { %9310 = vmatpush3.msra.mxu0 %v15112_v1  ;;  %5043 = vmatprep.mubr.f32.mxu1 %v11353_v59  ;;  %v1902_v8 = vadd.f32 %v1901_v15, %v1900_v56  ;;  %v2331_v39 = vmul.f32 %v10214_v53, %v11442_v0  ;;  %v613_v56 = vsel %vm563_vm7, %v538_v4, 0.0  ;;  %v3566_v26 = vrot.slane %v10675_v5, %v11544_v47 }
 0x115   :  { %9311 = vmatprep.subr.mxu0 %v15112_v1  ;;  %v3648_v6 = vrot.slane %v10661_v61, %v11544_v47  ;;  %v11704_v30 = vrot.slane %v10824_v40, %v11544_v47  ;;  %v11708_v63 = vsel %vm15061_vm10, %v3956_v33, %v11593_v14  ;;  %v2687_v9 = vrot.slane %v2686_v38, 1 }
 0x116   :  { %9312 = vmatpush3.msra.mxu0 %v15112_v1  ;;  %v1903_v29 = vrot.slane %v1902_v8, 1  ;;  %v2571_v0 = vsub.f32 %v2331_v39, %v2539_v43  ;;  %v2861_v46 = vmul.f32 %v2539_v43, %v2331_v39  ;;  %v2962_v35 = vadd.f32 %v2961_v50, %v2960_v23 }
 0x117   :  { %5045 = vmatmul.mubr.f32.vlgmr.msra.gmra.mxu1 %v11540_v24  ;;  %9313 = vmatprep.subr.mxu0 %v15112_v1  ;;  %v3514_v52 = vrot.slane %v11677_v10, 1  ;;  %v11717_v14 = vmul.f32 %v9117_v21, %v9117_v21  ;;  %v3369_v43 = vrot.slane %v11688_v3, 7  ;;  %v3730_v53 = vrot.slane %v10653_v55, %v11544_v47 }
 0x118   :  { %9328 = vmatpush3.msra.mxu1 %v15112_v1  ;;  %9314 = vmatpush3.msra.mxu0 %v15112_v1  ;;  %v11682_v2 = vadd.f32 %v1903_v29, %v1902_v8  ;;  %v2587_v15 = vand.u32 2147483647, %v2571_v0  ;;  %v2893_v45 = vrot.slane %v2861_v46, 5  ;;  %v10216_v31 = vpop.eup %10215  ;;  %v614_v8 = vrot.slane %v613_v56, 4 }
 0x119   :  { %9329 = vmatprep.subr.mxu1 %v15112_v1  ;;  %9315 = vmatprep.subr.mxu0 %v15112_v1  ;;  %v1390_v11 = vmul.f32 %v11698_v57, %v11698_v57  ;;  %v3235_v23 = vrot.slane %v3234_v27, 2  ;;  %v4073_v29 = vsel %vm15064_vm9, %v3566_v26, %v3648_v6  ;;  %v2126_v37 = vmul.f32 %v11710_v28, %v11710_v28 }
 0x11a   :  { %9330 = vmatpush3.msra.mxu1 %v15112_v1  ;;  %9316 = vmatpush3.msra.mxu0 %v15112_v1  ;;  %10219 = vrsqrt.f32 %v11682_v2  ;;  %v615_v39 = vadd.f32 %v614_v8, %v613_v56  ;;  %v1707_v33 = vmul.f32 %v10216_v31, %v11385_v32  ;;  %v2619_v50 = vrot.slane %v2587_v15, 5 }
 0x11b   :  { %9331 = vmatprep.subr.mxu1 %v15112_v1  ;;  %9317 = vmatprep.subr.mxu0 %v15112_v1  ;;  %v2949_v0 = vsel %vm563_vm7, %v2893_v45, 0.0  ;;  %v2688_v41 = vadd.f32 %v2687_v9, %v2686_v38  ;;  %v3812_v46 = vrot.slane %v10679_v12, %v11544_v47  ;;  %v1422_v56 = vrot.slane %v1390_v11, 4  ;;  %v11751_v9 = vld [vmem:[#allocation2 + $0xf8] sm:$0x7] }
 0x11c   :  { %9332 = vmatpush3.msra.mxu1 %v15112_v1  ;;  %9318 = vmatpush3.msra.mxu0 %v15112_v1  ;;  %v616_v21 = vrot.slane %v615_v39, 2  ;;  %v2158_v26 = vrot.slane %v2126_v37, 5  ;;  %v15136_v6 = vand.u32 4294901760, %v11400_v17  ;;  %v2950_v38 = vrot.slane %v2949_v0, 4 }
 0x11d   :  { %9333 = vmatprep.subr.mxu1 %v15112_v1  ;;  %9319 = vmatprep.subr.mxu0 %v15112_v1  ;;  %v10218_v51 = vpop.eup %10217  ;;  %v11746_v15 = vadd.f32 %v3235_v23, %v3234_v27  ;;  %v11749_v45 = vsel %vm15061_vm10, %v4073_v29, %v3730_v53  ;;  %v2675_v8 = vsel %vm563_vm7, %v2619_v50, 0.0  ;;  %v1496_v11 = vsel %vm563_vm7, %v1422_v56, 0.0 }
 0x11e   :  { %9334 = vmatpush3.msra.mxu1 %v15112_v1  ;;  %9320 = vmatpush3.msra.mxu0 %v15112_v1  ;;  %v1723_v4 = vmul.f32 %v10218_v51, %v11440_v7  ;;  %v3562_v7 = vrot.slane %v10675_v5, %v11649_v20  ;;  %v617_v31 = vadd.f32 %v616_v21, %v615_v39  ;;  %v2232_v17 = vsel %vm563_vm7, %v2158_v26, 0.0 }
 0x11f   :  { %9335 = vmatprep.subr.mxu1 %v15112_v1  ;;  %4962 = vmatmul.mubr.f32.vlgmr.msra.gmra.mxu0 %v4706_v16  ;;  %v3038_v16 = vsub.f32 1.0, %v2962_v35  ;;  %v2846_v27 = vmul.f32 %v11704_v30, %v2688_v41  ;;  %v3644_v51 = vrot.slane %v10661_v61, %v11649_v20  ;;  %vm824_vm8 = vweird.f32 %v11717_v14 }
 0x120   :  { %9336 = vmatpush3.msra.mxu1 %v15112_v1  ;;  %9365 = vmatprep.subr.mxu0 %v15112_v1  ;;  %v1755_v32 = vrot.slane %v1723_v4, 3  ;;  %v618_v23 = vrot.slane %v617_v31, 1  ;;  %v1497_v48 = vrot.slane %v1496_v11, 4  ;;  %v2350_v39 = vmul.f32 %v11751_v9, %v11751_v9  ;;  %vm11835_vm0 = vmxor %vm824_vm8, %vm15062_vm13 }
 0x121   :  { %9337 = vmatprep.subr.mxu1 %v15112_v1  ;;  %9366 = vmatpush3.msra.mxu0 %v15112_v1  ;;  %v11763_v53 = vmul.f32 %v3038_v16, %v11704_v30  ;;  %vm2012_vm12 = vcmp.eq.f32.partialorder %v11682_v2, inf  ;;  %v2015_v37 = vand.u32 2147483648, %v11682_v2  ;;  %v2951_v16 = vadd.f32 %v2950_v38, %v2949_v0 }
 0x122   :  { %9338 = vmatpush3.msra.mxu1 %v15112_v1  ;;  %9367 = vmatprep.subr.mxu0 %v15112_v1  ;;  %v1787_v35 = vsub.f32 %v1707_v33, %v1755_v32  ;;  %v2676_v33 = vrot.slane %v2675_v8, 4  ;;  %v11776_v4 = vadd.f32 %v618_v23, %v617_v31  ;;  %v1498_v21 = vadd.f32 %v1497_v48, %v1496_v11 }
 0x123   :  { %9339 = vmatprep.subr.mxu1 %v15112_v1  ;;  %4969 = vmatprep.mubr.f32.mxu0 %v15136_v6  ;;  %vm2014_vm15 = vcmp.eq.f32.partialorder %v11682_v2, 0.0  ;;  %v3418_v26 = vrot.slane %v2846_v27, 4  ;;  %v3466_v6 = vrot.slane %v11763_v53, 3  ;;  %v3726_v38 = vrot.slane %v10653_v55, %v11649_v20 }
 0x124   :  { %9340 = vmatpush3.msra.mxu1 %v15112_v1  ;;  %9368 = vmatpush3.msra.mxu0 %v15112_v1  ;;  %v1803_v29 = vmul.f32 %v1787_v35, %v1787_v35  ;;  %10221 = vrsqrt.f32 %v11776_v4  ;;  %v2408_v31 = vsel %vm563_vm7, %v2350_v39, 0.0  ;;  %v4072_v27 = vsel %vm15064_vm9, %v3562_v7, %v3644_v51 }
 0x125   :  { %4973 = vmatmul.mubr.f32.gmra.mxu0 %v4721_v44  ;;  %9341 = vmatprep.subr.mxu1 %v15112_v1  ;;  %v2233_v44 = vrot.slane %v2232_v17, 4  ;;  %v2952_v23 = vrot.slane %v2951_v16, 2  ;;  %v3894_v7 = vrot.slane %v10665_v62, %v11544_v47  ;;  %v2409_v51 = vrot.slane %v2408_v31, 4 }
 0x126   :  { %9369 = vmatprep.subr.mxu0 %v15112_v1  ;;  %9342 = vmatpush3.msra.mxu1 %v15112_v1  ;;  %v1835_v41 = vrot.slane %v1803_v29, 1  ;;  %v1499_v29 = vrot.slane %v1498_v21, 2  ;;  %v3237_v39 = vrot.slane %v11746_v15, 1  ;;  %vm727_vm2 = vcmp.eq.f32.partialorder %v11776_v4, inf }
 0x127   :  { %9370 = vmatpush3.msra.mxu0 %v15112_v1  ;;  %9343 = vmatprep.subr.mxu1 %v15112_v1  ;;  %v10220_v50 = vpop.eup %10219  ;;  %v2234_v32 = vadd.f32 %v2233_v44, %v2232_v17  ;;  %v2677_v17 = vadd.f32 %v2676_v33, %v2675_v8  ;;  %vm729_vm3 = vcmp.eq.f32.partialorder %v11776_v4, 0.0 }
 0x128   :  { %9371 = vmatprep.subr.mxu0 %v15112_v1  ;;  %9344 = vmatpush3.msra.mxu1 %v15112_v1  ;;  %v2011_v56 = vmul.f32 %v10220_v50, %v11682_v2  ;;  %v1891_v0 = vsel %vm563_vm7, %v1835_v41, 0.0  ;;  %v4088_v41 = vsel %vm15061_vm10, %v4072_v27, %v3726_v38  ;;  %v3238_v10 = vadd.f32 %v3237_v39, %v11746_v15  ;;  %v907_v27 = vld [vmem:[#allocation2 + $0xb8] sm:$0x1c] }
 0x129   :  { %9372 = vmatpush3.msra.mxu0 %v15112_v1  ;;  %9345 = vmatprep.subr.mxu1 %v15112_v1  ;;  %v1892_v11 = vrot.slane %v1891_v0, 4  ;;  %v2235_v48 = vrot.slane %v2234_v32, 2  ;;  %v856_v15 = vsel %vm11835_vm0, %v11717_v14, 0.0  ;;  %v11871_v14 = vrot.slane %v10824_v40, %v11649_v20 }
 0x12a   :  { %9373 = vmatprep.subr.mxu0 %v15112_v1  ;;  %5050 = vmatprep.mubr.f32.mxu1 %v11383_v22  ;;  %v2013_v35 = vsel %vm2012_vm12, %v11682_v2, %v2011_v56  ;;  %v1500_v56 = vadd.f32 %v1499_v29, %v1498_v21  ;;  %v939_v39 = vrot.slane %v907_v27, 3 }
 0x12b   :  { %9346 = vmatpush3.msra.mxu1 %v15112_v1  ;;  %9374 = vmatpush3.msra.mxu0 %v15112_v1  ;;  %v2016_v53 = vsel %vm2014_vm15, %v2015_v37, %v2013_v35  ;;  %v1893_v8 = vadd.f32 %v1892_v11, %v1891_v0  ;;  %v4105_v37 = vsel %vm563_vm7, %v11749_v45, %v3812_v46  ;;  %v2678_v45 = vrot.slane %v2677_v17, 2 }
 0x12c   :  { %5052 = vmatmul.mubr.f32.gmra.mxu1 %v11428_v25  ;;  %9347 = vmatprep.subr.mxu1 %v15112_v1  ;;  %v3989_v44 = vsel %vm563_vm7, %v11708_v63, %v2016_v53  ;;  %v3808_v63 = vrot.slane %v10679_v12, %v11649_v20  ;;  %v2236_v0 = vadd.f32 %v2235_v48, %v2234_v32 }
 0x12d   :  { %9375 = vmatprep.subr.mxu0 %v15112_v1  ;;  %9348 = vmatpush3.msra.mxu1 %v15112_v1  ;;  %v4006_v2 = vsel %vm15060_vm11, %v3989_v44, %v3418_v26  ;;  %v1894_v50 = vrot.slane %v1893_v8, 2  ;;  %v2953_v26 = vadd.f32 %v2952_v23, %v2951_v16  ;;  %v2410_v35 = vadd.f32 %v2409_v51, %v2408_v31 }
 0x12e   :  { %9376 = vmatpush3.msra.mxu0 %v15112_v1  ;;  %9349 = vmatprep.subr.mxu1 %v15112_v1  ;;  %v4023_v33 = vsel %vm15059_vm14, %v4006_v2, %v3466_v6  ;;  %v2237_v32 = vrot.slane %v2236_v0, 1  ;;  %v3890_v31 = vrot.slane %v10665_v62, %v11649_v20  ;;  %v2679_v29 = vadd.f32 %v2678_v45, %v2677_v17  ;;  %v11888_v45 = vpop.f32.mrf.mxu1 }
 0x12f   :  { %9377 = vmatprep.subr.mxu0 %v15112_v1  ;;  %9350 = vmatpush3.msra.mxu1 %v15112_v1  ;;  %v4040_v46 = vsel %vm15058_vm1, %v4023_v33, %v11704_v30  ;;  %v1895_v38 = vadd.f32 %v1894_v50, %v1893_v8  ;;  %v1501_v30 = vrot.slane %v1500_v56, 1  ;;  %v2411_v23 = vrot.slane %v2410_v35, 2 }
 0x130   :  { %9378 = vmatpush3.msra.mxu0 %v15112_v1  ;;  %9351 = vmatprep.subr.mxu1 %v15112_v1  ;;  %v4057_v6 = vsel %vm15057_vm4, %v4040_v46, %v3514_v52  ;;  %v11845_v52 = vsel %vm15060_vm11, %v4105_v37, %v3894_v7  ;;  %v4104_v44 = vsel %vm563_vm7, %v4088_v41, %v3808_v63  ;;  %v2954_v7 = vrot.slane %v2953_v26, 1  ;;  %v11874_v63 = vld [vmem:[#allocation2 + $0x70] sm:$0xe]  ;;  %v883_v46 = vld [vmem:[#allocation2 + $0xb8] sm:$0x3] }
 0x131   :  { %9379 = vmatprep.subr.mxu0 %v15112_v1  ;;  %9352 = vmatpush3.msra.mxu1 %v15112_v1  ;;  %v11841_v16 = vand.u32 4294901760, %v4057_v6  ;;  %v1896_v11 = vrot.slane %v1895_v38, 1  ;;  %v11851_v53 = vadd.f32 %v1501_v30, %v1500_v56  ;;  %v2238_v51 = vadd.f32 %v2237_v32, %v2236_v0  ;;  %v10222_v2 = vpop.eup %10221  ;;  %v875_v56 = vld [vmem:[#allocation2 + $0x78] sm:$0x80] }
 0x132   :  { %9380 = vmatpush3.msra.mxu0 %v15112_v1  ;;  %9353 = vmatprep.subr.mxu1 %v15112_v1  ;;  %v2412_v37 = vadd.f32 %v2411_v23, %v2410_v35  ;;  %v11880_v33 = vmul.f32 %v3238_v10, %v11667_v18  ;;  %v3955_v50 = vsel %vm15064_vm9, %v856_v15, %v3369_v43  ;;  %v11886_v41 = vand.u32 4294901760, %v11845_v52  ;;  %v11901_v35 = vld [vmem:[#allocation2 + $0x70] sm:$0x70]  ;;  %v4304_v10 = vpop.f32.mrf.mxu1 }
 0x133   :  { %9381 = vmatprep.subr.mxu0 %v15112_v1  ;;  %9354 = vmatpush3.msra.mxu1 %v15112_v1  ;;  %v11859_v48 = vsub.f32 %v4057_v6, %v11841_v16  ;;  %v11864_v8 = vadd.f32 %v1896_v11, %v1895_v38  ;;  %10223 = vrsqrt.f32 %v11851_v53  ;;  %v2680_v0 = vrot.slane %v2679_v29, 1 }
 0x134   :  { %9382 = vmatpush3.msra.mxu0 %v15112_v1  ;;  %9355 = vmatprep.subr.mxu1 %v15112_v1  ;;  %v4120_v3 = vsel %vm15060_vm11, %v4104_v44, %v3890_v31  ;;  %v2413_v21 = vrot.slane %v2412_v37, 1  ;;  %v2955_v43 = vadd.f32 %v2954_v7, %v2953_v26  ;;  %v726_v38 = vmul.f32 %v10222_v2, %v11776_v4 }
 0x135   :  { %9383 = vmatprep.subr.mxu0 %v15112_v1  ;;  %9356 = vmatpush3.msra.mxu1 %v15112_v1  ;;  %v15047_v17 = vand.u32 4294901760, %v11859_v48  ;;  %10225 = vrsqrt.f32 %v11864_v8  ;;  %v2302_v30 = vmax.f32 %v2238_v51, 1e-24  ;;  %v11906_v32 = vsub.f32 %v875_v56, %v939_v39  ;;  %v11920_v51 = vld [vmem:[#allocation2 + $0xb0] sm:$0xe0] }
 0x136   :  { %9384 = vmatpush3.msra.mxu0 %v15112_v1  ;;  %9357 = vmatprep.subr.mxu1 %v15112_v1  ;;  %v2414_v26 = vadd.f32 %v2413_v21, %v2412_v37  ;;  %v11912_v11 = vand.u32 4294901760, %v4120_v3  ;;  %v730_v31 = vand.u32 2147483648, %v11776_v4  ;;  %v2681_v23 = vadd.f32 %v2680_v0, %v2679_v29 }
 0x137   :  { %9385 = vmatprep.subr.mxu0 %v15112_v1  ;;  %9358 = vmatpush3.msra.mxu1 %v15112_v1  ;;  %v5203_v6 = vsub.f32 %v11859_v48, %v15047_v17  ;;  %v1389_v7 = vmul.f32 %v11901_v35, %v11901_v35  ;;  %v3037_v2 = vsub.f32 1.0, %v2955_v43  ;;  %10227 = vrsqrt.f32 %v2302_v30 }
 0x138   :  { %5122 = vmatprep.mubr.f32.mxu1 %v11353_v59  ;;  %9386 = vmatpush3.msra.mxu0 %v15112_v1  ;;  %v505_v59 = vmul.f32 %v11874_v63, %v11874_v63  ;;  %v2478_v44 = vmax.f32 %v2414_v26, 1e-24  ;;  %v3972_v29 = vsel %vm15061_vm10, %v3955_v50, %v11667_v18  ;;  %v2125_v0 = vmul.f32 %v11920_v51, %v11920_v51 }
 0x139   :  { %5124 = vmatmul.mubr.f32.vlgmr.msra.gmra.mxu1 %v11540_v24  ;;  %9387 = vmatprep.subr.mxu0 %v15112_v1  ;;  %v11908_v24 = vsub.f32 %v883_v46, %v939_v39  ;;  %v5204_v15 = vand.u32 4294901760, %v5203_v6  ;;  %v728_v39 = vsel %vm727_vm2, %v11776_v4, %v726_v38  ;;  %v1421_v46 = vrot.slane %v1389_v7, 4 }
 0x13a   :  { %5261 = vmatprep.subr.mxu1 %v15117_v19  ;;  %9388 = vmatpush3.msra.mxu0 %v15112_v1  ;;  %v537_v27 = vrot.slane %v505_v59, 1  ;;  %10229 = vrsqrt.f32 %v2478_v44  ;;  %v2845_v18 = vmul.f32 %v11871_v14, %v2681_v23  ;;  %v1003_v50 = vand.u32 2147483647, %v11906_v32 }
 0x13b   :  { %5262 = vmatpush1.msra.mxu1 %v15117_v19  ;;  %9389 = vmatprep.subr.mxu0 %v15112_v1  ;;  %v3053_v21 = vmul.f32 %v3037_v2, %v11871_v14  ;;  %v11951_v43 = vsub.f32 %v4120_v3, %v11912_v11  ;;  %v1011_v38 = vand.u32 2147483647, %v11908_v24  ;;  %v1489_v30 = vsel %vm563_vm7, %v1421_v46, 0.0 }
 0x13c   :  { %5129 = vmatprep.mubr.f32.mxu1 %v11383_v22  ;;  %9390 = vmatpush3.msra.mxu0 %v15112_v1  ;;  %v606_v22 = vsel %vm563_vm7, %v537_v27, 0.0  ;;  %vm1610_vm5 = vcmp.eq.f32.partialorder %v11851_v53, inf  ;;  %v1613_v4 = vand.u32 2147483648, %v11851_v53  ;;  %v2157_v32 = vrot.slane %v2125_v0, 5 }
 0x13d   :  { %5131 = vmatmul.mubr.f32.gmra.mxu1 %v11428_v25  ;;  %9391 = vmatprep.subr.mxu0 %v15112_v1  ;;  %v11934_v25 = vsub.f32 %v11845_v52, %v11886_v41  ;;  %v607_v37 = vrot.slane %v606_v22, 4  ;;  %v11945_v52 = vsel %vm729_vm3, %v730_v31, %v728_v39  ;;  %vm1612_vm6 = vcmp.eq.f32.partialorder %v11851_v53, 0.0 }
 0x13e   :  { %9392 = vmatpush3.msra.mxu0 %v15112_v1  ;;  %5296 = vmatprep.mubr.f32.mxu1 %v11841_v16  ;;  %v1358_v26 = vadd.f32 1e-06, %v11945_v52  ;;  %v1490_v24 = vrot.slane %v1489_v30, 4  ;;  %vm2005_vm8 = vcmp.eq.f32.partialorder %v11864_v8, inf  ;;  %v2008_v27 = vand.u32 2147483648, %v11864_v8 }
 0x13f   :  { %9393 = vmatprep.subr.mxu0 %v15112_v1  ;;  %5340 = vmatprep.subr.mxu1 %v15117_v19  ;;  %v608_v6 = vadd.f32 %v607_v37, %v606_v22  ;;  %v3417_v23 = vrot.slane %v2845_v18, 4  ;;  %vm2007_vm12 = vcmp.eq.f32.partialorder %v11864_v8, 0.0  ;;  %v3465_v39 = vrot.slane %v3053_v21, 3  ;;  %v3072_v21 = vld [vmem:[#allocation2 + $0x138] sm:$0xff] }
 0x140   :  { %9394 = vmatpush3.msra.mxu0 %v15112_v1  ;;  %5205 = vmatprep.mubr.f32.mxu0 %v5204_v15  ;;  %v10224_v59 = vpop.eup %10223  ;;  %v1491_v2 = vadd.f32 %v1490_v24, %v1489_v30  ;;  %v2225_v46 = vsel %vm563_vm7, %v2157_v32, 0.0  ;;  %10231 = vrcp.f32 %v1358_v26  ;;  %v1083_v17 = vrot.slane %v1011_v38, 7  ;;  %v3088_v30 = vld [vmem:[#allocation2 + $0x178] sm:$0xff] }
 0x141   :  { %9395 = vmatprep.subr.mxu0 %v15112_v1  ;;  %v609_v10 = vrot.slane %v608_v6, 2  ;;  %v1609_v3 = vmul.f32 %v10224_v59, %v11851_v53  ;;  %v15049_v38 = vand.u32 4294901760, %v11934_v25  ;;  %v15048_v24 = vand.u32 4294901760, %v11951_v43 }
 0x142   :  { %9396 = vmatpush3.msra.mxu0 %v15112_v1  ;;  %v10226_v31 = vpop.eup %10225  ;;  %v1492_v18 = vrot.slane %v1491_v2, 2 }
 0x143   :  { %5510 = vmatprep.subr.mxu0 %v15117_v19  ;;  %v610_v15 = vadd.f32 %v609_v10, %v608_v6  ;;  %v2004_v44 = vmul.f32 %v10226_v31, %v11864_v8  ;;  %v1611_v7 = vsel %vm1610_vm5, %v11851_v53, %v1609_v3  ;;  %v11971_v6 = vld [vmem:[#allocation2 + $0xf0] sm:$0x7]  ;;  %v1082_v31 = vrot.slane %v1003_v50, 7 }
 0x144   :  { %v1614_v22 = vsel %vm1612_vm6, %v1613_v4, %v1611_v7  ;;  %v1493_v4 = vadd.f32 %v1492_v18, %v1491_v2  ;;  %v2226_v3 = vrot.slane %v2225_v46, 4  ;;  %v10228_v32 = vpop.eup %10227  ;;  %v2349_v26 = vmul.f32 %v11971_v6, %v11971_v6 }
 0x145   :  { %v611_v37 = vrot.slane %v610_v15, 1  ;;  %v2006_v0 = vsel %vm2005_vm8, %v11864_v8, %v2004_v44  ;;  %v1678_v59 = vadd.f32 1e-06, %v1614_v22  ;;  %v3120_v44 = vadd.f32 %v3088_v30, %v3072_v21 }
 0x146   :  { %v2009_v10 = vsel %vm2007_vm12, %v2008_v27, %v2006_v0  ;;  %v1494_v7 = vrot.slane %v1493_v4, 1  ;;  %v2334_v22 = vmul.f32 %v10228_v32, %v11710_v28  ;;  %v2227_v0 = vadd.f32 %v2226_v3, %v2225_v46  ;;  %v906_v46 = vld [vmem:[#allocation2 + $0xb0] sm:$0x1c] }
 0x147   :  { %v11973_v56 = vadd.f32 %v611_v37, %v610_v15  ;;  %v3988_v53 = vsel %vm563_vm7, %v3972_v29, %v2009_v10  ;;  %10233 = vrcp.f32 %v1678_v59  ;;  %v10230_v29 = vpop.eup %10229  ;;  %v1084_v15 = vsel %vm15064_vm9, %v1082_v31, %v1083_v17  ;;  %v3104_v37 = vld [vmem:[#allocation2 + $0x1b8] sm:$0xff] }
 0x148   :  { %v4005_v8 = vsel %vm15060_vm11, %v3988_v53, %v3417_v23  ;;  %v15139_v23 = vrot.slane %v11880_v33, 1  ;;  %v11993_v18 = vadd.f32 %v1494_v7, %v1493_v4  ;;  %v1174_v17 = vsel %vm563_vm7, %v1084_v15, 0.0  ;;  %v874_v7 = vld [vmem:[#allocation2 + $0x70] sm:$0x80] }
 0x149   :  { %10235 = vrsqrt.f32 %v11973_v56  ;;  %v4022_v50 = vsel %vm15059_vm14, %v4005_v8, %v3465_v39  ;;  %v2510_v39 = vmul.f32 %v10230_v29, %v11751_v9  ;;  %v2228_v31 = vrot.slane %v2227_v0, 2 }
 0x14a   :  { %v4039_v27 = vsel %vm15058_vm1, %v4022_v50, %v11871_v14  ;;  %v2401_v14 = vsel %vm563_vm7, %v2349_v26, 0.0  ;;  %v5218_v28 = vsub.f32 %v11934_v25, %v15049_v38  ;;  %v12004_v9 = vadd.f32 %v3120_v44, %v3104_v37 }
 0x14b   :  { %v4056_v2 = vsel %vm15057_vm4, %v4039_v27, %v15139_v23  ;;  %v2542_v10 = vrot.slane %v2510_v39, 3  ;;  %v2402_v53 = vrot.slane %v2401_v14, 4  ;;  %10237 = vrsqrt.f32 %v11993_v18 }
 0x14c   :  { %v11991_v59 = vand.u32 4294901760, %v4056_v2  ;;  %v5224_v21 = vsub.f32 %v11951_v43, %v15048_v24  ;;  %v2229_v4 = vadd.f32 %v2228_v31, %v2227_v0  ;;  %v1175_v32 = vrot.slane %v1174_v17, 4 }
 0x14d   :  { %v2864_v30 = vmul.f32 %v2542_v10, %v2334_v22  ;;  %v2574_v8 = vsub.f32 %v2334_v22, %v2542_v10  ;;  %v2403_v26 = vadd.f32 %v2402_v53, %v2401_v14  ;;  %v938_v50 = vrot.slane %v906_v46, 3  ;;  %v10232_v27 = vpop.eup %10231  ;;  %v882_v22 = vld [vmem:[#allocation2 + $0xb0] sm:$0x3] }
 0x14e   :  { %v11998_v33 = vsub.f32 %v4056_v2, %v11991_v59  ;;  %5298 = vmatmul.mubr.f32.vlgmr.msra.gmra.mxu1 %v11991_v59  ;;  %v2230_v29 = vrot.slane %v2229_v4, 1  ;;  %v3152_v44 = vand.u32 2147483647, %v12004_v9  ;;  %v5219_v2 = vand.u32 4294901760, %v5218_v28  ;;  %v3071_v9 = vld [vmem:[#allocation2 + $0x130] sm:$0xff] }
 0x14f   :  { %5341 = vmatpush1.msra.mxu1 %v15117_v19  ;;  %5303 = vmatprep.mubr.f32.mxu1 %v11886_v41  ;;  %v2404_v23 = vrot.slane %v2403_v26, 2  ;;  %v5225_v39 = vand.u32 4294901760, %v5224_v21  ;;  %v2896_v37 = vrot.slane %v2864_v30, 5  ;;  %v12020_v31 = vadd.f32 %v1175_v32, %v1174_v17 }
 0x150   :  { %v15050_v3 = vand.u32 4294901760, %v11998_v33  ;;  %9403 = vmatprep.subr.mxu1 %v15112_v1  ;;  %v2231_v0 = vadd.f32 %v2230_v29, %v2229_v4  ;;  %v2590_v53 = vand.u32 2147483647, %v2574_v8  ;;  %v1710_v38 = vmul.f32 %v10232_v27, %v11654_v36 }
 0x151   :  { %v2405_v46 = vadd.f32 %v2404_v23, %v2403_v26  ;;  %vm720_vm15 = vcmp.eq.f32.partialorder %v11973_v56, inf  ;;  %v12025_v28 = vsub.f32 %v874_v7, %v938_v50  ;;  %vm12030_vm0 = vweird.f32 %v3152_v44 }
 0x152   :  { %v5209_v15 = vsub.f32 %v11998_v33, %v15050_v3  ;;  %5305 = vmatmul.mubr.f32.gmra.mxu1 %v11912_v11  ;;  %v978_v30 = vsub.f32 %v882_v22, %v938_v50  ;;  %v723_v32 = vand.u32 2147483648, %v11973_v56  ;;  %v2301_v8 = vmax.f32 %v2231_v0, 1e-24  ;;  %vm12053_vm3 = vmxor %vm12030_vm0, %vm15062_vm13 }
 0x153   :  { %5376 = vmatprep.mubr.f32.mxu1 %v11859_v48  ;;  %v2406_v4 = vrot.slane %v2405_v46, 1  ;;  %v2622_v26 = vrot.slane %v2590_v53, 5  ;;  %vm722_vm2 = vcmp.eq.f32.partialorder %v11973_v56, 0.0  ;;  %v1177_v29 = vrot.slane %v12020_v31, 2 }
 0x154   :  { %v10234_v14 = vpop.eup %10233  ;;  %v5210_v10 = vand.u32 4294901760, %v5209_v15  ;;  %10239 = vrsqrt.f32 %v2301_v8  ;;  %vm1603_vm5 = vcmp.eq.f32.partialorder %v11993_v18, inf  ;;  %vm1605_vm6 = vcmp.eq.f32.partialorder %v11993_v18, 0.0 }
 0x155   :  { %v1726_v3 = vmul.f32 %v10234_v14, %v11698_v57  ;;  %v2970_v57 = vsel %vm563_vm7, %v2896_v37, 0.0  ;;  %v2407_v50 = vadd.f32 %v2406_v4, %v2405_v46  ;;  %v1010_v37 = vand.u32 2147483647, %v978_v30  ;;  %v3087_v30 = vld [vmem:[#allocation2 + $0x170] sm:$0xff] }
 0x156   :  { %v10236_v24 = vpop.eup %10235  ;;  %5211 = vmatmul.mubr.f32.vlgmr.msra.gmra.mxu0 %v5210_v10  ;;  %5379 = vmatmul.mubr.f32.vlgmr.msra.gmra.mxu1 %v11998_v33  ;;  %v2971_v27 = vrot.slane %v2970_v57, 4  ;;  %v1606_v14 = vand.u32 2147483648, %v11993_v18  ;;  %v3200_v10 = vsel %vm12053_vm3, %v3152_v44, 0.0  ;;  %v1178_v44 = vadd.f32 %v1177_v29, %v12020_v31  ;;  %v3103_v29 = vld [vmem:[#allocation2 + $0x1b0] sm:$0xff] }
 0x157   :  { %v719_v17 = vmul.f32 %v10236_v24, %v11973_v56  ;;  %5220 = vmatprep.mubr.f32.mxu0 %v5219_v2  ;;  %9404 = vmatpush3.msra.mxu1 %v15112_v1  ;;  %v1758_v36 = vrot.slane %v1726_v3, 3  ;;  %v2477_v23 = vmax.f32 %v2407_v50, 1e-24  ;;  %v2696_v2 = vsel %vm563_vm7, %v2622_v26, 0.0 }
 0x158   :  { %5511 = vmatpush1.msra.mxu0 %v15117_v19  ;;  %9405 = vmatprep.subr.mxu1 %v15112_v1  ;;  %v10238_v15 = vpop.eup %10237  ;;  %v2972_v21 = vadd.f32 %v2971_v27, %v2970_v57  ;;  %v1080_v57 = vrot.slane %v1010_v37, 7  ;;  %v3119_v50 = vadd.f32 %v3087_v30, %v3071_v9 }
 0x159   :  { %v721_v24 = vsel %vm720_vm15, %v11973_v56, %v719_v17  ;;  %9441 = vmatprep.subr.mxu0 %v15112_v1  ;;  %9406 = vmatpush3.msra.mxu1 %v15112_v1  ;;  %v1790_v3 = vsub.f32 %v1710_v38, %v1758_v36  ;;  %v1602_v0 = vmul.f32 %v10238_v15, %v11993_v18  ;;  %10241 = vrsqrt.f32 %v2477_v23 }
 0x15a   :  { %5226 = vmatmul.mubr.f32.gmra.mxu0 %v5225_v39  ;;  %9407 = vmatprep.subr.mxu1 %v15112_v1  ;;  %v12057_v38 = vsel %vm722_vm2, %v723_v32, %v721_v24  ;;  %v1002_v39 = vand.u32 2147483647, %v12025_v28  ;;  %v2697_v28 = vrot.slane %v2696_v2, 4  ;;  %v3251_v36 = vrot.slane %v3200_v10, 4 }
 0x15b   :  { %5545 = vmatprep.mubr.f32.mxu0 %v11841_v16  ;;  %9408 = vmatpush3.msra.mxu1 %v15112_v1  ;;  %v1806_v7 = vmul.f32 %v1790_v3, %v1790_v3  ;;  %v1357_v53 = vadd.f32 1e-06, %v12057_v38  ;;  %v1604_v17 = vsel %vm1603_vm5, %v11993_v18, %v1602_v0  ;;  %v2973_v3 = vrot.slane %v2972_v21, 2 }
 0x15c   :  { %5385 = vmatprep.mubr.f32.mxu1 %v11934_v25  ;;  %9409 = vmatprep.subr.mxu1 %v15112_v1  ;;  %v1079_v32 = vrot.slane %v1002_v39, 7  ;;  %v1607_v8 = vsel %vm1605_vm6, %v1606_v14, %v1604_v17  ;;  %v2698_v31 = vadd.f32 %v2697_v28, %v2696_v2  ;;  %v9120_v18 = vadd.f32 -1.0, %v11945_v52 }
 0x15d   :  { %5388 = vmatmul.mubr.f32.gmra.mxu1 %v11951_v43  ;;  %v1838_v22 = vrot.slane %v1806_v7, 1  ;;  %10243 = vrcp.f32 %v1357_v53  ;;  %v1677_v24 = vadd.f32 1e-06, %v1607_v8  ;;  %v1179_v15 = vrot.slane %v1178_v44, 1 }
 0x15e   :  { %5547 = vmatmul.mubr.f32.vlgmr.msra.gmra.mxu0 %v11991_v59  ;;  %9410 = vmatpush3.msra.mxu1 %v15112_v1  ;;  %v12098_v7 = vsub.s32 7, %v10528_v54  ;;  %v3252_v56 = vadd.f32 %v3251_v36, %v3200_v10  ;;  %v1081_v2 = vsel %vm15064_vm9, %v1079_v32, %v1080_v57  ;;  %v12103_v39 = vadd.f32 %v3119_v50, %v3103_v29 }
 0x15f   :  { %9442 = vmatpush3.msra.mxu0 %v15112_v1  ;;  %9411 = vmatprep.subr.mxu1 %v15112_v1  ;;  %v1912_v46 = vsel %vm563_vm7, %v1838_v22, 0.0  ;;  %10245 = vrcp.f32 %v1677_v24  ;;  %v2699_v52 = vrot.slane %v2698_v31, 2  ;;  %v2974_v37 = vadd.f32 %v2973_v3, %v2972_v21 }
 0x160   :  { %9443 = vmatprep.subr.mxu0 %v15112_v1  ;;  %9412 = vmatpush3.msra.mxu1 %v15112_v1  ;;  %v1913_v4 = vrot.slane %v1912_v46, 4  ;;  %15144 = vst [vmem:[#allocation15_spill] sm:$0xff] %v12098_v7  ;;  %v12109_v0 = vmul.f32 %v9120_v18, %v9120_v18  ;;  %v1180_v10 = vadd.f32 %v1179_v15, %v1178_v44  ;;  %v1167_v28 = vsel %vm563_vm7, %v1081_v2, 0.0 }
 0x161   :  { %9444 = vmatpush3.msra.mxu0 %v15112_v1  ;;  %9413 = vmatprep.subr.mxu1 %v15112_v1  ;;  %v10240_v22 = vpop.eup %10239  ;;  %v12115_v53 = vrot.slane %v10642_v34, %v12098_v7  ;;  %v3151_v9 = vand.u32 2147483647, %v12103_v39  ;;  %v2700_v30 = vadd.f32 %v2699_v52, %v2698_v31  ;;  %v2975_v44 = vrot.slane %v2974_v37, 1 }
 0x162   :  { %9445 = vmatprep.subr.mxu0 %v15112_v1  ;;  %9414 = vmatpush3.msra.mxu1 %v15112_v1  ;;  %v1914_v26 = vadd.f32 %v1913_v4, %v1912_v46  ;;  %v3253_v46 = vrot.slane %v3252_v56, 2  ;;  %v2333_v4 = vmul.f32 %v10240_v22, %v11920_v51  ;;  %vm827_vm8 = vweird.f32 %v12109_v0 }
 0x163   :  { %9446 = vmatpush3.msra.mxu0 %v15112_v1  ;;  %9415 = vmatprep.subr.mxu1 %v15112_v1  ;;  %v1168_v32 = vrot.slane %v1167_v28, 4  ;;  %v1326_v57 = vmul.f32 %v12115_v53, %v1180_v10  ;;  %vm12138_vm12 = vweird.f32 %v3151_v9  ;;  %vm12147_vm15 = vmxor %vm827_vm8, %vm15062_vm13  ;;  %v2701_v31 = vrot.slane %v2700_v30, 1 }
 0x164   :  { %9447 = vmatprep.subr.mxu0 %v15112_v1  ;;  %9416 = vmatpush3.msra.mxu1 %v15112_v1  ;;  %v1915_v27 = vrot.slane %v1914_v26, 2  ;;  %v3254_v8 = vadd.f32 %v3253_v46, %v3252_v56  ;;  %v2976_v3 = vadd.f32 %v2975_v44, %v2974_v37  ;;  %vm12158_vm0 = vmxor %vm12138_vm12, %vm15062_vm13 }
 0x165   :  { %9448 = vmatpush3.msra.mxu0 %v15112_v1  ;;  %9417 = vmatprep.subr.mxu1 %v15112_v1  ;;  %v1169_v15 = vadd.f32 %v1168_v32, %v1167_v28  ;;  %v3372_v2 = vrot.slane %v1326_v57, 7  ;;  %v2702_v28 = vadd.f32 %v2701_v31, %v2700_v30  ;;  %v12192_v31 = vsub.s32 6, %v10528_v54 }
 0x166   :  { %9449 = vmatprep.subr.mxu0 %v15112_v1  ;;  %9418 = vmatpush3.msra.mxu1 %v15112_v1  ;;  %v1916_v23 = vadd.f32 %v1915_v27, %v1914_v26  ;;  %v10242_v21 = vpop.eup %10241  ;;  %v3040_v44 = vsub.f32 1.0, %v2976_v3 }
 0x167   :  { %9450 = vmatpush3.msra.mxu0 %v15112_v1  ;;  %9419 = vmatprep.subr.mxu1 %v15112_v1  ;;  %v2509_v36 = vmul.f32 %v10242_v21, %v11971_v6  ;;  %v12175_v21 = vrot.slane %v10824_v40, %v12098_v7  ;;  %15151 = vst [vmem:[#allocation16_spill] sm:$0xff] %v12192_v31 }
 0x168   :  { %9451 = vmatprep.subr.mxu0 %v15112_v1  ;;  %9420 = vmatpush3.msra.mxu1 %v15112_v1  ;;  %v1917_v14 = vrot.slane %v1916_v23, 1 }
 0x169   :  { %9452 = vmatpush3.msra.mxu0 %v15112_v1  ;;  %9421 = vmatprep.subr.mxu1 %v15112_v1  ;;  %v2541_v26 = vrot.slane %v2509_v36, 3 }
 0x16a   :  { %9453 = vmatprep.subr.mxu0 %v15112_v1  ;;  %9422 = vmatpush3.msra.mxu1 %v15112_v1  ;;  %v12120_v17 = vadd.f32 %v1917_v14, %v1916_v23  ;;  %v10244_v24 = vpop.eup %10243  ;;  %v3255_v23 = vrot.slane %v3254_v8, 1  ;;  %v859_v14 = vsel %vm12147_vm15, %v12109_v0, 0.0  ;;  %v1170_v0 = vrot.slane %v1169_v15, 2 }
 0x16b   :  { %9454 = vmatpush3.msra.mxu0 %v15112_v1  ;;  %9423 = vmatprep.subr.mxu1 %v15112_v1  ;;  %v2573_v29 = vsub.f32 %v2333_v4, %v2541_v26  ;;  %v2863_v18 = vmul.f32 %v2541_v26, %v2333_v4  ;;  %v1709_v10 = vmul.f32 %v10244_v24, %v11874_v63 }
 0x16c   :  { %9455 = vmatprep.subr.mxu0 %v15112_v1  ;;  %9424 = vmatpush3.msra.mxu1 %v15112_v1  ;;  %10247 = vrsqrt.f32 %v12120_v17  ;;  %v10246_v56 = vpop.eup %10245  ;;  %v3256_v30 = vadd.f32 %v3255_v23, %v3254_v8  ;;  %v3958_v32 = vsel %vm15064_vm9, %v859_v14, %v3372_v2  ;;  %v3056_v8 = vmul.f32 %v3040_v44, %v12175_v21 }
 0x16d   :  { %9456 = vmatpush3.msra.mxu0 %v15112_v1  ;;  %9425 = vmatprep.subr.mxu1 %v15112_v1  ;;  %v2589_v39 = vand.u32 2147483647, %v2573_v29  ;;  %v2895_v52 = vrot.slane %v2863_v18, 5  ;;  %v1725_v46 = vmul.f32 %v10246_v56, %v11901_v35  ;;  %v3199_v35 = vsel %vm12158_vm0, %v3151_v9, 0.0 }
 0x16e   :  { %v12134_v51 = vpop.f32.mrf.mxu1  ;;  %9457 = vmatprep.subr.mxu0 %v15112_v1  ;;  %9426 = vmatpush3.msra.mxu1 %v15112_v1  ;;  %v2848_v9 = vmul.f32 %v12175_v21, %v2702_v28  ;;  %v3245_v3 = vrot.slane %v3199_v35, 4  ;;  %v3975_v18 = vsel %vm15061_vm10, %v3958_v32, %v12115_v53  ;;  %vm2026_vm2 = vcmp.eq.f32.partialorder %v12120_v17, inf }
 0x16f   :  { %9458 = vmatpush3.msra.mxu0 %v15112_v1  ;;  %9427 = vmatprep.subr.mxu1 %v15112_v1  ;;  %v1757_v63 = vrot.slane %v1725_v46, 3  ;;  %v2621_v57 = vrot.slane %v2589_v39, 5  ;;  %v2963_v26 = vsel %vm563_vm7, %v2895_v52, 0.0  ;;  %v15152_v39 = vand.u32 4294901760, %v11859_v48 }
 0x170   :  { %v4378_v27 = vpop.f32.mrf.mxu1  ;;  %9459 = vmatprep.subr.mxu0 %v15112_v1  ;;  %9428 = vmatpush3.msra.mxu1 %v15112_v1  ;;  %v2964_v23 = vrot.slane %v2963_v26, 4  ;;  %v2029_v54 = vand.u32 2147483648, %v12120_v17  ;;  %v3312_v52 = vmul.f32 %v3256_v30, %v12115_v53  ;;  %vm2028_vm3 = vcmp.eq.f32.partialorder %v12120_v17, 0.0 }
 0x171   :  { %9460 = vmatpush3.msra.mxu0 %v15112_v1  ;;  %9429 = vmatprep.subr.mxu1 %v15112_v1  ;;  %v1789_v24 = vsub.f32 %v1709_v10, %v1757_v63  ;;  %v12198_v27 = vadd.f32 %v1170_v0, %v1169_v15  ;;  %v2689_v37 = vsel %vm563_vm7, %v2621_v57, 0.0  ;;  %v15153_v15 = vand.u32 4294901760, %v11998_v33 }
 0x172   :  { %9461 = vmatprep.subr.mxu0 %v15112_v1  ;;  %9430 = vmatpush3.msra.mxu1 %v15112_v1  ;;  %v9119_v48 = vadd.f32 -1.0, %v12057_v38  ;;  %v3420_v53 = vrot.slane %v2848_v9, 4  ;;  %v3468_v28 = vrot.slane %v3056_v8, 3  ;;  %v3246_v44 = vadd.f32 %v3245_v3, %v3199_v35 }
 0x173   :  { %v12162_v22 = vpop.f32.mrf.mxu1  ;;  %9462 = vmatpush3.msra.mxu0 %v15112_v1  ;;  %9431 = vmatprep.subr.mxu1 %v15112_v1  ;;  %v1805_v56 = vmul.f32 %v1789_v24, %v1789_v24  ;;  %v2690_v0 = vrot.slane %v2689_v37, 4  ;;  %v2965_v63 = vadd.f32 %v2964_v23, %v2963_v26  ;;  %v1172_v26 = vrot.slane %v12198_v27, 1 }
 0x174   :  { %v9169_v4 = vpop.f32.mrf.mxu0  ;;  %9463 = vmatprep.subr.mxu0 %v15112_v1  ;;  %9432 = vmatpush3.msra.mxu1 %v15112_v1  ;;  %v3574_v9 = vrot.slane %v10675_v5, %v12098_v7  ;;  %v3247_v8 = vrot.slane %v3246_v44, 2 }
 0x175   :  { %v4387_v36 = vpop.f32.mrf.mxu1  ;;  %9464 = vmatpush3.msra.mxu0 %v15112_v1  ;;  %5552 = vmatprep.mubr.f32.mxu0 %v11886_v41  ;;  %v1837_v46 = vrot.slane %v1805_v56, 1  ;;  %v2966_v56 = vrot.slane %v2965_v63, 2 }
 0x176   :  { %v9170_v6 = vpop.f32.mrf.mxu0  ;;  %9465 = vmatprep.subr.mxu0 %v15112_v1  ;;  %9433 = vmatprep.subr.mxu1 %v15112_v1 }
 0x177   :  { %v9171_v50 = vadd.f32 %v9170_v6, %v9169_v4  ;;  %9466 = vmatpush3.msra.mxu0 %v15112_v1  ;;  %9434 = vmatpush3.msra.mxu1 %v15112_v1  ;;  %v1905_v38 = vsel %vm563_vm7, %v1837_v46, 0.0  ;;  %v3516_v6 = vrot.slane %v3312_v52, 1  ;;  %v12262_v52 = vrot.slane %v10642_v34, %v12192_v31 }
 0x178   :  { %9467 = vmatprep.subr.mxu0 %v15112_v1  ;;  %5554 = vmatmul.mubr.f32.gmra.mxu0 %v11912_v11  ;;  %v1906_v30 = vrot.slane %v1905_v38, 4 }
 0x179   :  { %v10248_v2 = vpop.eup %10247  ;;  %9468 = vmatpush3.msra.mxu0 %v15112_v1  ;;  %5460 = vmatprep.mubr.f32.mxu1 %v15152_v39  ;;  %v3656_v39 = vrot.slane %v10661_v61, %v12098_v7 }
 0x17a   :  { %v9172_v29 = vpop.f32.mrf.mxu0  ;;  %9469 = vmatprep.subr.mxu0 %v15112_v1  ;;  %5464 = vmatmul.mubr.f32.vlgmr.msra.gmra.mxu1 %v15153_v15  ;;  %v2025_v10 = vmul.f32 %v10248_v2, %v12120_v17  ;;  %v12252_v2 = vmul.f32 %v9119_v48, %v9119_v48  ;;  %v2967_v15 = vadd.f32 %v2966_v56, %v2965_v63 }
 0x17b   :  { %9470 = vmatpush3.msra.mxu0 %v15112_v1  ;;  %9479 = vmatprep.subr.mxu1 %v15112_v1  ;;  %v3734_v63 = vrot.slane %v10653_v55, %v12192_v31  ;;  %v3898_v56 = vrot.slane %v10665_v62, %v12192_v31 }
 0x17c   :  { %v9173_v14 = vpop.f32.mrf.mxu0  ;;  %9471 = vmatprep.subr.mxu0 %v15112_v1  ;;  %5624 = vmatprep.mubr.f32.mxu0 %v11841_v16  ;;  %v2027_v33 = vsel %vm2026_vm2, %v12120_v17, %v2025_v10  ;;  %v15154_v17 = vand.u32 4294901760, %v11934_v25  ;;  %v2691_v25 = vadd.f32 %v2690_v0, %v2689_v37  ;;  %vm826_vm5 = vweird.f32 %v12252_v2 }
 0x17d   :  { %v9174_v4 = vadd.f32 %v9173_v14, %v9172_v29  ;;  %9472 = vmatpush3.msra.mxu0 %v15112_v1  ;;  %9480 = vmatpush3.msra.mxu1 %v15112_v1  ;;  %v2030_v35 = vsel %vm2028_vm3, %v2029_v54, %v2027_v33  ;;  %v15155_v29 = vand.u32 4294901760, %v11951_v43  ;;  %v3248_v14 = vadd.f32 %v3247_v8, %v3246_v44  ;;  %vm12293_vm6 = vmxor %vm826_vm5, %vm15062_vm13 }
 0x17e   :  { %v4295_v36 = vpop.f32.mrf.mxu0  ;;  %5626 = vmatmul.mubr.f32.vlgmr.msra.gmra.mxu0 %v11991_v59  ;;  %9481 = vmatprep.subr.mxu1 %v15112_v1  ;;  %v3991_v24 = vsel %vm563_vm7, %v3975_v18, %v2030_v35  ;;  %v4075_v10 = vsel %vm15064_vm9, %v3574_v9, %v3656_v39  ;;  %v2968_v0 = vrot.slane %v2967_v15, 1  ;;  %v3902_v35 = vrot.slane %v10665_v62, %v12098_v7 }
 0x17f   :  { %v4296_v32 = vadd.f32 %v9171_v50, %v4295_v36  ;;  %v4303_v57 = vadd.f32 %v9174_v4, %v11888_v45  ;;  %5471 = vmatprep.mubr.f32.mxu1 %v15154_v17  ;;  %9482 = vmatpush3.msra.mxu1 %v15112_v1  ;;  %v4008_v45 = vsel %vm15060_vm11, %v3991_v24, %v3420_v53  ;;  %v3249_v4 = vrot.slane %v3248_v14, 1 }
 0x180   :  { %v4297_v16 = vpop.f32.mrf.mxu0  ;;  %v1907_v50 = vadd.f32 %v1906_v30, %v1905_v38  ;;  %5475 = vmatmul.mubr.f32.gmra.mxu1 %v15155_v29  ;;  %9483 = vmatprep.subr.mxu1 %v15112_v1  ;;  %v4025_v18 = vsel %vm15059_vm14, %v4008_v45, %v3468_v28  ;;  %v3570_v53 = vrot.slane %v10675_v5, %v12192_v31 }
 0x181   :  { %v12237_v59 = vadd.f32 %v12134_v51, %v4296_v32  ;;  %v12246_v23 = vadd.f32 %v12162_v22, %v4303_v57  ;;  %5631 = vmatprep.mubr.f32.mxu0 %v11886_v41  ;;  %9484 = vmatpush3.msra.mxu1 %v15112_v1  ;;  %v4042_v51 = vsel %vm15058_vm1, %v4025_v18, %v12175_v21  ;;  %v858_v57 = vsel %vm12293_vm6, %v12252_v2, 0.0 }
 0x182   :  { %v12239_v3 = vpop.f32.mrf.mxu0  ;;  %v1908_v43 = vrot.slane %v1907_v50, 2  ;;  %5633 = vmatmul.mubr.f32.gmra.mxu0 %v11912_v11  ;;  %9485 = vmatprep.subr.mxu1 %v15112_v1  ;;  %v4059_v22 = vsel %vm15057_vm4, %v4042_v51, %v3516_v6  ;;  %v1173_v41 = vadd.f32 %v1172_v26, %v12198_v27  ;;  %v2692_v11 = vrot.slane %v2691_v25, 2 }
 0x183   :  { %9486 = vmatpush3.msra.mxu1 %v15112_v1  ;;  %5763 = vmatprep.subr.mxu0 %v15117_v19  ;;  %v12266_v21 = vand.u32 4294901760, %v4059_v22  ;;  %v3738_v27 = vrot.slane %v10653_v55, %v12098_v7  ;;  %v3652_v28 = vrot.slane %v10661_v61, %v12192_v31  ;;  %v3820_v36 = vrot.slane %v10679_v12, %v12098_v7 }
 0x184   :  { %v4546_v54 = vpop.f32.mrf.mxu0  ;;  %v1909_v37 = vadd.f32 %v1908_v43, %v1907_v50  ;;  %9487 = vmatprep.subr.mxu1 %v15112_v1  ;;  %5764 = vmatpush1.msra.mxu0 %v15117_v19  ;;  %v1325_v46 = vmul.f32 %v12262_v52, %v1173_v41  ;;  %v2693_v5 = vadd.f32 %v2692_v11, %v2691_v25 }
 0x185   :  { %9488 = vmatpush3.msra.mxu1 %v15112_v1  ;;  %5798 = vmatprep.mubr.f32.mxu0 %v12266_v21  ;;  %v12277_v48 = vsub.f32 %v4059_v22, %v12266_v21  ;;  %v4091_v61 = vsel %vm15061_vm10, %v4075_v10, %v3738_v27  ;;  %v4074_v30 = vsel %vm15064_vm9, %v3570_v53, %v3652_v28  ;;  %v12358_v53 = vld [vmem:[#allocation2 + $0x208] sm:$0xe] }
 0x186   :  { %v1910_v34 = vrot.slane %v1909_v37, 1  ;;  %9489 = vmatprep.subr.mxu1 %v15112_v1  ;;  %5842 = vmatprep.subr.mxu0 %v15117_v19  ;;  %v3250_v16 = vadd.f32 %v3249_v4, %v3248_v14  ;;  %v3371_v6 = vrot.slane %v1325_v46, 7  ;;  %v4107_v24 = vsel %vm563_vm7, %v4091_v61, %v3820_v36 }
 0x187   :  { %9490 = vmatpush3.msra.mxu1 %v15112_v1  ;;  %v5704_v33 = vand.u32 4294901760, %v12277_v48  ;;  %v2694_v26 = vrot.slane %v2693_v5, 1  ;;  %v2969_v9 = vadd.f32 %v2968_v0, %v2967_v15  ;;  %v3816_v17 = vrot.slane %v10679_v12, %v12192_v31 }
 0x188   :  { %v12286_v44 = vadd.f32 %v1910_v34, %v1909_v37  ;;  %9491 = vmatprep.subr.mxu1 %v15112_v1  ;;  %v4090_v50 = vsel %vm15061_vm10, %v4074_v30, %v3734_v63  ;;  %v4123_v29 = vsel %vm15060_vm11, %v4107_v24, %v3902_v35  ;;  %v12324_v18 = vrot.slane %v10824_v40, %v12192_v31  ;;  %v12342_v37 = vld [vmem:[#allocation2 + $0x208] sm:$0x70] }
 0x189   :  { %9492 = vmatpush3.msra.mxu1 %v15112_v1  ;;  %v5705_v32 = vsub.f32 %v12277_v48, %v5704_v33  ;;  %v12327_v25 = vmul.f32 %v3250_v16, %v12262_v52  ;;  %v3957_v12 = vsel %vm15064_vm9, %v858_v57, %v3371_v6  ;;  %v2695_v2 = vadd.f32 %v2694_v26, %v2693_v5  ;;  %v491_v5 = vld [vmem:[#allocation2 + $0x200] sm:$0xe] }
 0x18a   :  { %10249 = vrsqrt.f32 %v12286_v44  ;;  %9493 = vmatprep.subr.mxu1 %v15112_v1  ;;  %v3039_v43 = vsub.f32 1.0, %v2969_v9  ;;  %v4106_v39 = vsel %vm563_vm7, %v4090_v50, %v3816_v17  ;;  %v12335_v40 = vand.u32 4294901760, %v4123_v29 }
 0x18b   :  { %9494 = vmatpush3.msra.mxu1 %v15112_v1  ;;  %v5706_v45 = vand.u32 4294901760, %v5705_v32  ;;  %v3974_v22 = vsel %vm15061_vm10, %v3957_v12, %v12262_v52  ;;  %v3515_v14 = vrot.slane %v12327_v25, 1  ;;  %v4122_v11 = vsel %vm15060_vm11, %v4106_v39, %v3898_v56  ;;  %v1343_v52 = vld [vmem:[#allocation2 + $0x200] sm:$0x70] }
 0x18c   :  { %9495 = vmatprep.subr.mxu1 %v15112_v1  ;;  %v12348_v15 = vsub.f32 %v4123_v29, %v12335_v40  ;;  %v1392_v27 = vmul.f32 %v12342_v37, %v12342_v37  ;;  %v2847_v34 = vmul.f32 %v12324_v18, %v2695_v2  ;;  %v1391_v28 = vmul.f32 %v1343_v52, %v1343_v52 }
 0x18d   :  { %9496 = vmatpush3.msra.mxu1 %v15112_v1  ;;  %5707 = vmatprep.mubr.f32.mxu1 %v5706_v45  ;;  %vm2019_vm8 = vcmp.eq.f32.partialorder %v12286_v44, inf  ;;  %v508_v36 = vmul.f32 %v12358_v53, %v12358_v53  ;;  %vm2021_vm12 = vcmp.eq.f32.partialorder %v12286_v44, 0.0  ;;  %v507_v61 = vmul.f32 %v491_v5, %v491_v5 }
 0x18e   :  { %9497 = vmatprep.subr.mxu1 %v15112_v1  ;;  %v1424_v38 = vrot.slane %v1392_v27, 4  ;;  %v1423_v63 = vrot.slane %v1391_v28, 4  ;;  %v3419_v16 = vrot.slane %v2847_v34, 4  ;;  %v12384_v2 = vand.u32 4294901760, %v4122_v11 }
 0x18f   :  { %v9207_v8 = vpop.f32.mrf.mxu1  ;;  %9498 = vmatpush3.msra.mxu1 %v15112_v1  ;;  %v540_v32 = vrot.slane %v508_v36, 1  ;;  %v539_v24 = vrot.slane %v507_v61, 1 }
 0x190   :  { %9499 = vmatprep.subr.mxu1 %v15112_v1  ;;  %v1510_v57 = vsel %vm563_vm7, %v1424_v38, 0.0  ;;  %v1503_v26 = vsel %vm563_vm7, %v1423_v63, 0.0  ;;  %v12392_v34 = vsub.f32 %v4122_v11, %v12384_v2  ;;  %v5719_v38 = vand.u32 4294901760, %v12348_v15 }
 0x191   :  { %v9208_v51 = vpop.f32.mrf.mxu1  ;;  %9500 = vmatpush3.msra.mxu1 %v15112_v1  ;;  %v1511_v6 = vrot.slane %v1510_v57, 4  ;;  %v1504_v50 = vrot.slane %v1503_v26, 4  ;;  %v620_v39 = vsel %vm563_vm7, %v539_v24, 0.0 }
 0x192   :  { %v9209_v54 = vadd.f32 %v9208_v51, %v9207_v8  ;;  %9501 = vmatprep.subr.mxu1 %v15112_v1  ;;  %v621_v27 = vrot.slane %v620_v39, 4  ;;  %v5725_v11 = vand.u32 4294901760, %v12392_v34 }
 0x193   :  { %9502 = vmatpush3.msra.mxu1 %v15112_v1  ;;  %v1512_v56 = vadd.f32 %v1511_v6, %v1510_v57 }
 0x194   :  { %v4462_v62 = vadd.f32 %v9209_v54, %v12237_v59  ;;  %v3055_v59 = vmul.f32 %v3039_v43, %v12324_v18  ;;  %9503 = vmatprep.subr.mxu1 %v15112_v1  ;;  %v1505_v54 = vadd.f32 %v1504_v50, %v1503_v26 }
 0x195   :  { %v9210_v41 = vpop.f32.mrf.mxu1  ;;  %9504 = vmatpush3.msra.mxu1 %v15112_v1 }
 0x196   :  { %v12356_v10 = vadd.f32 %v12239_v3, %v4462_v62  ;;  %v2022_v3 = vand.u32 2147483648, %v12286_v44  ;;  %9505 = vmatprep.subr.mxu1 %v15112_v1  ;;  %v3467_v17 = vrot.slane %v3055_v59, 3 }
 0x197   :  { %v9211_v46 = vpop.f32.mrf.mxu1  ;;  %v10250_v0 = vpop.eup %10249  ;;  %9506 = vmatpush3.msra.mxu1 %v15112_v1 }
 0x198   :  { %v9212_v4 = vadd.f32 %v9211_v46, %v9210_v41  ;;  %v2018_v35 = vmul.f32 %v10250_v0, %v12286_v44  ;;  %9507 = vmatprep.subr.mxu1 %v15112_v1  ;;  %v1513_v41 = vrot.slane %v1512_v56, 2 }
 0x199   :  { %9508 = vmatpush3.msra.mxu1 %v15112_v1 }
 0x19a   :  { %v4473_v30 = vadd.f32 %v9212_v4, %v12246_v23  ;;  %v2020_v9 = vsel %vm2019_vm8, %v12286_v44, %v2018_v35  ;;  %v627_v23 = vsel %vm563_vm7, %v540_v32, 0.0  ;;  %9509 = vmatprep.subr.mxu1 %v15112_v1  ;;  %v1514_v28 = vadd.f32 %v1513_v41, %v1512_v56 }
 0x19b   :  { %v4551_v45 = vpop.f32.mrf.mxu0  ;;  %v2023_v8 = vsel %vm2021_vm12, %v2022_v3, %v2020_v9  ;;  %v628_v12 = vrot.slane %v627_v23, 4  ;;  %9510 = vmatpush3.msra.mxu1 %v15112_v1  ;;  %v622_v4 = vadd.f32 %v621_v27, %v620_v39  ;;  %v5720_v32 = vsub.f32 %v12348_v15, %v5719_v38 }
 0x19c   :  { %v12381_v29 = vadd.f32 %v4551_v45, %v4473_v30  ;;  %v3990_v51 = vsel %vm563_vm7, %v3974_v22, %v2023_v8  ;;  %6012 = vmatprep.subr.mxu1 %v15117_v19  ;;  %v1506_v22 = vrot.slane %v1505_v54, 2  ;;  %v1515_v3 = vrot.slane %v1514_v28, 1 }
 0x19d   :  { %v4553_v43 = vpop.f32.mrf.mxu0  ;;  %v4007_v62 = vsel %vm15060_vm11, %v3990_v51, %v3419_v16  ;;  %v629_v44 = vadd.f32 %v628_v12, %v627_v23  ;;  %v623_v61 = vrot.slane %v622_v4, 2  ;;  %v5721_v12 = vand.u32 4294901760, %v5720_v32 }
 0x19e   :  { %v4024_v52 = vsel %vm15059_vm14, %v4007_v62, %v3467_v17  ;;  %v1507_v63 = vadd.f32 %v1506_v22, %v1505_v54  ;;  %v12407_v25 = vadd.f32 %v1515_v3, %v1514_v28  ;;  %v5726_v17 = vsub.f32 %v12392_v34, %v5725_v11  ;;  %v12470_v28 = vld [vmem:[#allocation2 + $0x288] sm:$0x7] }
 0x19f   :  { %v4041_v59 = vsel %vm15058_vm1, %v4024_v52, %v12324_v18  ;;  %v630_v46 = vrot.slane %v629_v44, 2 }
 0x1a0   :  { %v4058_v36 = vsel %vm15057_vm4, %v4041_v59, %v3515_v14  ;;  %v624_v14 = vadd.f32 %v623_v61, %v622_v4  ;;  %10251 = vrsqrt.f32 %v12407_v25  ;;  %v1508_v23 = vrot.slane %v1507_v63, 1 }
 0x1a1   :  { %v12400_v5 = vand.u32 4294901760, %v4058_v36  ;;  %v631_v0 = vadd.f32 %v630_v46, %v629_v44  ;;  %v5727_v39 = vand.u32 4294901760, %v5726_v17  ;;  %vm1624_vm15 = vcmp.eq.f32.partialorder %v12407_v25, inf  ;;  %v12468_v46 = vld [vmem:[#allocation2 + $0x248] sm:$0xe0] }
 0x1a2   :  { %v625_v24 = vrot.slane %v624_v14, 1  ;;  %v12434_v54 = vadd.f32 %v1508_v23, %v1507_v63  ;;  %v1627_v41 = vand.u32 2147483648, %v12407_v25  ;;  %vm1626_vm0 = vcmp.eq.f32.partialorder %v12407_v25, 0.0 }
 0x1a3   :  { %5800 = vmatmul.mubr.f32.vlgmr.msra.gmra.mxu0 %v12400_v5  ;;  %v12405_v18 = vsub.f32 %v4058_v36, %v12400_v5  ;;  %v632_v30 = vrot.slane %v631_v0, 1  ;;  %v2352_v61 = vmul.f32 %v12470_v28, %v12470_v28 }
 0x1a4   :  { %v9245_v35 = vpop.f32.mrf.mxu0  ;;  %5805 = vmatprep.mubr.f32.mxu0 %v12335_v40  ;;  %5843 = vmatpush1.msra.mxu0 %v15117_v19  ;;  %v12431_v51 = vadd.f32 %v625_v24, %v624_v14  ;;  %vm1617_vm6 = vcmp.eq.f32.partialorder %v12434_v54, inf  ;;  %vm1619_vm12 = vcmp.eq.f32.partialorder %v12434_v54, 0.0 }
 0x1a5   :  { %9517 = vmatprep.subr.mxu0 %v15112_v1  ;;  %v5710_v57 = vand.u32 4294901760, %v12405_v18  ;;  %v12416_v6 = vadd.f32 %v632_v30, %v631_v0  ;;  %v2128_v0 = vmul.f32 %v12468_v46, %v12468_v46  ;;  %v2111_v30 = vld [vmem:[#allocation2 + $0x280] sm:$0x7]  ;;  %v2422_v32 = vsel %vm563_vm7, %v2352_v61, 0.0 }
 0x1a6   :  { %v9246_v16 = vpop.f32.mrf.mxu0  ;;  %v2351_v17 = vmul.f32 %v2111_v30, %v2111_v30  ;;  %vm734_vm5 = vcmp.eq.f32.partialorder %v12431_v51, inf  ;;  %vm736_vm8 = vcmp.eq.f32.partialorder %v12431_v51, 0.0  ;;  %v1620_v61 = vand.u32 2147483648, %v12434_v54 }
 0x1a7   :  { %v9247_v26 = vadd.f32 %v9246_v16, %v9245_v35  ;;  %5807 = vmatmul.mubr.f32.gmra.mxu0 %v12384_v2  ;;  %v5711_v9 = vsub.f32 %v12405_v18, %v5710_v57  ;;  %10253 = vrsqrt.f32 %v12416_v6  ;;  %vm741_vm2 = vcmp.eq.f32.partialorder %v12416_v6, inf  ;;  %v2095_v35 = vld [vmem:[#allocation2 + $0x240] sm:$0xe0] }
 0x1a8   :  { %v9248_v45 = vpop.f32.mrf.mxu0  ;;  %5878 = vmatprep.mubr.f32.mxu0 %v12277_v48  ;;  %10255 = vrsqrt.f32 %v12431_v51  ;;  %v744_v22 = vand.u32 2147483648, %v12416_v6  ;;  %vm743_vm3 = vcmp.eq.f32.partialorder %v12416_v6, 0.0  ;;  %v2160_v63 = vrot.slane %v2128_v0, 5 }
 0x1a9   :  { %v12429_v50 = vadd.f32 %v9247_v26, %v12356_v10  ;;  %v5712_v8 = vand.u32 4294901760, %v5711_v9  ;;  %10257 = vrsqrt.f32 %v12434_v54  ;;  %v2127_v9 = vmul.f32 %v2095_v35, %v2095_v35 }
 0x1aa   :  { %v9249_v56 = vpop.f32.mrf.mxu0  ;;  %v2246_v16 = vsel %vm563_vm7, %v2160_v63, 0.0 }
 0x1ab   :  { %v9250_v43 = vadd.f32 %v9249_v56, %v9248_v45  ;;  %5881 = vmatmul.mubr.f32.vlgmr.msra.gmra.mxu0 %v12405_v18  ;;  %5713 = vmatmul.mubr.f32.vlgmr.msra.gmra.mxu1 %v5712_v8  ;;  %v2247_v26 = vrot.slane %v2246_v16, 4  ;;  %v2159_v56 = vrot.slane %v2127_v9, 5 }
 0x1ac   :  { %9518 = vmatpush3.msra.mxu0 %v15112_v1  ;;  %6013 = vmatpush1.msra.mxu1 %v15117_v19 }
 0x1ad   :  { %v12439_v62 = vadd.f32 %v9250_v43, %v12381_v29  ;;  %9519 = vmatprep.subr.mxu0 %v15112_v1  ;;  %5722 = vmatprep.mubr.f32.mxu1 %v5721_v12  ;;  %v10252_v10 = vpop.eup %10251  ;;  %v2248_v12 = vadd.f32 %v2247_v26, %v2246_v16  ;;  %v2415_v43 = vsel %vm563_vm7, %v2351_v17, 0.0 }
 0x1ae   :  { %9520 = vmatpush3.msra.mxu0 %v15112_v1  ;;  %9555 = vmatprep.subr.mxu1 %v15112_v1  ;;  %v1623_v29 = vmul.f32 %v10252_v10, %v12407_v25 }
 0x1af   :  { %9521 = vmatprep.subr.mxu0 %v15112_v1  ;;  %5728 = vmatmul.mubr.f32.gmra.mxu1 %v5727_v39  ;;  %v2416_v39 = vrot.slane %v2415_v43, 4 }
 0x1b0   :  { %9522 = vmatpush3.msra.mxu0 %v15112_v1  ;;  %6047 = vmatprep.mubr.f32.mxu1 %v12266_v21  ;;  %v1625_v52 = vsel %vm1624_vm15, %v12407_v25, %v1623_v29  ;;  %v2249_v29 = vrot.slane %v2248_v12, 2 }
 0x1b1   :  { %9523 = vmatprep.subr.mxu0 %v15112_v1  ;;  %5887 = vmatprep.mubr.f32.mxu0 %v12348_v15  ;;  %v1628_v59 = vsel %vm1626_vm0, %v1627_v41, %v1625_v52  ;;  %v12575_v15 = vld [vmem:[#allocation2 + $0x1c8] sm:$0xff] }
 0x1b2   :  { %9524 = vmatpush3.msra.mxu0 %v15112_v1  ;;  %v1680_v36 = vadd.f32 1e-06, %v1628_v59 }
 0x1b3   :  { %9525 = vmatprep.subr.mxu0 %v15112_v1  ;;  %6049 = vmatmul.mubr.f32.vlgmr.msra.gmra.mxu1 %v12400_v5 }
 0x1b4   :  { %v10254_v44 = vpop.eup %10253  ;;  %9526 = vmatpush3.msra.mxu0 %v15112_v1  ;;  %9556 = vmatpush3.msra.mxu1 %v15112_v1  ;;  %10259 = vrcp.f32 %v1680_v36 }
 0x1b5   :  { %9527 = vmatprep.subr.mxu0 %v15112_v1  ;;  %9557 = vmatprep.subr.mxu1 %v15112_v1  ;;  %v740_v27 = vmul.f32 %v10254_v44, %v12416_v6  ;;  %v10256_v25 = vpop.eup %10255  ;;  %v2239_v44 = vsel %vm563_vm7, %v2159_v56, 0.0 }
 0x1b6   :  { %9528 = vmatpush3.msra.mxu0 %v15112_v1  ;;  %9558 = vmatpush3.msra.mxu1 %v15112_v1  ;;  %v10258_v24 = vpop.eup %10257  ;;  %v733_v23 = vmul.f32 %v10256_v25, %v12431_v51  ;;  %v2240_v52 = vrot.slane %v2239_v44, 4 }
 0x1b7   :  { %9529 = vmatprep.subr.mxu0 %v15112_v1  ;;  %9559 = vmatprep.subr.mxu1 %v15112_v1  ;;  %v742_v4 = vsel %vm741_vm2, %v12416_v6, %v740_v27  ;;  %v2423_v6 = vrot.slane %v2422_v32, 4  ;;  %v737_v27 = vand.u32 2147483648, %v12431_v51 }
 0x1b8   :  { %9530 = vmatpush3.msra.mxu0 %v15112_v1  ;;  %9560 = vmatpush3.msra.mxu1 %v15112_v1  ;;  %v12480_v3 = vsel %vm743_vm3, %v744_v22, %v742_v4  ;;  %v2417_v22 = vadd.f32 %v2416_v39, %v2415_v43  ;;  %v2250_v4 = vadd.f32 %v2249_v29, %v2248_v12 }
 0x1b9   :  { %9531 = vmatprep.subr.mxu0 %v15112_v1  ;;  %5890 = vmatmul.mubr.f32.gmra.mxu0 %v12392_v34  ;;  %v1360_v14 = vadd.f32 1e-06, %v12480_v3  ;;  %v2424_v45 = vadd.f32 %v2423_v6, %v2422_v32  ;;  %v735_v36 = vsel %vm734_vm5, %v12431_v51, %v733_v23  ;;  %v2241_v63 = vadd.f32 %v2240_v52, %v2239_v44  ;;  %v12573_v44 = vld [vmem:[#allocation2 + $0x1c0] sm:$0xff] }
 0x1ba   :  { %9532 = vmatpush3.msra.mxu0 %v15112_v1  ;;  %9561 = vmatprep.subr.mxu1 %v15112_v1  ;;  %v2251_v30 = vrot.slane %v2250_v4, 1  ;;  %v2418_v51 = vrot.slane %v2417_v22, 2 }
 0x1bb   :  { %9533 = vmatprep.subr.mxu0 %v15112_v1  ;;  %9562 = vmatpush3.msra.mxu1 %v15112_v1  ;;  %10261 = vrcp.f32 %v1360_v14  ;;  %v2425_v48 = vrot.slane %v2424_v45, 2  ;;  %v12534_v14 = vsel %vm736_vm8, %v737_v27, %v735_v36  ;;  %v2242_v32 = vrot.slane %v2241_v63, 2 }
 0x1bc   :  { %9534 = vmatpush3.msra.mxu0 %v15112_v1  ;;  %9563 = vmatprep.subr.mxu1 %v15112_v1  ;;  %v12542_v26 = vadd.f32 %v2251_v30, %v2250_v4  ;;  %v1359_v17 = vadd.f32 1e-06, %v12534_v14  ;;  %v97_v4 = vrot.slane %v12573_v44, 4  ;;  %v15055_v36 = vrot.slane %v12575_v15, 4  ;;  %v12601_v30 = vld [vmem:[#allocation2 + $0x1f0] sm:$0xff] }
 0x1bd   :  { %9535 = vmatprep.subr.mxu0 %v15112_v1  ;;  %5962 = vmatprep.mubr.f32.mxu0 %v5704_v33  ;;  %v1616_v33 = vmul.f32 %v10258_v24, %v12434_v54  ;;  %v2426_v41 = vadd.f32 %v2425_v48, %v2424_v45  ;;  %v12547_v45 = vadd.f32 %v2418_v51, %v2417_v22  ;;  %v12583_v22 = vld [vmem:[#allocation2 + $0x1d8] sm:$0xff] }
 0x1be   :  { %9536 = vmatpush3.msra.mxu0 %v15112_v1  ;;  %9564 = vmatpush3.msra.mxu1 %v15112_v1  ;;  %v12554_v56 = vadd.f32 %v2242_v32, %v2241_v63  ;;  %10263 = vrcp.f32 %v1359_v17  ;;  %v104_v34 = vmax.f32 %v12575_v15, %v15055_v36 }
 0x1bf   :  { %v12501_v8 = vpop.f32.mrf.mxu0  ;;  %9537 = vmatprep.subr.mxu0 %v15112_v1  ;;  %9565 = vmatprep.subr.mxu1 %v15112_v1  ;;  %v1618_v0 = vsel %vm1617_vm6, %v12434_v54, %v1616_v33  ;;  %v2427_v25 = vrot.slane %v2426_v41, 1  ;;  %v2420_v18 = vrot.slane %v12547_v45, 1 }
 0x1c0   :  { %9538 = vmatpush3.msra.mxu0 %v15112_v1  ;;  %9566 = vmatpush3.msra.mxu1 %v15112_v1  ;;  %v1621_v24 = vsel %vm1619_vm12, %v1620_v61, %v1618_v0  ;;  %v2244_v27 = vrot.slane %v12554_v56, 1 }
 0x1c1   :  { %v4799_v10 = vpop.f32.mrf.mxu0  ;;  %9539 = vmatprep.subr.mxu0 %v15112_v1  ;;  %9567 = vmatprep.subr.mxu1 %v15112_v1  ;;  %v10260_v16 = vpop.eup %10259  ;;  %v12544_v9 = vadd.f32 %v2427_v25, %v2426_v41  ;;  %v12562_v39 = vadd.f32 1e-06, %v1621_v24  ;;  %v15053_v25 = vrot.slane %v12583_v22, 4 }
 0x1c2   :  { %9540 = vmatpush3.msra.mxu0 %v15112_v1  ;;  %9568 = vmatpush3.msra.mxu1 %v15112_v1  ;;  %v12552_v12 = vmul.f32 %v10260_v16, %v12342_v37  ;;  %v2304_v10 = vmax.f32 %v12542_v26, 1e-24  ;;  %v210_v26 = vmin.f32 %v12573_v44, %v97_v4 }
 0x1c3   :  { %v12517_v59 = vpop.f32.mrf.mxu0  ;;  %9541 = vmatprep.subr.mxu0 %v15112_v1  ;;  %9569 = vmatprep.subr.mxu1 %v15112_v1  ;;  %v2480_v29 = vmax.f32 %v12544_v9, 1e-24  ;;  %10265 = vrcp.f32 %v12562_v39 }
 0x1c4   :  { %9542 = vmatpush3.msra.mxu0 %v15112_v1  ;;  %9570 = vmatpush3.msra.mxu1 %v15112_v1  ;;  %v1760_v41 = vrot.slane %v12552_v12, 3  ;;  %v12687_v12 = vadd.f32 %v2244_v27, %v12554_v56 }
 0x1c5   :  { %v4806_v35 = vpop.f32.mrf.mxu0  ;;  %9543 = vmatprep.subr.mxu0 %v15112_v1  ;;  %9571 = vmatprep.subr.mxu1 %v15112_v1  ;;  %10267 = vrsqrt.f32 %v2480_v29 }
 0x1c6   :  { %9544 = vmatpush3.msra.mxu0 %v15112_v1  ;;  %9572 = vmatpush3.msra.mxu1 %v15112_v1  ;;  %10269 = vrsqrt.f32 %v2304_v10  ;;  %v15158_v10 = vrot.slane %v12575_v15, 4 }
 0x1c7   :  { %v9283_v6 = vpop.f32.mrf.mxu1  ;;  %9545 = vmatprep.subr.mxu0 %v15112_v1  ;;  %9573 = vmatprep.subr.mxu1 %v15112_v1 }
 0x1c8   :  { %9546 = vmatpush3.msra.mxu0 %v15112_v1  ;;  %6054 = vmatprep.mubr.f32.mxu1 %v12335_v40  ;;  %v10262_v48 = vpop.eup %10261  ;;  %v216_v56 = vmin.f32 %v12575_v15, %v15158_v10 }
 0x1c9   :  { %v9284_v54 = vpop.f32.mrf.mxu1  ;;  %9547 = vmatprep.subr.mxu0 %v15112_v1  ;;  %9574 = vmatpush3.msra.mxu1 %v15112_v1  ;;  %v12593_v61 = vmul.f32 %v10262_v48, %v12358_v53  ;;  %v98_v53 = vmax.f32 %v12573_v44, %v97_v4 }
 0x1ca   :  { %v9285_v23 = vadd.f32 %v9284_v54, %v9283_v6  ;;  %9548 = vmatpush3.msra.mxu0 %v15112_v1  ;;  %6056 = vmatmul.mubr.f32.gmra.mxu1 %v12384_v2  ;;  %v116_v6 = vmax.f32 %v12583_v22, %v15053_v25  ;;  %v15056_v54 = vrot.slane %v12601_v30, 4 }
 0x1cb   :  { %v9286_v43 = vpop.f32.mrf.mxu1  ;;  %5966 = vmatmul.mubr.f32.vlgmr.msra.gmra.mxu0 %v5710_v57  ;;  %9575 = vmatprep.subr.mxu1 %v15112_v1 }
 0x1cc   :  { %v4711_v33 = vadd.f32 %v9285_v23, %v12429_v50  ;;  %5973 = vmatprep.mubr.f32.mxu0 %v5719_v38  ;;  %9576 = vmatpush3.msra.mxu1 %v15112_v1  ;;  %v12577_v38 = vld [vmem:[#allocation2 + $0x1d0] sm:$0xff]  ;;  %v12629_v23 = vld [vmem:[#allocation2 + $0x1f8] sm:$0xff] }
 0x1cd   :  { %v9287_v37 = vpop.f32.mrf.mxu1  ;;  %9577 = vmatprep.subr.mxu1 %v15112_v1  ;;  %6126 = vmatprep.mubr.f32.mxu1 %v12266_v21  ;;  %v12585_v21 = vld [vmem:[#allocation2 + $0x1e0] sm:$0xff]  ;;  %v15054_v0 = vrot.slane %v12577_v38, 4  ;;  %v139_v36 = vrot.slane %v12629_v23, 4  ;;  %v15159_v27 = vrot.slane %v12577_v38, 4 }
 0x1ce   :  { %v9288_v57 = vadd.f32 %v9287_v37, %v9286_v43  ;;  %v4798_v50 = vadd.f32 %v12501_v8, %v4711_v33  ;;  %9578 = vmatpush3.msra.mxu1 %v15112_v1  ;;  %9593 = vmatprep.subr.mxu0 %v15112_v1  ;;  %v12587_v8 = vld [vmem:[#allocation2 + $0x1e8] sm:$0xff]  ;;  %v15051_v51 = vrot.slane %v12585_v21, 4  ;;  %v105_v43 = vrot.slane %v104_v34, 2 }
 0x1cf   :  { %v4878_v52 = vpop.f32.mrf.mxu1  ;;  %5977 = vmatmul.mubr.f32.gmra.mxu0 %v5725_v11  ;;  %9579 = vmatprep.subr.mxu1 %v15112_v1  ;;  %v110_v11 = vmax.f32 %v12577_v38, %v15054_v0  ;;  %v15161_v4 = vrot.slane %v12585_v21, 4 }
 0x1d0   :  { %v12598_v63 = vadd.f32 %v4878_v52, %v4798_v50  ;;  %v4726_v35 = vadd.f32 %v9288_v57, %v12439_v62  ;;  %9580 = vmatpush3.msra.mxu1 %v15112_v1  ;;  %9594 = vmatpush3.msra.mxu0 %v15112_v1  ;;  %v15052_v62 = vrot.slane %v12587_v8, 4  ;;  %v122_v24 = vmax.f32 %v12585_v21, %v15051_v51 }
 0x1d1   :  { %v4880_v32 = vpop.f32.mrf.mxu1  ;;  %9581 = vmatprep.subr.mxu1 %v15112_v1  ;;  %9595 = vmatprep.subr.mxu0 %v15112_v1  ;;  %v111_v48 = vrot.slane %v110_v11, 2  ;;  %v117_v57 = vrot.slane %v116_v6, 2  ;;  %v134_v52 = vmax.f32 %v12601_v30, %v15056_v54  ;;  %v106_v51 = vmax.f32 %v104_v34, %v105_v43 }
 0x1d2   :  { %v4805_v16 = vadd.f32 %v12517_v59, %v4726_v35  ;;  %9582 = vmatpush3.msra.mxu1 %v15112_v1  ;;  %9596 = vmatpush3.msra.mxu0 %v15112_v1  ;;  %v99_v59 = vrot.slane %v98_v53, 2  ;;  %v128_v33 = vmax.f32 %v12587_v8, %v15052_v62  ;;  %v123_v50 = vrot.slane %v122_v24, 2 }
 0x1d3   :  { %v4887_v17 = vpop.f32.mrf.mxu1  ;;  %9583 = vmatprep.subr.mxu1 %v15112_v1  ;;  %9597 = vmatprep.subr.mxu0 %v15112_v1  ;;  %v112_v62 = vmax.f32 %v110_v11, %v111_v48  ;;  %v135_v0 = vrot.slane %v134_v52, 2  ;;  %v140_v43 = vmax.f32 %v12629_v23, %v139_v36  ;;  %v234_v15 = vmin.f32 %v12585_v21, %v15161_v4 }
 0x1d4   :  { %v12635_v37 = vadd.f32 %v4887_v17, %v4805_v16  ;;  %9584 = vmatpush3.msra.mxu1 %v15112_v1  ;;  %9598 = vmatpush3.msra.mxu0 %v15112_v1  ;;  %v100_v32 = vmax.f32 %v98_v53, %v99_v59  ;;  %v129_v25 = vrot.slane %v128_v33, 2  ;;  %v118_v16 = vmax.f32 %v116_v6, %v117_v57 }
 0x1d5   :  { %v4889_v35 = vpop.f32.mrf.mxu1  ;;  %9585 = vmatprep.subr.mxu1 %v15112_v1  ;;  %9599 = vmatprep.subr.mxu0 %v15112_v1  ;;  %v124_v17 = vmax.f32 %v122_v24, %v123_v50  ;;  %v107_v53 = vrot.slane %v106_v51, 1  ;;  %v113_v34 = vrot.slane %v112_v62, 1  ;;  %v136_v24 = vmax.f32 %v134_v52, %v135_v0 }
 0x1d6   :  { %9586 = vmatpush3.msra.mxu1 %v15112_v1  ;;  %9600 = vmatpush3.msra.mxu0 %v15112_v1  ;;  %v101_v35 = vrot.slane %v100_v32, 1  ;;  %v130_v11 = vmax.f32 %v128_v33, %v129_v25  ;;  %v119_v59 = vrot.slane %v118_v16, 1  ;;  %v12663_v25 = vpop.eup %10263  ;;  %v12672_v33 = vsub.f32 %v12593_v61, %v1760_v41 }
 0x1d7   :  { %v12647_v54 = vpop.f32.mrf.mxu1  ;;  %6128 = vmatmul.mubr.f32.vlgmr.msra.gmra.mxu1 %v12400_v5  ;;  %9601 = vmatprep.subr.mxu0 %v15112_v1  ;;  %v125_v6 = vrot.slane %v124_v17, 1  ;;  %v12661_v5 = vadd.f32 %v2420_v18, %v12547_v45  ;;  %v12678_v45 = vmax.f32 %v106_v51, %v107_v53  ;;  %v12680_v39 = vmax.f32 %v112_v62, %v113_v34 }
 0x1d8   :  { %6133 = vmatprep.mubr.f32.mxu1 %v12335_v40  ;;  %9602 = vmatpush3.msra.mxu0 %v15112_v1  ;;  %v131_v57 = vrot.slane %v130_v11, 1  ;;  %v12667_v0 = vmax.f32 %v100_v32, %v101_v35  ;;  %v141_v40 = vrot.slane %v140_v43, 2  ;;  %v12690_v9 = vmax.f32 %v118_v16, %v119_v59 }
 0x1d9   :  { %v5048_v48 = vpop.f32.mrf.mxu1  ;;  %9603 = vmatprep.subr.mxu0 %v15112_v1  ;;  %6265 = vmatprep.subr.mxu1 %v15117_v19  ;;  %v12692_v29 = vmax.f32 %v124_v17, %v125_v6  ;;  %v137_v41 = vrot.slane %v136_v24, 1  ;;  %v2479_v61 = vmax.f32 %v12661_v5, 1e-24  ;;  %v15160_v62 = vrot.slane %v12583_v22, 4 }
 0x1da   :  { %9604 = vmatpush3.msra.mxu0 %v15112_v1  ;;  %6266 = vmatpush1.msra.mxu1 %v15117_v19  ;;  %v12694_v18 = vmax.f32 %v130_v11, %v131_v57  ;;  %v142_v51 = vmax.f32 %v140_v43, %v141_v40  ;;  %vm153_vm15 = vcmp.gt.f32.partialorder %v12667_v0, 0.0  ;;  %vm154_vm0 = vcmp.gt.f32.partialorder %v12678_v45, 0.0  ;;  %v327_v0 = vld [vmem:[#allocation2 + $0x285] ss:$8 sm:$0xf0] }
 0x1db   :  { %6135 = vmatmul.mubr.f32.gmra.mxu1 %v12384_v2  ;;  %9605 = vmatprep.subr.mxu0 %v15112_v1  ;;  %v222_v2 = vmin.f32 %v12577_v38, %v15159_v27  ;;  %v228_v44 = vmin.f32 %v12583_v22, %v15160_v62  ;;  %v211_v50 = vrot.slane %v210_v26, 2  ;;  %v217_v52 = vrot.slane %v216_v56, 2 }
 0x1dc   :  { %9606 = vmatpush3.msra.mxu0 %v15112_v1  ;;  %6344 = vmatprep.subr.mxu1 %v15117_v19  ;;  %v15162_v16 = vrot.slane %v12587_v8, 4  ;;  %v12722_v35 = vmax.f32 %v136_v24, %v137_v41  ;;  %vm155_vm2 = vcmp.gt.f32.partialorder %v12680_v39, 0.0  ;;  %v235_v21 = vrot.slane %v234_v15, 2 }
 0x1dd   :  { %9607 = vmatprep.subr.mxu0 %v15112_v1  ;;  %v223_v32 = vrot.slane %v222_v2, 2  ;;  %v229_v22 = vrot.slane %v228_v44, 2  ;;  %vm156_vm3 = vcmp.gt.f32.partialorder %v12690_v9, 0.0  ;;  %v212_v34 = vmin.f32 %v210_v26, %v211_v50 }
 0x1de   :  { %v240_v17 = vmin.f32 %v12587_v8, %v15162_v16  ;;  %9608 = vmatpush3.msra.mxu0 %v15112_v1  ;;  %v218_v11 = vmin.f32 %v216_v56, %v217_v52  ;;  %v143_v43 = vrot.slane %v142_v51, 1  ;;  %v236_v24 = vmin.f32 %v234_v15, %v235_v21 }
 0x1df   :  { %v9321_v38 = vpop.f32.mrf.mxu0  ;;  %9609 = vmatprep.subr.mxu0 %v15112_v1  ;;  %v224_v59 = vmin.f32 %v222_v2, %v223_v32  ;;  %v230_v48 = vmin.f32 %v228_v44, %v229_v22  ;;  %vm157_vm5 = vcmp.gt.f32.partialorder %v12692_v29, 0.0  ;;  %vm158_vm6 = vcmp.gt.f32.partialorder %v12694_v18, 0.0  ;;  %v44_v32 = vld [vmem:[#allocation2 + $0x200] ss:$8 sm:$0xf] }
 0x1e0   :  { %v241_v6 = vrot.slane %v240_v17, 2  ;;  %9610 = vmatpush3.msra.mxu0 %v15112_v1  ;;  %v15163_v40 = vrot.slane %v12601_v30, 4  ;;  %v213_v10 = vrot.slane %v212_v34, 1  ;;  %v219_v56 = vrot.slane %v218_v11, 1 }
 0x1e1   :  { %v9322_v53 = vpop.f32.mrf.mxu0  ;;  %9611 = vmatprep.subr.mxu0 %v15112_v1  ;;  %v252_v27 = vmin.f32 %v12629_v23, %v139_v36  ;;  %v225_v62 = vrot.slane %v224_v59, 1  ;;  %v231_v44 = vrot.slane %v230_v48, 1  ;;  %v237_v4 = vrot.slane %v236_v24, 1 }
 0x1e2   :  { %v9323_v8 = vadd.f32 %v9322_v53, %v9321_v38  ;;  %v242_v57 = vmin.f32 %v240_v17, %v241_v6  ;;  %v246_v41 = vmin.f32 %v12601_v30, %v15163_v40  ;;  %9612 = vmatpush3.msra.mxu0 %v15112_v1  ;;  %v12741_v30 = vpop.eup %10265  ;;  %vm159_vm8 = vcmp.gt.f32.partialorder %v12722_v35, 0.0  ;;  %v45_v6 = vld [vmem:[#allocation2 + $0x200] ss:$8 sm:$0xf0] }
 0x1e3   :  { %9613 = vmatprep.subr.mxu0 %v15112_v1  ;;  %v214_v50 = vmin.f32 %v212_v34, %v213_v10  ;;  %v220_v36 = vmin.f32 %v218_v11, %v219_v56  ;;  %v10268_v23 = vpop.eup %10267  ;;  %v226_v16 = vmin.f32 %v224_v59, %v225_v62  ;;  %v232_v17 = vmin.f32 %v230_v48, %v231_v44  ;;  %v326_v11 = vld [vmem:[#allocation2 + $0x285] ss:$8 sm:$0xf] }
 0x1e4   :  { %v4964_v26 = vadd.f32 %v9323_v8, %v12598_v63  ;;  %v243_v15 = vrot.slane %v242_v57, 1  ;;  %9614 = vmatpush3.msra.mxu0 %v15112_v1  ;;  %v12746_v63 = vmax.f32 %v142_v51, %v143_v43  ;;  %v238_v22 = vmin.f32 %v236_v24, %v237_v4  ;;  %v10270_v53 = vpop.eup %10269 }
 0x1e5   :  { %v9324_v2 = vpop.f32.mrf.mxu0  ;;  %9615 = vmatprep.subr.mxu0 %v15112_v1  ;;  %v247_v51 = vrot.slane %v246_v41, 2  ;;  %v253_v8 = vrot.slane %v252_v27, 2  ;;  %vm265_vm12 = vcmp.lt.f32.partialorder %v214_v50, 0.0  ;;  %vm266_vm4 = vcmp.lt.f32.partialorder %v220_v36, 0.0  ;;  %v909_v36 = vld [vmem:[#allocation2 + $0x248] sm:$0x1c] }
 0x1e6   :  { %v12744_v38 = vadd.f32 %v12647_v54, %v4964_v26  ;;  %v244_v21 = vmin.f32 %v242_v57, %v243_v15  ;;  %9616 = vmatpush3.msra.mxu0 %v15112_v1  ;;  %vm267_vm1 = vcmp.lt.f32.partialorder %v226_v16, 0.0  ;;  %vm268_vm14 = vcmp.lt.f32.partialorder %v232_v17, 0.0  ;;  %vm12754_vm11 = vmand %vm153_vm15, %vm265_vm12  ;;  %v342_v50 = vld [vmem:[#allocation2 + $0x287] ss:$8 sm:$0xf] }
 0x1e7   :  { %v9325_v52 = vpop.f32.mrf.mxu0  ;;  %9617 = vmatprep.subr.mxu0 %v15112_v1  ;;  %v12760_v59 = vmul.f32 %v12672_v33, %v12672_v33  ;;  %v248_v48 = vmin.f32 %v246_v41, %v247_v51  ;;  %v254_v24 = vmin.f32 %v252_v27, %v253_v8  ;;  %vm269_vm10 = vcmp.lt.f32.partialorder %v238_v22, 0.0  ;;  %vm282_vm13 = vmand %vm154_vm0, %vm266_vm4  ;;  %v334_v33 = vld [vmem:[#allocation2 + $0x286] ss:$8 sm:$0xf]  ;;  %v885_v17 = vld [vmem:[#allocation2 + $0x208] sm:$0x80] }
 0x1e8   :  { %v9326_v54 = vadd.f32 %v9325_v52, %v9324_v2  ;;  %9618 = vmatpush3.msra.mxu0 %v15112_v1  ;;  %v46_v57 = vor.u32 %v45_v6, %v44_v32  ;;  %vm160_vm15 = vcmp.gt.f32.partialorder %v12746_v63, 0.0  ;;  %vm270_vm12 = vcmp.lt.f32.partialorder %v244_v21, 0.0  ;;  %vm283_vm9 = vmand %vm155_vm2, %vm267_vm1  ;;  %v335_v27 = vld [vmem:[#allocation2 + $0x286] ss:$8 sm:$0xf0] }
 0x1e9   :  { %9619 = vmatprep.subr.mxu0 %v15112_v1  ;;  %v249_v40 = vrot.slane %v248_v48, 1  ;;  %v255_v41 = vrot.slane %v254_v24, 1  ;;  %vm284_vm4 = vmand %vm156_vm3, %vm268_vm14  ;;  %v9104_v26 = vsel %vm282_vm13, 1.0, %v15117_v19  ;;  %v9105_v10 = vsel %vm283_vm9, 1.0, %v15117_v19  ;;  %v893_v22 = vld [vmem:[#allocation2 + $0x248] sm:$0x3] }
 0x1ea   :  { %v4975_v43 = vadd.f32 %v9326_v54, %v12635_v37  ;;  %v9103_v37 = vsel %vm12754_vm11, 1.0, %v15117_v19  ;;  %9620 = vmatpush3.msra.mxu0 %v15112_v1  ;;  %vm285_vm11 = vmand %vm157_vm5, %vm269_vm10  ;;  %v9106_v56 = vsel %vm284_vm4, 1.0, %v15117_v19  ;;  %v2336_v2 = vmul.f32 %v10270_v53, %v12468_v46 }
 0x1eb   :  { %9621 = vmatprep.subr.mxu0 %v15112_v1  ;;  %v2512_v9 = vmul.f32 %v10268_v23, %v12470_v28  ;;  %v250_v44 = vmin.f32 %v248_v48, %v249_v40  ;;  %v256_v4 = vmin.f32 %v254_v24, %v255_v41  ;;  %vm286_vm9 = vmand %vm158_vm6, %vm270_vm12  ;;  %v9107_v15 = vsel %vm285_vm11, 1.0, %v15117_v19  ;;  %v343_v23 = vld [vmem:[#allocation2 + $0x287] ss:$8 sm:$0xf0] }
 0x1ec   :  { %v5053_v45 = vpop.f32.mrf.mxu1  ;;  %9622 = vmatpush3.msra.mxu0 %v15112_v1  ;;  %v12794_v29 = vor.u32 %v327_v0, %v326_v11  ;;  %v12797_v46 = vsub.f32 1.0, %v46_v57  ;;  %v9108_v28 = vsel %vm286_vm9, 1.0, %v15117_v19  ;;  %v428_v52 = vcombine.low %v9103_v37, %v9104_v26  ;;  %v3074_v24 = vld [vmem:[#allocation2 + $0x2c8] sm:$0xff] }
 0x1ed   :  { %v12781_v39 = vadd.f32 %v5053_v45, %v4975_v43  ;;  %9623 = vmatprep.subr.mxu0 %v15112_v1  ;;  %v429_v32 = vcombine.low %v9105_v10, %v9106_v56  ;;  %vm271_vm10 = vcmp.lt.f32.partialorder %v250_v44, 0.0  ;;  %vm272_vm13 = vcmp.lt.f32.partialorder %v256_v4, 0.0  ;;  %v3090_v0 = vld [vmem:[#allocation2 + $0x308] sm:$0xff] }
 0x1ee   :  { %v5055_v62 = vpop.f32.mrf.mxu1  ;;  %9624 = vmatpush3.msra.mxu0 %v15112_v1  ;;  %v336_v18 = vor.u32 %v335_v27, %v334_v33  ;;  %v430_v16 = vcombine.low %v9107_v15, %v9108_v28  ;;  %vm287_vm14 = vmand %vm159_vm8, %vm271_vm10  ;;  %v438_v21 = vrot.slane %v428_v52, %v10591_v42  ;;  %v9122_v54 = vadd.f32 -1.0, %v12480_v3  ;;  %v3106_v41 = vld [vmem:[#allocation2 + $0x348] sm:$0xff]  ;;  %v908_v52 = vld [vmem:[#allocation2 + $0x240] sm:$0x1c] }
 0x1ef   :  { %6514 = vmatprep.subr.mxu0 %v15117_v19  ;;  %v445_v53 = vrot.slane %v429_v32, %v10591_v42  ;;  %v941_v6 = vrot.slane %v909_v36, 3  ;;  %vm288_vm1 = vmand %vm160_vm15, %vm272_vm13  ;;  %v9109_v51 = vsel %vm287_vm14, 1.0, %v15117_v19  ;;  %v344_v8 = vor.u32 %v343_v23, %v342_v50 }
 0x1f0   :  { %vm348_vm0 = vcmp.eq.f32.partialorder %v12794_v29, 0.0  ;;  %v1840_v34 = vrot.slane %v12760_v59, 1  ;;  %v9110_v35 = vsel %vm288_vm1, 1.0, %v15117_v19  ;;  %vm350_vm2 = vcmp.lt.f32.partialorder %v336_v18, 0.3  ;;  %v3073_v59 = vld [vmem:[#allocation2 + $0x2c0] sm:$0xff] }
 0x1f1   :  { %v460_v11 = vcombine.low %v438_v21, %v445_v53  ;;  %v981_v43 = vsub.f32 %v885_v17, %v941_v6  ;;  %v989_v48 = vsub.f32 %v893_v22, %v941_v6  ;;  %v431_v3 = vcombine.low %v9109_v51, %v9110_v35  ;;  %vm12824_vm5 = vmand %vm348_vm0, %vm350_vm2 }
 0x1f2   :  { %v452_v57 = vrot.slane %v430_v16, %v10591_v42  ;;  %v1926_v63 = vsel %vm563_vm7, %v1840_v34, 0.0  ;;  %v12815_v37 = vmul.f32 %v9122_v54, %v9122_v54  ;;  %vm12817_vm3 = vcmp.lt.f32.partialorder %v344_v8, 0.03 }
 0x1f3   :  { %v1013_v33 = vand.u32 2147483647, %v981_v43  ;;  %v1021_v45 = vand.u32 2147483647, %v989_v48  ;;  %v1927_v40 = vrot.slane %v1926_v63, 4  ;;  %v459_v26 = vrot.slane %v431_v3, %v10591_v42  ;;  %vm356_vm12 = vmand %vm12824_vm5, %vm12817_vm3 }
 0x1f4   :  { %v2544_v10 = vrot.slane %v2512_v9, 3  ;;  %v3122_v56 = vadd.f32 %v3090_v0, %v3074_v24  ;;  %v468_v62 = vrot.slane %v460_v11, %v10591_v42  ;;  %vm346_vm6 = vcmp.eq.f32.partialorder %v12794_v29, 1.0 }
 0x1f5   :  { %v1088_v44 = vrot.slane %v1013_v33, 7  ;;  %v1089_v4 = vrot.slane %v1021_v45, 7  ;;  %v1928_v15 = vadd.f32 %v1927_v40, %v1926_v63  ;;  %v461_v50 = vcombine.low %v452_v57, %v459_v26  ;;  %vm12846_vm4 = vmor %vm346_vm6, %vm356_vm12  ;;  %v884_v57 = vld [vmem:[#allocation2 + $0x200] sm:$0x80]  ;;  %v10375_v40 = vld [vmem:[#allocation2 + $0x200] sm:$0xe] }
 0x1f6   :  { %v2576_v36 = vsub.f32 %v2336_v2, %v2544_v10  ;;  %v2866_v28 = vmul.f32 %v2544_v10, %v2336_v2  ;;  %v3138_v23 = vadd.f32 %v3122_v56, %v3106_v41  ;;  %vm829_vm8 = vweird.f32 %v12815_v37 }
 0x1f7   :  { %vm15170_vm15 = vcmask 1040384   ;;  %v1929_v18 = vrot.slane %v1928_v15, 2  ;;  %v475_v16 = vrot.slane %v461_v50, %v10591_v42  ;;  %v940_v51 = vrot.slane %v908_v52, 3 }
 0x1f8   :  { %v1090_v9 = vsel %vm15170_vm15, %v1088_v44, %v1089_v4  ;;  %v2592_v2 = vand.u32 2147483647, %v2576_v36  ;;  %v2898_v22 = vrot.slane %v2866_v28, 5  ;;  %v3154_v6 = vand.u32 2147483647, %v3138_v23  ;;  %vm15176_vm1 = vmmov %vm15170_vm15 }
 0x1f9   :  { %v9359_v32 = vpop.f32.mrf.mxu1  ;;  %v1188_v17 = vsel %vm563_vm7, %v1090_v9, 0.0  ;;  %v1930_v54 = vadd.f32 %v1929_v18, %v1928_v15  ;;  %v476_v34 = vcombine.low %v468_v62, %v475_v16  ;;  %vm15173_vm9 = vmmov 1   ;;  %v892_v44 = vld [vmem:[#allocation2 + $0x240] sm:$0x3]  ;;  %vm15177_vm2 = vmmov %vm15176_vm1 }
 0x1fa   :  { %v1189_v53 = vrot.slane %v1188_v17, 4  ;;  %v2624_v35 = vrot.slane %v2592_v2, 5  ;;  %v2984_v11 = vsel %vm563_vm7, %v2898_v22, 0.0  ;;  %vm3170_vm11 = vweird.f32 %v3154_v6  ;;  %vm12860_vm13 = vmxor %vm829_vm8, %vm15173_vm9 }
 0x1fb   :  { %v9360_v21 = vpop.f32.mrf.mxu1  ;;  %v1931_v0 = vrot.slane %v1930_v54, 1  ;;  %v2985_v3 = vrot.slane %v2984_v11, 4  ;;  %vm3186_vm10 = vmxor %vm3170_vm11, %vm15173_vm9  ;;  %v9121_v45 = vadd.f32 -1.0, %v12534_v14  ;;  %v1711_v29 = vmul.f32 %v10375_v40, %v12663_v25 }
 0x1fc   :  { %v9361_v8 = vadd.f32 %v9360_v21, %v9359_v32  ;;  %v1190_v24 = vadd.f32 %v1189_v53, %v1188_v17  ;;  %v2710_v33 = vsel %vm563_vm7, %v2624_v35, 0.0  ;;  %v12867_v62 = vmul.f32 %v476_v34, %v12797_v46  ;;  %v10376_v21 = vld [vmem:[#allocation2 + $0x200] sm:$0x70] }
 0x1fd   :  { %v9362_v43 = vpop.f32.mrf.mxu1  ;;  %v2711_v10 = vrot.slane %v2710_v33, 4  ;;  %v2986_v56 = vadd.f32 %v2985_v3, %v2984_v11  ;;  %v3202_v14 = vsel %vm3186_vm10, %v3154_v6, 0.0  ;;  %v980_v25 = vsub.f32 %v884_v57, %v940_v51  ;;  %v3326_v57 = vld [vmem:[#allocation2 + $0x283] ss:$8 sm:$0xf] }
 0x1fe   :  { %v12851_v63 = vadd.f32 %v9361_v8, %v12744_v38  ;;  %v1191_v26 = vrot.slane %v1190_v24, 2  ;;  %v12864_v38 = vadd.f32 %v1931_v0, %v1930_v54  ;;  %v9112_v4 = vsel %vm12846_vm4, 1.0, %v15117_v19 }
 0x1ff   :  { %v9363_v41 = vpop.f32.mrf.mxu1  ;;  %v12874_v50 = vrot.slane %v12797_v46, %v10657_v60  ;;  %v861_v28 = vsel %vm12860_vm13, %v12815_v37, 0.0  ;;  %v2712_v23 = vadd.f32 %v2711_v10, %v2710_v33  ;;  %v12883_v52 = vmul.f32 %v9121_v45, %v9121_v45  ;;  %v3334_v10 = vld [vmem:[#allocation2 + $0x284] ss:$8 sm:$0xf]  ;;  %vm15187_vm13 = vmmov %vm15176_vm1 }
 0x200   :  { %v9364_v27 = vadd.f32 %v9363_v41, %v9362_v43  ;;  %v1192_v15 = vadd.f32 %v1191_v26, %v1190_v24  ;;  %10271 = vrsqrt.f32 %v12864_v38  ;;  %v2987_v9 = vrot.slane %v2986_v56, 2  ;;  %v3327_v26 = vld [vmem:[#allocation2 + $0x283] ss:$8 sm:$0xf0] }
 0x201   :  { %v3263_v18 = vrot.slane %v3202_v14, 4  ;;  %v988_v16 = vsub.f32 %v892_v44, %v940_v51  ;;  %v12886_v17 = vmul.f32 %v9112_v4, %v12867_v62  ;;  %v2713_v2 = vrot.slane %v2712_v23, 2  ;;  %v3335_v44 = vld [vmem:[#allocation2 + $0x284] ss:$8 sm:$0xf0] }
 0x202   :  { %v12878_v36 = vadd.f32 %v9364_v27, %v12781_v39  ;;  %v1193_v32 = vrot.slane %v1192_v15, 1  ;;  %v1012_v22 = vand.u32 2147483647, %v980_v25  ;;  %v1727_v39 = vmul.f32 %v10376_v21, %v12741_v30 }
 0x203   :  { %v2988_v54 = vadd.f32 %v2987_v9, %v2986_v56  ;;  %v3264_v6 = vadd.f32 %v3263_v18, %v3202_v14  ;;  %v1020_v8 = vand.u32 2147483647, %v988_v16  ;;  %vm2040_vm14 = vcmp.eq.f32.partialorder %v12864_v38, inf }
 0x204   :  { %v1194_v53 = vadd.f32 %v1193_v32, %v1192_v15  ;;  %v2714_v37 = vadd.f32 %v2713_v2, %v2712_v23  ;;  %v1085_v34 = vrot.slane %v1012_v22, 7  ;;  %v1759_v35 = vrot.slane %v1727_v39, 3  ;;  %v3105_v15 = vld [vmem:[#allocation2 + $0x340] sm:$0xff] }
 0x205   :  { %v2303_v11 = vmax.f32 %v12687_v12, 1e-24  ;;  %v2989_v43 = vrot.slane %v2988_v54, 1  ;;  %v3265_v48 = vrot.slane %v3264_v6, 2  ;;  %v1086_v24 = vrot.slane %v1020_v8, 7  ;;  %v3089_v12 = vld [vmem:[#allocation2 + $0x300] sm:$0xff] }
 0x206   :  { %v1328_v51 = vmul.f32 %v12874_v50, %v1194_v53  ;;  %v2715_v0 = vrot.slane %v2714_v37, 1  ;;  %v12894_v30 = vrot.slane %v12886_v17, %v10657_v60  ;;  %v1791_v3 = vsub.f32 %v1711_v29, %v1759_v35 }
 0x207   :  { %10273 = vrsqrt.f32 %v2303_v11  ;;  %v2990_v33 = vadd.f32 %v2989_v43, %v2988_v54  ;;  %v3266_v45 = vadd.f32 %v3265_v48, %v3264_v6  ;;  %v1087_v41 = vsel %vm15176_vm1, %v1085_v34, %v1086_v24 }
 0x208   :  { %v3374_v40 = vrot.slane %v1328_v51, 7  ;;  %v2716_v56 = vadd.f32 %v2715_v0, %v2714_v37  ;;  %v1181_v27 = vsel %vm563_vm7, %v1087_v41, 0.0  ;;  %v1807_v14 = vmul.f32 %v1791_v3, %v1791_v3 }
 0x209   :  { %10275 = vrsqrt.f32 %v2479_v61  ;;  %vm2042_vm0 = vcmp.eq.f32.partialorder %v12864_v38, 0.0  ;;  %v3042_v29 = vsub.f32 1.0, %v2990_v33  ;;  %v3267_v25 = vrot.slane %v3266_v45, 1 }
 0x20a   :  { %v1182_v4 = vrot.slane %v1181_v27, 4  ;;  %v2850_v23 = vmul.f32 %v12894_v30, %v2716_v56  ;;  %v3960_v32 = vsel %vm15177_vm2, %v861_v28, %v3374_v40  ;;  %v1839_v9 = vrot.slane %v1807_v14, 1 }
 0x20b   :  { %v3121_v18 = vadd.f32 %v3089_v12, %v3073_v59  ;;  %v3058_v16 = vmul.f32 %v3042_v29, %v12894_v30  ;;  %v3268_v2 = vadd.f32 %v3267_v25, %v3266_v45  ;;  %v12904_v21 = vor.u32 %v3327_v26, %v3326_v57 }
 0x20c   :  { %v1183_v22 = vadd.f32 %v1182_v4, %v1181_v27  ;;  %v2043_v61 = vand.u32 2147483648, %v12864_v38  ;;  %v1919_v39 = vsel %vm563_vm7, %v1839_v9, 0.0  ;;  %v3336_v54 = vor.u32 %v3335_v44, %v3334_v10 }
 0x20d   :  { %15178 = vst [vmem:[#allocation17_spill] sm:$0xff] %v12904_v21  ;;  %v10272_v5 = vpop.eup %10271  ;;  %v3137_v53 = vadd.f32 %v3121_v18, %v3105_v15  ;;  %v3314_v8 = vmul.f32 %v3268_v2, %v12874_v50  ;;  %vm15179_vm3 = vcmask 1041408   ;;  %v3422_v35 = vrot.slane %v2850_v23, 4 }
 0x20e   :  { %v2039_v6 = vmul.f32 %v10272_v5, %v12864_v38  ;;  %v3977_v28 = vsel %vm15179_vm3, %v3960_v32, %v12874_v50  ;;  %v1184_v37 = vrot.slane %v1183_v22, 2  ;;  %v12912_v34 = vpop.f32.mrf.mxu1  ;;  %v1920_v11 = vrot.slane %v1919_v39, 4 }
 0x20f   :  { %v3153_v51 = vand.u32 2147483647, %v3137_v53  ;;  %v3338_v43 = vmul.f32 5.0, %v3336_v54  ;;  %v3470_v24 = vrot.slane %v3058_v16, 3  ;;  %v12919_v3 = vmul.f32 %v12904_v21, %v12867_v62  ;;  %v10378_v54 = vld [vmem:[#allocation2 + $0x240] sm:$0xe0] }
 0x210   :  { %v2041_v48 = vsel %vm2040_vm14, %v12864_v38, %v2039_v6  ;;  %v1185_v0 = vadd.f32 %v1184_v37, %v1183_v22  ;;  %v5301_v57 = vpop.f32.mrf.mxu1  ;;  %v1921_v33 = vadd.f32 %v1920_v11, %v1919_v39  ;;  %v3518_v40 = vrot.slane %v3314_v8, 1  ;;  %v10377_v39 = vld [vmem:[#allocation2 + $0x280] sm:$0x7]  ;;  %vm15188_vm14 = vmmov %vm15179_vm3 }
 0x211   :  { %v2044_v50 = vsel %vm2042_vm0, %v2043_v61, %v2041_v48  ;;  %vm3169_vm5 = vweird.f32 %v3153_v51  ;;  %v12923_v45 = vadd.f32 0.05, %v3338_v43  ;;  %vm15181_vm8 = vcmask 1043456   ;;  %vm15189_vm0 = vmmov %vm15176_vm1 }
 0x212   :  { %v3993_v41 = vsel %vm563_vm7, %v3977_v28, %v2044_v50  ;;  %v1186_v59 = vrot.slane %v1185_v0, 1  ;;  %vm3185_vm6 = vmxor %vm3169_vm5, %vm15173_vm9  ;;  %v12927_v12 = vpop.f32.mrf.mxu1  ;;  %vm828_vm15 = vweird.f32 %v12883_v52  ;;  %v1922_v10 = vrot.slane %v1921_v33, 2 }
 0x213   :  { %15180 = vst [vmem:[#allocation18_spill] sm:$0xff] %v12923_v45  ;;  %v4010_v26 = vsel %vm15181_vm8, %v3993_v41, %v3422_v35  ;;  %v3201_v56 = vsel %vm3185_vm6, %v3153_v51, 0.0  ;;  %vm15182_vm12 = vcmask 1044480   ;;  %v12934_v14 = vrot.slane %v12797_v46, %v10668_v13  ;;  %vm12952_vm10 = vmxor %vm828_vm15, %vm15173_vm9 }
 0x214   :  { %v10274_v38 = vpop.eup %10273  ;;  %v4027_v27 = vsel %vm15182_vm12, %v4010_v26, %v3470_v24  ;;  %v3257_v44 = vrot.slane %v3201_v56, 4  ;;  %v12938_v29 = vmul.f32 %v12919_v3, %v12919_v3  ;;  %v5308_v25 = vpop.f32.mrf.mxu1  ;;  %vm15183_vm4 = vcmask 1045504   ;;  %vm15190_vm5 = vmmov %vm15181_vm8 }
 0x215   :  { %v4044_v4 = vsel %vm15183_vm4, %v4027_v27, %v12894_v30  ;;  %v1187_v15 = vadd.f32 %v1186_v59, %v1185_v0  ;;  %v1923_v23 = vadd.f32 %v1922_v10, %v1921_v33  ;;  %v12944_v32 = vmul.f32 %v12923_v45, %v12867_v62  ;;  %vm15191_vm8 = vmmov %vm15190_vm5 }
 0x216   :  { %v10276_v9 = vpop.eup %10275  ;;  %vm15184_vm11 = vcmask 1046528   ;;  %v3258_v16 = vadd.f32 %v3257_v44, %v3201_v56  ;;  %v9397_v2 = vpop.f32.mrf.mxu0  ;;  %v2335_v6 = vmul.f32 %v10378_v54, %v10274_v38  ;;  %v3582_v28 = vrot.slane %v12938_v29, %v10657_v60  ;;  %vm15192_vm15 = vmmov %vm15179_vm3 }
 0x217   :  { %v4061_v18 = vsel %vm15184_vm11, %v4044_v4, %v3518_v40  ;;  %v5380_v22 = vpop.f32.mrf.mxu1  ;;  %v1924_v61 = vrot.slane %v1923_v23, 1  ;;  %v2511_v53 = vmul.f32 %v10377_v39, %v10276_v9  ;;  %v3664_v37 = vrot.slane %v12919_v3, %v10657_v60  ;;  %vm15193_vm12 = vmmov %vm15190_vm5 }
 0x218   :  { %v12947_v5 = vand.u32 4294901760, %v4061_v18  ;;  %v3259_v8 = vrot.slane %v3258_v16, 2  ;;  %v9398_v35 = vpop.f32.mrf.mxu0  ;;  %v1327_v51 = vmul.f32 %v12934_v14, %v1187_v15  ;;  %v12966_v24 = vmul.f32 %v12944_v32, %v12919_v3 }
 0x219   :  { %v5382_v11 = vpop.f32.mrf.mxu1  ;;  %v12962_v43 = vadd.f32 %v1924_v61, %v1923_v23  ;;  %v2543_v48 = vrot.slane %v2511_v53, 3  ;;  %v9399_v0 = vadd.f32 %v9398_v35, %v9397_v2  ;;  %v860_v50 = vsel %vm12952_vm10, %v12883_v52, 0.0 }
 0x21a   :  { %6300 = vmatprep.mubr.f32.mxu1 %v12947_v5  ;;  %v9400_v57 = vpop.f32.mrf.mxu0  ;;  %v3260_v33 = vadd.f32 %v3259_v8, %v3258_v16  ;;  %v3746_v40 = vrot.slane %v12867_v62, %v10657_v60  ;;  %v4077_v10 = vsel %vm15187_vm13, %v3582_v28, %v3664_v37  ;;  %v3373_v38 = vrot.slane %v1327_v51, 7  ;;  %vm15197_vm13 = vmmov %vm15189_vm0 }
 0x21b   :  { %10277 = vrsqrt.f32 %v12962_v43  ;;  %v5213_v41 = vadd.f32 %v9399_v0, %v12851_v63  ;;  %v2575_v59 = vsub.f32 %v2335_v6, %v2543_v48  ;;  %v2865_v26 = vmul.f32 %v2543_v48, %v2335_v6  ;;  %v13006_v0 = vld [vmem:[#allocation2 + $0x218] sm:$0xe] }
 0x21c   :  { %v9401_v56 = vpop.f32.mrf.mxu0  ;;  %v3828_v27 = vrot.slane %v12966_v24, %v10657_v60  ;;  %v3578_v52 = vrot.slane %v12938_v29, %v10668_v13  ;;  %v3660_v44 = vrot.slane %v12919_v3, %v10668_v13  ;;  %v12987_v16 = vrot.slane %v12886_v17, %v10668_v13 }
 0x21d   :  { %v9402_v25 = vadd.f32 %v9401_v56, %v9400_v57  ;;  %v5300_v4 = vadd.f32 %v12912_v34, %v5213_v41  ;;  %v5389_v15 = vpop.f32.mrf.mxu1  ;;  %v2591_v63 = vand.u32 2147483647, %v2575_v59  ;;  %v2897_v23 = vrot.slane %v2865_v26, 5  ;;  %v911_v41 = vld [vmem:[#allocation2 + $0x258] sm:$0x1c] }
 0x21e   :  { %v12983_v9 = vpop.f32.mrf.mxu0  ;;  %v3261_v2 = vrot.slane %v3260_v33, 1  ;;  %v4093_v61 = vsel %vm15188_vm14, %v4077_v10, %v3746_v40  ;;  %v3742_v39 = vrot.slane %v12867_v62, %v10668_v13  ;;  %v3959_v37 = vsel %vm15176_vm1, %v860_v50, %v3373_v38 }
 0x21f   :  { %v5228_v53 = vadd.f32 %v9402_v25, %v12878_v36  ;;  %v12993_v30 = vadd.f32 %v5380_v22, %v5300_v4  ;;  %v5391_v34 = vpop.f32.mrf.mxu1  ;;  %v2623_v54 = vrot.slane %v2591_v63, 5  ;;  %v2977_v6 = vsel %vm563_vm7, %v2897_v23, 0.0  ;;  %v887_v23 = vld [vmem:[#allocation2 + $0x218] sm:$0x80] }
 0x220   :  { %v5550_v8 = vpop.f32.mrf.mxu0  ;;  %v2978_v28 = vrot.slane %v2977_v6, 4  ;;  %v3910_v35 = vrot.slane %v12944_v32, %v10657_v60  ;;  %v4076_v11 = vsel %vm15189_vm0, %v3578_v52, %v3660_v44  ;;  %v4109_v36 = vsel %vm563_vm7, %v4093_v61, %v3828_v27 }
 0x221   :  { %v5307_v51 = vadd.f32 %v12927_v12, %v5228_v53  ;;  %v2703_v48 = vsel %vm563_vm7, %v2623_v54, 0.0  ;;  %v13004_v22 = vsub.f32 %v4061_v18, %v12947_v5  ;;  %vm2033_vm2 = vcmp.eq.f32.partialorder %v12962_v43, inf }
 0x222   :  { %v2704_v57 = vrot.slane %v2703_v48, 4  ;;  %v2979_v50 = vadd.f32 %v2978_v28, %v2977_v6  ;;  %v3824_v40 = vrot.slane %v12966_v24, %v10668_v13  ;;  %v3262_v12 = vadd.f32 %v3261_v2, %v3260_v33  ;;  %v13025_v2 = vld [vmem:[#allocation2 + $0x218] sm:$0x70]  ;;  %v895_v6 = vld [vmem:[#allocation2 + $0x258] sm:$0x3] }
 0x223   :  { %v13011_v59 = vadd.f32 %v5389_v15, %v5307_v51  ;;  %v4092_v26 = vsel %vm15179_vm3, %v4076_v11, %v3742_v39  ;;  %v15065_v10 = vand.u32 4294901760, %v13004_v22  ;;  %v4125_v38 = vsel %vm15190_vm5, %v4109_v36, %v3910_v35 }
 0x224   :  { %v2705_v56 = vadd.f32 %v2704_v57, %v2703_v48  ;;  %v2980_v18 = vrot.slane %v2979_v50, 2  ;;  %v510_v27 = vmul.f32 %v13006_v0, %v13006_v0  ;;  %vm2035_vm6 = vcmp.eq.f32.partialorder %v12962_v43, 0.0 }
 0x225   :  { %v3906_v52 = vrot.slane %v12944_v32, %v10668_v13  ;;  %v6207_v33 = vsub.f32 %v13004_v22, %v15065_v10  ;;  %v943_v44 = vrot.slane %v911_v41, 3  ;;  %v4108_v15 = vsel %vm563_vm7, %v4092_v26, %v3824_v40  ;;  %v13041_v26 = vld [vmem:[#allocation2 + $0x258] sm:$0xe0] }
 0x226   :  { %v2706_v25 = vrot.slane %v2705_v56, 2  ;;  %v2981_v4 = vadd.f32 %v2980_v18, %v2979_v50  ;;  %v542_v63 = vrot.slane %v510_v27, 1  ;;  %v2036_v39 = vand.u32 2147483648, %v12962_v43 }
 0x227   :  { %v13029_v53 = vmul.f32 %v3262_v12, %v12934_v14  ;;  %v13031_v34 = vand.u32 4294901760, %v4125_v38  ;;  %v6208_v54 = vand.u32 4294901760, %v6207_v33  ;;  %v4124_v51 = vsel %vm15191_vm8, %v4108_v15, %v3906_v52 }
 0x228   :  { %v10278_v61 = vpop.eup %10277  ;;  %v2707_v28 = vadd.f32 %v2706_v25, %v2705_v56  ;;  %v2982_v35 = vrot.slane %v2981_v4, 1  ;;  %v641_v11 = vsel %vm563_vm7, %v542_v63, 0.0  ;;  %v983_v36 = vsub.f32 %v887_v23, %v943_v44  ;;  %v13043_v56 = vld [vmem:[#allocation2 + $0x298] sm:$0x7] }
 0x229   :  { %v2032_v8 = vmul.f32 %v10278_v61, %v12962_v43  ;;  %6209 = vmatprep.mubr.f32.mxu0 %v6208_v54  ;;  %v642_v48 = vrot.slane %v641_v11, 4  ;;  %v1394_v57 = vmul.f32 %v13025_v2, %v13025_v2  ;;  %v991_v12 = vsub.f32 %v895_v6, %v943_v44 }
 0x22a   :  { %v2708_v40 = vrot.slane %v2707_v28, 1  ;;  %v2983_v41 = vadd.f32 %v2982_v35, %v2981_v4  ;;  %v3517_v18 = vrot.slane %v13029_v53, 1  ;;  %v3976_v27 = vsel %vm15192_vm15, %v3959_v37, %v12934_v14 }
 0x22b   :  { %v2034_v50 = vsel %vm2033_vm2, %v12962_v43, %v2032_v8  ;;  %v13049_v52 = vsub.f32 %v4125_v38, %v13031_v34  ;;  %v643_v33 = vadd.f32 %v642_v48, %v641_v11  ;;  %v13053_v4 = vand.u32 4294901760, %v4124_v51 }
 0x22c   :  { %v2037_v25 = vsel %vm2035_vm6, %v2036_v39, %v2034_v50  ;;  %v2709_v15 = vadd.f32 %v2708_v40, %v2707_v28  ;;  %v3041_v63 = vsub.f32 1.0, %v2983_v41  ;;  %v1426_v23 = vrot.slane %v1394_v57, 4  ;;  %v3076_v41 = vld [vmem:[#allocation2 + $0x2d8] sm:$0xff]  ;;  %vm15200_vm6 = vmmov %vm15197_vm13 }
 0x22d   :  { %v644_v44 = vrot.slane %v643_v33, 2  ;;  %v2130_v61 = vmul.f32 %v13041_v26, %v13041_v26  ;;  %v2354_v53 = vmul.f32 %v13043_v56, %v13043_v56  ;;  %v1015_v38 = vand.u32 2147483647, %v983_v36 }
 0x22e   :  { %v2849_v14 = vmul.f32 %v12987_v16, %v2709_v15  ;;  %v3057_v37 = vmul.f32 %v3041_v63, %v12987_v16  ;;  %v1023_v54 = vand.u32 2147483647, %v991_v12  ;;  %v3992_v43 = vsel %vm563_vm7, %v3976_v27, %v2037_v25  ;;  %v3092_v12 = vld [vmem:[#allocation2 + $0x318] sm:$0xff] }
 0x22f   :  { %v645_v39 = vadd.f32 %v644_v44, %v643_v33  ;;  %v1524_v6 = vsel %vm563_vm7, %v1426_v23, 0.0  ;;  %v2162_v8 = vrot.slane %v2130_v61, 5  ;;  %v15066_v11 = vand.u32 4294901760, %v13049_v52 }
 0x230   :  { %v3421_v28 = vrot.slane %v2849_v14, 4  ;;  %v3469_v35 = vrot.slane %v3057_v37, 3  ;;  %v1525_v48 = vrot.slane %v1524_v6, 4  ;;  %v13065_v57 = vsub.f32 %v4124_v51, %v13053_v4 }
 0x231   :  { %v646_v50 = vrot.slane %v645_v39, 1  ;;  %v2260_v40 = vsel %vm563_vm7, %v2162_v8, 0.0  ;;  %v2436_v36 = vsel %vm563_vm7, %v2354_v53, 0.0  ;;  %v1094_v33 = vrot.slane %v1015_v38, 7  ;;  %v13075_v53 = vld [vmem:[#allocation2 + $0x210] sm:$0xe] }
 0x232   :  { %v4009_v27 = vsel %vm15193_vm12, %v3992_v43, %v3421_v28  ;;  %v1526_v25 = vadd.f32 %v1525_v48, %v1524_v6  ;;  %v2261_v15 = vrot.slane %v2260_v40, 4  ;;  %vm15194_vm4 = vcmask 1044480   ;;  %v3108_v43 = vld [vmem:[#allocation2 + $0x358] sm:$0xff]  ;;  %v910_v48 = vld [vmem:[#allocation2 + $0x250] sm:$0x1c] }
 0x233   :  { %v4026_v63 = vsel %vm15194_vm4, %v4009_v27, %v3469_v35  ;;  %v13071_v44 = vadd.f32 %v646_v50, %v645_v39  ;;  %v1095_v23 = vrot.slane %v1023_v54, 7  ;;  %v2437_v61 = vrot.slane %v2436_v36, 4 }
 0x234   :  { %vm15195_vm11 = vcmask 1045504   ;;  %v1527_v14 = vrot.slane %v1526_v25, 2  ;;  %v2262_v37 = vadd.f32 %v2261_v15, %v2260_v40  ;;  %v3124_v8 = vadd.f32 %v3092_v12, %v3076_v41 }
 0x235   :  { %v4043_v51 = vsel %vm15195_vm11, %v4026_v63, %v12987_v16  ;;  %vm15196_vm10 = vcmask 1046528   ;;  %v15067_v38 = vand.u32 4294901760, %v13065_v57  ;;  %10279 = vrsqrt.f32 %v13071_v44 }
 0x236   :  { %v4060_v10 = vsel %vm15196_vm10, %v4043_v51, %v3517_v18  ;;  %v1528_v39 = vadd.f32 %v1527_v14, %v1526_v25  ;;  %v6222_v54 = vsub.f32 %v13049_v52, %v15066_v11  ;;  %v2263_v16 = vrot.slane %v2262_v37, 2 }
 0x237   :  { %v13080_v6 = vand.u32 4294901760, %v4060_v10  ;;  %v2438_v28 = vadd.f32 %v2437_v61, %v2436_v36  ;;  %v509_v35 = vmul.f32 %v13075_v53, %v13075_v53  ;;  %v1096_v40 = vsel %vm15197_vm13, %v1094_v33, %v1095_v23  ;;  %vm15209_vm13 = vmmov %vm15200_vm6 }
 0x238   :  { %v13087_v50 = vpop.f32.mrf.mxu0  ;;  %v1529_v41 = vrot.slane %v1528_v39, 1  ;;  %v13094_v12 = vadd.f32 %v3124_v8, %v3108_v43  ;;  %v13101_v36 = vsub.f32 %v13065_v57, %v15067_v38  ;;  %v2264_v27 = vadd.f32 %v2263_v16, %v2262_v37  ;;  %v886_v43 = vld [vmem:[#allocation2 + $0x210] sm:$0x80] }
 0x239   :  { %6302 = vmatmul.mubr.f32.vlgmr.msra.gmra.mxu1 %v13080_v6  ;;  %v13091_v18 = vsub.f32 %v4060_v10, %v13080_v6  ;;  %v2439_v25 = vrot.slane %v2438_v28, 2  ;;  %v541_v15 = vrot.slane %v509_v35, 1  ;;  %v942_v61 = vrot.slane %v910_v48, 3  ;;  %v894_v35 = vld [vmem:[#allocation2 + $0x250] sm:$0x3] }
 0x23a   :  { %6307 = vmatprep.mubr.f32.mxu1 %v13031_v34  ;;  %6345 = vmatpush1.msra.mxu1 %v15117_v19  ;;  %v9435_v63 = vpop.f32.mrf.mxu1  ;;  %v5557_v10 = vpop.f32.mrf.mxu0  ;;  %v13105_v23 = vadd.f32 %v1529_v41, %v1528_v39  ;;  %v1202_v51 = vsel %vm563_vm7, %v1096_v40, 0.0  ;;  %v2265_v14 = vrot.slane %v2264_v27, 1  ;;  %v3156_v16 = vand.u32 2147483647, %v13094_v12 }
 0x23b   :  { %9631 = vmatprep.subr.mxu1 %v15112_v1  ;;  %v15070_v33 = vand.u32 4294901760, %v13091_v18  ;;  %v2440_v8 = vadd.f32 %v2439_v25, %v2438_v28  ;;  %v634_v39 = vsel %vm563_vm7, %v541_v15, 0.0  ;;  %v6223_v40 = vand.u32 4294901760, %v6222_v54 }
 0x23c   :  { %v9436_v11 = vpop.f32.mrf.mxu1  ;;  %10281 = vrsqrt.f32 %v13105_v23  ;;  %v6229_v28 = vand.u32 4294901760, %v13101_v36  ;;  %v2266_v41 = vadd.f32 %v2265_v14, %v2264_v27  ;;  %v1203_v38 = vrot.slane %v1202_v51, 4 }
 0x23d   :  { %6309 = vmatmul.mubr.f32.gmra.mxu1 %v13053_v4  ;;  %v6213_v37 = vsub.f32 %v13091_v18, %v15070_v33  ;;  %v9437_v48 = vadd.f32 %v9436_v11, %v9435_v63  ;;  %v2441_v45 = vrot.slane %v2440_v8, 1  ;;  %v982_v21 = vsub.f32 %v886_v43, %v942_v61 }
 0x23e   :  { %6380 = vmatprep.mubr.f32.mxu1 %v13004_v22  ;;  %v9473_v25 = vpop.f32.mrf.mxu0  ;;  %v2306_v13 = vmax.f32 %v2266_v41, 1e-24  ;;  %v635_v60 = vrot.slane %v634_v39, 4  ;;  %v990_v12 = vsub.f32 %v894_v35, %v942_v61  ;;  %vm755_vm14 = vcmp.eq.f32.partialorder %v13071_v44, inf  ;;  %v13127_v61 = vld [vmem:[#allocation2 + $0x210] sm:$0x70] }
 0x23f   :  { %v6214_v10 = vand.u32 4294901760, %v6213_v37  ;;  %v5466_v33 = vadd.f32 %v9437_v48, %v12993_v30  ;;  %v758_v11 = vand.u32 2147483648, %v13071_v44  ;;  %v2442_v54 = vadd.f32 %v2441_v45, %v2440_v8 }
 0x240   :  { %v9438_v55 = vpop.f32.mrf.mxu1  ;;  %v9474_v15 = vpop.f32.mrf.mxu0  ;;  %vm13121_vm1 = vweird.f32 %v3156_v16  ;;  %10283 = vrsqrt.f32 %v2306_v13  ;;  %v636_v63 = vadd.f32 %v635_v60, %v634_v39  ;;  %v1014_v8 = vand.u32 2147483647, %v982_v21 }
 0x241   :  { %6383 = vmatmul.mubr.f32.vlgmr.msra.gmra.mxu1 %v13091_v18  ;;  %6215 = vmatmul.mubr.f32.vlgmr.msra.gmra.mxu0 %v6214_v10  ;;  %v5549_v27 = vadd.f32 %v12983_v9, %v5466_v33  ;;  %v9475_v30 = vadd.f32 %v9474_v15, %v9473_v25  ;;  %v2482_v45 = vmax.f32 %v2442_v54, 1e-24  ;;  %v1022_v37 = vand.u32 2147483647, %v990_v12  ;;  %vm3188_vm0 = vmxor %vm13121_vm1, %vm15173_vm9 }
 0x242   :  { %9632 = vmatpush3.msra.mxu1 %v15112_v1  ;;  %6224 = vmatprep.mubr.f32.mxu0 %v6223_v40  ;;  %v10280_v14 = vpop.eup %10279  ;;  %v9439_v43 = vpop.f32.mrf.mxu1  ;;  %v637_v13 = vrot.slane %v636_v63, 2  ;;  %vm757_vm2 = vcmp.eq.f32.partialorder %v13071_v44, 0.0  ;;  %v1204_v21 = vadd.f32 %v1203_v38, %v1202_v51  ;;  %v3204_v39 = vsel %vm3188_vm0, %v3156_v16, 0.0  ;;  %v13151_v51 = vld [vmem:[#allocation2 + $0x250] sm:$0xe0] }
 0x243   :  { %9633 = vmatprep.subr.mxu1 %v15112_v1  ;;  %6515 = vmatpush1.msra.mxu0 %v15117_v19  ;;  %v9440_v35 = vadd.f32 %v9439_v43, %v9438_v55  ;;  %v13131_v48 = vadd.f32 %v9475_v30, %v5549_v27  ;;  %v754_v60 = vmul.f32 %v10280_v14, %v13071_v44  ;;  %10285 = vrsqrt.f32 %v2482_v45 }
 0x244   :  { %9634 = vmatpush3.msra.mxu1 %v15112_v1  ;;  %9669 = vmatprep.subr.mxu0 %v15112_v1  ;;  %v1393_v55 = vmul.f32 %v13127_v61, %v13127_v61  ;;  %v638_v38 = vadd.f32 %v637_v13, %v636_v63  ;;  %v1092_v41 = vrot.slane %v1022_v37, 7  ;;  %vm1638_vm3 = vcmp.eq.f32.partialorder %v13105_v23, inf }
 0x245   :  { %9635 = vmatprep.subr.mxu1 %v15112_v1  ;;  %6230 = vmatmul.mubr.f32.gmra.mxu0 %v6229_v28  ;;  %v5477_v9 = vadd.f32 %v9440_v35, %v13011_v59  ;;  %v756_v33 = vsel %vm755_vm14, %v13071_v44, %v754_v60  ;;  %v1091_v28 = vrot.slane %v1014_v8, 7  ;;  %v1205_v44 = vrot.slane %v1204_v21, 2  ;;  %v13184_v8 = vld [vmem:[#allocation2 + $0x290] sm:$0x7] }
 0x246   :  { %9636 = vmatpush3.msra.mxu1 %v15112_v1  ;;  %6549 = vmatprep.mubr.f32.mxu0 %v12947_v5  ;;  %v13157_v59 = vsel %vm757_vm2, %v758_v11, %v756_v33  ;;  %v639_v16 = vrot.slane %v638_v38, 1  ;;  %v1425_v25 = vrot.slane %v1393_v55, 4  ;;  %vm1640_vm5 = vcmp.eq.f32.partialorder %v13105_v23, 0.0  ;;  %v3091_v33 = vld [vmem:[#allocation2 + $0x310] sm:$0xff] }
 0x247   :  { %9637 = vmatprep.subr.mxu1 %v15112_v1  ;;  %6389 = vmatprep.mubr.f32.mxu1 %v13049_v52  ;;  %v13154_v40 = vadd.f32 %v13087_v50, %v5477_v9  ;;  %v1641_v50 = vand.u32 2147483648, %v13105_v23  ;;  %v3275_v12 = vrot.slane %v3204_v39, 4  ;;  %v2129_v15 = vmul.f32 %v13151_v51, %v13151_v51  ;;  %v3075_v9 = vld [vmem:[#allocation2 + $0x2d0] sm:$0xff] }
 0x248   :  { %9638 = vmatpush3.msra.mxu1 %v15112_v1  ;;  %v1362_v11 = vadd.f32 1e-06, %v13157_v59  ;;  %v13172_v36 = vadd.f32 %v639_v16, %v638_v38  ;;  %v1517_v27 = vsel %vm563_vm7, %v1425_v25, 0.0  ;;  %v1093_v30 = vsel %vm15200_vm6, %v1091_v28, %v1092_v41 }
 0x249   :  { %9639 = vmatprep.subr.mxu1 %v15112_v1  ;;  %6551 = vmatmul.mubr.f32.vlgmr.msra.gmra.mxu0 %v13080_v6  ;;  %v10282_v10 = vpop.eup %10281  ;;  %v1518_v63 = vrot.slane %v1517_v27, 4  ;;  %v2161_v14 = vrot.slane %v2129_v15, 5  ;;  %v1206_v43 = vadd.f32 %v1205_v44, %v1204_v21  ;;  %v3276_v35 = vadd.f32 %v3275_v12, %v3204_v39  ;;  %v3107_v44 = vld [vmem:[#allocation2 + $0x350] sm:$0xff] }
 0x24a   :  { %9640 = vmatpush3.msra.mxu1 %v15112_v1  ;;  %9670 = vmatpush3.msra.mxu0 %v15112_v1  ;;  %v1637_v54 = vmul.f32 %v10282_v10, %v13105_v23  ;;  %10287 = vrsqrt.f32 %v13172_v36  ;;  %v1195_v21 = vsel %vm563_vm7, %v1093_v30, 0.0  ;;  %v2353_v39 = vmul.f32 %v13184_v8, %v13184_v8 }
 0x24b   :  { %9641 = vmatprep.subr.mxu1 %v15112_v1  ;;  %9671 = vmatprep.subr.mxu0 %v15112_v1  ;;  %10289 = vrcp.f32 %v1362_v11  ;;  %v1519_v55 = vadd.f32 %v1518_v63, %v1517_v27  ;;  %v1207_v38 = vrot.slane %v1206_v43, 1  ;;  %v1196_v10 = vrot.slane %v1195_v21, 4 }
 0x24c   :  { %9642 = vmatpush3.msra.mxu1 %v15112_v1  ;;  %9672 = vmatpush3.msra.mxu0 %v15112_v1  ;;  %v1639_v45 = vsel %vm1638_vm3, %v13105_v23, %v1637_v54  ;;  %v2253_v23 = vsel %vm563_vm7, %v2161_v14, 0.0  ;;  %v3123_v12 = vadd.f32 %v3091_v33, %v3075_v9  ;;  %v3277_v11 = vrot.slane %v3276_v35, 2  ;;  %vm15211_vm3 = vmmov %vm15200_vm6 }
 0x24d   :  { %9643 = vmatprep.subr.mxu1 %v15112_v1  ;;  %9673 = vmatprep.subr.mxu0 %v15112_v1  ;;  %v1642_v37 = vsel %vm1640_vm5, %v1641_v50, %v1639_v45  ;;  %v10284_v60 = vpop.eup %10283  ;;  %v1520_v28 = vrot.slane %v1519_v55, 2  ;;  %v2254_v41 = vrot.slane %v2253_v23, 4  ;;  %v2429_v50 = vsel %vm563_vm7, %v2353_v39, 0.0 }
 0x24e   :  { %9644 = vmatpush3.msra.mxu1 %v15112_v1  ;;  %9674 = vmatpush3.msra.mxu0 %v15112_v1  ;;  %v1682_v13 = vadd.f32 1e-06, %v1642_v37  ;;  %v2338_v25 = vmul.f32 %v10284_v60, %v13041_v26  ;;  %v2430_v30 = vrot.slane %v2429_v50, 4  ;;  %v13209_v63 = vadd.f32 %v3123_v12, %v3107_v44  ;;  %v9476_v26 = vpop.f32.mrf.mxu0 }
 0x24f   :  { %9645 = vmatprep.subr.mxu1 %v15112_v1  ;;  %9675 = vmatprep.subr.mxu0 %v15112_v1  ;;  %v1521_v54 = vadd.f32 %v1520_v28, %v1519_v55  ;;  %v2255_v27 = vadd.f32 %v2254_v41, %v2253_v23  ;;  %v13215_v14 = vrot.slane %v12797_v46, %v10984_v58  ;;  %v15201_v60 = vand.u32 4294901760, %v13004_v22 }
 0x250   :  { %9646 = vmatpush3.msra.mxu1 %v15112_v1  ;;  %9676 = vmatpush3.msra.mxu0 %v15112_v1  ;;  %10291 = vrcp.f32 %v1682_v13  ;;  %v10286_v16 = vpop.eup %10285  ;;  %v1208_v13 = vadd.f32 %v1207_v38, %v1206_v43  ;;  %v1197_v55 = vadd.f32 %v1196_v10, %v1195_v21  ;;  %v2431_v9 = vadd.f32 %v2430_v30, %v2429_v50  ;;  %v9477_v38 = vpop.f32.mrf.mxu0 }
 0x251   :  { %9647 = vmatprep.subr.mxu1 %v15112_v1  ;;  %9677 = vmatprep.subr.mxu0 %v15112_v1  ;;  %v2514_v15 = vmul.f32 %v10286_v16, %v13043_v56  ;;  %v1522_v45 = vrot.slane %v1521_v54, 1  ;;  %v2256_v37 = vrot.slane %v2255_v27, 2  ;;  %v3155_v33 = vand.u32 2147483647, %v13209_v63 }
 0x252   :  { %9648 = vmatpush3.msra.mxu1 %v15112_v1  ;;  %9678 = vmatpush3.msra.mxu0 %v15112_v1  ;;  %v3278_v28 = vadd.f32 %v3277_v11, %v3276_v35  ;;  %v9124_v41 = vadd.f32 -1.0, %v13157_v59  ;;  %v2432_v21 = vrot.slane %v2431_v9, 2  ;;  %v13232_v16 = vrot.slane %v12886_v17, %v10984_v58 }
 0x253   :  { %9649 = vmatprep.subr.mxu1 %v15112_v1  ;;  %6392 = vmatmul.mubr.f32.gmra.mxu1 %v13065_v57  ;;  %v2546_v56 = vrot.slane %v2514_v15, 3  ;;  %v13226_v22 = vadd.f32 %v1522_v45, %v1521_v54  ;;  %v2257_v43 = vadd.f32 %v2256_v37, %v2255_v27  ;;  %vm13234_vm8 = vweird.f32 %v3155_v33 }
 0x254   :  { %9650 = vmatpush3.msra.mxu1 %v15112_v1  ;;  %9679 = vmatprep.subr.mxu0 %v15112_v1  ;;  %v13241_v10 = vmul.f32 %v13215_v14, %v1208_v13  ;;  %vm748_vm15 = vcmp.eq.f32.partialorder %v13172_v36, inf  ;;  %v1198_v50 = vrot.slane %v1197_v55, 2  ;;  %v9478_v30 = vadd.f32 %v9477_v38, %v9476_v26  ;;  %vm13256_vm12 = vmxor %vm13234_vm8, %vm15173_vm9 }
 0x255   :  { %9651 = vmatprep.subr.mxu1 %v15112_v1  ;;  %9680 = vmatpush3.msra.mxu0 %v15112_v1  ;;  %v2578_v23 = vsub.f32 %v2338_v25, %v2546_v56  ;;  %v2868_v39 = vmul.f32 %v2546_v56, %v2338_v25  ;;  %10293 = vrsqrt.f32 %v13226_v22  ;;  %v2258_v54 = vrot.slane %v2257_v43, 1 }
 0x256   :  { %9652 = vmatpush3.msra.mxu1 %v15112_v1  ;;  %6464 = vmatprep.mubr.f32.mxu1 %v15201_v60  ;;  %v13251_v63 = vmul.f32 %v9124_v41, %v9124_v41  ;;  %v3279_v56 = vrot.slane %v3278_v28, 1  ;;  %v2433_v45 = vadd.f32 %v2432_v21, %v2431_v9  ;;  %v751_v13 = vand.u32 2147483648, %v13172_v36 }
 0x257   :  { %9653 = vmatprep.subr.mxu1 %v15112_v1  ;;  %9681 = vmatprep.subr.mxu0 %v15112_v1  ;;  %v2594_v44 = vand.u32 2147483647, %v2578_v23  ;;  %v2900_v35 = vrot.slane %v2868_v39, 5  ;;  %v10288_v59 = vpop.eup %10287  ;;  %v2259_v23 = vadd.f32 %v2258_v54, %v2257_v43  ;;  %vm750_vm4 = vcmp.eq.f32.partialorder %v13172_v36, 0.0 }
 0x258   :  { %9654 = vmatpush3.msra.mxu1 %v15112_v1  ;;  %9682 = vmatpush3.msra.mxu0 %v15112_v1  ;;  %v747_v11 = vmul.f32 %v10288_v59, %v13172_v36  ;;  %v10290_v27 = vpop.eup %10289  ;;  %v1199_v41 = vadd.f32 %v1198_v50, %v1197_v55  ;;  %v2434_v21 = vrot.slane %v2433_v45, 1  ;;  %vm831_vm11 = vweird.f32 %v13251_v63 }
 0x259   :  { %9655 = vmatprep.subr.mxu1 %v15112_v1  ;;  %9683 = vmatprep.subr.mxu0 %v15112_v1  ;;  %v2626_v12 = vrot.slane %v2594_v44, 5  ;;  %v2998_v15 = vsel %vm563_vm7, %v2900_v35, 0.0  ;;  %v1714_v38 = vmul.f32 %v10290_v27, %v13006_v0  ;;  %v2305_v44 = vmax.f32 %v2259_v23, 1e-24  ;;  %vm13297_vm10 = vmxor %vm831_vm11, %vm15173_vm9 }
 0x25a   :  { %9656 = vmatpush3.msra.mxu1 %v15112_v1  ;;  %9684 = vmatpush3.msra.mxu0 %v15112_v1  ;;  %v2999_v60 = vrot.slane %v2998_v15, 4  ;;  %v749_v9 = vsel %vm748_vm15, %v13172_v36, %v747_v11  ;;  %v3203_v35 = vsel %vm13256_vm12, %v3155_v33, 0.0  ;;  %v3280_v25 = vadd.f32 %v3279_v56, %v3278_v28  ;;  %v13348_v36 = vld [vmem:[#allocation2 + $0x228] sm:$0xe]  ;;  %vm15217_vm15 = vmmov %vm15211_vm3 }
 0x25b   :  { %9657 = vmatprep.subr.mxu1 %v15112_v1  ;;  %9685 = vmatprep.subr.mxu0 %v15112_v1  ;;  %v2724_v26 = vsel %vm563_vm7, %v2626_v12, 0.0  ;;  %v2435_v59 = vadd.f32 %v2434_v21, %v2433_v45  ;;  %v15206_v50 = vand.u32 4294901760, %v13091_v18  ;;  %v752_v12 = vsel %vm750_vm4, %v751_v13, %v749_v9  ;;  %vm15220_vm4 = vmmov %vm15211_vm3 }
 0x25c   :  { %9658 = vmatpush3.msra.mxu1 %v15112_v1  ;;  %9686 = vmatpush3.msra.mxu0 %v15112_v1  ;;  %v2725_v55 = vrot.slane %v2724_v26, 4  ;;  %v3590_v33 = vrot.slane %v12938_v29, %v10984_v58  ;;  %v9123_v11 = vadd.f32 -1.0, %v752_v12  ;;  %v3269_v54 = vrot.slane %v3203_v35, 4 }
 0x25d   :  { %9659 = vmatprep.subr.mxu1 %v15112_v1  ;;  %9687 = vmatprep.subr.mxu0 %v15112_v1  ;;  %v10292_v39 = vpop.eup %10291  ;;  %v2481_v28 = vmax.f32 %v2435_v59, 1e-24  ;;  %v3672_v27 = vrot.slane %v12919_v3, %v10984_v58  ;;  %v3376_v56 = vrot.slane %v13241_v10, 7  ;;  %v1200_v45 = vrot.slane %v1199_v41, 1 }
 0x25e   :  { %9660 = vmatpush3.msra.mxu1 %v15112_v1  ;;  %9688 = vmatpush3.msra.mxu0 %v15112_v1  ;;  %v1730_v43 = vmul.f32 %v10292_v39, %v13025_v2  ;;  %v3000_v2 = vadd.f32 %v2999_v60, %v2998_v15  ;;  %10295 = vrsqrt.f32 %v2305_v44  ;;  %v13303_v37 = vadd.f32 %v9478_v30, %v13154_v40 }
 0x25f   :  { %9661 = vmatprep.subr.mxu1 %v15112_v1  ;;  %9689 = vmatprep.subr.mxu0 %v15112_v1  ;;  %v2726_v60 = vadd.f32 %v2725_v55, %v2724_v26  ;;  %v13309_v13 = vrot.slane %v12797_v46, %v11159_v49  ;;  %10297 = vrsqrt.f32 %v2481_v28  ;;  %v13314_v40 = vmul.f32 %v3280_v25, %v13215_v14 }
 0x260   :  { %9662 = vmatpush3.msra.mxu1 %v15112_v1  ;;  %9690 = vmatpush3.msra.mxu0 %v15112_v1  ;;  %v1762_v0 = vrot.slane %v1730_v43, 3  ;;  %v3001_v39 = vrot.slane %v3000_v2, 2  ;;  %v3754_v30 = vrot.slane %v12867_v62, %v10984_v58  ;;  %v863_v26 = vsel %vm13297_vm10, %v13251_v63, 0.0 }
 0x261   :  { %9707 = vmatprep.subr.mxu1 %v15112_v1  ;;  %6468 = vmatmul.mubr.f32.vlgmr.msra.gmra.mxu1 %v15206_v50  ;;  %v13323_v9 = vmul.f32 %v9123_v11, %v9123_v11  ;;  %v3270_v21 = vadd.f32 %v3269_v54, %v3203_v35  ;;  %v1201_v25 = vadd.f32 %v1200_v45, %v1199_v41  ;;  %vm1631_vm14 = vcmp.eq.f32.partialorder %v13226_v22, inf }
 0x262   :  { %9708 = vmatpush3.msra.mxu1 %v15112_v1  ;;  %9691 = vmatprep.subr.mxu0 %v15112_v1  ;;  %v1794_v15 = vsub.f32 %v1714_v38, %v1762_v0  ;;  %v4079_v38 = vsel %vm15209_vm13, %v3590_v33, %v3672_v27  ;;  %v10294_v43 = vpop.eup %10293  ;;  %v1634_v59 = vand.u32 2147483648, %v13226_v22  ;;  %v2727_v63 = vrot.slane %v2726_v60, 2 }
 0x263   :  { %v13290_v18 = vpop.f32.mrf.mxu0  ;;  %9709 = vmatprep.subr.mxu1 %v15112_v1  ;;  %9692 = vmatpush3.msra.mxu0 %v15112_v1  ;;  %v1361_v35 = vadd.f32 1e-06, %v752_v12  ;;  %v1630_v50 = vmul.f32 %v10294_v43, %v13226_v22  ;;  %vm1633_vm1 = vcmp.eq.f32.partialorder %v13226_v22, 0.0  ;;  %v3002_v33 = vadd.f32 %v3001_v39, %v3000_v2 }
 0x264   :  { %9710 = vmatpush3.msra.mxu1 %v15112_v1  ;;  %9693 = vmatprep.subr.mxu0 %v15112_v1  ;;  %v1810_v10 = vmul.f32 %v1794_v15, %v1794_v15  ;;  %v3836_v11 = vrot.slane %v12966_v24, %v10984_v58  ;;  %vm15210_vm0 = vcmask 1041408   ;;  %vm830_vm2 = vweird.f32 %v13323_v9 }
 0x265   :  { %v5803_v23 = vpop.f32.mrf.mxu0  ;;  %9711 = vmatprep.subr.mxu1 %v15112_v1  ;;  %9694 = vmatpush3.msra.mxu0 %v15112_v1  ;;  %v4095_v28 = vsel %vm15210_vm0, %v4079_v38, %v3754_v30  ;;  %v1632_v54 = vsel %vm1631_vm14, %v13226_v22, %v1630_v50  ;;  %v3271_v27 = vrot.slane %v3270_v21, 2  ;;  %v3962_v45 = vsel %vm15211_vm3, %v863_v26, %v3376_v56  ;;  %vm13365_vm5 = vmxor %vm830_vm2, %vm15173_vm9 }
 0x266   :  { %9712 = vmatpush3.msra.mxu1 %v15112_v1  ;;  %9695 = vmatprep.subr.mxu0 %v15112_v1  ;;  %v1842_v55 = vrot.slane %v1810_v10, 1  ;;  %v1329_v23 = vmul.f32 %v13309_v13, %v1201_v25  ;;  %v1635_v10 = vsel %vm1633_vm1, %v1634_v59, %v1632_v54  ;;  %v2728_v30 = vadd.f32 %v2727_v63, %v2726_v60  ;;  %vm15214_vm6 = vmmov %vm15210_vm0 }
 0x267   :  { %v13326_v44 = vpop.f32.mrf.mxu0  ;;  %9713 = vmatprep.subr.mxu1 %v15112_v1  ;;  %6556 = vmatprep.mubr.f32.mxu0 %v13031_v34  ;;  %10299 = vrcp.f32 %v1361_v35  ;;  %v1681_v38 = vadd.f32 1e-06, %v1635_v10  ;;  %v3003_v56 = vrot.slane %v3002_v33, 1  ;;  %v3918_v26 = vrot.slane %v12944_v32, %v10984_v58  ;;  %vm15219_vm12 = vmmov %vm15210_vm0 }
 0x268   :  { %9714 = vmatpush3.msra.mxu1 %v15112_v1  ;;  %9696 = vmatpush3.msra.mxu0 %v15112_v1  ;;  %v1940_v41 = vsel %vm563_vm7, %v1842_v55, 0.0  ;;  %v4111_v60 = vsel %vm563_vm7, %v4095_v28, %v3836_v11  ;;  %v512_v25 = vmul.f32 %v13348_v36, %v13348_v36  ;;  %v3272_v35 = vadd.f32 %v3271_v27, %v3270_v21  ;;  %v13391_v27 = vld [vmem:[#allocation2 + $0x268] sm:$0x1c]  ;;  %vm15221_vm11 = vmmov %vm15210_vm0 }
 0x269   :  { %v5810_v0 = vpop.f32.mrf.mxu0  ;;  %9715 = vmatprep.subr.mxu1 %v15112_v1  ;;  %6558 = vmatmul.mubr.f32.gmra.mxu0 %v13053_v4  ;;  %v1941_v12 = vrot.slane %v1940_v41, 4  ;;  %10301 = vrcp.f32 %v1681_v38  ;;  %v3375_v11 = vrot.slane %v1329_v23, 7  ;;  %v2729_v54 = vrot.slane %v2728_v30, 1 }
 0x26a   :  { %9716 = vmatpush3.msra.mxu1 %v15112_v1  ;;  %9697 = vmatprep.subr.mxu0 %v15112_v1  ;;  %v544_v28 = vrot.slane %v512_v25, 1  ;;  %vm15215_vm8 = vcmask 1043456   ;;  %v15216_v10 = vand.u32 4294901760, %v13049_v52  ;;  %v945_v22 = vrot.slane %v13391_v27, 3 }
 0x26b   :  { %v9511_v2 = vpop.f32.mrf.mxu1  ;;  %v13350_v15 = vpop.f32.mrf.mxu0  ;;  %9717 = vmatprep.subr.mxu1 %v15112_v1  ;;  %9698 = vmatpush3.msra.mxu0 %v15112_v1  ;;  %v1942_v39 = vadd.f32 %v1941_v12, %v1940_v41  ;;  %v13383_v41 = vsel %vm15214_vm6, %v3962_v45, %v13215_v14  ;;  %v13399_v45 = vrot.slane %v12886_v17, %v11159_v49  ;;  %vm15223_vm14 = vmmov %vm15215_vm8  ;;  %vm15224_vm1 = vcmask 1044480  }
 0x26c   :  { %9718 = vmatpush3.msra.mxu1 %v15112_v1  ;;  %9699 = vmatprep.subr.mxu0 %v15112_v1  ;;  %v10296_v12 = vpop.eup %10295  ;;  %v655_v23 = vsel %vm563_vm7, %v544_v28, 0.0  ;;  %vm15225_vm0 = vcmask 1045504   ;;  %vm15227_vm2 = vmmov %vm15215_vm8  ;;  %vm15229_vm3 = vcmask 1046528  }
 0x26d   :  { %v9512_v43 = vpop.f32.mrf.mxu1  ;;  %v5884_v55 = vpop.f32.mrf.mxu0  ;;  %9719 = vmatprep.subr.mxu1 %v15112_v1  ;;  %9700 = vmatpush3.msra.mxu0 %v15112_v1  ;;  %v1943_v63 = vrot.slane %v1942_v39, 2 }
 0x26e   :  { %v9513_v59 = vadd.f32 %v9512_v43, %v9511_v2  ;;  %9720 = vmatpush3.msra.mxu1 %v15112_v1  ;;  %6628 = vmatprep.mubr.f32.mxu0 %v12947_v5  ;;  %v10298_v2 = vpop.eup %10297  ;;  %v2337_v55 = vmul.f32 %v10296_v12, %v13151_v51  ;;  %v15218_v51 = vand.u32 4294901760, %v13065_v57  ;;  %v3668_v57 = vrot.slane %v12919_v3, %v11159_v49  ;;  %v13443_v12 = vld [vmem:[#allocation2 + $0x268] sm:$0xe0] }
 0x26f   :  { %v13376_v50 = vpop.f32.mrf.mxu1  ;;  %9721 = vmatprep.subr.mxu1 %v15112_v1  ;;  %6630 = vmatmul.mubr.f32.vlgmr.msra.gmra.mxu0 %v13080_v6  ;;  %v1944_v21 = vadd.f32 %v1943_v63, %v1942_v39  ;;  %v862_v6 = vsel %vm13365_vm5, %v13323_v9, 0.0  ;;  %v2513_v38 = vmul.f32 %v10298_v2, %v13184_v8  ;;  %vm15230_vm5 = vmmov %vm15220_vm4 }
 0x270   :  { %v5715_v5 = vadd.f32 %v9513_v59, %v13131_v48  ;;  %9722 = vmatpush3.msra.mxu1 %v15112_v1  ;;  %6635 = vmatprep.mubr.f32.mxu0 %v13031_v34  ;;  %v3004_v48 = vadd.f32 %v3003_v56, %v3002_v33  ;;  %v13402_v34 = vsel %vm15215_vm8, %v4111_v60, %v3918_v26  ;;  %v3273_v33 = vrot.slane %v3272_v35, 1 }
 0x271   :  { %v13393_v14 = vpop.f32.mrf.mxu1  ;;  %9723 = vmatprep.subr.mxu1 %v15112_v1  ;;  %6767 = vmatprep.subr.mxu0 %v15117_v19  ;;  %v1945_v39 = vrot.slane %v1944_v21, 1  ;;  %v3961_v56 = vsel %vm15217_vm15, %v862_v6, %v3375_v11  ;;  %v2730_v26 = vadd.f32 %v2729_v54, %v2728_v30  ;;  %v2545_v60 = vrot.slane %v2513_v38, 3  ;;  %v13432_v11 = vld [vmem:[#allocation2 + $0x228] sm:$0x70] }
 0x272   :  { %v5802_v9 = vadd.f32 %v13290_v18, %v5715_v5  ;;  %9724 = vmatpush3.msra.mxu1 %v15112_v1  ;;  %6475 = vmatprep.mubr.f32.mxu1 %v15216_v10  ;;  %v656_v18 = vrot.slane %v655_v23, 4  ;;  %v13428_v59 = vand.u32 4294901760, %v13402_v34  ;;  %v3274_v30 = vadd.f32 %v3273_v33, %v3272_v35 }
 0x273   :  { %v13410_v43 = vpop.f32.mrf.mxu1  ;;  %9725 = vmatprep.subr.mxu1 %v15112_v1  ;;  %6637 = vmatmul.mubr.f32.gmra.mxu0 %v13053_v4  ;;  %v13422_v8 = vadd.f32 %v1945_v39, %v1944_v21  ;;  %v3044_v4 = vsub.f32 1.0, %v3004_v48  ;;  %v13438_v28 = vsel %vm15219_vm12, %v3961_v56, %v13309_v13  ;;  %v2577_v5 = vsub.f32 %v2337_v55, %v2545_v60 }
 0x274   :  { %v13418_v52 = vadd.f32 %v13350_v15, %v5802_v9  ;;  %9726 = vmatpush3.msra.mxu1 %v15112_v1  ;;  %6768 = vmatpush1.msra.mxu0 %v15117_v19  ;;  %v3586_v15 = vrot.slane %v12938_v29, %v11159_v49  ;;  %v657_v63 = vadd.f32 %v656_v18, %v655_v23  ;;  %v13458_v9 = vld [vmem:[#allocation2 + $0x260] sm:$0x1c]  ;;  %v10300_v10 = vpop.eup %10299 }
 0x275   :  { %v6052_v25 = vpop.f32.mrf.mxu1  ;;  %9727 = vmatprep.subr.mxu1 %v15112_v1  ;;  %6479 = vmatmul.mubr.f32.gmra.mxu1 %v15218_v51  ;;  %10303 = vrsqrt.f32 %v13422_v8  ;;  %v2867_v21 = vmul.f32 %v2545_v60, %v2337_v55  ;;  %v3750_v54 = vrot.slane %v12867_v62, %v11159_v49  ;;  %v13452_v6 = vmul.f32 %v13232_v16, %v2730_v26  ;;  %v13473_v51 = vld [vmem:[#allocation2 + $0x2a8] sm:$0x7] }
 0x276   :  { %9728 = vmatpush3.msra.mxu1 %v15112_v1  ;;  %6846 = vmatprep.subr.mxu0 %v15117_v19  ;;  %v658_v48 = vrot.slane %v657_v63, 2  ;;  %v1396_v23 = vmul.f32 %v13432_v11, %v13432_v11  ;;  %v13464_v38 = vmul.f32 %v3044_v4, %v13232_v16  ;;  %v2593_v33 = vand.u32 2147483647, %v2577_v5  ;;  %v10302_v0 = vpop.eup %10301 }
 0x277   :  { %9729 = vmatprep.subr.mxu1 %v15112_v1  ;;  %v2899_v55 = vrot.slane %v2867_v21, 5  ;;  %v2132_v56 = vmul.f32 %v13443_v12, %v13443_v12  ;;  %v13470_v18 = vmul.f32 %v3274_v30, %v13309_v13  ;;  %v4078_v26 = vsel %vm15220_vm4, %v3586_v15, %v3668_v57  ;;  %v889_v57 = vld [vmem:[#allocation2 + $0x228] sm:$0x80] }
 0x278   :  { %9730 = vmatpush3.msra.mxu1 %v15112_v1  ;;  %v659_v60 = vadd.f32 %v658_v48, %v657_v63  ;;  %v1428_v25 = vrot.slane %v1396_v23, 4  ;;  %v2625_v4 = vrot.slane %v2593_v33, 5  ;;  %v1713_v13 = vmul.f32 %v10300_v10, %v13075_v53 }
 0x279   :  { %v13460_v39 = vpop.f32.mrf.mxu0  ;;  %9731 = vmatprep.subr.mxu1 %v15112_v1  ;;  %v2991_v5 = vsel %vm563_vm7, %v2899_v55, 0.0  ;;  %v2164_v21 = vrot.slane %v2132_v56, 5  ;;  %v1729_v15 = vmul.f32 %v10302_v0, %v13127_v61  ;;  %v2356_v33 = vmul.f32 %v13473_v51, %v13473_v51  ;;  %v897_v61 = vld [vmem:[#allocation2 + $0x268] sm:$0x3] }
 0x27a   :  { %9732 = vmatpush3.msra.mxu1 %v15112_v1  ;;  %v2992_v63 = vrot.slane %v2991_v5, 4  ;;  %v660_v30 = vrot.slane %v659_v60, 1  ;;  %v1538_v48 = vsel %vm563_vm7, %v1428_v25, 0.0  ;;  %v3424_v0 = vrot.slane %v13452_v6, 4 }
 0x27b   :  { %v5893_v2 = vpop.f32.mrf.mxu0  ;;  %9733 = vmatprep.subr.mxu1 %v15112_v1  ;;  %v2274_v23 = vsel %vm563_vm7, %v2164_v21, 0.0  ;;  %v1761_v55 = vrot.slane %v1729_v15, 3  ;;  %v985_v10 = vsub.f32 %v889_v57, %v945_v22  ;;  %v1539_v25 = vrot.slane %v1538_v48, 4 }
 0x27c   :  { %9734 = vmatpush3.msra.mxu1 %v15112_v1  ;;  %v2717_v2 = vsel %vm563_vm7, %v2625_v4, 0.0  ;;  %v2993_v35 = vadd.f32 %v2992_v63, %v2991_v5  ;;  %v13488_v53 = vadd.f32 %v660_v30, %v659_v60  ;;  %v2275_v4 = vrot.slane %v2274_v23, 4 }
 0x27d   :  { %9735 = vmatprep.subr.mxu1 %v15112_v1  ;;  %v2718_v56 = vrot.slane %v2717_v2, 4  ;;  %v1793_v21 = vsub.f32 %v1713_v13, %v1761_v55  ;;  %v3472_v60 = vrot.slane %v13464_v38, 3  ;;  %v4094_v5 = vsel %vm15221_vm11, %v4078_v26, %v3750_v54 }
 0x27e   :  { %9736 = vmatpush3.msra.mxu1 %v15112_v1  ;;  %v2994_v42 = vrot.slane %v2993_v35, 2  ;;  %10305 = vrsqrt.f32 %v13488_v53  ;;  %v993_v6 = vsub.f32 %v897_v61, %v945_v22  ;;  %v2450_v15 = vsel %vm563_vm7, %v2356_v33, 0.0 }
 0x27f   :  { %9737 = vmatprep.subr.mxu1 %v15112_v1  ;;  %v2719_v58 = vadd.f32 %v2718_v56, %v2717_v2  ;;  %v1809_v63 = vmul.f32 %v1793_v21, %v1793_v21  ;;  %v1540_v57 = vadd.f32 %v1539_v25, %v1538_v48  ;;  %vm2054_vm10 = vcmp.eq.f32.partialorder %v13422_v8, inf }
 0x280   :  { %9738 = vmatpush3.msra.mxu1 %v15112_v1  ;;  %v2995_v13 = vadd.f32 %v2994_v42, %v2993_v35  ;;  %v2057_v55 = vand.u32 2147483648, %v13422_v8  ;;  %v13506_v38 = vsub.f32 %v13402_v34, %v13428_v59  ;;  %v2276_v54 = vadd.f32 %v2275_v4, %v2274_v23 }
 0x281   :  { %7016 = vmatprep.subr.mxu1 %v15117_v19  ;;  %v2720_v30 = vrot.slane %v2719_v58, 2  ;;  %vm2056_vm13 = vcmp.eq.f32.partialorder %v13422_v8, 0.0  ;;  %v1841_v27 = vrot.slane %v1809_v63, 1  ;;  %v1017_v22 = vand.u32 2147483647, %v985_v10 }
 0x282   :  { %v10304_v2 = vpop.eup %10303  ;;  %v1025_v33 = vand.u32 2147483647, %v993_v6  ;;  %v1541_v56 = vrot.slane %v1540_v57, 2  ;;  %v2277_v42 = vrot.slane %v2276_v54, 2  ;;  %v2451_v35 = vrot.slane %v2450_v15, 4 }
 0x283   :  { %v2053_v26 = vmul.f32 %v10304_v2, %v13422_v8  ;;  %v1933_v61 = vsel %vm563_vm7, %v1841_v27, 0.0  ;;  %v2721_v25 = vadd.f32 %v2720_v30, %v2719_v58  ;;  %v2996_v21 = vrot.slane %v2995_v13, 1 }
 0x284   :  { %v1934_v34 = vrot.slane %v1933_v61, 4  ;;  %v15222_v23 = vrot.slane %v12966_v24, %v11159_v49  ;;  %v1542_v2 = vadd.f32 %v1541_v56, %v1540_v57  ;;  %v9516_v10 = vadd.f32 %v13393_v14, %v13376_v50 }
 0x285   :  { %v2055_v48 = vsel %vm2054_vm10, %v13422_v8, %v2053_v26  ;;  %v1100_v63 = vrot.slane %v1017_v22, 7  ;;  %v2278_v8 = vadd.f32 %v2277_v42, %v2276_v54  ;;  %v2722_v7 = vrot.slane %v2721_v25, 1 }
 0x286   :  { %v2058_v31 = vsel %vm2056_vm13, %v2057_v55, %v2055_v48  ;;  %v4110_v4 = vsel %vm563_vm7, %v4094_v5, %v15222_v23  ;;  %v1935_v58 = vadd.f32 %v1934_v34, %v1933_v61  ;;  %v1543_v30 = vrot.slane %v1542_v2, 1 }
 0x287   :  { %v3995_v6 = vsel %vm563_vm7, %v13383_v41, %v2058_v31  ;;  %v2452_v55 = vadd.f32 %v2451_v35, %v2450_v15  ;;  %v2997_v5 = vadd.f32 %v2996_v21, %v2995_v13  ;;  %v1101_v57 = vrot.slane %v1025_v33, 7 }
 0x288   :  { %v4012_v26 = vsel %vm15223_vm14, %v3995_v6, %v3424_v0  ;;  %v1936_v14 = vrot.slane %v1935_v58, 2  ;;  %v15226_v31 = vrot.slane %v12944_v32, %v11159_v49  ;;  %v13530_v0 = vadd.f32 %v1543_v30, %v1542_v2  ;;  %vm15235_vm14 = vmmov %vm15227_vm2 }
 0x289   :  { %v4029_v48 = vsel %vm15224_vm1, %v4012_v26, %v3472_v60  ;;  %v5730_v15 = vadd.f32 %v9516_v10, %v13303_v37  ;;  %v15228_v60 = vrot.slane %v13314_v40, 1  ;;  %v15087_v22 = vand.u32 4294901760, %v13506_v38 }
 0x28a   :  { %v13521_v27 = vpop.f32.mrf.mxu1  ;;  %v4046_v50 = vsel %vm15225_vm0, %v4029_v48, %v13232_v16  ;;  %v4126_v41 = vsel %vm15227_vm2, %v4110_v4, %v15226_v31  ;;  %v2279_v33 = vrot.slane %v2278_v8, 1  ;;  %v1937_v61 = vadd.f32 %v1936_v14, %v1935_v58  ;;  %v13565_v31 = vld [vmem:[#allocation2 + $0x220] sm:$0xe]  ;;  %vm15236_vm0 = vmmov %vm15230_vm5 }
 0x28b   :  { %v9549_v56 = vpop.f32.mrf.mxu0  ;;  %v4063_v13 = vsel %vm15229_vm3, %v4046_v50, %v15228_v60  ;;  %v10306_v42 = vpop.eup %10305  ;;  %10307 = vrsqrt.f32 %v13530_v0  ;;  %v2453_v21 = vrot.slane %v2452_v55, 2  ;;  %v2723_v23 = vadd.f32 %v2722_v7, %v2721_v25  ;;  %v3078_v25 = vld [vmem:[#allocation2 + $0x2e8] sm:$0xff] }
 0x28c   :  { %v6059_v54 = vpop.f32.mrf.mxu1  ;;  %v13537_v35 = vand.u32 4294901760, %v4063_v13  ;;  %v3043_v4 = vsub.f32 1.0, %v2997_v5  ;;  %v1102_v37 = vsel %vm15230_vm5, %v1100_v63, %v1101_v57  ;;  %v1938_v40 = vrot.slane %v1937_v61, 1  ;;  %v3094_v63 = vld [vmem:[#allocation2 + $0x328] sm:$0xff] }
 0x28d   :  { %v9550_v16 = vpop.f32.mrf.mxu0  ;;  %v13545_v6 = vand.u32 4294901760, %v4126_v41  ;;  %v768_v26 = vmul.f32 %v10306_v42, %v13488_v53  ;;  %v5809_v58 = vadd.f32 %v13326_v44, %v5730_v15  ;;  %vm769_vm6 = vcmp.eq.f32.partialorder %v13488_v53, inf }
 0x28e   :  { %v9551_v34 = vadd.f32 %v9550_v16, %v9549_v56  ;;  %6802 = vmatprep.mubr.f32.mxu0 %v13537_v35  ;;  %v13543_v10 = vsub.f32 %v4063_v13, %v13537_v35  ;;  %v2280_v7 = vadd.f32 %v2279_v33, %v2278_v8  ;;  %v13551_v48 = vadd.f32 %v1938_v40, %v1937_v61  ;;  %v3110_v33 = vld [vmem:[#allocation2 + $0x368] sm:$0xff] }
 0x28f   :  { %v9552_v2 = vpop.f32.mrf.mxu0  ;;  %v13555_v57 = vsel %vm563_vm7, %v1102_v37, 0.0  ;;  %v2454_v56 = vadd.f32 %v2453_v21, %v2452_v55  ;;  %v13559_v44 = vmul.f32 %v13399_v45, %v2723_v23  ;;  %v772_v8 = vand.u32 2147483648, %v13488_v53  ;;  %v13580_v23 = vld [vmem:[#allocation2 + $0x220] sm:$0x70] }
 0x290   :  { %v5968_v30 = vadd.f32 %v9551_v34, %v13418_v52  ;;  %v15085_v5 = vand.u32 4294901760, %v13543_v10  ;;  %v13562_v52 = vmul.f32 %v3043_v4, %v13399_v45  ;;  %10309 = vrsqrt.f32 %v13551_v48  ;;  %v888_v34 = vld [vmem:[#allocation2 + $0x220] sm:$0x80] }
 0x291   :  { %v9553_v50 = vpop.f32.mrf.mxu0  ;;  %v770_v15 = vsel %vm769_vm6, %v13488_v53, %v768_v26  ;;  %vm771_vm8 = vcmp.eq.f32.partialorder %v13488_v53, 0.0  ;;  %v3126_v55 = vadd.f32 %v3094_v63, %v3078_v25  ;;  %v5892_v54 = vadd.f32 %v13460_v39, %v5809_v58 }
 0x292   :  { %v6051_v14 = vadd.f32 %v13410_v43, %v5968_v30  ;;  %v6709_v43 = vsub.f32 %v13543_v10, %v15085_v5  ;;  %v13575_v60 = vsub.f32 %v4126_v41, %v13545_v6  ;;  %v2308_v13 = vmax.f32 %v2280_v7, 1e-24  ;;  %v896_v30 = vld [vmem:[#allocation2 + $0x260] sm:$0x3] }
 0x293   :  { %v9554_v42 = vadd.f32 %v9553_v50, %v9552_v2  ;;  %v1217_v16 = vrot.slane %v13555_v57, 4  ;;  %v2455_v61 = vrot.slane %v2454_v56, 1  ;;  %v511_v21 = vmul.f32 %v13565_v31, %v13565_v31 }
 0x294   :  { %v3423_v39 = vrot.slane %v13559_v44, 4  ;;  %v3471_v4 = vrot.slane %v13562_v52, 3  ;;  %v6710_v37 = vand.u32 4294901760, %v6709_v43  ;;  %v13586_v41 = vsel %vm771_vm8, %v772_v8, %v770_v15 }
 0x295   :  { %vm1652_vm15 = vcmp.eq.f32.partialorder %v13530_v0, inf  ;;  %v2456_v2 = vadd.f32 %v2455_v61, %v2454_v56  ;;  %v13589_v26 = vadd.f32 %v3126_v55, %v3110_v33  ;;  %v543_v58 = vrot.slane %v511_v21, 1 }
 0x296   :  { %6711 = vmatprep.mubr.f32.mxu1 %v6710_v37  ;;  %vm1654_vm12 = vcmp.eq.f32.partialorder %v13530_v0, 0.0  ;;  %10311 = vrsqrt.f32 %v2308_v13  ;;  %v15231_v7 = vrot.slane %v13458_v9, 3  ;;  %v1395_v53 = vmul.f32 %v13580_v23, %v13580_v23  ;;  %v13601_v37 = vld [vmem:[#allocation2 + $0x260] sm:$0xe0] }
 0x297   :  { %v9587_v40 = vpop.f32.mrf.mxu1  ;;  %v5979_v63 = vadd.f32 %v9554_v42, %v5892_v54  ;;  %v1364_v8 = vadd.f32 1e-06, %v13586_v41  ;;  %v2484_v15 = vmax.f32 %v2456_v2, 1e-24  ;;  %v648_v56 = vsel %vm563_vm7, %v543_v58, 0.0 }
 0x298   :  { %v984_v25 = vsub.f32 %v888_v34, %v15231_v7  ;;  %v10308_v55 = vpop.eup %10307  ;;  %v1655_v33 = vand.u32 2147483648, %v13530_v0  ;;  %v649_v61 = vrot.slane %v648_v56, 4  ;;  %v15232_v13 = vmov %v15231_v7 }
 0x299   :  { %v9588_v50 = vpop.f32.mrf.mxu1  ;;  %v992_v21 = vsub.f32 %v896_v30, %v15232_v13  ;;  %vm2047_vm4 = vcmp.eq.f32.partialorder %v13551_v48, inf  ;;  %v1651_v54 = vmul.f32 %v10308_v55, %v13530_v0  ;;  %10313 = vrsqrt.f32 %v2484_v15 }
 0x29a   :  { %v9589_v43 = vadd.f32 %v9588_v50, %v9587_v40  ;;  %v3158_v42 = vand.u32 2147483647, %v13589_v26  ;;  %v650_v58 = vadd.f32 %v649_v61, %v648_v56  ;;  %v1016_v40 = vand.u32 2147483647, %v984_v25  ;;  %v13623_v61 = vld [vmem:[#allocation2 + $0x2a0] sm:$0x7] }
 0x29b   :  { %v9590_v34 = vpop.f32.mrf.mxu1  ;;  %v1427_v7 = vrot.slane %v1395_v53, 4  ;;  %v6058_v50 = vadd.f32 %v13521_v27, %v5979_v63  ;;  %10315 = vrcp.f32 %v1364_v8  ;;  %v1653_v9 = vsel %vm1652_vm15, %v13530_v0, %v1651_v54 }
 0x29c   :  { %v13606_v2 = vadd.f32 %v9589_v43, %v6051_v14  ;;  %v2131_v30 = vmul.f32 %v13601_v37, %v13601_v37  ;;  %v1656_v26 = vsel %vm1654_vm12, %v1655_v33, %v1653_v9  ;;  %v651_v14 = vrot.slane %v650_v58, 2 }
 0x29d   :  { %v9591_v5 = vpop.f32.mrf.mxu1  ;;  %v1024_v15 = vand.u32 2147483647, %v992_v21  ;;  %vm2049_vm11 = vcmp.eq.f32.partialorder %v13551_v48, 0.0  ;;  %v2050_v25 = vand.u32 2147483648, %v13551_v48  ;;  %v1684_v27 = vadd.f32 1e-06, %v1656_v26  ;;  %v10310_v63 = vpop.eup %10309 }
 0x29e   :  { %v9592_v55 = vadd.f32 %v9591_v5, %v9590_v34  ;;  %v1531_v53 = vsel %vm563_vm7, %v1427_v7, 0.0  ;;  %vm13619_vm10 = vweird.f32 %v3158_v42  ;;  %v652_v43 = vadd.f32 %v651_v14, %v650_v58 }
 0x29f   :  { %v1097_v5 = vrot.slane %v1016_v40, 7  ;;  %v2046_v0 = vmul.f32 %v10310_v63, %v13551_v48  ;;  %10317 = vrcp.f32 %v1684_v27  ;;  %v1532_v33 = vrot.slane %v1531_v53, 4  ;;  %vm3190_vm13 = vmxor %vm13619_vm10, %vm15173_vm9 }
 0x2a0   :  { %v6137_v8 = vadd.f32 %v9592_v55, %v6058_v50  ;;  %v2163_v13 = vrot.slane %v2131_v30, 5  ;;  %v1098_v7 = vrot.slane %v1024_v15, 7  ;;  %v653_v55 = vrot.slane %v652_v43, 1 }
 0x2a1   :  { %v2048_v50 = vsel %vm2047_vm4, %v13551_v48, %v2046_v0  ;;  %v2355_v58 = vmul.f32 %v13623_v61, %v13623_v61  ;;  %v13636_v30 = vsub.f32 %v13506_v38, %v15087_v22  ;;  %v1533_v26 = vadd.f32 %v1532_v33, %v1531_v53  ;;  %v3109_v22 = vld [vmem:[#allocation2 + $0x360] sm:$0xff] }
 0x2a2   :  { %10051 = vpush %v6137_v8  ;;  %v8278_v21 = vrot.slane %v6137_v8, 1  ;;  %v8280_v34 = vrot.slane %v6137_v8, 2  ;;  %v8282_v54 = vrot.slane %v6137_v8, 3  ;;  %v8284_v9 = vrot.slane %v6137_v8, 4 }
 0x2a3   :  { %v2051_v40 = vsel %vm2049_vm11, %v2050_v25, %v2048_v50  ;;  %v2267_v14 = vsel %vm563_vm7, %v2163_v13, 0.0  ;;  %v10312_v15 = vpop.eup %10311  ;;  %v3519_v27 = vrot.slane %v13470_v18, 1  ;;  %v15086_v8 = vand.u32 4294901760, %v13575_v60 }
 0x2a4   :  { %10053 = vpush %v8278_v21  ;;  %v3994_v63 = vsel %vm563_vm7, %v13438_v28, %v2051_v40  ;;  %v13646_v48 = vadd.f32 %v653_v55, %v652_v43  ;;  %v1218_v18 = vadd.f32 %v1217_v16, %v13555_v57  ;;  %v1534_v53 = vrot.slane %v1533_v26, 2 }
 0x2a5   :  { %10055 = vpush %v8280_v34  ;;  %v4011_v25 = vsel %vm15235_vm14, %v3994_v63, %v3423_v39  ;;  %v2268_v0 = vrot.slane %v2267_v14, 4  ;;  %v1099_v56 = vsel %vm15236_vm0, %v1097_v5, %v1098_v7  ;;  %v2443_v43 = vsel %vm563_vm7, %v2355_v58, 0.0  ;;  %vm15244_vm14 = vmmov %vm15236_vm0 }
 0x2a6   :  { %10057 = vpush %v8282_v54  ;;  %v4028_v28 = vsel %vm15224_vm1, %v4011_v25, %v3471_v4  ;;  %10319 = vrsqrt.f32 %v13646_v48  ;;  %v10314_v44 = vpop.eup %10313  ;;  %vm15237_vm2 = vcmask 1045504   ;;  %v6725_v33 = vand.u32 4294901760, %v13636_v30 }
 0x2a7   :  { %10059 = vpush %v8284_v9  ;;  %v4045_v39 = vsel %vm15237_vm2, %v4028_v28, %v13399_v45  ;;  %v3206_v57 = vsel %vm3190_vm13, %v3158_v42, 0.0  ;;  %v2340_v13 = vmul.f32 %v10312_v15, %v13443_v12  ;;  %v2516_v52 = vmul.f32 %v10314_v44, %v13473_v51  ;;  %v3077_v44 = vld [vmem:[#allocation2 + $0x2e0] sm:$0xff]  ;;  %vm15248_vm2 = vmmov %vm15244_vm14 }
 0x2a8   :  { %v4062_v16 = vsel %vm15229_vm3, %v4045_v39, %v3519_v27  ;;  %v1535_v4 = vadd.f32 %v1534_v53, %v1533_v26  ;;  %v10316_v21 = vpop.eup %10315  ;;  %v1209_v5 = vsel %vm563_vm7, %v1099_v56, 0.0  ;;  %v2269_v54 = vadd.f32 %v2268_v0, %v2267_v14  ;;  %v3093_v39 = vld [vmem:[#allocation2 + $0x320] sm:$0xff]  ;;  %vm15249_vm3 = vmmov %vm15248_vm2 }
 0x2a9   :  { %v13666_v34 = vand.u32 4294901760, %v4062_v16  ;;  %v2444_v7 = vrot.slane %v2443_v43, 4  ;;  %v13672_v45 = vsub.f32 %v13575_v60, %v15086_v8  ;;  %v1219_v42 = vrot.slane %v1218_v18, 2 }
 0x2aa   :  { %v2548_v9 = vrot.slane %v2516_v52, 3  ;;  %v1536_v50 = vrot.slane %v1535_v4, 1  ;;  %v3287_v51 = vrot.slane %v3206_v57, 4  ;;  %v2270_v55 = vrot.slane %v2269_v54, 2 }
 0x2ab   :  { %v13675_v12 = vsub.f32 %v4062_v16, %v13666_v34  ;;  %6804 = vmatmul.mubr.f32.vlgmr.msra.gmra.mxu0 %v13666_v34  ;;  %v2445_v58 = vadd.f32 %v2444_v7, %v2443_v43  ;;  %v1210_v14 = vrot.slane %v1209_v5, 4  ;;  %v1716_v25 = vmul.f32 %v10316_v21, %v13348_v36 }
 0x2ac   :  { %6809 = vmatprep.mubr.f32.mxu0 %v13428_v59  ;;  %6847 = vmatpush1.msra.mxu0 %v15117_v19  ;;  %v2580_v40 = vsub.f32 %v2340_v13, %v2548_v9  ;;  %v2870_v26 = vmul.f32 %v2548_v9, %v2340_v13  ;;  %v13680_v15 = vadd.f32 %v1536_v50, %v1535_v4  ;;  %v10318_v27 = vpop.eup %10317  ;;  %v9126_v13 = vadd.f32 -1.0, %v13586_v41 }
 0x2ad   :  { %v6714_v63 = vand.u32 4294901760, %v13675_v12  ;;  %9745 = vmatprep.subr.mxu0 %v15112_v1  ;;  %v2271_v53 = vadd.f32 %v2270_v55, %v2269_v54  ;;  %v2446_v0 = vrot.slane %v2445_v58, 2  ;;  %v1732_v28 = vmul.f32 %v10318_v27, %v13432_v11 }
 0x2ae   :  { %v2596_v56 = vand.u32 2147483647, %v2580_v40  ;;  %v2902_v43 = vrot.slane %v2870_v26, 5  ;;  %10321 = vrsqrt.f32 %v13680_v15  ;;  %v1220_v52 = vadd.f32 %v1219_v42, %v1218_v18 }
 0x2af   :  { %v6715_v16 = vsub.f32 %v13675_v12, %v6714_v63  ;;  %6811 = vmatmul.mubr.f32.gmra.mxu0 %v13545_v6  ;;  %v3288_v36 = vadd.f32 %v3287_v51, %v3206_v57  ;;  %v1764_v4 = vrot.slane %v1732_v28, 3  ;;  %v2272_v54 = vrot.slane %v2271_v53, 1 }
 0x2b0   :  { %6882 = vmatprep.mubr.f32.mxu0 %v13543_v10  ;;  %v2628_v11 = vrot.slane %v2596_v56, 5  ;;  %v3012_v21 = vsel %vm563_vm7, %v2902_v43, 0.0  ;;  %v2447_v50 = vadd.f32 %v2446_v0, %v2445_v58  ;;  %v3125_v55 = vadd.f32 %v3093_v39, %v3077_v44 }
 0x2b1   :  { %v6716_v7 = vand.u32 4294901760, %v6715_v16  ;;  %v3013_v9 = vrot.slane %v3012_v21, 4  ;;  %v1796_v40 = vsub.f32 %v1716_v25, %v1764_v4  ;;  %v1211_v27 = vadd.f32 %v1210_v14, %v1209_v5 }
 0x2b2   :  { %v2738_v26 = vsel %vm563_vm7, %v2628_v11, 0.0  ;;  %v2273_v8 = vadd.f32 %v2272_v54, %v2271_v53  ;;  %v6731_v18 = vand.u32 4294901760, %v13672_v45  ;;  %vm762_vm5 = vcmp.eq.f32.partialorder %v13646_v48, inf }
 0x2b3   :  { %v10320_v41 = vpop.eup %10319  ;;  %6717 = vmatmul.mubr.f32.vlgmr.msra.gmra.mxu1 %v6716_v7  ;;  %6885 = vmatmul.mubr.f32.vlgmr.msra.gmra.mxu0 %v13675_v12  ;;  %v2739_v57 = vrot.slane %v2738_v26, 4  ;;  %v2448_v42 = vrot.slane %v2447_v50, 1  ;;  %v1812_v51 = vmul.f32 %v1796_v40, %v1796_v40  ;;  %v3014_v58 = vadd.f32 %v3013_v9, %v3012_v21 }
 0x2b4   :  { %6726 = vmatprep.mubr.f32.mxu1 %v6725_v33  ;;  %9746 = vmatpush3.msra.mxu0 %v15112_v1  ;;  %v761_v5 = vmul.f32 %v10320_v41, %v13646_v48  ;;  %v2307_v14 = vmax.f32 %v2273_v8, 1e-24  ;;  %v13704_v45 = vmul.f32 %v9126_v13, %v9126_v13  ;;  %v1221_v25 = vrot.slane %v1220_v52, 1 }
 0x2b5   :  { %9747 = vmatprep.subr.mxu0 %v15112_v1  ;;  %7017 = vmatpush1.msra.mxu1 %v15117_v19  ;;  %v2449_v53 = vadd.f32 %v2448_v42, %v2447_v50  ;;  %v13706_v0 = vadd.f32 %v3125_v55, %v3109_v22  ;;  %v1844_v30 = vrot.slane %v1812_v51, 1  ;;  %v3289_v33 = vrot.slane %v3288_v36, 2 }
 0x2b6   :  { %9748 = vmatpush3.msra.mxu0 %v15112_v1  ;;  %9783 = vmatprep.subr.mxu1 %v15112_v1  ;;  %v765_v28 = vand.u32 2147483648, %v13646_v48  ;;  %v1212_v56 = vrot.slane %v1211_v27, 2  ;;  %v763_v8 = vsel %vm762_vm5, %v13646_v48, %v761_v5  ;;  %vm764_vm6 = vcmp.eq.f32.partialorder %v13646_v48, 0.0 }
 0x2b7   :  { %6732 = vmatmul.mubr.f32.gmra.mxu1 %v6731_v18  ;;  %9749 = vmatprep.subr.mxu0 %v15112_v1  ;;  %10323 = vrsqrt.f32 %v2307_v14  ;;  %v2483_v22 = vmax.f32 %v2449_v53, 1e-24  ;;  %v1954_v43 = vsel %vm563_vm7, %v1844_v30, 0.0  ;;  %v2740_v44 = vadd.f32 %v2739_v57, %v2738_v26 }
 0x2b8   :  { %7051 = vmatprep.mubr.f32.mxu1 %v13537_v35  ;;  %9750 = vmatpush3.msra.mxu0 %v15112_v1  ;;  %v3015_v39 = vrot.slane %v3014_v58, 2  ;;  %v13723_v16 = vrot.slane %v12797_v46, %v11544_v47  ;;  %v1955_v13 = vrot.slane %v1954_v43, 4  ;;  %v3157_v4 = vand.u32 2147483647, %v13706_v0  ;;  %v13851_v0 = vld [vmem:[#allocation2 + $0x238] sm:$0x70] }
 0x2b9   :  { %9751 = vmatprep.subr.mxu0 %v15112_v1  ;;  %6891 = vmatprep.mubr.f32.mxu0 %v13506_v38  ;;  %10325 = vrsqrt.f32 %v2483_v22  ;;  %v1222_v11 = vadd.f32 %v1221_v25, %v1220_v52  ;;  %v3290_v21 = vadd.f32 %v3289_v33, %v3288_v36  ;;  %v766_v54 = vsel %vm764_vm6, %v765_v28, %v763_v8 }
 0x2ba   :  { %9752 = vmatpush3.msra.mxu0 %v15112_v1  ;;  %v1213_v7 = vadd.f32 %v1212_v56, %v1211_v27  ;;  %vm833_vm8 = vweird.f32 %v13704_v45  ;;  %v1956_v50 = vadd.f32 %v1955_v13, %v1954_v43  ;;  %vm1645_vm15 = vcmp.eq.f32.partialorder %v13680_v15, inf }
 0x2bb   :  { %v10322_v9 = vpop.eup %10321  ;;  %7053 = vmatmul.mubr.f32.vlgmr.msra.gmra.mxu1 %v13666_v34  ;;  %9753 = vmatprep.subr.mxu0 %v15112_v1  ;;  %vm1647_vm12 = vcmp.eq.f32.partialorder %v13680_v15, 0.0  ;;  %v2741_v52 = vrot.slane %v2740_v44, 2  ;;  %v3016_v48 = vadd.f32 %v3015_v39, %v3014_v58  ;;  %v1648_v55 = vand.u32 2147483648, %v13680_v15  ;;  %vm13755_vm11 = vmxor %vm833_vm8, %vm15173_vm9 }
 0x2bc   :  { %9784 = vmatpush3.msra.mxu1 %v15112_v1  ;;  %9754 = vmatpush3.msra.mxu0 %v15112_v1  ;;  %v1644_v36 = vmul.f32 %v10322_v9, %v13680_v15  ;;  %v1957_v40 = vrot.slane %v1956_v50, 2  ;;  %v9125_v26 = vadd.f32 -1.0, %v766_v54  ;;  %v1363_v27 = vadd.f32 1e-06, %v766_v54 }
 0x2bd   :  { %9785 = vmatprep.subr.mxu1 %v15112_v1  ;;  %9755 = vmatprep.subr.mxu0 %v15112_v1  ;;  %vm13740_vm4 = vweird.f32 %v3157_v4  ;;  %v1332_v18 = vmul.f32 %v13723_v16, %v1222_v11  ;;  %v3291_v57 = vrot.slane %v3290_v21, 1  ;;  %v1214_v42 = vrot.slane %v1213_v7, 1 }
 0x2be   :  { %9786 = vmatpush3.msra.mxu1 %v15112_v1  ;;  %9756 = vmatpush3.msra.mxu0 %v15112_v1  ;;  %v1646_v51 = vsel %vm1645_vm15, %v13680_v15, %v1644_v36  ;;  %v1958_v5 = vadd.f32 %v1957_v40, %v1956_v50  ;;  %v2742_v14 = vadd.f32 %v2741_v52, %v2740_v44  ;;  %v3017_v25 = vrot.slane %v3016_v48, 1  ;;  %vm13766_vm10 = vmxor %vm13740_vm4, %vm15173_vm9  ;;  %v13802_v50 = vld [vmem:[#allocation2 + $0x238] sm:$0xe] }
 0x2bf   :  { %9787 = vmatprep.subr.mxu1 %v15112_v1  ;;  %9757 = vmatprep.subr.mxu0 %v15112_v1  ;;  %v1649_v53 = vsel %vm1647_vm12, %v1648_v55, %v1646_v51  ;;  %v13772_v33 = vmul.f32 %v9125_v26, %v9125_v26  ;;  %10327 = vrcp.f32 %v1363_v27  ;;  %v3292_v15 = vadd.f32 %v3291_v57, %v3290_v21  ;;  %vm15253_vm12 = vmmov %vm15248_vm2 }
 0x2c0   :  { %9788 = vmatpush3.msra.mxu1 %v15112_v1  ;;  %9758 = vmatpush3.msra.mxu0 %v15112_v1  ;;  %v1959_v30 = vrot.slane %v1958_v5, 1  ;;  %v1683_v28 = vadd.f32 1e-06, %v1649_v53  ;;  %v3378_v56 = vrot.slane %v1332_v18, 7  ;;  %v1215_v8 = vadd.f32 %v1214_v42, %v1213_v7 }
 0x2c1   :  { %9789 = vmatprep.subr.mxu1 %v15112_v1  ;;  %9759 = vmatprep.subr.mxu0 %v15112_v1  ;;  %v13778_v22 = vrot.slane %v12797_v46, %v11649_v20  ;;  %v865_v43 = vsel %vm13755_vm11, %v13704_v45, 0.0  ;;  %v3205_v39 = vsel %vm13766_vm10, %v3157_v4, 0.0  ;;  %v2743_v11 = vrot.slane %v2742_v14, 1 }
 0x2c2   :  { %9790 = vmatpush3.msra.mxu1 %v15112_v1  ;;  %9760 = vmatpush3.msra.mxu0 %v15112_v1  ;;  %v13785_v44 = vadd.f32 %v1959_v30, %v1958_v5  ;;  %10329 = vrcp.f32 %v1683_v28  ;;  %v3018_v21 = vadd.f32 %v3017_v25, %v3016_v48  ;;  %vm832_vm13 = vweird.f32 %v13772_v33  ;;  %v13842_v5 = vld [vmem:[#allocation2 + $0x278] sm:$0x1c] }
 0x2c3   :  { %9791 = vmatprep.subr.mxu1 %v15112_v1  ;;  %9761 = vmatprep.subr.mxu0 %v15112_v1  ;;  %v13798_v4 = vmul.f32 %v3292_v15, %v13723_v16  ;;  %v3964_v54 = vsel %vm15244_vm14, %v865_v43, %v3378_v56  ;;  %v1331_v7 = vmul.f32 %v13778_v22, %v1215_v8  ;;  %v3281_v9 = vrot.slane %v3205_v39, 4  ;;  %vm13817_vm1 = vmxor %vm832_vm13, %vm15173_vm9 }
 0x2c4   :  { %v10324_v13 = vpop.eup %10323  ;;  %9792 = vmatpush3.msra.mxu1 %v15112_v1  ;;  %9762 = vmatpush3.msra.mxu0 %v15112_v1  ;;  %10331 = vrsqrt.f32 %v13785_v44  ;;  %v13808_v52 = vrot.slane %v12886_v17, %v11544_v47  ;;  %v2744_v55 = vadd.f32 %v2743_v11, %v2742_v14  ;;  %v3046_v40 = vsub.f32 1.0, %v3018_v21 }
 0x2c5   :  { %9793 = vmatprep.subr.mxu1 %v15112_v1  ;;  %9763 = vmatprep.subr.mxu0 %v15112_v1  ;;  %v2339_v48 = vmul.f32 %v10324_v13, %v13601_v37  ;;  %v3598_v27 = vrot.slane %v12938_v29, %v11544_v47  ;;  %v3680_v37 = vrot.slane %v12919_v3, %v11544_v47  ;;  %vm15247_vm0 = vcmask 1041408  }
 0x2c6   :  { %v10326_v45 = vpop.eup %10325  ;;  %9794 = vmatpush3.msra.mxu1 %v15112_v1  ;;  %9764 = vmatpush3.msra.mxu0 %v15112_v1  ;;  %v514_v18 = vmul.f32 %v13802_v50, %v13802_v50  ;;  %v3522_v57 = vrot.slane %v13798_v4, 1  ;;  %v13838_v42 = vrot.slane %v12886_v17, %v11649_v20  ;;  %v13840_v51 = vadd.f32 %v3281_v9, %v3205_v39  ;;  %vm15250_vm5 = vmmov %vm15247_vm0 }
 0x2c7   :  { %9795 = vmatprep.subr.mxu1 %v15112_v1  ;;  %9765 = vmatprep.subr.mxu0 %v15112_v1  ;;  %v2515_v36 = vmul.f32 %v10326_v45, %v13623_v61  ;;  %v13829_v61 = vsel %vm15247_vm0, %v3964_v54, %v13723_v16  ;;  %v3377_v58 = vrot.slane %v1331_v7, 7  ;;  %v864_v16 = vsel %vm13817_vm1, %v13772_v33, 0.0  ;;  %vm15251_vm15 = vmmov %vm15247_vm0 }
 0x2c8   :  { %9796 = vmatpush3.msra.mxu1 %v15112_v1  ;;  %9766 = vmatpush3.msra.mxu0 %v15112_v1  ;;  %v3762_v53 = vrot.slane %v12867_v62, %v11544_v47  ;;  %v13856_v30 = vmul.f32 %v13808_v52, %v2744_v55  ;;  %v13859_v28 = vmul.f32 %v3046_v40, %v13808_v52  ;;  %v546_v33 = vrot.slane %v514_v18, 1  ;;  %vm15258_vm14 = vmmov %vm15247_vm0 }
 0x2c9   :  { %9797 = vmatprep.subr.mxu1 %v15112_v1  ;;  %9767 = vmatprep.subr.mxu0 %v15112_v1  ;;  %v2547_v41 = vrot.slane %v2515_v36, 3  ;;  %v4081_v15 = vsel %vm15248_vm2, %v3598_v27, %v3680_v37  ;;  %v3844_v8 = vrot.slane %v12966_v24, %v11544_v47  ;;  %v3926_v43 = vrot.slane %v12944_v32, %v11544_v47 }
 0x2ca   :  { %9798 = vmatpush3.msra.mxu1 %v15112_v1  ;;  %9768 = vmatpush3.msra.mxu0 %v15112_v1  ;;  %v947_v39 = vrot.slane %v13842_v5, 3  ;;  %v3283_v11 = vrot.slane %v13840_v51, 2  ;;  %v3594_v21 = vrot.slane %v12938_v29, %v11649_v20  ;;  %v669_v45 = vsel %vm563_vm7, %v546_v33, 0.0  ;;  %v13905_v33 = vld [vmem:[#allocation2 + $0x278] sm:$0xe0] }
 0x2cb   :  { %9799 = vmatprep.subr.mxu1 %v15112_v1  ;;  %9769 = vmatprep.subr.mxu0 %v15112_v1  ;;  %v2579_v14 = vsub.f32 %v2339_v48, %v2547_v41  ;;  %v2869_v25 = vmul.f32 %v2547_v41, %v2339_v48  ;;  %v1398_v54 = vmul.f32 %v13851_v0, %v13851_v0  ;;  %v670_v36 = vrot.slane %v669_v45, 4 }
 0x2cc   :  { %9800 = vmatpush3.msra.mxu1 %v15112_v1  ;;  %9770 = vmatpush3.msra.mxu0 %v15112_v1  ;;  %v10328_v13 = vpop.eup %10327  ;;  %v3963_v9 = vsel %vm15249_vm3, %v864_v16, %v3377_v58  ;;  %v13881_v48 = vsel %vm15250_vm5, %v4081_v15, %v3762_v53  ;;  %v3426_v40 = vrot.slane %v13856_v30, 4  ;;  %v3474_v26 = vrot.slane %v13859_v28, 3 }
 0x2cd   :  { %9801 = vmatprep.subr.mxu1 %v15112_v1  ;;  %9771 = vmatprep.subr.mxu0 %v15112_v1  ;;  %v2595_v56 = vand.u32 2147483647, %v2579_v14  ;;  %v2901_v7 = vrot.slane %v2869_v25, 5  ;;  %v3676_v27 = vrot.slane %v12919_v3, %v11649_v20  ;;  %v1430_v37 = vrot.slane %v1398_v54, 4 }
 0x2ce   :  { %9802 = vmatpush3.msra.mxu1 %v15112_v1  ;;  %9772 = vmatpush3.msra.mxu0 %v15112_v1  ;;  %v1715_v41 = vmul.f32 %v10328_v13, %v13565_v31  ;;  %v671_v16 = vadd.f32 %v670_v36, %v669_v45  ;;  %vm2068_vm6 = vcmp.eq.f32.partialorder %v13785_v44, inf  ;;  %vm2070_vm8 = vcmp.eq.f32.partialorder %v13785_v44, 0.0 }
 0x2cf   :  { %9803 = vmatprep.subr.mxu1 %v15112_v1  ;;  %9773 = vmatprep.subr.mxu0 %v15112_v1  ;;  %v10330_v55 = vpop.eup %10329  ;;  %v2627_v58 = vrot.slane %v2595_v56, 5  ;;  %v2071_v25 = vand.u32 2147483648, %v13785_v44  ;;  %v1552_v53 = vsel %vm563_vm7, %v1430_v37, 0.0  ;;  %v3005_v30 = vsel %vm563_vm7, %v2901_v7, 0.0  ;;  %v899_v37 = vld [vmem:[#allocation2 + $0x278] sm:$0x3] }
 0x2d0   :  { %9804 = vmatpush3.msra.mxu1 %v15112_v1  ;;  %6894 = vmatmul.mubr.f32.gmra.mxu0 %v13575_v60  ;;  %v1731_v18 = vmul.f32 %v10330_v55, %v13580_v23  ;;  %v672_v15 = vrot.slane %v671_v16, 2  ;;  %v13912_v56 = vadd.f32 %v3283_v11, %v13840_v51  ;;  %v13916_v13 = vsel %vm15251_vm15, %v3963_v9, %v13778_v22  ;;  %v891_v55 = vld [vmem:[#allocation2 + $0x238] sm:$0x80] }
 0x2d1   :  { %9805 = vmatprep.subr.mxu1 %v15112_v1  ;;  %9774 = vmatpush3.msra.mxu0 %v15112_v1  ;;  %v10332_v14 = vpop.eup %10331  ;;  %v3758_v45 = vrot.slane %v12867_v62, %v11649_v20  ;;  %v1553_v54 = vrot.slane %v1552_v53, 4  ;;  %v15252_v7 = vand.u32 4294901760, %v13543_v10  ;;  %v2731_v9 = vsel %vm563_vm7, %v2627_v58, 0.0 }
 0x2d2   :  { %9806 = vmatpush3.msra.mxu1 %v15112_v1  ;;  %9775 = vmatprep.subr.mxu0 %v15112_v1  ;;  %v2067_v31 = vmul.f32 %v10332_v14, %v13785_v44  ;;  %v1763_v23 = vrot.slane %v1731_v18, 3  ;;  %v673_v36 = vadd.f32 %v672_v15, %v671_v16  ;;  %v3006_v18 = vrot.slane %v3005_v30, 4 }
 0x2d3   :  { %s13899_s0 = spop %10051  ;;  %9807 = vmatprep.subr.mxu1 %v15112_v1  ;;  %9776 = vmatpush3.msra.mxu0 %v15112_v1  ;;  %v4080_v14 = vsel %vm15253_vm12, %v3594_v21, %v3676_v27  ;;  %v1554_v21 = vadd.f32 %v1553_v54, %v1552_v53  ;;  %vm15254_vm4 = vcmask 1043456   ;;  %vm15255_vm11 = vcmask 1044480  }
 0x2d4   :  { %9808 = vmatpush3.msra.mxu1 %v15112_v1  ;;  %7058 = vmatprep.mubr.f32.mxu1 %v13428_v59  ;;  %v2069_v51 = vsel %vm2068_vm6, %v13785_v44, %v2067_v31  ;;  %v1795_v11 = vsub.f32 %v1715_v41, %v1763_v23  ;;  %v2134_v41 = vmul.f32 %v13905_v33, %v13905_v33  ;;  %v674_v16 = vrot.slane %v673_v36, 1  ;;  %vm15259_vm1 = vmmov %vm15254_vm4 }
 0x2d5   :  { %s13908_s13 = spop %10053  ;;  %9809 = vmatprep.subr.mxu1 %v15112_v1  ;;  %6966 = vmatprep.mubr.f32.mxu0 %v15252_v7  ;;  %v2072_v10 = vsel %vm2070_vm8, %v2071_v25, %v2069_v51  ;;  %v2732_v25 = vrot.slane %v2731_v9, 4  ;;  %v987_v31 = vsub.f32 %v891_v55, %v947_v39  ;;  %v995_v23 = vsub.f32 %v899_v37, %v947_v39  ;;  %v14023_v55 = vld [vmem:[#allocation2 + $0x2b8] sm:$0x7]  ;;  %vm15261_vm0 = vmmov %vm15259_vm1 }
 0x2d6   :  { %s8287_s14 = smul.f32 %s13908_s13, %s13908_s13  ;;  %s8299_s15 = ssub.f32 0.0, %s13908_s13  ;;  %9810 = vmatpush3.msra.mxu1 %v15112_v1  ;;  %9821 = vmatprep.subr.mxu0 %v15112_v1  ;;  %v3997_v58 = vsel %vm563_vm7, %v13829_v61, %v2072_v10  ;;  %v1811_v44 = vmul.f32 %v1795_v11, %v1795_v11  ;;  %v13967_v61 = vadd.f32 %v674_v16, %v673_v36  ;;  %v1555_v5 = vrot.slane %v1554_v21, 2 }
 0x2d7   :  { %s13930_s16 = spop %10055  ;;  %7060 = vmatmul.mubr.f32.gmra.mxu1 %v13545_v6  ;;  %9811 = vmatprep.subr.mxu1 %v15112_v1  ;;  %v4014_v27 = vsel %vm15254_vm4, %v3997_v58, %v3426_v40  ;;  %vm15256_vm10 = vcmask 1045504   ;;  %v3007_v40 = vadd.f32 %v3006_v18, %v3005_v30  ;;  %v4113_v28 = vsel %vm563_vm7, %v13881_v48, %v3844_v8 }
 0x2d8   :  { %s8286_s17 = smul.f32 %s13930_s16, %s13899_s0  ;;  %s13941_s18 = spop %10057  ;;  %6970 = vmatmul.mubr.f32.vlgmr.msra.gmra.mxu0 %v6714_v63  ;;  %9812 = vmatpush3.msra.mxu1 %v15112_v1  ;;  %v4031_v12 = vsel %vm15255_vm11, %v4014_v27, %v3474_v26  ;;  %v1843_v63 = vrot.slane %v1811_v44, 1  ;;  %v2166_v26 = vrot.slane %v2134_v41, 5  ;;  %vm15257_vm13 = vcmask 1046528   ;;  %vm15263_vm11 = vmmov %vm15261_vm0 }
 0x2d9   :  { %s13960_s20 = spop %10059  ;;  %9822 = vmatpush3.msra.mxu0 %v15112_v1  ;;  %9813 = vmatprep.subr.mxu1 %v15112_v1  ;;  %s13972_s21 = smul.f32 %s13941_s18, %s8299_s15  ;;  %v4048_v39 = vsel %vm15256_vm10, %v4031_v12, %v13808_v52  ;;  %v3840_v30 = vrot.slane %v12966_v24, %v11649_v20  ;;  %10333 = vrsqrt.f32 %v13967_v61  ;;  %v1019_v48 = vand.u32 2147483647, %v987_v31  ;;  %v14046_v12 = vld [vmem:[#allocation2 + $0x230] sm:$0xe] }
 0x2da   :  { %s13958_s19 = ssub.f32 %s8286_s17, %s8287_s14  ;;  %9823 = vmatprep.subr.mxu0 %v15112_v1  ;;  %9814 = vmatpush3.msra.mxu1 %v15112_v1  ;;  %v4065_v53 = vsel %vm15257_vm13, %v4048_v39, %v3522_v57  ;;  %v1947_v52 = vsel %vm563_vm7, %v1843_v63, 0.0  ;;  %s8301_s22 = smul.f32 %s13960_s20, %s13899_s0  ;;  %v1027_v4 = vand.u32 2147483647, %v995_v23  ;;  %v2733_v15 = vadd.f32 %v2732_v25, %v2731_v9 }
 0x2db   :  { %7130 = vmatprep.mubr.f32.mxu1 %v13537_v35  ;;  %9824 = vmatpush3.msra.mxu0 %v15112_v1  ;;  %v1948_v8 = vrot.slane %v1947_v52, 4  ;;  %v4096_v35 = vsel %vm15258_vm14, %v4080_v14, %v3758_v45  ;;  %v14003_v57 = vand.u32 4294901760, %v4065_v53  ;;  %v1556_v54 = vadd.f32 %v1555_v5, %v1554_v21  ;;  %s8291_s25 = smul.f32 %s13941_s18, %s13930_s16 }
 0x2dc   :  { %p8289_p5 = scmp.eq.f32.partialorder %s13958_s19, 0.0  ;;  %7132 = vmatmul.mubr.f32.vlgmr.msra.gmra.mxu1 %v13666_v34  ;;  %9825 = vmatprep.subr.mxu0 %v15112_v1  ;;  %v4129_v34 = vsel %vm15259_vm1, %v4113_v28, %v3926_v43  ;;  %v3008_v7 = vrot.slane %v3007_v40, 2  ;;  %v3922_v51 = vrot.slane %v12944_v32, %v11649_v20  ;;  %s14014_s24 = sadd.f32 %s8301_s22, %s13972_s21  ;;  %v4112_v43 = vsel %vm563_vm7, %v4096_v35, %v3840_v30  ;;  %v14053_v28 = vld [vmem:[#allocation2 + $0x270] sm:$0x1c] }
 0x2dd   :  { %9826 = vmatpush3.msra.mxu0 %v15112_v1  ;;  %7137 = vmatprep.mubr.f32.mxu1 %v13428_v59  ;;  %v1949_v45 = vadd.f32 %v1948_v8, %v1947_v52  ;;  %v2288_v59 = vsel %vm563_vm7, %v2166_v26, 0.0  ;;  %v14021_v9 = vsub.f32 %v4065_v53, %v14003_v57  ;;  %v1557_v36 = vrot.slane %v1556_v54, 1  ;;  %s8292_s26 = smul.f32 %s13960_s20, %s13908_s13 }
 0x2de   :  { %s8290_s23 = scalar_select %p8289_p5, 1.0, %s13958_s19  ;;  %9827 = vmatprep.subr.mxu0 %v15112_v1  ;;  %7269 = vmatprep.subr.mxu1 %v15117_v19  ;;  %v1106_v10 = vrot.slane %v1019_v48, 7  ;;  %v1107_v18 = vrot.slane %v1027_v4, 7  ;;  %v2734_v14 = vrot.slane %v2733_v15, 2  ;;  %v2289_v44 = vrot.slane %v2288_v59, 4 }
 0x2df   :  { %9828 = vmatpush3.msra.mxu0 %v15112_v1  ;;  %7270 = vmatpush1.msra.mxu1 %v15117_v19  ;;  %v1950_v37 = vrot.slane %v1949_v45, 2  ;;  %v7210_v41 = vand.u32 4294901760, %v14021_v9  ;;  %v14030_v58 = vadd.f32 %v1557_v36, %v1556_v54  ;;  %v3009_v21 = vadd.f32 %v3008_v7, %v3007_v40  ;;  %s8293_s27 = ssub.f32 %s8291_s25, %s8292_s26 }
 0x2e0   :  { %v8294_v11 = vstv %s8290_s23  ;;  %7139 = vmatmul.mubr.f32.gmra.mxu1 %v13545_v6  ;;  %9829 = vmatprep.subr.mxu0 %v15112_v1  ;;  %v2358_v6 = vmul.f32 %v14023_v55, %v14023_v55  ;;  %v3285_v27 = vrot.slane %v13912_v56, 1  ;;  %v14038_v25 = vand.u32 4294901760, %v4129_v34 }
 0x2e1   :  { %10335 = vrcp.f32 %v8294_v11  ;;  %9830 = vmatpush3.msra.mxu0 %v15112_v1  ;;  %7304 = vmatprep.mubr.f32.mxu1 %v14003_v57  ;;  %v1951_v16 = vadd.f32 %v1950_v37, %v1949_v45  ;;  %v15260_v31 = vand.u32 4294901760, %v13506_v38  ;;  %v7211_v23 = vsub.f32 %v14021_v9, %v7210_v41 }
 0x2e2   :  { %9831 = vmatprep.subr.mxu0 %v15112_v1  ;;  %7348 = vmatprep.subr.mxu1 %v15117_v19  ;;  %10337 = vrsqrt.f32 %v14030_v58  ;;  %v4128_v5 = vsel %vm15261_vm0, %v4112_v43, %v3922_v51  ;;  %v15262_v39 = vand.u32 4294901760, %v13575_v60  ;;  %v2290_v40 = vadd.f32 %v2289_v44, %v2288_v59 }
 0x2e3   :  { %9832 = vmatpush3.msra.mxu0 %v15112_v1  ;;  %6977 = vmatprep.mubr.f32.mxu0 %v15260_v31  ;;  %v1952_v63 = vrot.slane %v1951_v16, 1  ;;  %v2464_v38 = vsel %vm563_vm7, %v2358_v6, 0.0  ;;  %v2735_v26 = vadd.f32 %v2734_v14, %v2733_v15  ;;  %v7212_v53 = vand.u32 4294901760, %v7211_v23  ;;  %v14086_v31 = vld [vmem:[#allocation2 + $0x230] sm:$0x70] }
 0x2e4   :  { %9833 = vmatprep.subr.mxu0 %v15112_v1  ;;  %6981 = vmatmul.mubr.f32.gmra.mxu0 %v15262_v39  ;;  %v1108_v52 = vsel %vm15248_vm2, %v1106_v10, %v1107_v18  ;;  %v2465_v30 = vrot.slane %v2464_v38, 4  ;;  %v3010_v35 = vrot.slane %v3009_v21, 1  ;;  %v2291_v48 = vrot.slane %v2290_v40, 2  ;;  %v3080_v10 = vld [vmem:[#allocation2 + $0x2f8] sm:$0xff] }
 0x2e5   :  { %9834 = vmatpush3.msra.mxu0 %v15112_v1  ;;  %v14057_v8 = vadd.f32 %v1952_v63, %v1951_v16  ;;  %v513_v60 = vmul.f32 %v14046_v12, %v14046_v12  ;;  %v3286_v4 = vadd.f32 %v3285_v27, %v13912_v56  ;;  %7213 = vmatprep.mubr.f32.mxu0 %v7212_v53  ;;  %v946_v45 = vrot.slane %v14053_v28, 3  ;;  %v3096_v18 = vld [vmem:[#allocation2 + $0x338] sm:$0xff] }
 0x2e6   :  { %9835 = vmatprep.subr.mxu0 %v15112_v1  ;;  %v14065_v15 = vsub.f32 %v4129_v34, %v14038_v25  ;;  %v2466_v54 = vadd.f32 %v2465_v30, %v2464_v38  ;;  %v10334_v7 = vpop.eup %10333  ;;  %v14070_v51 = vand.u32 4294901760, %v4128_v5  ;;  %vm783_vm3 = vcmp.eq.f32.partialorder %v13967_v61, inf }
 0x2e7   :  { %9836 = vmatpush3.msra.mxu0 %v15112_v1  ;;  %10339 = vrsqrt.f32 %v14057_v8  ;;  %v1230_v56 = vsel %vm563_vm7, %v1108_v52, 0.0  ;;  %v782_v59 = vmul.f32 %v10334_v7, %v13967_v61  ;;  %v786_v34 = vand.u32 2147483648, %v13967_v61 }
 0x2e8   :  { %9837 = vmatprep.subr.mxu0 %v15112_v1  ;;  %v2292_v11 = vadd.f32 %v2291_v48, %v2290_v40  ;;  %v2467_v43 = vrot.slane %v2466_v54, 2  ;;  %v2736_v36 = vrot.slane %v2735_v26, 1  ;;  %v3011_v37 = vadd.f32 %v3010_v35, %v3009_v21 }
 0x2e9   :  { %9838 = vmatpush3.msra.mxu0 %v15112_v1  ;;  %vm785_vm5 = vcmp.eq.f32.partialorder %v13967_v61, 0.0  ;;  %v545_v14 = vrot.slane %v513_v60, 1  ;;  %v14080_v44 = vmul.f32 %v3286_v4, %v13778_v22  ;;  %v784_v16 = vsel %vm783_vm3, %v13967_v61, %v782_v59 }
 0x2ea   :  { %9839 = vmatprep.subr.mxu0 %v15112_v1  ;;  %v2293_v6 = vrot.slane %v2292_v11, 1  ;;  %v2468_v27 = vadd.f32 %v2467_v43, %v2466_v54  ;;  %v7225_v21 = vand.u32 4294901760, %v14065_v15  ;;  %v14091_v23 = vsub.f32 %v4128_v5, %v14070_v51  ;;  %v3112_v5 = vld [vmem:[#allocation2 + $0x378] sm:$0xff] }
 0x2eb   :  { %9840 = vmatpush3.msra.mxu0 %v15112_v1  ;;  %v1231_v63 = vrot.slane %v1230_v56, 4  ;;  %v662_v22 = vsel %vm563_vm7, %v545_v14, 0.0  ;;  %v14097_v40 = vsel %vm785_vm5, %v786_v34, %v784_v16  ;;  %v3128_v52 = vadd.f32 %v3096_v18, %v3080_v10 }
 0x2ec   :  { %9841 = vmatprep.subr.mxu0 %v15112_v1  ;;  %v2294_v38 = vadd.f32 %v2293_v6, %v2292_v11  ;;  %v2469_v53 = vrot.slane %v2468_v27, 1  ;;  %v2737_v30 = vadd.f32 %v2736_v36, %v2735_v26  ;;  %v3045_v35 = vsub.f32 1.0, %v3011_v37 }
 0x2ed   :  { %9842 = vmatpush3.msra.mxu0 %v15112_v1  ;;  %v663_v48 = vrot.slane %v662_v22, 4  ;;  %v1397_v60 = vmul.f32 %v14086_v31, %v14086_v31  ;;  %vm1666_vm6 = vcmp.eq.f32.partialorder %v14030_v58, inf  ;;  %vm1668_vm8 = vcmp.eq.f32.partialorder %v14030_v58, 0.0 }
 0x2ee   :  { %v10336_v39 = vpop.eup %10335  ;;  %9843 = vmatprep.subr.mxu0 %v15112_v1  ;;  %v2310_v61 = vmax.f32 %v2294_v38, 1e-24  ;;  %v2470_v4 = vadd.f32 %v2469_v53, %v2468_v27  ;;  %v1366_v26 = vadd.f32 1e-06, %v14097_v40  ;;  %v1669_v7 = vand.u32 2147483648, %v14030_v58 }
 0x2ef   :  { %10061 = vpush %v10336_v39  ;;  %9844 = vmatpush3.msra.mxu0 %v15112_v1  ;;  %v10338_v54 = vpop.eup %10337  ;;  %v664_v59 = vadd.f32 %v663_v48, %v662_v22  ;;  %v1429_v34 = vrot.slane %v1397_v60, 4  ;;  %v14110_v36 = vadd.f32 %v3128_v52, %v3112_v5  ;;  %v2853_v37 = vmul.f32 %v13838_v42, %v2737_v30  ;;  %v14120_v22 = vld [vmem:[#allocation2 + $0x270] sm:$0xe0]  ;;  %v14126_v39 = vld [vmem:[#allocation2 + $0x2b0] sm:$0x7] }
 0x2f0   :  { %9845 = vmatprep.subr.mxu0 %v15112_v1  ;;  %v1665_v11 = vmul.f32 %v10338_v54, %v14030_v58  ;;  %10341 = vrsqrt.f32 %v2310_v61  ;;  %v2486_v43 = vmax.f32 %v2470_v4, 1e-24  ;;  %v1232_v10 = vadd.f32 %v1231_v63, %v1230_v56 }
 0x2f1   :  { %9846 = vmatpush3.msra.mxu0 %v15112_v1  ;;  %v665_v18 = vrot.slane %v664_v59, 2  ;;  %v1545_v14 = vsel %vm563_vm7, %v1429_v34, 0.0  ;;  %v3061_v16 = vmul.f32 %v3045_v35, %v13838_v42  ;;  %vm2061_vm15 = vcmp.eq.f32.partialorder %v14057_v8, inf }
 0x2f2   :  { %9847 = vmatprep.subr.mxu0 %v15112_v1  ;;  %v1667_v6 = vsel %vm1666_vm6, %v14030_v58, %v1665_v11  ;;  %10343 = vrsqrt.f32 %v2486_v43  ;;  %v1546_v27 = vrot.slane %v1545_v14, 4  ;;  %v2064_v53 = vand.u32 2147483648, %v14057_v8 }
 0x2f3   :  { %9848 = vmatpush3.msra.mxu0 %v15112_v1  ;;  %10345 = vrcp.f32 %v1366_v26  ;;  %v1670_v56 = vsel %vm1668_vm8, %v1669_v7, %v1667_v6  ;;  %v666_v63 = vadd.f32 %v665_v18, %v664_v59  ;;  %v3160_v30 = vand.u32 2147483647, %v14110_v36  ;;  %v890_v59 = vld [vmem:[#allocation2 + $0x230] sm:$0x80]  ;;  %v898_v36 = vld [vmem:[#allocation2 + $0x270] sm:$0x3] }
 0x2f4   :  { %9849 = vmatprep.subr.mxu0 %v15112_v1  ;;  %v10340_v38 = vpop.eup %10339  ;;  %v1686_v52 = vadd.f32 1e-06, %v1670_v56  ;;  %v1547_v35 = vadd.f32 %v1546_v27, %v1545_v14  ;;  %vm2063_vm12 = vcmp.eq.f32.partialorder %v14057_v8, 0.0  ;;  %v2133_v48 = vmul.f32 %v14120_v22, %v14120_v22 }
 0x2f5   :  { %9850 = vmatpush3.msra.mxu0 %v15112_v1  ;;  %v2060_v5 = vmul.f32 %v10340_v38, %v14057_v8  ;;  %v667_v58 = vrot.slane %v666_v63, 1  ;;  %v3425_v60 = vrot.slane %v2853_v37, 4  ;;  %v2357_v4 = vmul.f32 %v14126_v39, %v14126_v39 }
 0x2f6   :  { %9851 = vmatprep.subr.mxu0 %v15112_v1  ;;  %10347 = vrcp.f32 %v1686_v52  ;;  %v1548_v61 = vrot.slane %v1547_v35, 2  ;;  %v3473_v26 = vrot.slane %v3061_v16, 3  ;;  %v2165_v34 = vrot.slane %v2133_v48, 5 }
 0x2f7   :  { %9852 = vmatpush3.msra.mxu0 %v15112_v1  ;;  %v2062_v54 = vsel %vm2061_vm15, %v14057_v8, %v2060_v5  ;;  %v14143_v7 = vadd.f32 %v667_v58, %v666_v63  ;;  %v7231_v43 = vand.u32 4294901760, %v14091_v23  ;;  %vm3176_vm4 = vweird.f32 %v3160_v30 }
 0x2f8   :  { %7518 = vmatprep.subr.mxu0 %v15117_v19  ;;  %v2065_v11 = vsel %vm2063_vm12, %v2064_v53, %v2062_v54  ;;  %v1549_v37 = vadd.f32 %v1548_v61, %v1547_v35  ;;  %v3521_v18 = vrot.slane %v14080_v44, 1  ;;  %v1233_v6 = vrot.slane %v1232_v10, 2  ;;  %vm3192_vm13 = vmxor %vm3176_vm4, %vm15173_vm9 }
 0x2f9   :  { %v3996_v14 = vsel %vm563_vm7, %v13916_v13, %v2065_v11  ;;  %10349 = vrsqrt.f32 %v14143_v7  ;;  %v986_v16 = vsub.f32 %v890_v59, %v946_v45  ;;  %v2457_v27 = vsel %vm563_vm7, %v2357_v4, 0.0 }
 0x2fa   :  { %v4013_v8 = vsel %vm15263_vm11, %v3996_v14, %v3425_v60  ;;  %vm15264_vm10 = vcmask 1044480   ;;  %v994_v44 = vsub.f32 %v898_v36, %v946_v45  ;;  %v1550_v63 = vrot.slane %v1549_v37, 1  ;;  %v15267_v60 = vld [vmem:[#allocation15_spill] sm:$0xff] }
 0x2fb   :  { %v4030_v56 = vsel %vm15264_vm10, %v4013_v8, %v3473_v26  ;;  %v2281_v13 = vsel %vm563_vm7, %v2165_v34, 0.0  ;;  %vm15265_vm14 = vcmask 1045504   ;;  %v14164_v53 = vsub.f32 %v14065_v15, %v7225_v21 }
 0x2fc   :  { %v4047_v38 = vsel %vm15265_vm14, %v4030_v56, %v13838_v42  ;;  %v14169_v52 = vsub.f32 %v14091_v23, %v7231_v43  ;;  %v2282_v35 = vrot.slane %v2281_v13, 4  ;;  %vm15266_vm1 = vcmask 1046528  }
 0x2fd   :  { %v10342_v5 = vpop.eup %10341  ;;  %v4064_v28 = vsel %vm15266_vm1, %v4047_v38, %v3521_v18  ;;  %v14172_v45 = vadd.f32 %v1233_v6, %v1232_v10  ;;  %v14174_v58 = vadd.f32 %v1550_v63, %v1549_v37  ;;  %v2458_v48 = vrot.slane %v2457_v27, 4 }
 0x2fe   :  { %v14176_v42 = vand.u32 4294901760, %v4064_v28  ;;  %v14180_v61 = vrot.slane %v12797_v46, %v15267_v60  ;;  %v3208_v4 = vsel %vm3192_vm13, %v3160_v30, 0.0  ;;  %v2283_v54 = vadd.f32 %v2282_v35, %v2281_v13 }
 0x2ff   :  { %v10344_v26 = vpop.eup %10343  ;;  %v2342_v59 = vmul.f32 %v10342_v5, %v13905_v33  ;;  %v1018_v34 = vand.u32 2147483647, %v986_v16  ;;  %v1026_v11 = vand.u32 2147483647, %v994_v44  ;;  %10351 = vrsqrt.f32 %v14174_v58 }
 0x300   :  { %v10346_v10 = vpop.eup %10345  ;;  %7306 = vmatmul.mubr.f32.vlgmr.msra.gmra.mxu1 %v14176_v42  ;;  %v14186_v36 = vsub.f32 %v4064_v28, %v14176_v42  ;;  %v2518_v37 = vmul.f32 %v10344_v26, %v14023_v55  ;;  %v2284_v18 = vrot.slane %v2283_v54, 2  ;;  %v2459_v14 = vadd.f32 %v2458_v48, %v2457_v27 }
 0x301   :  { %7311 = vmatprep.mubr.f32.mxu1 %v14038_v25  ;;  %7349 = vmatpush1.msra.mxu1 %v15117_v19  ;;  %v7227_v33 = vand.u32 4294901760, %v14164_v53  ;;  %v7233_v30 = vand.u32 4294901760, %v14169_v52  ;;  %v1235_v6 = vrot.slane %v14172_v45, 1  ;;  %v3299_v8 = vrot.slane %v3208_v4, 4 }
 0x302   :  { %9859 = vmatprep.subr.mxu1 %v15112_v1  ;;  %v7216_v16 = vand.u32 4294901760, %v14186_v36  ;;  %v2550_v56 = vrot.slane %v2518_v37, 3  ;;  %v2285_v44 = vadd.f32 %v2284_v18, %v2283_v54  ;;  %v2460_v55 = vrot.slane %v2459_v14, 2 }
 0x303   :  { %v10348_v63 = vpop.eup %10347  ;;  %v9128_v27 = vadd.f32 -1.0, %v14097_v40  ;;  %v1718_v13 = vmul.f32 %v10346_v10, %v13802_v50  ;;  %v1103_v38 = vrot.slane %v1018_v34, 7  ;;  %v1104_v35 = vrot.slane %v1026_v11, 7 }
 0x304   :  { %7313 = vmatmul.mubr.f32.gmra.mxu1 %v14070_v51  ;;  %v7217_v53 = vsub.f32 %v14186_v36, %v7216_v16  ;;  %v1734_v52 = vmul.f32 %v10348_v63, %v13851_v0  ;;  %v2582_v5 = vsub.f32 %v2342_v59, %v2550_v56  ;;  %v2872_v28 = vmul.f32 %v2550_v56, %v2342_v59  ;;  %v3079_v56 = vld [vmem:[#allocation2 + $0x2f0] sm:$0xff] }
 0x305   :  { %7384 = vmatprep.mubr.f32.mxu1 %v14021_v9  ;;  %v14204_v48 = vadd.f32 %v3299_v8, %v3208_v4  ;;  %vm776_vm0 = vcmp.eq.f32.partialorder %v14143_v7, inf  ;;  %v2286_v40 = vrot.slane %v2285_v44, 1  ;;  %v2461_v50 = vadd.f32 %v2460_v55, %v2459_v14  ;;  %v3095_v55 = vld [vmem:[#allocation2 + $0x330] sm:$0xff] }
 0x306   :  { %v10350_v54 = vpop.eup %10349  ;;  %v7218_v26 = vand.u32 4294901760, %v7217_v53  ;;  %v1766_v34 = vrot.slane %v1734_v52, 3  ;;  %v2598_v11 = vand.u32 2147483647, %v2582_v5  ;;  %v2904_v10 = vrot.slane %v2872_v28, 5 }
 0x307   :  { %v775_v37 = vmul.f32 %v10350_v54, %v14143_v7  ;;  %vm778_vm2 = vcmp.eq.f32.partialorder %v14143_v7, 0.0  ;;  %v2287_v0 = vadd.f32 %v2286_v40, %v2285_v44  ;;  %v2462_v18 = vrot.slane %v2461_v50, 1 }
 0x308   :  { %7387 = vmatmul.mubr.f32.vlgmr.msra.gmra.mxu1 %v14186_v36  ;;  %7219 = vmatmul.mubr.f32.vlgmr.msra.gmra.mxu0 %v7218_v26  ;;  %v1798_v4 = vsub.f32 %v1718_v13, %v1766_v34  ;;  %v2630_v59 = vrot.slane %v2598_v11, 5  ;;  %v3026_v8 = vsel %vm563_vm7, %v2904_v10, 0.0  ;;  %v779_v14 = vand.u32 2147483648, %v14143_v7  ;;  %v3111_v10 = vld [vmem:[#allocation2 + $0x370] sm:$0xff] }
 0x309   :  { %9860 = vmatpush3.msra.mxu1 %v15112_v1  ;;  %7228 = vmatprep.mubr.f32.mxu0 %v7227_v33  ;;  %v3027_v63 = vrot.slane %v3026_v8, 4  ;;  %v777_v44 = vsel %vm776_vm0, %v14143_v7, %v775_v37  ;;  %v2309_v53 = vmax.f32 %v2287_v0, 1e-24  ;;  %v2463_v52 = vadd.f32 %v2462_v18, %v2461_v50 }
 0x30a   :  { %9861 = vmatprep.subr.mxu1 %v15112_v1  ;;  %7519 = vmatpush1.msra.mxu0 %v15117_v19  ;;  %v1236_v13 = vadd.f32 %v1235_v6, %v14172_v45  ;;  %v1814_v5 = vmul.f32 %v1798_v4, %v1798_v4  ;;  %v2752_v28 = vsel %vm563_vm7, %v2630_v59, 0.0  ;;  %vm15268_vm3 = vcmask 1040384  }
 0x30b   :  { %v1105_v40 = vsel %vm15268_vm3, %v1103_v38, %v1104_v35  ;;  %9862 = vmatpush3.msra.mxu1 %v15112_v1  ;;  %9897 = vmatprep.subr.mxu0 %v15112_v1  ;;  %v14223_v33 = vmul.f32 %v9128_v27, %v9128_v27  ;;  %v2753_v54 = vrot.slane %v2752_v28, 4  ;;  %v3028_v26 = vadd.f32 %v3027_v63, %v3026_v8  ;;  %vm15273_vm4 = vmmov %vm15268_vm3 }
 0x30c   :  { %v3127_v50 = vadd.f32 %v3095_v55, %v3079_v56  ;;  %v10352_v34 = vpop.eup %10351  ;;  %9863 = vmatprep.subr.mxu1 %v15112_v1  ;;  %7234 = vmatmul.mubr.f32.gmra.mxu0 %v7233_v30  ;;  %v1846_v11 = vrot.slane %v1814_v5, 1  ;;  %v14228_v45 = vsel %vm778_vm2, %v779_v14, %v777_v44  ;;  %10353 = vrsqrt.f32 %v2309_v53 }
 0x30d   :  { %v2485_v6 = vmax.f32 %v2463_v52, 1e-24  ;;  %9864 = vmatpush3.msra.mxu1 %v15112_v1  ;;  %7553 = vmatprep.mubr.f32.mxu0 %v14003_v57  ;;  %v2754_v27 = vadd.f32 %v2753_v54, %v2752_v28  ;;  %v3301_v38 = vrot.slane %v14204_v48, 2  ;;  %vm1659_vm5 = vcmp.eq.f32.partialorder %v14174_v58, inf }
 0x30e   :  { %v1662_v35 = vand.u32 2147483648, %v14174_v58  ;;  %9865 = vmatprep.subr.mxu1 %v15112_v1  ;;  %7393 = vmatprep.mubr.f32.mxu1 %v14065_v15  ;;  %v1968_v7 = vsel %vm563_vm7, %v1846_v11, 0.0  ;;  %v3029_v30 = vrot.slane %v3028_v26, 2  ;;  %v1658_v37 = vmul.f32 %v10352_v34, %v14174_v58 }
 0x30f   :  { %10355 = vrsqrt.f32 %v2485_v6  ;;  %9866 = vmatpush3.msra.mxu1 %v15112_v1  ;;  %v1969_v0 = vrot.slane %v1968_v7, 4  ;;  %v1365_v18 = vadd.f32 1e-06, %v14228_v45  ;;  %vm1661_vm6 = vcmp.eq.f32.partialorder %v14174_v58, 0.0 }
 0x310   :  { %9867 = vmatprep.subr.mxu1 %v15112_v1  ;;  %7555 = vmatmul.mubr.f32.vlgmr.msra.gmra.mxu0 %v14176_v42  ;;  %v2755_v4 = vrot.slane %v2754_v27, 2  ;;  %v1223_v59 = vsel %vm563_vm7, %v1105_v40, 0.0  ;;  %v1660_v8 = vsel %vm1659_vm5, %v14174_v58, %v1658_v37  ;;  %v14248_v14 = vadd.f32 %v3127_v50, %v3111_v10 }
 0x311   :  { %9868 = vmatpush3.msra.mxu1 %v15112_v1  ;;  %9898 = vmatpush3.msra.mxu0 %v15112_v1  ;;  %v1970_v56 = vadd.f32 %v1969_v0, %v1968_v7  ;;  %v3302_v55 = vadd.f32 %v3301_v38, %v14204_v48  ;;  %vm835_vm8 = vweird.f32 %v14223_v33  ;;  %v1334_v63 = vmul.f32 %v14180_v61, %v1236_v13 }
 0x312   :  { %9869 = vmatprep.subr.mxu1 %v15112_v1  ;;  %9899 = vmatprep.subr.mxu0 %v15112_v1  ;;  %v3030_v44 = vadd.f32 %v3029_v30, %v3028_v26  ;;  %v1663_v53 = vsel %vm1661_vm6, %v1662_v35, %v1660_v8  ;;  %v1224_v5 = vrot.slane %v1223_v59, 4  ;;  %10357 = vrcp.f32 %v1365_v18  ;;  %vm14269_vm15 = vmxor %vm835_vm8, %vm15173_vm9 }
 0x313   :  { %9870 = vmatpush3.msra.mxu1 %v15112_v1  ;;  %9900 = vmatpush3.msra.mxu0 %v15112_v1  ;;  %v1971_v52 = vrot.slane %v1970_v56, 2  ;;  %v1685_v48 = vadd.f32 1e-06, %v1663_v53  ;;  %v2756_v28 = vadd.f32 %v2755_v4, %v2754_v27  ;;  %v3159_v13 = vand.u32 2147483647, %v14248_v14  ;;  %v15278_v53 = vld [vmem:[#allocation16_spill] sm:$0xff] }
 0x314   :  { %9871 = vmatprep.subr.mxu1 %v15112_v1  ;;  %9901 = vmatprep.subr.mxu0 %v15112_v1  ;;  %v3303_v54 = vrot.slane %v3302_v55, 1  ;;  %v3031_v26 = vrot.slane %v3030_v44, 1  ;;  %v3380_v34 = vrot.slane %v1334_v63, 7  ;;  %v1225_v11 = vadd.f32 %v1224_v5, %v1223_v59 }
 0x315   :  { %9872 = vmatpush3.msra.mxu1 %v15112_v1  ;;  %9902 = vmatpush3.msra.mxu0 %v15112_v1  ;;  %v1972_v40 = vadd.f32 %v1971_v52, %v1970_v56  ;;  %10359 = vrcp.f32 %v1685_v48  ;;  %v867_v6 = vsel %vm14269_vm15, %v14223_v33, 0.0  ;;  %v2757_v27 = vrot.slane %v2756_v28, 1 }
 0x316   :  { %9873 = vmatprep.subr.mxu1 %v15112_v1  ;;  %9903 = vmatprep.subr.mxu0 %v15112_v1  ;;  %vm14284_vm12 = vweird.f32 %v3159_v13  ;;  %v3304_v7 = vadd.f32 %v3303_v54, %v3302_v55  ;;  %v3032_v30 = vadd.f32 %v3031_v26, %v3030_v44  ;;  %v14301_v37 = vrot.slane %v12886_v17, %v15267_v60 }
 0x317   :  { %9874 = vmatpush3.msra.mxu1 %v15112_v1  ;;  %9904 = vmatpush3.msra.mxu0 %v15112_v1  ;;  %v1973_v50 = vrot.slane %v1972_v40, 1  ;;  %v3966_v0 = vsel %vm15273_vm4, %v867_v6, %v3380_v34  ;;  %v1226_v18 = vrot.slane %v1225_v11, 2  ;;  %vm14307_vm11 = vmxor %vm14284_vm12, %vm15173_vm9  ;;  %v2758_v59 = vadd.f32 %v2757_v27, %v2756_v28 }
 0x318   :  { %9875 = vmatprep.subr.mxu1 %v15112_v1  ;;  %9905 = vmatprep.subr.mxu0 %v15112_v1  ;;  %v15276_v56 = vlaneseq  ;;  %v14325_v63 = vmul.f32 %v3304_v7, %v14180_v61  ;;  %v14331_v44 = vsel %vm14307_vm11, %v3159_v13, 0.0  ;;  %vm15277_vm10 = vcmask 1041408  }
 0x319   :  { %v10354_v35 = vpop.eup %10353  ;;  %9876 = vmatpush3.msra.mxu1 %v15112_v1  ;;  %9906 = vmatpush3.msra.mxu0 %v15112_v1  ;;  %v14292_v10 = vadd.f32 %v1973_v50, %v1972_v40  ;;  %v14337_v9 = vsel %vm15277_vm10, %v3966_v0, %v14180_v61  ;;  %v14343_v52 = vrot.slane %v12797_v46, %v15278_v53  ;;  %v3293_v58 = vrot.slane %v14331_v44, 4 }
 0x31a   :  { %9877 = vmatprep.subr.mxu1 %v15112_v1  ;;  %7396 = vmatmul.mubr.f32.gmra.mxu1 %v14091_v23  ;;  %v2341_v8 = vmul.f32 %v10354_v35, %v14120_v22  ;;  %v14316_v55 = vand.u32 127, %v15276_v56  ;;  %v3048_v22 = vsub.f32 1.0, %v3032_v30  ;;  %v14349_v48 = vmul.f32 %v14301_v37, %v2758_v59  ;;  %v15279_v30 = vld [vmem:[#allocation9_spill] sm:$0xff] }
 0x31b   :  { %9878 = vmatpush3.msra.mxu1 %v15112_v1  ;;  %9907 = vmatprep.subr.mxu0 %v15112_v1  ;;  %10361 = vrsqrt.f32 %v14292_v10  ;;  %v3524_v46 = vrot.slane %v14325_v63, 1  ;;  %v3606_v40 = vrot.slane %v12938_v29, %v15267_v60  ;;  %vm2082_vm13 = vcmp.eq.f32.partialorder %v14292_v10, inf }
 0x31c   :  { %v10356_v33 = vpop.eup %10355  ;;  %9879 = vmatprep.subr.mxu1 %v15112_v1  ;;  %9908 = vmatpush3.msra.mxu0 %v15112_v1  ;;  %v14352_v61 = vadd.s32 128, %v14316_v55  ;;  %v14363_v54 = vadd.s32 256, %v14316_v55  ;;  %v14370_v50 = vmul.f32 %v3048_v22, %v14301_v37  ;;  %v8152_v6 = vadd.s32 384, %v14316_v55 }
 0x31d   :  { %v2517_v14 = vmul.f32 %v10356_v33, %v14126_v39  ;;  %9880 = vmatpush3.msra.mxu1 %v15112_v1  ;;  %7468 = vmatprep.mubr.f32.mxu1 %v7210_v41  ;;  %v14339_v41 = vadd.f32 %v1226_v18, %v1225_v11  ;;  %v8153_v7 = vadd.s32 512, %v14316_v55  ;;  %v3428_v0 = vrot.slane %v14349_v48, 4 }
 0x31e   :  { %9881 = vmatprep.subr.mxu1 %v15112_v1  ;;  %9909 = vmatprep.subr.mxu0 %v15112_v1  ;;  %v8154_v59 = vadd.s32 640, %v14316_v55  ;;  %v8156_v56 = vadd.s32 896, %v14316_v55  ;;  %v8161_v22 = vand.u32 31, %v14316_v55  ;;  %vm2084_vm14 = vcmp.eq.f32.partialorder %v14292_v10, 0.0 }
 0x31f   :  { %v2549_v39 = vrot.slane %v2517_v14, 3  ;;  %9882 = vmatpush3.msra.mxu1 %v15112_v1  ;;  %9910 = vmatpush3.msra.mxu0 %v15112_v1  ;;  %v10358_v5 = vpop.eup %10357  ;;  %v8155_v14 = vadd.s32 768, %v14316_v55  ;;  %v8168_v48 = vand.u32 31, %v14352_v61  ;;  %v8189_v61 = vand.u32 31, %v8153_v7 }
 0x320   :  { %s10062_s28 = spop %10061  ;;  %9883 = vmatprep.subr.mxu1 %v15112_v1  ;;  %9911 = vmatprep.subr.mxu0 %v15112_v1  ;;  %v1717_v38 = vmul.f32 %v10358_v5, %v14046_v12  ;;  %v3476_v36 = vrot.slane %v14370_v50, 3  ;;  %vm14410_vm1 = vcmp.ne.s32.totalorder %v8161_v22, 31  ;;  %vm15292_vm8 = vcmask 1043456  }
 0x321   :  { %s8297_s29 = smul.f32 %s10062_s28, %s8293_s27  ;;  %v2581_v28 = vsub.f32 %v2341_v8, %v2549_v39  ;;  %v2871_v13 = vmul.f32 %v2549_v39, %v2341_v8  ;;  %9884 = vmatpush3.msra.mxu1 %v15112_v1  ;;  %9912 = vmatpush3.msra.mxu0 %v15112_v1  ;;  %v2085_v39 = vand.u32 2147483648, %v14292_v10  ;;  %vm14419_vm0 = vcmp.ne.s32.totalorder %v8168_v48, 31 }
 0x322   :  { %s8306_s30 = smul.f32 %s10062_s28, %s14014_s24  ;;  %v10360_v26 = vpop.eup %10359  ;;  %9885 = vmatprep.subr.mxu1 %v15112_v1  ;;  %9913 = vmatprep.subr.mxu0 %v15112_v1  ;;  %vm14440_vm5 = vcmp.ne.s32.totalorder %v8189_v61, 31  ;;  %vm15297_vm4 = vcmask 1044480   ;;  %vm15298_vm11 = vcmask 1045504   ;;  %vm15299_vm10 = vcmask 1046528  }
 0x323   :  { %s15369_s29 = smov (%p8289_p5, %s8297_s29), 0.0  ;;  %v2597_v34 = vand.u32 2147483647, %v2581_v28  ;;  %v2903_v11 = vrot.slane %v2871_v13, 5  ;;  %9886 = vmatpush3.msra.mxu1 %v15112_v1  ;;  %9914 = vmatpush3.msra.mxu0 %v15112_v1  ;;  %v1733_v35 = vmul.f32 %v10360_v26, %v14086_v31  ;;  %v8175_v26 = vand.u32 31, %v14363_v54 }
 0x324   :  { %s15371_s30 = smov (%p8289_p5, %s8306_s30), 0.0  ;;  %v8308_v27 = vstv %s15369_s29  ;;  %9887 = vmatprep.subr.mxu1 %v15112_v1  ;;  %9915 = vmatprep.subr.mxu0 %v15112_v1  ;;  %v3294_v54 = vadd.f32 %v3293_v58, %v14331_v44 }
 0x325   :  { %v8309_v33 = vmul.f32 %v8308_v27, %v15279_v30  ;;  %v2629_v18 = vrot.slane %v2597_v34, 5  ;;  %9888 = vmatpush3.msra.mxu1 %v15112_v1  ;;  %9916 = vmatpush3.msra.mxu0 %v15112_v1  ;;  %v8310_v12 = vstv %s15371_s30  ;;  %v1765_v4 = vrot.slane %v1733_v35, 3 }
 0x326   :  { %v3019_v31 = vsel %vm563_vm7, %v2903_v11, 0.0  ;;  %9889 = vmatprep.subr.mxu1 %v15112_v1  ;;  %9917 = vmatprep.subr.mxu0 %v15112_v1  ;;  %v8182_v34 = vand.u32 31, %v8152_v6  ;;  %v8210_v35 = vand.u32 31, %v8156_v56  ;;  %vm14427_vm2 = vcmp.ne.s32.totalorder %v8175_v26, 31 }
 0x327   :  { %v14389_v8 = vadd.f32 %v8310_v12, %v8309_v33  ;;  %9890 = vmatpush3.msra.mxu1 %v15112_v1  ;;  %9918 = vmatpush3.msra.mxu0 %v15112_v1  ;;  %v1797_v5 = vsub.f32 %v1717_v38, %v1765_v4  ;;  %v2745_v13 = vsel %vm563_vm7, %v2629_v18, 0.0  ;;  %v3020_v55 = vrot.slane %v3019_v31, 4 }
 0x328   :  { %v10362_v28 = vpop.eup %10361  ;;  %9935 = vmatprep.subr.mxu1 %v15112_v1  ;;  %7472 = vmatmul.mubr.f32.vlgmr.msra.gmra.mxu1 %v7216_v16  ;;  %v8196_v38 = vand.u32 31, %v8154_v59  ;;  %v8203_v16 = vand.u32 31, %v8155_v14  ;;  %v2746_v30 = vrot.slane %v2745_v13, 4  ;;  %vm14431_vm3 = vcmp.ne.s32.totalorder %v8182_v34, 31 }
 0x329   :  { %9936 = vmatpush3.msra.mxu1 %v15112_v1  ;;  %9919 = vmatprep.subr.mxu0 %v15112_v1  ;;  %v2081_v11 = vmul.f32 %v10362_v28, %v14292_v10  ;;  %v1813_v27 = vmul.f32 %v1797_v5, %v1797_v5  ;;  %v3021_v18 = vadd.f32 %v3020_v55, %v3019_v31  ;;  %vm14455_vm12 = vcmp.ne.s32.totalorder %v8210_v35, 31 }
 0x32a   :  { %9937 = vmatprep.subr.mxu1 %v15112_v1  ;;  %9920 = vmatpush3.msra.mxu0 %v15112_v1  ;;  %vm14444_vm6 = vcmp.ne.s32.totalorder %v8196_v38, 31  ;;  %vm14451_vm15 = vcmp.ne.s32.totalorder %v8203_v16, 31  ;;  %v2747_v48 = vadd.f32 %v2746_v30, %v2745_v13  ;;  %v9130_v28 = vsel %vm14419_vm0, 1.0, %v15117_v19 }
 0x32b   :  { %9938 = vmatpush3.msra.mxu1 %v15112_v1  ;;  %9921 = vmatprep.subr.mxu0 %v15112_v1  ;;  %v2083_v6 = vsel %vm2082_vm13, %v14292_v10, %v2081_v11  ;;  %v1845_v7 = vrot.slane %v1813_v27, 1  ;;  %v3022_v34 = vrot.slane %v3021_v18, 2  ;;  %v9131_v13 = vsel %vm14427_vm2, 1.0, %v15117_v19  ;;  %v15300_v10 = vld [vmem:[#allocation10_spill] sm:$0xff] }
 0x32c   :  { %9939 = vmatprep.subr.mxu1 %v15112_v1  ;;  %9922 = vmatpush3.msra.mxu0 %v15112_v1  ;;  %v2086_v50 = vsel %vm2084_vm14, %v2085_v39, %v2083_v6  ;;  %v9132_v27 = vsel %vm14431_vm3, 1.0, %v15117_v19  ;;  %v9134_v61 = vsel %vm14444_vm6, 1.0, %v15117_v19  ;;  %v9127_v16 = vadd.f32 -1.0, %v14228_v45  ;;  %v15301_v39 = vld [vmem:[#allocation8_spill] sm:$0xff]  ;;  %vm15309_vm3 = vmmov %vm15292_vm8 }
 0x32d   :  { %9940 = vmatpush3.msra.mxu1 %v15112_v1  ;;  %9923 = vmatprep.subr.mxu0 %v15112_v1  ;;  %v3999_v59 = vsel %vm563_vm7, %v14337_v9, %v2086_v50  ;;  %v1961_v14 = vsel %vm563_vm7, %v1845_v7, 0.0  ;;  %v2748_v35 = vrot.slane %v2747_v48, 2  ;;  %v3688_v6 = vrot.slane %v12919_v3, %v15267_v60 }
 0x32e   :  { %9941 = vmatprep.subr.mxu1 %v15112_v1  ;;  %7560 = vmatprep.mubr.f32.mxu0 %v14038_v25  ;;  %v4016_v56 = vsel %vm15292_vm8, %v3999_v59, %v3428_v0  ;;  %v1962_v22 = vrot.slane %v1961_v14, 4  ;;  %v9129_v0 = vsel %vm14410_vm1, 1.0, %v15117_v19  ;;  %v1228_v45 = vrot.slane %v14339_v41, 1 }
 0x32f   :  { %9942 = vmatpush3.msra.mxu1 %v15112_v1  ;;  %9924 = vmatpush3.msra.mxu0 %v15112_v1  ;;  %v4033_v5 = vsel %vm15297_vm4, %v4016_v56, %v3476_v36  ;;  %v9136_v36 = vsel %vm14455_vm12, 1.0, %v15117_v19  ;;  %v8406_v33 = vcombine.low %v9129_v0, %v9130_v28  ;;  %v8407_v50 = vcombine.low %v9131_v13, %v9132_v27  ;;  %vm15313_vm4 = vmmov %vm15309_vm3 }
 0x330   :  { %9943 = vmatprep.subr.mxu1 %v15112_v1  ;;  %7562 = vmatmul.mubr.f32.gmra.mxu0 %v14070_v51  ;;  %v4050_v55 = vsel %vm15298_vm11, %v4033_v5, %v14301_v37  ;;  %v1963_v26 = vadd.f32 %v1962_v22, %v1961_v14  ;;  %v9133_v37 = vsel %vm14440_vm5, 1.0, %v15117_v19  ;;  %v3023_v4 = vadd.f32 %v3022_v34, %v3021_v18 }
 0x331   :  { %9944 = vmatpush3.msra.mxu1 %v15112_v1  ;;  %9925 = vmatprep.subr.mxu0 %v15112_v1  ;;  %v4067_v11 = vsel %vm15299_vm10, %v4050_v55, %v3524_v46  ;;  %v9135_v46 = vsel %vm14451_vm15, 1.0, %v15117_v19  ;;  %v8408_v44 = vcombine.low %v9133_v37, %v9134_v61  ;;  %v3770_v14 = vrot.slane %v12867_v62, %v15267_v60  ;;  %v15303_v55 = vld [vmem:[#allocation11_spill] sm:$0xff]  ;;  %vm15311_vm15 = vmmov %vm15309_vm3 }
 0x332   :  { %9945 = vmatprep.subr.mxu1 %v15112_v1  ;;  %9926 = vmatpush3.msra.mxu0 %v15112_v1  ;;  %v14491_v38 = vand.u32 4294901760, %v4067_v11  ;;  %v1964_v63 = vrot.slane %v1963_v26, 2  ;;  %v8409_v58 = vcombine.low %v9135_v46, %v9136_v36  ;;  %v14526_v31 = vmul.f32 %v9127_v16, %v9127_v16 }
 0x333   :  { %9946 = vmatpush3.msra.mxu1 %v15112_v1  ;;  %9927 = vmatprep.subr.mxu0 %v15112_v1  ;;  %v2749_v56 = vadd.f32 %v2748_v35, %v2747_v48  ;;  %v3295_v18 = vrot.slane %v3294_v54, 2  ;;  %v8416_v9 = vrot.slane %v8406_v33, %v15301_v39  ;;  %v1229_v48 = vadd.f32 %v1228_v45, %v14339_v41 }
 0x334   :  { %9947 = vmatprep.subr.mxu1 %v15112_v1  ;;  %9928 = vmatpush3.msra.mxu0 %v15112_v1  ;;  %v1965_v7 = vadd.f32 %v1964_v63, %v1963_v26  ;;  %v14510_v30 = vsub.f32 %v4067_v11, %v14491_v38  ;;  %v8437_v5 = vrot.slane %v8409_v58, %v15301_v39  ;;  %v3024_v0 = vrot.slane %v3023_v4, 1 }
 0x335   :  { %9948 = vmatpush3.msra.mxu1 %v15112_v1  ;;  %7632 = vmatprep.mubr.f32.mxu0 %v14003_v57  ;;  %v14523_v57 = vsub.f32 %v14389_v8, %v15300_v10  ;;  %v8430_v8 = vrot.slane %v8408_v44, %v15301_v39  ;;  %vm15302_vm13 = vcmask 1040384   ;;  %v3602_v28 = vrot.slane %v12938_v29, %v15278_v53 }
 0x336   :  { %9949 = vmatprep.subr.mxu1 %v15112_v1  ;;  %7634 = vmatmul.mubr.f32.vlgmr.msra.gmra.mxu0 %v14176_v42  ;;  %v1966_v12 = vrot.slane %v1965_v7, 1  ;;  %v7712_v59 = vand.u32 4294901760, %v14510_v30  ;;  %v4083_v15 = vsel %vm15302_vm13, %v3606_v40, %v3688_v6  ;;  %vm834_vm14 = vweird.f32 %v14526_v31  ;;  %vm15305_vm0 = vmmov %vm15302_vm13 }
 0x337   :  { %9950 = vmatpush3.msra.mxu1 %v15112_v1  ;;  %7639 = vmatprep.mubr.f32.mxu0 %v14038_v25  ;;  %v8423_v25 = vrot.slane %v8407_v50, %v15301_v39  ;;  %v3296_v41 = vadd.f32 %v3295_v18, %v3294_v54  ;;  %v3852_v40 = vrot.slane %v12966_v24, %v15267_v60  ;;  %v2750_v29 = vrot.slane %v2749_v56, 1  ;;  %vm14584_vm2 = vmxor %vm834_vm14, %vm15173_vm9 }
 0x338   :  { %9951 = vmatprep.subr.mxu1 %v15112_v1  ;;  %7771 = vmatprep.subr.mxu0 %v15117_v19  ;;  %v14530_v42 = vadd.f32 %v1966_v12, %v1965_v7  ;;  %v7713_v22 = vsub.f32 %v14510_v30, %v7712_v59  ;;  %v14563_v26 = vmul.f32 %v14523_v57, %v15303_v55  ;;  %vm15304_vm1 = vcmask 1041408   ;;  %vm15310_vm5 = vmmov %vm15305_vm0 }
 0x339   :  { %9952 = vmatpush3.msra.mxu1 %v15112_v1  ;;  %7479 = vmatprep.mubr.f32.mxu1 %v7225_v21  ;;  %v4099_v34 = vsel %vm15304_vm1, %v4083_v15, %v3770_v14  ;;  %v8439_v13 = vcombine.low %v8430_v8, %v8437_v5  ;;  %v1333_v11 = vmul.f32 %v14343_v52, %v1229_v48  ;;  %vm15308_vm9 = vmmov %vm15304_vm1  ;;  %v866_v33 = vsel %vm14584_vm2, %v14526_v31, 0.0 }
 0x33a   :  { %9953 = vmatprep.subr.mxu1 %v15112_v1  ;;  %7641 = vmatmul.mubr.f32.gmra.mxu0 %v14070_v51  ;;  %10363 = vrsqrt.f32 %v14530_v42  ;;  %v7714_v21 = vand.u32 4294901760, %v7713_v22  ;;  %v3684_v51 = vrot.slane %v12919_v3, %v15278_v53  ;;  %v8438_v3 = vcombine.low %v8416_v9, %v8423_v25  ;;  %v9625_v9 = vpop.f32.mrf.mxu0  ;;  %vm15312_vm12 = vmmov %vm15304_vm1 }
 0x33b   :  { %9954 = vmatpush3.msra.mxu1 %v15112_v1  ;;  %7772 = vmatpush1.msra.mxu0 %v15117_v19  ;;  %v3025_v27 = vadd.f32 %v3024_v0, %v3023_v4  ;;  %v3766_v37 = vrot.slane %v12867_v62, %v15278_v53  ;;  %v14577_v61 = vrot.slane %v12886_v17, %v15278_v53  ;;  %v3379_v7 = vrot.slane %v1333_v11, 7  ;;  %vm15320_vm2 = vmmov %vm15305_vm0 }
 0x33c   :  { %9955 = vmatprep.subr.mxu1 %v15112_v1  ;;  %7806 = vmatprep.mubr.f32.mxu0 %v14491_v38  ;;  %v4082_v63 = vsel %vm15305_vm0, %v3602_v28, %v3684_v51  ;;  %v3934_v46 = vrot.slane %v12944_v32, %v15267_v60  ;;  %v4115_v36 = vsel %vm563_vm7, %v4099_v34, %v3852_v40  ;;  %vm2075_vm6 = vcmp.eq.f32.partialorder %v14530_v42, inf  ;;  %v9626_v0 = vpop.f32.mrf.mxu0  ;;  %v6303_v34 = vpop.f32.mrf.mxu1 }
 0x33d   :  { %9956 = vmatpush3.msra.mxu1 %v15112_v1  ;;  %7850 = vmatprep.subr.mxu0 %v15117_v19  ;;  %v3848_v17 = vrot.slane %v12966_v24, %v15278_v53  ;;  %v2751_v16 = vadd.f32 %v2750_v29, %v2749_v56  ;;  %v8446_v35 = vrot.slane %v8438_v3, %v15301_v39  ;;  %v3047_v6 = vsub.f32 1.0, %v3025_v27 }
 0x33e   :  { %9957 = vmatprep.subr.mxu1 %v15112_v1  ;;  %7483 = vmatmul.mubr.f32.gmra.mxu1 %v7231_v43  ;;  %v3297_v43 = vrot.slane %v3296_v41, 1  ;;  %v8453_v54 = vrot.slane %v8439_v13, %v15301_v39  ;;  %v4098_v24 = vsel %vm15308_vm9, %v4082_v63, %v3766_v37  ;;  %v4131_v50 = vsel %vm15309_vm3, %v4115_v36, %v3934_v46  ;;  %v9628_v29 = vpop.f32.mrf.mxu0  ;;  %v6305_v11 = vpop.f32.mrf.mxu1  ;;  %vm15321_vm9 = vmmov %vm15305_vm0 }
 0x33f   :  { %9958 = vmatpush3.msra.mxu1 %v15112_v1  ;;  %7715 = vmatprep.mubr.f32.mxu1 %v7714_v21  ;;  %v3930_v44 = vrot.slane %v12944_v32, %v15278_v53  ;;  %v2855_v58 = vmul.f32 %v14577_v61, %v2751_v16  ;;  %v4114_v12 = vsel %vm563_vm7, %v4098_v24, %v3848_v17  ;;  %v2078_v31 = vand.u32 2147483648, %v14530_v42  ;;  %vm15322_vm3 = vmmov %vm15305_vm0 }
 0x340   :  { %9959 = vmatprep.subr.mxu1 %v15112_v1  ;;  %8461 = vrot.lane.b32.xlu1 %v14563_v26, %s10430_s2  ;;  %v3298_v45 = vadd.f32 %v3297_v43, %v3296_v41  ;;  %v8454_v4 = vcombine.low %v8446_v35, %v8453_v54  ;;  %v3063_v14 = vmul.f32 %v3047_v6, %v14577_v61  ;;  %v14623_v56 = vand.u32 4294901760, %v4131_v50  ;;  %v6310_v46 = vpop.f32.mrf.mxu1 }
 0x341   :  { %9960 = vmatpush3.msra.mxu1 %v15112_v1  ;;  %8383 = vrot.lane.b32.xlu0 %v14563_v26, %s10431_s3  ;;  %v3965_v10 = vsel %vm15310_vm5, %v866_v33, %v3379_v7  ;;  %vm2077_vm8 = vcmp.eq.f32.partialorder %v14530_v42, 0.0  ;;  %v4130_v39 = vsel %vm15311_vm15, %v4114_v12, %v3930_v44  ;;  %v3427_v25 = vrot.slane %v2855_v58, 4  ;;  %vm15323_vm5 = vmmov %vm15305_vm0 }
 0x342   :  { %9961 = vmatprep.subr.mxu1 %v15112_v1  ;;  %v3319_v22 = vmul.f32 %v3298_v45, %v14343_v52  ;;  %v3982_v8 = vsel %vm15312_vm12, %v3965_v10, %v14343_v52  ;;  %v3475_v48 = vrot.slane %v3063_v14, 3  ;;  %v14634_v21 = vand.u32 4294901760, %v4130_v39  ;;  %v6312_v35 = vpop.f32.mrf.mxu1  ;;  %vm15326_vm15 = vmmov %vm15305_vm0 }
 0x343   :  { %9962 = vmatpush3.msra.mxu1 %v15112_v1  ;;  %v9627_v28 = vadd.f32 %v9626_v0, %v9625_v9  ;;  %v14638_v40 = vsub.f32 %v4131_v50, %v14623_v56  ;;  %vm15314_vm11 = vcmask 1044480   ;;  %vm15315_vm10 = vcmask 1045504  }
 0x344   :  { %9963 = vmatprep.subr.mxu1 %v15112_v1  ;;  %8469 = vrot.lane.b32.xlu1 %v15303_v55, %s10430_s2  ;;  %v3523_v51 = vrot.slane %v3319_v22, 1  ;;  %v14645_v37 = vsub.f32 %v4130_v39, %v14634_v21  ;;  %vm15316_vm13 = vcmask 1046528   ;;  %v6384_v24 = vpop.f32.mrf.mxu1  ;;  %vm8464_vm14 = vcmask 261120  }
 0x345   :  { %9964 = vmatpush3.msra.mxu1 %v15112_v1  ;;  %8391 = vrot.lane.b32.xlu0 %v15303_v55, %s10431_s3  ;;  %v6304_v3 = vadd.f32 %v9627_v28, %v6303_v34  ;;  %v7727_v43 = vand.u32 4294901760, %v14638_v40  ;;  %vm8386_vm1 = vcmask 7168   ;;  %vm8616_vm12 = vcmask 785408  }
 0x346   :  { %9965 = vmatprep.subr.mxu1 %v15112_v1  ;;  %v6386_v44 = vpop.f32.mrf.mxu1 }
 0x347   :  { %v10364_v32 = vpop.eup %10363  ;;  %9966 = vmatpush3.msra.mxu1 %v15112_v1  ;;  %v7728_v7 = vsub.f32 %v14638_v40, %v7727_v43  ;;  %v6385_v50 = vadd.f32 %v6384_v24, %v6304_v3 }
 0x348   :  { %v2074_v18 = vmul.f32 %v10364_v32, %v14530_v42  ;;  %8020 = vmatprep.subr.mxu1 %v15117_v19  ;;  %v6393_v10 = vpop.f32.mrf.mxu1 }
 0x349   :  { %8455 = vrot.lane.b32.xlu0 %v8454_v4, %s10431_s3  ;;  %v7729_v14 = vand.u32 4294901760, %v7728_v7 }
 0x34a   :  { %v2076_v5 = vsel %vm2075_vm6, %v14530_v42, %v2074_v18  ;;  %v9629_v42 = vpop.f32.mrf.mxu0  ;;  %v6395_v22 = vpop.f32.mrf.mxu1  ;;  %vm15324_vm6 = vmmov %vm15305_vm0 }
 0x34b   :  { %v2079_v15 = vsel %vm2077_vm8, %v2078_v31, %v2076_v5  ;;  %v9630_v63 = vadd.f32 %v9629_v42, %v9628_v29  ;;  %vm15325_vm8 = vmmov %vm15305_vm0 }
 0x34c   :  { %v3998_v41 = vsel %vm563_vm7, %v3982_v8, %v2079_v15  ;;  %v6552_v36 = vpop.f32.mrf.mxu0  ;;  %v9663_v8 = vpop.f32.mrf.mxu1 }
 0x34d   :  { %v4015_v52 = vsel %vm15313_vm4, %v3998_v41, %v3427_v25  ;;  %v6311_v16 = vadd.f32 %v9630_v63, %v6310_v46  ;;  %vm8525_vm4 = vcmask 1039360  }
 0x34e   :  { %v4032_v13 = vsel %vm15314_vm11, %v4015_v52, %v3475_v48  ;;  %v6554_v54 = vpop.f32.mrf.mxu0  ;;  %v9664_v48 = vpop.f32.mrf.mxu1  ;;  %vm15327_vm11 = vmmov %vm15305_vm0 }
 0x34f   :  { %v4049_v27 = vsel %vm15315_vm10, %v4032_v13, %v14577_v61  ;;  %v7733_v61 = vand.u32 4294901760, %v14645_v37  ;;  %v6394_v18 = vadd.f32 %v6393_v10, %v6311_v16  ;;  %v9665_v15 = vadd.f32 %v9664_v48, %v9663_v8  ;;  %vm15328_vm10 = vmmov %vm15305_vm0 }
 0x350   :  { %v4066_v23 = vsel %vm15316_vm13, %v4049_v27, %v3523_v51  ;;  %v6559_v33 = vpop.f32.mrf.mxu0  ;;  %v9666_v51 = vpop.f32.mrf.mxu1  ;;  %vm15329_vm13 = vmmov %vm15305_vm0 }
 0x351   :  { %v14649_v17 = vand.u32 4294901760, %v4066_v23  ;;  %v7734_v4 = vsub.f32 %v14645_v37, %v7733_v61 }
 0x352   :  { %v6561_v58 = vpop.f32.mrf.mxu0  ;;  %v9667_v41 = vpop.f32.mrf.mxu1 }
 0x353   :  { %v14652_v6 = vsub.f32 %v4066_v23, %v14649_v17  ;;  %7808 = vmatmul.mubr.f32.vlgmr.msra.gmra.mxu0 %v14649_v17  ;;  %v7735_v9 = vand.u32 4294901760, %v7734_v4  ;;  %v9668_v34 = vadd.f32 %v9667_v41, %v9666_v51 }
 0x354   :  { %7813 = vmatprep.mubr.f32.mxu0 %v14623_v56  ;;  %7851 = vmatpush1.msra.mxu0 %v15117_v19  ;;  %v9701_v32 = vpop.f32.mrf.mxu0 }
 0x355   :  { %v7718_v45 = vand.u32 4294901760, %v14652_v6  ;;  %9973 = vmatprep.subr.mxu0 %v15112_v1  ;;  %v6481_v52 = vadd.f32 %v9668_v34, %v6394_v18 }
 0x356   :  { %v9702_v39 = vpop.f32.mrf.mxu0 }
 0x357   :  { %v7719_v12 = vsub.f32 %v14652_v6, %v7718_v45  ;;  %7815 = vmatmul.mubr.f32.gmra.mxu0 %v14634_v21  ;;  %v9703_v25 = vadd.f32 %v9702_v39, %v9701_v32  ;;  %v6560_v13 = vadd.f32 %v6559_v33, %v6481_v52 }
 0x358   :  { %7886 = vmatprep.mubr.f32.mxu0 %v14510_v30  ;;  %v9704_v5 = vpop.f32.mrf.mxu0 }
 0x359   :  { %v7720_v31 = vand.u32 4294901760, %v7719_v12 }
 0x35a   :  { %v9705_v0 = vpop.f32.mrf.mxu0 }
 0x35b   :  { %7721 = vmatmul.mubr.f32.vlgmr.msra.gmra.mxu1 %v7720_v31  ;;  %7889 = vmatmul.mubr.f32.vlgmr.msra.gmra.mxu0 %v14652_v6  ;;  %v9706_v28 = vadd.f32 %v9705_v0, %v9704_v5 }
 0x35c   :  { %7730 = vmatprep.mubr.f32.mxu1 %v7729_v14  ;;  %9974 = vmatpush3.msra.mxu0 %v15112_v1 }
 0x35d   :  { %9975 = vmatprep.subr.mxu0 %v15112_v1  ;;  %8021 = vmatpush1.msra.mxu1 %v15117_v19  ;;  %v6470_v19 = vadd.f32 %v9665_v15, %v6385_v50  ;;  %v6639_v42 = vadd.f32 %v9706_v28, %v6560_v13 }
 0x35e   :  { %9976 = vmatpush3.msra.mxu0 %v15112_v1  ;;  %10011 = vmatprep.subr.mxu1 %v15112_v1 }
 0x35f   :  { %7736 = vmatmul.mubr.f32.gmra.mxu1 %v7735_v9  ;;  %9977 = vmatprep.subr.mxu0 %v15112_v1  ;;  %v6553_v29 = vadd.f32 %v6552_v36, %v6470_v19 }
 0x360   :  { %8055 = vmatprep.mubr.f32.mxu1 %v14491_v38  ;;  %9978 = vmatpush3.msra.mxu0 %v15112_v1 }
 0x361   :  { %9979 = vmatprep.subr.mxu0 %v15112_v1  ;;  %7895 = vmatprep.mubr.f32.mxu0 %v14638_v40  ;;  %v6632_v3 = vadd.f32 %v9703_v25, %v6553_v29 }
 0x362   :  { %9980 = vmatpush3.msra.mxu0 %v15112_v1 }
 0x363   :  { %8057 = vmatmul.mubr.f32.vlgmr.msra.gmra.mxu1 %v14649_v17  ;;  %9981 = vmatprep.subr.mxu0 %v15112_v1 }
 0x364   :  { %10012 = vmatpush3.msra.mxu1 %v15112_v1  ;;  %9982 = vmatpush3.msra.mxu0 %v15112_v1 }
 0x365   :  { %10013 = vmatprep.subr.mxu1 %v15112_v1  ;;  %9983 = vmatprep.subr.mxu0 %v15112_v1 }
 0x366   :  { %10014 = vmatpush3.msra.mxu1 %v15112_v1  ;;  %9984 = vmatpush3.msra.mxu0 %v15112_v1 }
 0x367   :  { %10015 = vmatprep.subr.mxu1 %v15112_v1  ;;  %9985 = vmatprep.subr.mxu0 %v15112_v1 }
 0x368   :  { %10016 = vmatpush3.msra.mxu1 %v15112_v1  ;;  %9986 = vmatpush3.msra.mxu0 %v15112_v1 }
 0x369   :  { %10017 = vmatprep.subr.mxu1 %v15112_v1  ;;  %9987 = vmatprep.subr.mxu0 %v15112_v1 }
 0x36a   :  { %10018 = vmatpush3.msra.mxu1 %v15112_v1  ;;  %9988 = vmatpush3.msra.mxu0 %v15112_v1 }
 0x36b   :  { %v6805_v11 = vpop.f32.mrf.mxu0  ;;  %10019 = vmatprep.subr.mxu1 %v15112_v1  ;;  %9989 = vmatprep.subr.mxu0 %v15112_v1 }
 0x36c   :  { %10020 = vmatpush3.msra.mxu1 %v15112_v1  ;;  %9990 = vmatpush3.msra.mxu0 %v15112_v1 }
 0x36d   :  { %v6807_v27 = vpop.f32.mrf.mxu0  ;;  %10021 = vmatprep.subr.mxu1 %v15112_v1  ;;  %9991 = vmatprep.subr.mxu0 %v15112_v1 }
 0x36e   :  { %10022 = vmatpush3.msra.mxu1 %v15112_v1  ;;  %9992 = vmatpush3.msra.mxu0 %v15112_v1 }
 0x36f   :  { %v6812_v63 = vpop.f32.mrf.mxu0  ;;  %10023 = vmatprep.subr.mxu1 %v15112_v1  ;;  %9993 = vmatprep.subr.mxu0 %v15112_v1 }
 0x370   :  { %10024 = vmatpush3.msra.mxu1 %v15112_v1  ;;  %9994 = vmatpush3.msra.mxu0 %v15112_v1 }
 0x371   :  { %v6814_v23 = vpop.f32.mrf.mxu0  ;;  %10025 = vmatprep.subr.mxu1 %v15112_v1  ;;  %9995 = vmatprep.subr.mxu0 %v15112_v1 }
 0x372   :  { %10026 = vmatpush3.msra.mxu1 %v15112_v1  ;;  %9996 = vmatpush3.msra.mxu0 %v15112_v1 }
 0x373   :  { %v9739_v46 = vpop.f32.mrf.mxu1  ;;  %v6886_v36 = vpop.f32.mrf.mxu0  ;;  %10027 = vmatprep.subr.mxu1 %v15112_v1  ;;  %9997 = vmatprep.subr.mxu0 %v15112_v1 }
 0x374   :  { %10028 = vmatpush3.msra.mxu1 %v15112_v1  ;;  %9998 = vmatpush3.msra.mxu0 %v15112_v1 }
 0x375   :  { %v9740_v16 = vpop.f32.mrf.mxu1  ;;  %v6888_v35 = vpop.f32.mrf.mxu0  ;;  %10029 = vmatprep.subr.mxu1 %v15112_v1  ;;  %9999 = vmatprep.subr.mxu0 %v15112_v1 }
 0x376   :  { %v9741_v54 = vadd.f32 %v9740_v16, %v9739_v46  ;;  %10030 = vmatpush3.msra.mxu1 %v15112_v1  ;;  %10000 = vmatpush3.msra.mxu0 %v15112_v1 }
 0x377   :  { %v9742_v7 = vpop.f32.mrf.mxu1  ;;  %10031 = vmatprep.subr.mxu1 %v15112_v1  ;;  %7898 = vmatmul.mubr.f32.gmra.mxu0 %v14645_v37 }
 0x378   :  { %v6719_v24 = vadd.f32 %v9741_v54, %v6632_v3  ;;  %10032 = vmatpush3.msra.mxu1 %v15112_v1  ;;  %10001 = vmatprep.subr.mxu0 %v15112_v1 }
 0x379   :  { %v9743_v33 = vpop.f32.mrf.mxu1  ;;  %10033 = vmatprep.subr.mxu1 %v15112_v1  ;;  %10002 = vmatpush3.msra.mxu0 %v15112_v1 }
 0x37a   :  { %v6806_v50 = vadd.f32 %v6805_v11, %v6719_v24  ;;  %v9744_v44 = vadd.f32 %v9743_v33, %v9742_v7  ;;  %10034 = vmatpush3.msra.mxu1 %v15112_v1  ;;  %10003 = vmatprep.subr.mxu0 %v15112_v1 }
 0x37b   :  { %v7054_v58 = vpop.f32.mrf.mxu1  ;;  %10035 = vmatprep.subr.mxu1 %v15112_v1  ;;  %10004 = vmatpush3.msra.mxu0 %v15112_v1 }
 0x37c   :  { %v6887_v12 = vadd.f32 %v6886_v36, %v6806_v50  ;;  %v6734_v4 = vadd.f32 %v9744_v44, %v6639_v42  ;;  %10036 = vmatpush3.msra.mxu1 %v15112_v1  ;;  %7970 = vmatprep.mubr.f32.mxu0 %v7712_v59  ;;  %v15318_v50 = vld [vmem:[#allocation13_spill] sm:$0xff] }
 0x37d   :  { %v7056_v14 = vpop.f32.mrf.mxu1  ;;  %10037 = vmatprep.subr.mxu1 %v15112_v1  ;;  %8062 = vmatprep.mubr.f32.mxu1 %v14623_v56 }
 0x37e   :  { %v6813_v10 = vadd.f32 %v6812_v63, %v6734_v4  ;;  %10038 = vmatpush3.msra.mxu1 %v15112_v1  ;;  %7974 = vmatmul.mubr.f32.vlgmr.msra.gmra.mxu0 %v7718_v45 }
 0x37f   :  { %8064 = vmatmul.mubr.f32.gmra.mxu1 %v14634_v21  ;;  %10039 = vmatprep.subr.mxu1 %v15112_v1 }
 0x380   :  { %10040 = vmatpush3.msra.mxu1 %v15112_v1  ;;  %7981 = vmatprep.mubr.f32.mxu0 %v7727_v43 }
 0x381   :  { %10041 = vmatprep.subr.mxu1 %v15112_v1  ;;  %8134 = vmatprep.mubr.f32.mxu1 %v14491_v38 }
 0x382   :  { %10042 = vmatpush3.msra.mxu1 %v15112_v1  ;;  %7985 = vmatmul.mubr.f32.gmra.mxu0 %v7733_v61 }
 0x383   :  { %8136 = vmatmul.mubr.f32.vlgmr.msra.gmra.mxu1 %v14649_v17 }
 0x384   :  { %8141 = vmatprep.mubr.f32.mxu1 %v14623_v56 }
 0x387   :  { %8143 = vmatmul.mubr.f32.gmra.mxu1 %v14634_v21 }
 0x390   :  { %v6895_v30 = vpop.f32.mrf.mxu0 }
 0x391   :  { %v6896_v59 = vadd.f32 %v6895_v30, %v6813_v10 }
 0x392   :  { %v6897_v6 = vpop.f32.mrf.mxu0 }
 0x397   :  { %v7061_v40 = vpop.f32.mrf.mxu1 }
 0x398   :  { %v9777_v43 = vpop.f32.mrf.mxu0 }
 0x399   :  { %v7063_v45 = vpop.f32.mrf.mxu1 }
 0x39a   :  { %v9778_v32 = vpop.f32.mrf.mxu0 }
 0x39b   :  { %v9779_v31 = vadd.f32 %v9778_v32, %v9777_v43 }
 0x39c   :  { %v9815_v38 = vpop.f32.mrf.mxu1 }
 0x39d   :  { %v6972_v18 = vadd.f32 %v9779_v31, %v6887_v12 }
 0x39e   :  { %v9816_v1 = vpop.f32.mrf.mxu1 }
 0x39f   :  { %v7055_v22 = vadd.f32 %v7054_v58, %v6972_v18  ;;  %v9817_v37 = vadd.f32 %v9816_v1, %v9815_v38 }
 0x3a0   :  { %v9818_v61 = vpop.f32.mrf.mxu1 }
 0x3a1   :  { %v14754_v39 = vadd.f32 %v9817_v37, %v7055_v22 }
 0x3a2   :  { %v9819_v17 = vpop.f32.mrf.mxu1 }
 0x3a3   :  { %v9820_v56 = vadd.f32 %v9819_v17, %v9818_v61 }
 0x3a4   :  { %v9780_v9 = vpop.f32.mrf.mxu0 }
 0x3a6   :  { %v9781_v21 = vpop.f32.mrf.mxu0 }
 0x3a7   :  { %v9782_v25 = vadd.f32 %v9781_v21, %v9780_v9 }
 0x3a9   :  { %v6983_v8 = vadd.f32 %v9782_v25, %v6896_v59  ;;  %v15319_v59 = vld [vmem:[#allocation14_spill] sm:$0xff] }
 0x3ab   :  { %v7062_v5 = vadd.f32 %v7061_v40, %v6983_v8 }
 0x3ad   :  { %v14756_v48 = vadd.f32 %v9820_v56, %v7062_v5 }
 0x3b2   :  { %v8462_v0 = vpop.permute.xlu1 %8461 }
 0x3b3   :  { %v8463_v15 = vrot.slane %v8462_v0, 7  ;;  %v8384_v28 = vpop.permute.xlu0 %8383 }
 0x3b4   :  { %v8385_v51 = vrot.slane %v8384_v28, 7 }
 0x3b5   :  { %v8465_v19 = vsel %vm8464_vm14, %v8463_v15, %v8462_v0 }
 0x3b6   :  { %v8467_v41 = vsub.f32 %v14563_v26, %v8465_v19  ;;  %v8387_v29 = vsel %vm8386_vm1, %v8385_v51, %v8384_v28  ;;  %v8470_v34 = vpop.permute.xlu1 %8469 }
 0x3b7   :  { %v8389_v52 = vsub.f32 %v14563_v26, %v8387_v29  ;;  %v8471_v3 = vrot.slane %v8470_v34, 7  ;;  %v8392_v13 = vpop.permute.xlu0 %8391  ;;  %v15317_v26 = vld [vmem:[#allocation12_spill] sm:$0xff]  ;;  %v8313_v29 = vmul.f32 %v14523_v57, %v14523_v57 }
 0x3b8   :  { %v8393_v42 = vrot.slane %v8392_v13, 7  ;;  %v8468_v27 = vand.u32 2147483647, %v8467_v41 }
 0x3b9   :  { %v8472_v11 = vsel %vm8464_vm14, %v8471_v3, %v8470_v34  ;;  %v8390_v46 = vand.u32 2147483647, %v8389_v52  ;;  %v8314_v3 = vmul.f32 %v8313_v29, %v15303_v55 }
 0x3ba   :  { %v8474_v63 = vmul.f32 %v8472_v11, %v15303_v55  ;;  %v8394_v23 = vsel %vm8386_vm1, %v8393_v42, %v8392_v13 }
 0x3bb   :  { %v8396_v36 = vmul.f32 %v8394_v23, %v15303_v55  ;;  %v8456_v16 = vpop.permute.xlu0 %8455  ;;  %v8319_v11 = vrot.slane %v8314_v3, %v15318_v50  ;;  %v8323_v57 = vrot.slane %v8314_v3, %v15317_v26  ;;  %v8327_v23 = vrot.slane %v8314_v3, %v11159_v49 }
 0x3bc   :  { %v8475_v35 = vmul.f32 %v8474_v63, %v8468_v27  ;;  %v8457_v54 = vrot.slane %v8456_v16, 7  ;;  %v8331_v55 = vrot.slane %v8314_v3, %v15319_v59 }
 0x3bd   :  { %v8397_v7 = vmul.f32 %v8396_v36, %v8390_v46  ;;  %v8356_v27 = vsel %vm15305_vm0, %v8319_v11, 0.0  ;;  %v8357_v63 = vsel %vm15320_vm2, %v8323_v57, 0.0  ;;  %vm15330_vm2 = vmmov %vm15305_vm0 }
 0x3be   :  { %v14767_v24 = vsel %vm8386_vm1, %v8457_v54, %v8456_v16  ;;  %v8575_v33 = vrot.slane %v8475_v35, %v15317_v26  ;;  %v8571_v44 = vrot.slane %v8475_v35, %v15318_v50  ;;  %v8579_v4 = vrot.slane %v8475_v35, %v11159_v49 }
 0x3bf   :  { %v8460_v58 = vmul.f32 %v14767_v24, %v8397_v7  ;;  %v8583_v6 = vrot.slane %v8475_v35, %v15319_v59  ;;  %v8587_v31 = vrot.slane %v8475_v35, %v11649_v20  ;;  %v8591_v15 = vrot.slane %v8475_v35, %v11544_v47 }
 0x3c0   :  { %8602 = vrot.lane.b32.xlu1 %v8575_v33, %s10432_s4  ;;  %8600 = vrot.lane.b32.xlu0 %v8571_v44, %s10432_s4  ;;  %v7307_v12 = vpop.f32.mrf.mxu1  ;;  %v8595_v19 = vrot.slane %v8475_v35, %v15278_v53  ;;  %v8358_v46 = vadd.f32 %v8357_v63, %v8356_v27  ;;  %v8359_v16 = vsel %vm15321_vm9, %v8327_v23, 0.0  ;;  %v8335_v33 = vrot.slane %v8314_v3, %v11649_v20  ;;  %vm15331_vm9 = vmmov %vm15305_vm0 }
 0x3c1   :  { %v8480_v14 = vrot.slane %v8460_v58, %v15318_v50  ;;  %v8488_v40 = vrot.slane %v8460_v58, %v11159_v49  ;;  %v8492_v38 = vrot.slane %v8460_v58, %v15319_v59  ;;  %v8484_v17 = vrot.slane %v8460_v58, %v15317_v26 }
 0x3c2   :  { %v7309_v10 = vpop.f32.mrf.mxu1  ;;  %v8496_v56 = vrot.slane %v8460_v58, %v11649_v20  ;;  %v8500_v28 = vrot.slane %v8460_v58, %v11544_v47  ;;  %v8504_v41 = vrot.slane %v8460_v58, %v15278_v53  ;;  %v8508_v34 = vrot.slane %v8460_v58, %v15267_v60 }
 0x3c3   :  { %v8361_v44 = vsel %vm15322_vm3, %v8331_v55, 0.0  ;;  %v8339_v10 = vrot.slane %v8314_v3, %v11544_v47  ;;  %vm15332_vm3 = vmmov %vm15305_vm0 }
 0x3c4   :  { %8604 = vrot.lane.b32.xlu0 %v8579_v4, %s10432_s4  ;;  %8509 = vrot.lane.b32.xlu1 %v8480_v14, %s10433_s5  ;;  %v7314_v30 = vpop.f32.mrf.mxu1 }
 0x3c6   :  { %v7316_v43 = vpop.f32.mrf.mxu1 }
 0x3c7   :  { %v8343_v43 = vrot.slane %v8314_v3, %v15278_v53 }
 0x3c8   :  { %8606 = vrot.lane.b32.xlu0 %v8583_v6, %s10432_s4  ;;  %8513 = vrot.lane.b32.xlu1 %v8488_v40, %s10433_s5  ;;  %v9853_v45 = vpop.f32.mrf.mxu0  ;;  %v7388_v32 = vpop.f32.mrf.mxu1 }
 0x3ca   :  { %v9854_v18 = vpop.f32.mrf.mxu0  ;;  %v7390_v1 = vpop.f32.mrf.mxu1 }
 0x3cb   :  { %v9855_v22 = vadd.f32 %v9854_v18, %v9853_v45  ;;  %v8365_v45 = vsel %vm15324_vm6, %v8339_v10, 0.0  ;;  %v8347_v18 = vrot.slane %v8314_v3, %v15267_v60  ;;  %v8367_v1 = vsel %vm15325_vm8, %v8343_v43, 0.0  ;;  %vm15334_vm6 = vmmov %vm15305_vm0 }
 0x3cc   :  { %8608 = vrot.lane.b32.xlu0 %v8587_v31, %s10432_s4  ;;  %8515 = vrot.lane.b32.xlu1 %v8492_v38, %s10433_s5  ;;  %v9856_v37 = vpop.f32.mrf.mxu0  ;;  %vm15335_vm8 = vmmov %vm15305_vm0 }
 0x3cd   :  { %v7221_v61 = vadd.f32 %v9855_v22, %v14754_v39 }
 0x3ce   :  { %v9857_v9 = vpop.f32.mrf.mxu0 }
 0x3cf   :  { %v7308_v21 = vadd.f32 %v7307_v12, %v7221_v61  ;;  %v9858_v25 = vadd.f32 %v9857_v9, %v9856_v37  ;;  %v8369_v9 = vsel %vm15326_vm15, %v8347_v18, 0.0  ;;  %vm15336_vm15 = vmmov %vm15305_vm0 }
 0x3d0   :  { %8511 = vrot.lane.b32.xlu0 %v8484_v17, %s10433_s5  ;;  %8517 = vrot.lane.b32.xlu1 %v8496_v56, %s10433_s5  ;;  %v7556_v8 = vpop.f32.mrf.mxu0 }
 0x3d1   :  { %v7236_v5 = vadd.f32 %v9858_v25, %v14756_v48  ;;  %v7389_v0 = vadd.f32 %v7388_v32, %v7308_v21  ;;  %v8599_v48 = vrot.slane %v8475_v35, %v15267_v60  ;;  %v8360_v35 = vadd.f32 %v8359_v16, %v8358_v46 }
 0x3d2   :  { %v7558_v39 = vpop.f32.mrf.mxu0 }
 0x3d3   :  { %v7315_v51 = vadd.f32 %v7314_v30, %v7236_v5  ;;  %v8362_v12 = vadd.f32 %v8361_v44, %v8360_v35  ;;  %v8363_v30 = vsel %vm15323_vm5, %v8335_v33, 0.0  ;;  %vm15333_vm5 = vmmov %vm15305_vm0 }
 0x3d4   :  { %8610 = vrot.lane.b32.xlu0 %v8591_v15, %s10432_s4  ;;  %8519 = vrot.lane.b32.xlu1 %v8500_v28, %s10433_s5 }
 0x3d5   :  { %v8364_v6 = vadd.f32 %v8363_v30, %v8362_v12 }
 0x3d7   :  { %v8366_v32 = vadd.f32 %v8365_v45, %v8364_v6 }
 0x3d8   :  { %8612 = vrot.lane.b32.xlu0 %v8595_v19, %s10432_s4  ;;  %8521 = vrot.lane.b32.xlu1 %v8504_v41, %s10433_s5 }
 0x3d9   :  { %v8368_v37 = vadd.f32 %v8367_v1, %v8366_v32 }
 0x3da   :  { %v7397_v52 = vpop.f32.mrf.mxu1 }
 0x3db   :  { %v7398_v13 = vadd.f32 %v7397_v52, %v7315_v51  ;;  %v8370_v25 = vadd.f32 %v8369_v9, %v8368_v37 }
 0x3dc   :  { %8614 = vrot.lane.b32.xlu0 %v8599_v48, %s10432_s4  ;;  %8523 = vrot.lane.b32.xlu1 %v8508_v34, %s10433_s5  ;;  %v7399_v42 = vpop.f32.mrf.mxu1 }
 0x3e8   :  { %v9891_v36 = vpop.f32.mrf.mxu1 }
 0x3ea   :  { %v9892_v54 = vpop.f32.mrf.mxu1 }
 0x3eb   :  { %v9893_v7 = vadd.f32 %v9892_v54, %v9891_v36 }
 0x3ed   :  { %v7474_v58 = vadd.f32 %v9893_v7, %v7389_v0 }
 0x3ef   :  { %v7557_v4 = vadd.f32 %v7556_v8, %v7474_v58 }
 0x3f0   :  { %v7563_v14 = vpop.f32.mrf.mxu0 }
 0x3f2   :  { %v7565_v40 = vpop.f32.mrf.mxu0 }
 0x3f6   :  { %v9929_v31 = vpop.f32.mrf.mxu0 }
 0x3f8   :  { %v9930_v38 = vpop.f32.mrf.mxu0 }
 0x3f9   :  { %v9931_v22 = vadd.f32 %v9930_v38, %v9929_v31 }
 0x3fa   :  { %v9932_v61 = vpop.f32.mrf.mxu0 }
 0x3fb   :  { %v7636_v17 = vadd.f32 %v9931_v22, %v7557_v4 }
 0x3fc   :  { %v9933_v56 = vpop.f32.mrf.mxu0 }
 0x3fd   :  { %v9934_v21 = vadd.f32 %v9933_v56, %v9932_v61 }
 0x3fe   :  { %v9894_v8 = vpop.f32.mrf.mxu1 }
 0x400   :  { %8371 = vadd.xlane.f32.xlu1 %v8370_v25  ;;  %v9895_v5 = vpop.f32.mrf.mxu1 }
 0x401   :  { %v9896_v0 = vadd.f32 %v9895_v5, %v9894_v8 }
 0x403   :  { %v7485_v15 = vadd.f32 %v9896_v0, %v7398_v13 }
 0x405   :  { %v7564_v28 = vadd.f32 %v7563_v14, %v7485_v15 }
 0x407   :  { %v7643_v39 = vadd.f32 %v9934_v21, %v7564_v28 }
 0x413   :  { %v7809_v51 = vpop.f32.mrf.mxu0 }
 0x415   :  { %v7811_v19 = vpop.f32.mrf.mxu0 }
 0x417   :  { %v7816_v41 = vpop.f32.mrf.mxu0 }
 0x419   :  { %v7818_v29 = vpop.f32.mrf.mxu0 }
 0x41b   :  { %v9967_v48 = vpop.f32.mrf.mxu1  ;;  %v7890_v34 = vpop.f32.mrf.mxu0 }
 0x41d   :  { %v9968_v52 = vpop.f32.mrf.mxu1  ;;  %v7892_v3 = vpop.f32.mrf.mxu0 }
 0x41e   :  { %v9969_v42 = vadd.f32 %v9968_v52, %v9967_v48 }
 0x41f   :  { %v9970_v11 = vpop.f32.mrf.mxu1 }
 0x420   :  { %v7723_v57 = vadd.f32 %v9969_v42, %v7636_v17 }
 0x421   :  { %v9971_v27 = vpop.f32.mrf.mxu1 }
 0x422   :  { %v7810_v63 = vadd.f32 %v7809_v51, %v7723_v57  ;;  %v9972_v23 = vadd.f32 %v9971_v27, %v9970_v11 }
 0x423   :  { %v8058_v46 = vpop.f32.mrf.mxu1 }
 0x424   :  { %v7891_v36 = vadd.f32 %v7890_v34, %v7810_v63  ;;  %v7738_v55 = vadd.f32 %v9972_v23, %v7643_v39 }
 0x425   :  { %v8060_v13 = vpop.f32.mrf.mxu1 }
 0x426   :  { %v7817_v16 = vadd.f32 %v7816_v41, %v7738_v55 }
 0x432   :  { %v8603_v35 = vpop.permute.xlu1 %8602  ;;  %v8601_v54 = vpop.permute.xlu0 %8600 }
 0x433   :  { %v8617_v22 = vsel %vm8616_vm12, %v8601_v54, %v8603_v35 }
 0x434   :  { %v8632_v34 = vsel %vm15305_vm0, %v8617_v22, 0.0 }
 0x436   :  { %v8510_v7 = vpop.permute.xlu1 %8509  ;;  %v8605_v33 = vpop.permute.xlu0 %8604 }
 0x437   :  { %v7899_v44 = vpop.f32.mrf.mxu0  ;;  %v8618_v37 = vsel %vm8616_vm12, %v8603_v35, %v8605_v33 }
 0x438   :  { %v7900_v58 = vadd.f32 %v7899_v44, %v7817_v16  ;;  %v8633_v51 = vsel %vm15329_vm13, %v8618_v37, 0.0  ;;  %vm15338_vm13 = vmmov %vm15305_vm0 }
 0x439   :  { %v7901_v12 = vpop.f32.mrf.mxu0 }
 0x43a   :  { %v8514_v4 = vpop.permute.xlu1 %8513  ;;  %v8607_v14 = vpop.permute.xlu0 %8606 }
 0x43b   :  { %v8619_v56 = vsel %vm8616_vm12, %v8605_v33, %v8607_v14 }
 0x43c   :  { %v8635_v57 = vsel %vm15331_vm9, %v8619_v56, 0.0  ;;  %vm15343_vm9 = vmmov %vm15305_vm0 }
 0x43e   :  { %v10005_v10 = vpop.f32.mrf.mxu0  ;;  %v8516_v30 = vpop.permute.xlu1 %8515 }
 0x43f   :  { %v8065_v6 = vpop.f32.mrf.mxu1  ;;  %v8609_v40 = vpop.permute.xlu0 %8608  ;;  %v8528_v9 = vsel %vm8525_vm4, %v8514_v4, %v8516_v30 }
 0x440   :  { %v10006_v43 = vpop.f32.mrf.mxu0  ;;  %v8544_v52 = vsel %vm15330_vm2, %v8528_v9, 0.0  ;;  %v8620_v3 = vsel %vm8616_vm12, %v8607_v14, %v8609_v40  ;;  %vm8645_vm2 = vcmask 778240  }
 0x441   :  { %v10007_v45 = vadd.f32 %v10006_v43, %v10005_v10  ;;  %v8067_v32 = vpop.f32.mrf.mxu1  ;;  %v8637_v13 = vsel %vm15333_vm5, %v8620_v3, 0.0  ;;  %vm15345_vm5 = vmmov %vm15305_vm0 }
 0x442   :  { %v10008_v31 = vpop.f32.mrf.mxu0  ;;  %v8518_v38 = vpop.permute.xlu1 %8517 }
 0x443   :  { %v7976_v18 = vadd.f32 %v10007_v45, %v7891_v36  ;;  %v10043_v1 = vpop.f32.mrf.mxu1  ;;  %v8512_v61 = vpop.permute.xlu0 %8511  ;;  %v8529_v19 = vsel %vm8525_vm4, %v8516_v30, %v8518_v38 }
 0x444   :  { %v10009_v17 = vpop.f32.mrf.mxu0  ;;  %v8526_v21 = vsel %vm8525_vm4, %v8510_v7, %v8512_v61  ;;  %v8527_v25 = vsel %vm8525_vm4, %v8512_v61, %v8514_v4  ;;  %v8546_v36 = vsel %vm15332_vm3, %v8529_v19, 0.0  ;;  %vm15344_vm3 = vmmov %vm15305_vm0 }
 0x445   :  { %v10010_v8 = vadd.f32 %v10009_v17, %v10008_v31  ;;  %v8059_v5 = vadd.f32 %v8058_v46, %v7976_v18  ;;  %v10044_v0 = vpop.f32.mrf.mxu1  ;;  %v8541_v15 = vsel %vm15327_vm11, %v8526_v21, 0.0  ;;  %v8542_v28 = vsel %vm15328_vm10, %v8527_v25, 0.0  ;;  %vm15337_vm11 = vmmov %vm15305_vm0 }
 0x446   :  { %v10045_v39 = vadd.f32 %v10044_v0, %v10043_v1  ;;  %v8543_v41 = vadd.f32 %v8542_v28, %v8541_v15  ;;  %v8520_v29 = vpop.permute.xlu1 %8519  ;;  %v8634_v46 = vadd.f32 %v8633_v51, %v8632_v34  ;;  %vm8554_vm10 = vcmask 1032192  }
 0x447   :  { %v7987_v48 = vadd.f32 %v10010_v8, %v7900_v58  ;;  %v8611_v42 = vpop.permute.xlu0 %8610  ;;  %v8530_v63 = vsel %vm8525_vm4, %v8518_v38, %v8520_v29  ;;  %v10046_v19 = vpop.f32.mrf.mxu1 }
 0x448   :  { %v14836_v11 = vadd.f32 %v10045_v39, %v8059_v5  ;;  %v8545_v27 = vadd.f32 %v8544_v52, %v8543_v41  ;;  %v8621_v55 = vsel %vm8616_vm12, %v8609_v40, %v8611_v42  ;;  %v8636_v54 = vadd.f32 %v8635_v57, %v8634_v46 }
 0x449   :  { %v8066_v23 = vadd.f32 %v8065_v6, %v7987_v48  ;;  %v8548_v7 = vsel %vm15334_vm6, %v8530_v63, 0.0  ;;  %v8639_v12 = vsel %vm15335_vm8, %v8621_v55, 0.0  ;;  %v10047_v52 = vpop.f32.mrf.mxu1  ;;  %vm15346_vm6 = vmmov %vm15305_vm0 }
 0x44a   :  { %v8547_v16 = vadd.f32 %v8546_v36, %v8545_v27  ;;  %v8522_v35 = vpop.permute.xlu1 %8521  ;;  %v8638_v10 = vadd.f32 %v8637_v13, %v8636_v54  ;;  %v10048_v57 = vadd.f32 %v10047_v52, %v10046_v19  ;;  %vm15347_vm8 = vmmov %vm15305_vm0 }
 0x44b   :  { %v8531_v33 = vsel %vm8525_vm4, %v8520_v29, %v8522_v35  ;;  %v8613_v44 = vpop.permute.xlu0 %8612 }
 0x44c   :  { %v8549_v58 = vadd.f32 %v8548_v7, %v8547_v16  ;;  %v8550_v4 = vsel %vm15336_vm15, %v8531_v33, 0.0  ;;  %v8622_v14 = vsel %vm8616_vm12, %v8611_v42, %v8613_v44  ;;  %v8640_v40 = vadd.f32 %v8639_v12, %v8638_v10  ;;  %v15339_v12 = vld [vmem:[#allocation17_spill] sm:$0xff]  ;;  %vm15348_vm15 = vmmov %vm15305_vm0 }
 0x44d   :  { %v8641_v30 = vsel %vm15337_vm11, %v8622_v14, 0.0  ;;  %v8145_v55 = vadd.f32 %v10048_v57, %v8066_v23  ;;  %vm15349_vm11 = vmmov %vm15305_vm0 }
 0x44e   :  { %v8524_v6 = vpop.permute.xlu1 %8523  ;;  %v8551_v43 = vadd.f32 %v8550_v4, %v8549_v58  ;;  %v8642_v18 = vadd.f32 %v8641_v30, %v8640_v40  ;;  %v15340_v30 = vld [vmem:[#allocation18_spill] sm:$0xff] }
 0x44f   :  { %v8532_v45 = vsel %vm8525_vm4, %v8522_v35, %v8524_v6  ;;  %v8615_v32 = vpop.permute.xlu0 %8614  ;;  %v8555_v37 = vsel %vm8554_vm10, %v8524_v6, 0.0  ;;  %v8659_v35 = vrot.slane %v8145_v55, 1  ;;  %v8661_v54 = vrot.slane %v8145_v55, 2 }
 0x450   :  { %v8552_v31 = vsel %vm15338_vm13, %v8532_v45, 0.0  ;;  %v8623_v38 = vsel %vm8616_vm12, %v8613_v44, %v8615_v32  ;;  %v8646_v56 = vsel %vm8645_vm2, %v8615_v32, 0.0  ;;  %v8663_v7 = vrot.slane %v8145_v55, 3  ;;  %vm15350_vm13 = vmmov %vm15305_vm0 }
 0x451   :  { %v8643_v1 = vsel %vm15305_vm0, %v8623_v38, 0.0  ;;  %v8553_v22 = vadd.f32 %v8552_v31, %v8551_v43  ;;  %v8665_v33 = vrot.slane %v8145_v55, 4 }
 0x452   :  { %v8644_v17 = vadd.f32 %v8643_v1, %v8642_v18 }
 0x453   :  { %v8556_v61 = vadd.f32 %v8555_v37, %v8553_v22 }
 0x454   :  { %v8647_v9 = vadd.f32 %v8646_v56, %v8644_v17 }
 0x455   :  { %8557 = vadd.xlane.f32.xlu0 %v8556_v61 }
 0x459   :  { %8648 = vadd.xlane.f32.xlu0 %v8647_v9 }
 0x46f   :  { %8771 = vrot.lane.b32.xlu0 %v12867_v62, %s10431_s3 }
 0x489   :  { %v8372_v21 = vpop.xlane.xlu1 %8371 }
 0x48a   :  { %v8373_v25 = vrot.slane %v8372_v21, 4 }
 0x48c   :  { %v8374_v8 = vadd.f32 %v8373_v25, %v8372_v21 }
 0x48e   :  { %v8375_v5 = vrot.slane %v8374_v8, 2 }
 0x490   :  { %v8376_v0 = vadd.f32 %v8375_v5, %v8374_v8 }
 0x492   :  { %v8377_v15 = vrot.slane %v8376_v0, 1 }
 0x494   :  { %v8378_v28 = vadd.f32 %v8377_v15, %v8376_v0 }
 0x496   :  { %10063 = vpush %v8378_v28 }
 0x4c7   :  { %s14857_s6 = spop %10063 }
 0x4de   :  { %v8558_v39 = vpop.xlane.xlu0 %8557 }
 0x4df   :  { %v8559_v51 = vrot.slane %v8558_v39, 4 }
 0x4e1   :  { %v8560_v41 = vadd.f32 %v8559_v51, %v8558_v39 }
 0x4e2   :  { %v8649_v29 = vpop.xlane.xlu0 %8648 }
 0x4e3   :  { %v8561_v48 = vrot.slane %v8560_v41, 2  ;;  %v8650_v34 = vrot.slane %v8649_v29, 4 }
 0x4e5   :  { %v8651_v3 = vadd.f32 %v8650_v34, %v8649_v29  ;;  %v8562_v42 = vadd.f32 %v8561_v48, %v8560_v41 }
 0x4e6   :  { %v8772_v43 = vpop.permute.xlu0 %8771 }
 0x4e7   :  { %v8652_v27 = vrot.slane %v8651_v3, 2  ;;  %v8563_v63 = vrot.slane %v8562_v42, 1  ;;  %v8773_v31 = vrot.slane %v8772_v43, 7 }
 0x4e9   :  { %v8564_v46 = vadd.f32 %v8563_v63, %v8562_v42  ;;  %v8653_v36 = vadd.f32 %v8652_v27, %v8651_v3  ;;  %v8774_v22 = vsel %vm8386_vm1, %v8773_v31, %v8772_v43 }
 0x4ea   :  { %v8776_v56 = vmul.f32 %v8774_v22, %v12867_v62 }
 0x4eb   :  { %10065 = vpush %v8564_v46  ;;  %v8654_v13 = vrot.slane %v8653_v36, 1 }
 0x4ed   :  { %v8655_v16 = vadd.f32 %v8654_v13, %v8653_v36 }
 0x4ef   :  { %10067 = vpush %v8655_v16 }
 0x4f0   :  { %10069 = vpush %v8145_v55 }
 0x4f1   :  { %10071 = vpush %v8659_v35 }
 0x4f2   :  { %10073 = vpush %v8661_v54 }
 0x4f3   :  { %10075 = vpush %v8663_v7 }
 0x4f4   :  { %10077 = vpush %v8665_v33 }
 0x51c   :  { %s14859_s7 = spop %10065 }
 0x520   :  { %s14861_s8 = spop %10067 }
 0x521   :  { %s8657_s9 = sadd.f32 %s14861_s8, %s14859_s7  ;;  %s10070_s10 = spop %10069 }
 0x522   :  { %s10072_s11 = spop %10071 }
 0x523   :  { %s8668_s12 = smul.f32 %s10072_s11, %s10072_s11  ;;  %s8680_s0 = ssub.f32 0.0, %s10072_s11 }
 0x524   :  { %s14865_s13 = spop %10073 }
 0x525   :  { %s8667_s14 = smul.f32 %s14865_s13, %s10070_s10  ;;  %s10076_s15 = spop %10075 }
 0x526   :  { %s8672_s18 = smul.f32 %s10076_s15, %s14865_s13  ;;  %s10078_s20 = spop %10077 }
 0x527   :  { %s8669_s17 = ssub.f32 %s8667_s14, %s8668_s12  ;;  %s8681_s19 = smul.f32 %s10076_s15, %s8680_s0 }
 0x528   :  { %s8673_s21 = smul.f32 %s10078_s20, %s10072_s11 }
 0x529   :  { %p8670_p6 = scmp.eq.f32.partialorder %s8669_s17, 0.0  ;;  %s8682_s22 = smul.f32 %s10078_s20, %s10070_s10 }
 0x52a   :  { %s8674_s24 = ssub.f32 %s8672_s18, %s8673_s21 }
 0x52b   :  { %s8671_s23 = scalar_select %p8670_p6, 1.0, %s8669_s17 }
 0x52c   :  { %s8683_s25 = sadd.f32 %s8682_s22, %s8681_s19 }
 0x52d   :  { %v8675_v23 = vstv %s8671_s23 }
 0x52e   :  { %10365 = vrcp.f32 %v8675_v23 }
 0x53b   :  { %v10366_v44 = vpop.eup %10365 }
 0x53c   :  { %10079 = vpush %v10366_v44 }
 0x56d   :  { %s10080_s26 = spop %10079 }
 0x56e   :  { %s8678_s27 = smul.f32 %s10080_s26, %s8674_s24 }
 0x56f   :  { %s8687_s28 = smul.f32 %s10080_s26, %s8683_s25 }
 0x570   :  { %s15373_s27 = smov (%p8670_p6, %s8678_s27), 0.0 }
 0x571   :  { %s15375_s28 = smov (%p8670_p6, %s8687_s28), 0.0  ;;  %v8689_v58 = vstv %s15373_s27 }
 0x572   :  { %v8690_v4 = vmul.f32 %v8689_v58, %v15339_v12  ;;  %v8691_v14 = vstv %s15375_s28 }
 0x574   :  { %v8692_v10 = vadd.f32 %v8691_v14, %v8690_v4 }
 0x576   :  { %v8693_v6 = vsub.f32 %v8692_v10, %v15340_v30 }
 0x578   :  { %v8762_v40 = vmul.f32 %v8693_v6, %v12867_v62  ;;  %v8694_v57 = vmul.f32 %v8693_v6, %v8693_v6 }
 0x57a   :  { %8764 = vrot.lane.b32.xlu1 %v8762_v40, %s10431_s3  ;;  %v8695_v46 = vmul.f32 %v8694_v57, %v12867_v62 }
 0x57c   :  { %v8700_v35 = vrot.slane %v8695_v46, %v15318_v50  ;;  %v8704_v54 = vrot.slane %v8695_v46, %v15317_v26  ;;  %v8708_v33 = vrot.slane %v8695_v46, %v11159_v49  ;;  %v8712_v44 = vrot.slane %v8695_v46, %v15319_v59 }
 0x57d   :  { %v8720_v14 = vrot.slane %v8695_v46, %v11544_v47  ;;  %v8724_v6 = vrot.slane %v8695_v46, %v15278_v53 }
 0x57e   :  { %8779 = vrot.lane.b32.xlu1 %v8762_v40, %s10430_s2  ;;  %v8740_v58 = vsel %vm15343_vm9, %v8708_v33, 0.0  ;;  %vm15353_vm9 = vmmov %vm15305_vm0 }
 0x57f   :  { %v8748_v43 = vsel %vm15347_vm8, %v8724_v6, 0.0  ;;  %vm15357_vm8 = vmmov %vm15305_vm0 }
 0x582   :  { %8786 = vrot.lane.b32.xlu1 %v12867_v62, %s10430_s2 }
 0x5ec   :  { %v8765_v45 = vpop.permute.xlu1 %8764 }
 0x5ed   :  { %v8766_v32 = vrot.slane %v8765_v45, 7 }
 0x5ef   :  { %v8767_v38 = vsel %vm8386_vm1, %v8766_v32, %v8765_v45  ;;  %vm15342_vm1 = vmmov %vm15305_vm0 }
 0x5f0   :  { %v8769_v18 = vsub.f32 %v8762_v40, %v8767_v38  ;;  %v8780_v1 = vpop.permute.xlu1 %8779  ;;  %v8738_v7 = vsel %vm15342_vm1, %v8704_v54, 0.0  ;;  %vm15352_vm1 = vmmov %vm15305_vm0 }
 0x5f1   :  { %v8781_v37 = vrot.slane %v8780_v1, 7 }
 0x5f2   :  { %v8770_v17 = vand.u32 2147483647, %v8769_v18 }
 0x5f3   :  { %v8782_v61 = vsel %vm8464_vm14, %v8781_v37, %v8780_v1 }
 0x5f4   :  { %v8784_v9 = vsub.f32 %v8762_v40, %v8782_v61  ;;  %v8787_v21 = vpop.permute.xlu1 %8786  ;;  %v8777_v5 = vmul.f32 %v8776_v56, %v8770_v17 }
 0x5f5   :  { %v8788_v25 = vrot.slane %v8787_v21, 7 }
 0x5f6   :  { %v8785_v0 = vand.u32 2147483647, %v8784_v9  ;;  %v8778_v39 = vmul.f32 %v8777_v5, %v14767_v24 }
 0x5f7   :  { %v8789_v8 = vsel %vm8464_vm14, %v8788_v25, %v8787_v21  ;;  %vm15341_vm14 = vmmov %vm15305_vm0 }
 0x5f8   :  { %v8791_v15 = vmul.f32 %v8789_v8, %v12867_v62  ;;  %v8797_v41 = vrot.slane %v8778_v39, %v15318_v50  ;;  %v8805_v48 = vrot.slane %v8778_v39, %v11159_v49  ;;  %v8809_v34 = vrot.slane %v8778_v39, %v15319_v59 }
 0x5f9   :  { %v8813_v3 = vrot.slane %v8778_v39, %v11649_v20  ;;  %v8801_v42 = vrot.slane %v8778_v39, %v15317_v26  ;;  %v8817_v27 = vrot.slane %v8778_v39, %v11544_v47  ;;  %v8821_v36 = vrot.slane %v8778_v39, %v15278_v53 }
 0x5fa   :  { %v8792_v28 = vmul.f32 %v8791_v15, %v8785_v0  ;;  %v8825_v13 = vrot.slane %v8778_v39, %v15267_v60  ;;  %v8737_v62 = vsel %vm15341_vm14, %v8700_v35, 0.0  ;;  %vm15351_vm14 = vmmov %vm15305_vm0 }
 0x5fb   :  { %v8739_v23 = vadd.f32 %v8738_v7, %v8737_v62 }
 0x5fc   :  { %v8890_v51 = vrot.slane %v8792_v28, %v15317_v26  ;;  %v8886_v19 = vrot.slane %v8792_v28, %v15318_v50  ;;  %v8894_v29 = vrot.slane %v8792_v28, %v11159_v49  ;;  %v8898_v24 = vrot.slane %v8792_v28, %v15319_v59 }
 0x5fd   :  { %v8902_v52 = vrot.slane %v8792_v28, %v11649_v20  ;;  %v8906_v63 = vrot.slane %v8792_v28, %v11544_v47  ;;  %v8910_v55 = vrot.slane %v8792_v28, %v15278_v53  ;;  %v8914_v16 = vrot.slane %v8792_v28, %v15267_v60 }
 0x5fe   :  { %8917 = vrot.lane.b32.xlu0 %v8890_v51, %s10432_s4  ;;  %8915 = vrot.lane.b32.xlu1 %v8886_v19, %s10432_s4  ;;  %v8741_v12 = vadd.f32 %v8740_v58, %v8739_v23  ;;  %v8716_v50 = vrot.slane %v8695_v46, %v11649_v20  ;;  %v8742_v26 = vsel %vm15344_vm3, %v8712_v44, 0.0  ;;  %v8746_v49 = vsel %vm15346_vm6, %v8720_v14, 0.0  ;;  %vm15354_vm3 = vmmov %vm15305_vm0 }
 0x5ff   :  { %v8728_v59 = vrot.slane %v8695_v46, %v15267_v60  ;;  %vm15356_vm6 = vmmov %vm15305_vm0 }
 0x600   :  { %v8743_v4 = vadd.f32 %v8742_v26, %v8741_v12  ;;  %v8744_v10 = vsel %vm15345_vm5, %v8716_v50, 0.0  ;;  %vm15355_vm5 = vmmov %vm15305_vm0 }
 0x601   :  { %v8750_v20 = vsel %vm15348_vm15, %v8728_v59, 0.0  ;;  %vm15358_vm15 = vmmov %vm15305_vm0 }
 0x602   :  { %8826 = vrot.lane.b32.xlu0 %v8797_v41, %s10433_s5  ;;  %8919 = vrot.lane.b32.xlu1 %v8894_v29, %s10432_s4  ;;  %v8745_v30 = vadd.f32 %v8744_v10, %v8743_v4 }
 0x604   :  { %v8747_v40 = vadd.f32 %v8746_v49, %v8745_v30 }
 0x606   :  { %8830 = vrot.lane.b32.xlu0 %v8805_v48, %s10433_s5  ;;  %8921 = vrot.lane.b32.xlu1 %v8898_v24, %s10432_s4  ;;  %v8749_v45 = vadd.f32 %v8748_v43, %v8747_v40 }
 0x608   :  { %v8751_v32 = vadd.f32 %v8750_v20, %v8749_v45 }
 0x60a   :  { %8832 = vrot.lane.b32.xlu0 %v8809_v34, %s10433_s5  ;;  %8923 = vrot.lane.b32.xlu1 %v8902_v52, %s10432_s4 }
 0x60e   :  { %8834 = vrot.lane.b32.xlu0 %v8813_v3, %s10433_s5  ;;  %8828 = vrot.lane.b32.xlu1 %v8801_v42, %s10433_s5 }
 0x612   :  { %8836 = vrot.lane.b32.xlu0 %v8817_v27, %s10433_s5  ;;  %8925 = vrot.lane.b32.xlu1 %v8906_v63, %s10432_s4 }
 0x616   :  { %8838 = vrot.lane.b32.xlu0 %v8821_v36, %s10433_s5  ;;  %8927 = vrot.lane.b32.xlu1 %v8910_v55, %s10432_s4 }
 0x61a   :  { %8840 = vrot.lane.b32.xlu0 %v8825_v13, %s10433_s5  ;;  %8929 = vrot.lane.b32.xlu1 %v8914_v16, %s10432_s4 }
 0x639   :  { %8752 = vadd.xlane.f32.xlu0 %v8751_v32 }
 0x670   :  { %v8918_v31 = vpop.permute.xlu0 %8917  ;;  %v8916_v38 = vpop.permute.xlu1 %8915 }
 0x671   :  { %v8931_v17 = vsel %vm8616_vm12, %v8916_v38, %v8918_v31 }
 0x672   :  { %v8946_v19 = vsel %vm15351_vm14, %v8931_v17, 0.0  ;;  %vm15367_vm14 = vcmask 1046528  }
 0x674   :  { %v8827_v47 = vpop.permute.xlu0 %8826  ;;  %v8920_v18 = vpop.permute.xlu1 %8919 }
 0x675   :  { %v8932_v61 = vsel %vm8616_vm12, %v8918_v31, %v8920_v18 }
 0x676   :  { %v8947_v5 = vsel %vm15349_vm11, %v8932_v61, 0.0  ;;  %vm15359_vm11 = vmmov %vm15305_vm0 }
 0x677   :  { %v8948_v34 = vadd.f32 %v8947_v5, %v8946_v19  ;;  %v8984_v19 = vrot.slane %v14836_v11, 1 }
 0x678   :  { %v8831_v1 = vpop.permute.xlu0 %8830  ;;  %v8922_v22 = vpop.permute.xlu1 %8921 }
 0x679   :  { %v8933_v9 = vsel %vm8616_vm12, %v8920_v18, %v8922_v22 }
 0x67a   :  { %v8949_v41 = vsel %vm15352_vm1, %v8933_v9, 0.0 }
 0x67b   :  { %v8950_v63 = vadd.f32 %v8949_v41, %v8948_v34  ;;  %v9002_v34 = vrot.slane %v13606_v2, 6 }
 0x67c   :  { %v8833_v37 = vpop.permute.xlu0 %8832  ;;  %v8924_v53 = vpop.permute.xlu1 %8923 }
 0x67d   :  { %v8844_v21 = vsel %vm8525_vm4, %v8831_v1, %v8833_v37  ;;  %v8934_v28 = vsel %vm8616_vm12, %v8922_v22, %v8924_v53 }
 0x67e   :  { %v8860_v29 = vsel %vm15353_vm9, %v8844_v21, 0.0  ;;  %v8951_v57 = vsel %vm15354_vm3, %v8934_v28, 0.0  ;;  %v8977_v28 = vrot.slane %v13606_v2, 2 }
 0x67f   :  { %v8952_v35 = vadd.f32 %v8951_v57, %v8950_v63 }
 0x680   :  { %v8835_v60 = vpop.permute.xlu0 %8834  ;;  %v8829_v56 = vpop.permute.xlu1 %8828 }
 0x681   :  { %v8842_v25 = vsel %vm8525_vm4, %v8827_v47, %v8829_v56  ;;  %v8843_v8 = vsel %vm8525_vm4, %v8829_v56, %v8831_v1  ;;  %v8845_v39 = vsel %vm8525_vm4, %v8833_v37, %v8835_v60 }
 0x682   :  { %v8857_v0 = vsel %vm15350_vm13, %v8842_v25, 0.0  ;;  %v8858_v15 = vsel %vm15305_vm0, %v8843_v8, 0.0  ;;  %v8862_v27 = vsel %vm15355_vm5, %v8845_v39, 0.0  ;;  %vm15360_vm13 = vmmov %vm15305_vm0  ;;  %v8979_v39 = vrot.slane %v14836_v11, 2 }
 0x683   :  { %v8859_v51 = vadd.f32 %v8858_v15, %v8857_v0 }
 0x684   :  { %v8837_v48 = vpop.permute.xlu0 %8836  ;;  %v8926_v24 = vpop.permute.xlu1 %8925 }
 0x685   :  { %v8861_v52 = vadd.f32 %v8860_v29, %v8859_v51  ;;  %v8846_v3 = vsel %vm8525_vm4, %v8835_v60, %v8837_v48  ;;  %v8935_v42 = vsel %vm8616_vm12, %v8924_v53, %v8926_v24  ;;  %v8982_v51 = vrot.slane %v13606_v2, 1 }
 0x686   :  { %v8864_v36 = vsel %vm15356_vm6, %v8846_v3, 0.0  ;;  %v8953_v55 = vsel %vm15357_vm8, %v8935_v42, 0.0  ;;  %v9009_v3 = vrot.slane %v13606_v2, 4  ;;  %v9011_v42 = vrot.slane %v14836_v11, 4 }
 0x687   :  { %v8863_v46 = vadd.f32 %v8862_v27, %v8861_v52  ;;  %v8954_v44 = vadd.f32 %v8953_v55, %v8952_v35  ;;  %v9004_v52 = vrot.slane %v14836_v11, 6 }
 0x688   :  { %v8839_v13 = vpop.permute.xlu0 %8838  ;;  %v8928_v16 = vpop.permute.xlu1 %8927 }
 0x689   :  { %v8865_v54 = vadd.f32 %v8864_v36, %v8863_v46  ;;  %v8847_v62 = vsel %vm8525_vm4, %v8837_v48, %v8839_v13  ;;  %v8936_v7 = vsel %vm8616_vm12, %v8926_v24, %v8928_v16  ;;  %v8994_v48 = vrot.slane %v13606_v2, 3 }
 0x68a   :  { %v8866_v33 = vsel %vm15358_vm15, %v8847_v62, 0.0  ;;  %v8955_v23 = vsel %vm15359_vm11, %v8936_v7, 0.0  ;;  %v8996_v24 = vrot.slane %v14836_v11, 3  ;;  %v9021_v62 = vrot.slane %v14836_v11, 5 }
 0x68b   :  { %v8867_v50 = vadd.f32 %v8866_v33, %v8865_v54  ;;  %v8956_v26 = vadd.f32 %v8955_v23, %v8954_v44  ;;  %v9019_v54 = vrot.slane %v13606_v2, 5  ;;  %v9043_v33 = vrot.slane %v13606_v2, 7 }
 0x68c   :  { %v8841_v58 = vpop.permute.xlu0 %8840  ;;  %v8930_v12 = vpop.permute.xlu1 %8929  ;;  %v9045_v23 = vrot.slane %v14836_v11, 7 }
 0x68d   :  { %v8848_v4 = vsel %vm8525_vm4, %v8839_v13, %v8841_v58  ;;  %v8937_v14 = vsel %vm8616_vm12, %v8928_v16, %v8930_v12  ;;  %v8870_v40 = vsel %vm8554_vm10, %v8841_v58, 0.0  ;;  %v8959_v59 = vsel %vm8645_vm2, %v8930_v12, 0.0  ;;  %vm15361_vm12 = vmmov %vm15305_vm0 }
 0x68e   :  { %v8868_v10 = vsel %vm15360_vm13, %v8848_v4, 0.0  ;;  %v8957_v30 = vsel %vm15305_vm0, %v8937_v14, 0.0  ;;  %vm15363_vm4 = vcmask 1041408   ;;  %vm15364_vm10 = vcmask 1043456  }
 0x68f   :  { %v8869_v6 = vadd.f32 %v8868_v10, %v8867_v50  ;;  %v8958_v49 = vadd.f32 %v8957_v30, %v8956_v26  ;;  %vm15365_vm2 = vcmask 1044480  }
 0x691   :  { %v8871_v43 = vadd.f32 %v8870_v40, %v8869_v6  ;;  %v8960_v45 = vadd.f32 %v8959_v59, %v8958_v49 }
 0x693   :  { %8872 = vadd.xlane.f32.xlu1 %v8871_v43  ;;  %8961 = vadd.xlane.f32.xlu0 %v8960_v45 }
 0x6c2   :  { %v8753_v20 = vpop.xlane.xlu0 %8752 }
 0x6c3   :  { %v8754_v32 = vrot.slane %v8753_v20, 4 }
 0x6c5   :  { %v8755_v31 = vadd.f32 %v8754_v32, %v8753_v20 }
 0x6c7   :  { %v8756_v38 = vrot.slane %v8755_v31, 2 }
 0x6c9   :  { %v8757_v47 = vadd.f32 %v8756_v38, %v8755_v31 }
 0x6cb   :  { %v8758_v18 = vrot.slane %v8757_v47, 1 }
 0x6cd   :  { %v8759_v1 = vadd.f32 %v8758_v18, %v8757_v47 }
 0x6cf   :  { %10081 = vpush %v8759_v1 }
 0x700   :  { %s14971_s29 = spop %10081 }
 0x71c   :  { %v8873_v22 = vpop.xlane.xlu1 %8872  ;;  %v8962_v37 = vpop.xlane.xlu0 %8961 }
 0x71d   :  { %v8874_v53 = vrot.slane %v8873_v22, 4  ;;  %v8963_v61 = vrot.slane %v8962_v37, 4 }
 0x71f   :  { %v8875_v17 = vadd.f32 %v8874_v53, %v8873_v22  ;;  %v8964_v60 = vadd.f32 %v8963_v61, %v8962_v37 }
 0x721   :  { %v8876_v56 = vrot.slane %v8875_v17, 2  ;;  %v8965_v9 = vrot.slane %v8964_v60, 2 }
 0x723   :  { %v8877_v21 = vadd.f32 %v8876_v56, %v8875_v17  ;;  %v8966_v25 = vadd.f32 %v8965_v9, %v8964_v60 }
 0x725   :  { %v8878_v8 = vrot.slane %v8877_v21, 1  ;;  %v8967_v5 = vrot.slane %v8966_v25, 1 }
 0x727   :  { %v8879_v0 = vadd.f32 %v8878_v8, %v8877_v21  ;;  %v8968_v15 = vadd.f32 %v8967_v5, %v8966_v25 }
 0x729   :  { %10083 = vpush %v8879_v0 }
 0x72a   :  { %10085 = vpush %v8968_v15 }
 0x72b   :  { %10087 = vpush %v13606_v2 }
 0x72c   :  { %10089 = vpush %v14836_v11 }
 0x72d   :  { %10091 = vpush %v8977_v28 }
 0x72e   :  { %10093 = vpush %v8979_v39 }
 0x72f   :  { %10095 = vpush %v8982_v51 }
 0x730   :  { %10097 = vpush %v8984_v19 }
 0x75a   :  { %s10084_s30 = spop %10083 }
 0x75b   :  { %s14976_s2 = sadd.f32 %s10084_s30, %s8657_s9  ;;  %s14978_s3 = spop %10085 }
 0x75c   :  { %s10088_s4 = spop %10087 }
 0x75d   :  { %s8970_s5 = sadd.f32 %s14978_s3, %s14976_s2  ;;  %s10090_s10 = spop %10089 }
 0x75e   :  { %s8973_s11 = sadd.f32 %s10090_s10, %s10088_s4  ;;  %s10092_s12 = spop %10091 }
 0x75f   :  { %s10094_s0 = spop %10093 }
 0x760   :  { %s14982_s14 = sadd.f32 %s10094_s0, %s10092_s12  ;;  %s10096_s15 = spop %10095 }
 0x761   :  { %s10098_s17 = spop %10097  ;;  %s8976_s8 = smul.f32 0.00048828125, %s8973_s11 }
 0x762   :  { %v8987_v41 = vstv %s14982_s14  ;;  %s8986_s7 = sadd.f32 %s10098_s17, %s10096_s15  ;;  %s9040_s24 = smul.f32 8.0, %s14982_s14 }
 0x763   :  { %10367 = vrcp.f32 %v8987_v41  ;;  %s9053_s20 = smul.f32 0.05, %s8976_s8  ;;  %v9064_v57 = vstv %s8976_s8  ;;  %s9029_s12 = sadd.f32 %s14865_s13, %s13930_s16 }
 0x764   :  { %p14995_p7 = scmp.eq.f32.partialorder %s9040_s24, 0.0  ;;  %s8761_s8 = sadd.f32 %s14971_s29, %s14857_s6 }
 0x765   :  { %v9030_v13 = vstv %s9029_s12 }
 0x766   :  { %s15377_s24 = smov (%p14995_p7, %s9040_s24), 1.0 }
 0x767   :  { %v9048_v16 = vstv %s15377_s24 }
 0x770   :  { %v10368_v29 = vpop.eup %10367 }
 0x771   :  { %10099 = vpush %v10368_v29 }
 0x772   :  { %10101 = vpush %v8994_v48 }
 0x773   :  { %10103 = vpush %v8996_v24 }
 0x774   :  { %10105 = vpush %v9002_v34 }
 0x775   :  { %10107 = vpush %v9004_v52 }
 0x776   :  { %10109 = vpush %v9009_v3 }
 0x777   :  { %10111 = vpush %v9011_v42 }
 0x7a2   :  { %s10100_s9 = spop %10099 }
 0x7a3   :  { %s8990_s18 = smul.f32 %s10100_s9, %s8986_s7  ;;  %s10102_s19 = spop %10101 }
 0x7a4   :  { %s10104_s21 = spop %10103 }
 0x7a5   :  { %s8993_s22 = smul.f32 0.33333334, %s8990_s18  ;;  %s8998_s23 = sadd.f32 %s10104_s21, %s10102_s19 }
 0x7a6   :  { %s10106_s25 = spop %10105 }
 0x7a7   :  { %s9054_s26 = sadd.f32 %s9053_s20, %s8993_s22  ;;  %v9065_v27 = vstv %s8993_s22  ;;  %s9001_s27 = smul.f32 0.00048828125, %s8998_s23 }
 0x7a8   :  { %v9072_v63 = vsel %vm15361_vm12, %v9064_v57, %v9065_v27  ;;  %s10108_s28 = spop %10107 }
 0x7a9   :  { %s9055_s30 = smul.f32 0.005, %s9001_s27  ;;  %v9066_v46 = vstv %s9001_s27  ;;  %s14993_s4 = sadd.f32 %s10108_s28, %s10106_s25 }
 0x7aa   :  { %v9073_v36 = vsel %vm15363_vm4, %v9072_v63, %v9066_v46  ;;  %s10110_s16 = spop %10109 }
 0x7ab   :  { %s15000_s11 = sadd.f32 %s9055_s30, %s9054_s26  ;;  %p9007_p8 = scmp.eq.f32.partialorder %s14993_s4, 0.0 }
 0x7ac   :  { %s10112_s13 = spop %10111 }
 0x7ad   :  { %s9008_s0 = scalar_select %p9007_p8, 1.0, %s14993_s4 }
 0x7ae   :  { %s9013_s14 = sadd.f32 %s10112_s13, %s10110_s16 }
 0x7af   :  { %v9014_v55 = vstv %s9008_s0 }
 0x7b0   :  { %10369 = vrcp.f32 %v9014_v55 }
 0x7b1   :  { %10371 = vrcp.f32 %v9030_v13 }
 0x7b2   :  { %10373 = vrcp.f32 %v9048_v16 }
 0x7bd   :  { %v10370_v35 = vpop.eup %10369 }
 0x7be   :  { %10113 = vpush %v10370_v35  ;;  %v10372_v7 = vpop.eup %10371 }
 0x7bf   :  { %10115 = vpush %v9019_v54  ;;  %v10374_v44 = vpop.eup %10373 }
 0x7c0   :  { %10117 = vpush %v9021_v62 }
 0x7c1   :  { %10119 = vpush %v10372_v7 }
 0x7c2   :  { %10121 = vpush %v9043_v33 }
 0x7c3   :  { %10123 = vpush %v9045_v23 }
 0x7c4   :  { %10125 = vpush %v10374_v44 }
 0x7ef   :  { %s10114_s15 = spop %10113 }
 0x7f0   :  { %s9017_s17 = smul.f32 %s10114_s15, %s9013_s14  ;;  %s10116_s7 = spop %10115 }
 0x7f1   :  { %s10118_s9 = spop %10117 }
 0x7f2   :  { %s15379_s17 = smov (%p9007_p8, %s9017_s17), 0.0  ;;  %s9023_s18 = sadd.f32 %s10118_s9, %s10116_s7 }
 0x7f3   :  { %s10120_s19 = spop %10119  ;;  %v9067_v2 = vstv %s15379_s17 }
 0x7f4   :  { %s9033_s20 = smul.f32 %s10120_s19, %s8761_s8  ;;  %s10122_s21 = spop %10121  ;;  %v9074_v11 = vsel %vm563_vm7, %v9073_v36, %v9067_v2  ;;  %vm15366_vm7 = vcmask 1045504  }
 0x7f5   :  { %s9027_s22 = smul.f32 %s10114_s15, %s9023_s18  ;;  %s10124_s23 = spop %10123 }
 0x7f6   :  { %s9037_s24 = smul.f32 %s10120_s19, %s8970_s5  ;;  %s9047_s25 = sadd.f32 %s10124_s23, %s10122_s21 }
 0x7f7   :  { %s15381_s22 = smov (%p9007_p8, %s9027_s22), 0.0  ;;  %s10126_s26 = spop %10125 }
 0x7f8   :  { %s9038_s6 = smul.f32 0.5, %s9037_s24  ;;  %s9057_s29 = sadd.f32 %s15381_s22, %s15379_s17  ;;  %v9068_v58 = vstv %s15381_s22 }
 0x7f9   :  { %v9075_v12 = vsel %vm15364_vm10, %v9074_v11, %v9068_v58  ;;  %s9051_s28 = smul.f32 %s10126_s26, %s9047_s25  ;;  %s10434_s5 = smov [#allocation5]  }
 0x7fa   :  { %s9039_s27 = sadd.f32 %s9038_s6, %s9033_s20  ;;  %s9058_s30 = smul.f32 0.05, %s9057_s29 }
 0x7fb   :  { %s15383_s28 = smov (%p14995_p7, %s9051_s28), 0.0  ;;  %s9086_s4 = sshll.u32 %s10434_s5, 4  ;;  %s9087_s4 = int_to_ptr.vmem [resolvable:$true] %s9086_s4 }
 0x7fc   :  { %v9069_v50 = vstv %s9039_s27  ;;  %s9059_s12 = sadd.f32 %s9058_s30, %s15000_s11  ;;  %s9060_s0 = smul.f32 0.1, %s9039_s27  ;;  %v9070_v4 = vstv %s15383_s28 }
 0x7fd   :  { %v9076_v26 = vsel %vm15365_vm2, %v9075_v12, %v9069_v50  ;;  %s9062_s3 = smul.f32 0.1, %s15383_s28  ;;  %s10399_s13 = scalar_lea.vmem %s9087_s4, 128 }
 0x7fe   :  { %s9061_s2 = sadd.f32 %s9060_s0, %s9059_s12  ;;  %v9077_v10 = vsel %vm15366_vm7, %v9076_v26, %v9070_v4  ;;  %p10400_p9 = scmp.ne.s32.totalorder %s9087_s4, %s10399_s13 }
 0x7ff   :  { %p10404_p10 = scmp.lt.s32.totalorder %s9087_s4, %s9087_s4  ;;  %p10405_p11 = scmp.lt.s32.totalorder %s10399_s13, %s10399_s13 }
 0x800   :  { %s9063_s16 = sadd.f32 %s9062_s3, %s9061_s2 }
 0x801   :  { %p10406_p12 = por %p10405_p11, %p10404_p10 }
 0x802   :  { %v9071_v14 = vstv %s9063_s16 }
 0x803   :  { %v9078_v30 = vsel %vm15367_vm14, %v9077_v10, %v9071_v14  ;;  %p10407_p13 = pnand %p10406_p12, %p10400_p9 }
 0x804   :  { %9079 = vst [vmem:[#allocation5] sm:$0xff] %v9078_v30 }
 0x805   :  { %10410 = shalt.err (!%p10407_p13)
}
 0x806   :  { %9089 = dma.vmem_to_hbm [thread:$0]  %s9087_s4, 128, %s15035_s1, [#allocation4]  }
 0x807   :  { %10421 = dma.done.wait [#allocation4], 128  }
 0x808   :  { %10422 = vsyncadd [#allocation4], 4294967168 }
 0x809   :  { %9093 = vsyncpa [#allocation3], 1 }
 0x80a   :  { %9094 = vsyncpa [#allocation4], 1 }

</bundles_post_ra>
